<compile_context>
chip_gen: v7x
topology: tpu7x:2x2x1
jax: 0.10.0
libtpu: 0.0.40
codegen_flags: <defaults>
</compile_context>

<pallas_src>
import functools

import jax
import jax.numpy as jnp
from jax.experimental import pallas as pl
from jax.experimental.pallas import tpu as pltpu


def _deep_shap_fusion_kernel(
    feat_ref,                         # [M, TB, D]  (modality-major layout)
    wA_ref, bA_ref,                   # [D, D+2H], [1, D+2H] = [w1|wg1|wn1], [b1|bg1|bn1]
    w1_ref, b1_ref,                   # projection first layer (re-used for `fused`)
    w2_ref, b2_ref,                   # projection second layer: Linear(D, O)
    wg2_ref, bg2_ref,                 # gate second layer: Linear(H, M) -> Sigmoid
    wn2_ref, bn2_ref,                 # noise second layer: Linear(H, D)
    out_ref,                          # [(O + 2M), TB]  packed, lane-dense output
    stack_ref,                        # VMEM scratch [(M+1)*TB, D]
    *, num_modalities, hidden, out_dim,
):
    m = num_modalities
    h = hidden
    o = out_dim
    tb = feat_ref.shape[1]
    d = feat_ref.shape[2]

    # Per-modality slabs are dense [TB, D] tiles (modality = cheap leading axis).
    feats = [feat_ref[i] for i in range(m)]

    # Modality sum / mean: M plain VPU adds.
    sum_all = feats[0]
    for i in range(1, m):
        sum_all = sum_all + feats[i]
    global_repr = sum_all / float(m)                       # features.mean(dim=1)

    # --- Stage A: one big first-layer matmul ------------------------------
    # Rows   : [ global_repr | leave-one-out means (M of them) ]
    # Columns: [ w1 (projection hidden) | wg1 (gate hidden) | wn1 (noise hidden) ]
    # Slabs are written in place into VMEM scratch (no jnp.concatenate copy).
    stack_ref[0:tb, :] = global_repr
    for i in range(m):
        stack_ref[(i + 1) * tb:(i + 2) * tb, :] = (sum_all - feats[i]) / float(m - 1)

    hA = jnp.maximum(
        jnp.dot(stack_ref[...], wA_ref[...], preferred_element_type=jnp.float32)
        + bA_ref[...],
        0.0,
    )                                                      # [(M+1)*TB, D+2H]

    hp_mp = hA[:, 0:d]                 # relu(x @ w1 + b1) for mean + partials
    hg = hA[0:tb, d:d + h]             # relu(global @ wg1 + bg1)
    hn = hA[0:tb, d + h:d + 2 * h]     # relu(global @ wn1 + bn1)

    # --- gate + noise second layers ---------------------------------------
    gate = jax.nn.sigmoid(
        jnp.dot(hg, wg2_ref[...], preferred_element_type=jnp.float32) + bg2_ref[...]
    )                                                      # [TB, M]
    noise = (
        jnp.dot(hn, wn2_ref[...], preferred_element_type=jnp.float32) + bn2_ref[...]
    )                                                      # [TB, D]

    # --- weighted fusion: mean over (M gated modalities + 1 noise row) ----
    weighted = feats[0] * gate[:, 0:1]
    for i in range(1, m):
        weighted = weighted + feats[i] * gate[:, i:i + 1]
    fused = (weighted + noise) / float(m + 1)

    # --- projection of fused + second layer for everything ----------------
    hp_fused = jnp.maximum(
        jnp.dot(fused, w1_ref[...], preferred_element_type=jnp.float32) + b1_ref[...],
        0.0,
    )
    proj_mp = (
        jnp.dot(hp_mp, w2_ref[...], preferred_element_type=jnp.float32) + b2_ref[...]
    )                                                      # [(M+1)*TB, O]
    final = (
        jnp.dot(hp_fused, w2_ref[...], preferred_element_type=jnp.float32) + b2_ref[...]
    )                                                      # [TB, O]

    # --- SHAP deltas (static, block_b-aligned row slices of proj_mp) ------
    base = proj_mp[0:tb]               # projection(mean); detach() is a forward no-op
    deltas = []
    for i in range(m):
        p_out = proj_mp[(i + 1) * tb:(i + 2) * tb]
        deltas.append(jnp.mean(jnp.abs(base - p_out), axis=1, keepdims=True))
    contrib = jnp.concatenate(deltas, axis=1)              # [TB, M]

    # --- lane-dense packed output: every store has lane width TB ----------
    # Transposes land on the XLU (which has slack here); stores are unmasked.
    out_ref[0:o, :] = final.T                              # [O,  TB]
    out_ref[o:o + m, :] = gate.T                           # [M,  TB]
    out_ref[o + m:o + 2 * m, :] = contrib.T                # [M,  TB]


def deep_shap_fusion(features, params, *, block_b=None):
    """features: [B, M, D] f32.

    Returns (final_output [B, O], learned_weights [B, M], contrib_scores [B, M]).
    """
    B, M, D = features.shape
    assert M >= 2, "DeepSHAPFusion needs at least 2 modalities (leave-one-out mean)"
    O = params["w2"].shape[1]
    H = params["wg1"].shape[1]

    # Tile selection: one grid step (no pipeline overhead) for small batches;
    # large lane-dense tiles (multiple of 128) for big batches.
    if block_b is None:
        if B <= 2048:
            block_b = B
        else:
            block_b = next((c for c in (2048, 1024, 512, 256, 128) if B % c == 0), B)
    block_b = min(block_b, B)
    assert B % block_b == 0
    if block_b != B:
        assert block_b % 128 == 0, (
            "block_b must be a multiple of 128 (lane-dense outputs, (8,128) tiles)"
        )
    num_steps = B // block_b

    # Wrapper-side layout plumbing (cheap XLA ops; keeps kernel tiles dense):
    feats_mbd = jnp.transpose(features, (1, 0, 2))                            # [M, B, D]
    wA = jnp.concatenate([params["w1"], params["wg1"], params["wn1"]], axis=1)  # [D, D+2H]
    bA = jnp.concatenate([params["b1"], params["bg1"], params["bn1"]], axis=1)  # [1, D+2H]

    rows_out = O + 2 * M
    const2d = lambda shape: pl.BlockSpec(shape, lambda b: (0, 0))
    in_specs = [
        pl.BlockSpec((M, block_b, D), lambda b: (0, b, 0)),   # features
        const2d((D, D + 2 * H)), const2d((1, D + 2 * H)),     # wA, bA
        const2d((D, D)), const2d((1, D)),                     # w1, b1
        const2d((D, O)), const2d((1, O)),                     # w2, b2
        const2d((H, M)), const2d((1, M)),                     # wg2, bg2
        const2d((H, D)), const2d((1, D)),                     # wn2, bn2
    ]
    out_spec = pl.BlockSpec((rows_out, block_b), lambda b: (0, b))

    grid_spec = pltpu.PrefetchScalarGridSpec(
        num_scalar_prefetch=0,
        grid=(num_steps,),
        in_specs=in_specs,
        out_specs=out_spec,
        scratch_shapes=[pltpu.VMEM(((M + 1) * block_b, D), jnp.float32)],
    )

    kernel = functools.partial(
        _deep_shap_fusion_kernel, num_modalities=M, hidden=H, out_dim=O
    )

    packed = pl.pallas_call(
        kernel,
        out_shape=jax.ShapeDtypeStruct((rows_out, B), jnp.float32),
        grid_spec=grid_spec,
        compiler_params=pltpu.CompilerParams(
            dimension_semantics=("arbitrary",) if num_steps == 1 else ("parallel",)
        ),
    )(
        feats_mbd,
        wA, bA,
        params["w1"], params["b1"],
        params["w2"], params["b2"],
        params["wg2"], params["bg2"],
        params["wn2"], params["bn2"],
    )

    # Cheap wrapper-side un-packing of the lane-dense slab.
    final = packed[0:O, :].T
    gate = packed[O:O + M, :].T
    contrib = packed[O + M:O + 2 * M, :].T
    return final, gate, contrib


def _reference(features, params):
    """Pure-JAX reference mirroring the PyTorch forward exactly."""
    B, M, D = features.shape

    def projection(x):
        h = jnp.maximum(x @ params["w1"] + params["b1"][0], 0.0)
        return h @ params["w2"] + params["b2"][0]

    global_repr = features.mean(axis=1)
    base = projection(global_repr)
    deltas = []
    for i in range(M):
        keep = jnp.array([j for j in range(M) if j != i])
        partial = features[:, keep, :].mean(axis=1)
        deltas.append(jnp.mean(jnp.abs(base - projection(partial)), axis=1, keepdims=True))
    contrib = jnp.concatenate(deltas, axis=1)

    hg = jnp.maximum(global_repr @ params["wg1"] + params["bg1"][0], 0.0)
    gate = jax.nn.sigmoid(hg @ params["wg2"] + params["bg2"][0])

    hn = jnp.maximum(global_repr @ params["wn1"] + params["bn1"][0], 0.0)
    noise = hn @ params["wn2"] + params["bn2"][0]

    weighted = features * gate[:, :, None]
    fused = jnp.concatenate([weighted, noise[:, None, :]], axis=1).mean(axis=1)
    return projection(fused), gate, contrib


def _init_params(key, D, O, M):
    H = D // 2
    shapes = {
        "w1": (D, D), "b1": (1, D),
        "w2": (D, O), "b2": (1, O),
        "wg1": (D, H), "bg1": (1, H),
        "wg2": (H, M), "bg2": (1, M),
        "wn1": (D, H), "bn1": (1, H),
        "wn2": (H, D), "bn2": (1, D),
    }
    params = {}
    for name, shape in shapes.items():
        key, sub = jax.random.split(key)
        params[name] = (0.1 * jax.random.normal(sub, shape)).astype(jnp.float32)
    return params


if __name__ == "__main__":
    # Small-but-representative shapes.  Defaults collapse to grid=(1,),
    # block_b=B=256 (single TensorCore step; no pipeline overhead).
    B, M, D, O = 256, 3, 32, 16
    key = jax.random.PRNGKey(0)
    k_feat, k_param = jax.random.split(key)

    features = jax.random.normal(k_feat, (B, M, D), dtype=jnp.float32)
    params = _init_params(k_param, D, O, M)

    final_out, gate_out, contrib_out = deep_shap_fusion(features, params)
    jax.block_until_ready((final_out, gate_out, contrib_out))

    ref_final, ref_gate, ref_contrib = _reference(features, params)
    assert jnp.allclose(final_out, ref_final, atol=1e-5, rtol=1e-5)
    assert jnp.allclose(gate_out, ref_gate, atol=1e-5, rtol=1e-5)
    assert jnp.allclose(contrib_out, ref_contrib, atol=1e-5, rtol=1e-5)

    print("KERNEL_OK")
</pallas_src>

<mosaic_0001>
module attributes {stable_mosaic.version = 11 : i64} {
  func.func @_deep_shap_fusion_kernel(%arg0: i32, %arg1: memref<3x256x32xf32, #tpu.memory_space<vmem>>, %arg2: memref<32x64xf32, #tpu.memory_space<vmem>>, %arg3: memref<1x64xf32, #tpu.memory_space<vmem>>, %arg4: memref<32x32xf32, #tpu.memory_space<vmem>>, %arg5: memref<1x32xf32, #tpu.memory_space<vmem>>, %arg6: memref<32x16xf32, #tpu.memory_space<vmem>>, %arg7: memref<1x16xf32, #tpu.memory_space<vmem>>, %arg8: memref<16x3xf32, #tpu.memory_space<vmem>>, %arg9: memref<1x3xf32, #tpu.memory_space<vmem>>, %arg10: memref<16x32xf32, #tpu.memory_space<vmem>>, %arg11: memref<1x32xf32, #tpu.memory_space<vmem>>, %arg12: memref<22x256xf32, #tpu.memory_space<vmem>>, %arg13: memref<1024x32xf32, #tpu.memory_space<vmem>>) attributes {dimension_semantics = [#tpu.dimension_semantics<arbitrary>], iteration_bounds = array<i64: 1>, scalar_prefetch = 0 : i64, scratch_operands = 1 : i64, tpu.core_type = #tpu.core_type<tc>, window_params = [{transform_indices = @transform_0, window_bounds = array<i64: 3, 256, 32>}, {pipeline_mode = #tpu.pipeline_mode<synchronous>, transform_indices = @transform_1, window_bounds = array<i64: 32, 64>}, {pipeline_mode = #tpu.pipeline_mode<synchronous>, transform_indices = @transform_2, window_bounds = array<i64: 1, 64>}, {pipeline_mode = #tpu.pipeline_mode<synchronous>, transform_indices = @transform_3, window_bounds = array<i64: 32, 32>}, {pipeline_mode = #tpu.pipeline_mode<synchronous>, transform_indices = @transform_4, window_bounds = array<i64: 1, 32>}, {pipeline_mode = #tpu.pipeline_mode<synchronous>, transform_indices = @transform_5, window_bounds = array<i64: 32, 16>}, {pipeline_mode = #tpu.pipeline_mode<synchronous>, transform_indices = @transform_6, window_bounds = array<i64: 1, 16>}, {pipeline_mode = #tpu.pipeline_mode<synchronous>, transform_indices = @transform_7, window_bounds = array<i64: 16, 3>}, {pipeline_mode = #tpu.pipeline_mode<synchronous>, transform_indices = @transform_8, window_bounds = array<i64: 1, 3>}, {pipeline_mode = #tpu.pipeline_mode<synchronous>, transform_indices = @transform_9, window_bounds = array<i64: 16, 32>}, {pipeline_mode = #tpu.pipeline_mode<synchronous>, transform_indices = @transform_10, window_bounds = array<i64: 1, 32>}, {transform_indices = @transform_11, window_bounds = array<i64: 22, 256>}]} {
    %c0 = arith.constant 0 : index
    %c0_0 = arith.constant 0 : index
    %c0_1 = arith.constant 0 : index
    %0 = vector.load %arg1[%c0, %c0_0, %c0_1] : memref<3x256x32xf32, #tpu.memory_space<vmem>>, vector<1x256x32xf32>
    %1 = vector.shape_cast %0 : vector<1x256x32xf32> to vector<256x32xf32>
    %c1 = arith.constant 1 : index
    %c0_2 = arith.constant 0 : index
    %c0_3 = arith.constant 0 : index
    %2 = vector.load %arg1[%c1, %c0_2, %c0_3] : memref<3x256x32xf32, #tpu.memory_space<vmem>>, vector<1x256x32xf32>
    %3 = vector.shape_cast %2 : vector<1x256x32xf32> to vector<256x32xf32>
    %c2 = arith.constant 2 : index
    %c0_4 = arith.constant 0 : index
    %c0_5 = arith.constant 0 : index
    %4 = vector.load %arg1[%c2, %c0_4, %c0_5] : memref<3x256x32xf32, #tpu.memory_space<vmem>>, vector<1x256x32xf32>
    %5 = vector.shape_cast %4 : vector<1x256x32xf32> to vector<256x32xf32>
    %6 = arith.addf %1, %3 : vector<256x32xf32>
    %7 = arith.addf %6, %5 : vector<256x32xf32>
    %cst = arith.constant 3.000000e+00 : f32
    %8 = vector.broadcast %cst : f32 to vector<256x32xf32>
    %9 = arith.divf %7, %8 : vector<256x32xf32>
    %c0_6 = arith.constant 0 : index
    %c0_7 = arith.constant 0 : index
    %10 = vector.load %arg13[%c0_6, %c0_7] : memref<1024x32xf32, #tpu.memory_space<vmem>>, vector<256x32xf32>
    tpu.vector_store %arg13[%c0_6, %c0_7], %9 {strides = array<i32>} : memref<1024x32xf32, #tpu.memory_space<vmem>>, vector<256x32xf32>,
    %11 = arith.subf %7, %1 : vector<256x32xf32>
    %cst_8 = arith.constant 2.000000e+00 : f32
    %12 = vector.broadcast %cst_8 : f32 to vector<256x32xf32>
    %13 = arith.divf %11, %12 : vector<256x32xf32>
    %c256 = arith.constant 256 : index
    %c0_9 = arith.constant 0 : index
    %14 = vector.load %arg13[%c256, %c0_9] : memref<1024x32xf32, #tpu.memory_space<vmem>>, vector<256x32xf32>
    tpu.vector_store %arg13[%c256, %c0_9], %13 {strides = array<i32>} : memref<1024x32xf32, #tpu.memory_space<vmem>>, vector<256x32xf32>,
    %15 = arith.subf %7, %3 : vector<256x32xf32>
    %cst_10 = arith.constant 2.000000e+00 : f32
    %16 = vector.broadcast %cst_10 : f32 to vector<256x32xf32>
    %17 = arith.divf %15, %16 : vector<256x32xf32>
    %c512 = arith.constant 512 : index
    %c0_11 = arith.constant 0 : index
    %18 = vector.load %arg13[%c512, %c0_11] : memref<1024x32xf32, #tpu.memory_space<vmem>>, vector<256x32xf32>
    tpu.vector_store %arg13[%c512, %c0_11], %17 {strides = array<i32>} : memref<1024x32xf32, #tpu.memory_space<vmem>>, vector<256x32xf32>,
    %19 = arith.subf %7, %5 : vector<256x32xf32>
    %cst_12 = arith.constant 2.000000e+00 : f32
    %20 = vector.broadcast %cst_12 : f32 to vector<256x32xf32>
    %21 = arith.divf %19, %20 : vector<256x32xf32>
    %c768 = arith.constant 768 : index
    %c0_13 = arith.constant 0 : index
    %22 = vector.load %arg13[%c768, %c0_13] : memref<1024x32xf32, #tpu.memory_space<vmem>>, vector<256x32xf32>
    tpu.vector_store %arg13[%c768, %c0_13], %21 {strides = array<i32>} : memref<1024x32xf32, #tpu.memory_space<vmem>>, vector<256x32xf32>,
    %c0_14 = arith.constant 0 : index
    %c0_15 = arith.constant 0 : index
    %23 = vector.load %arg13[%c0_14, %c0_15] : memref<1024x32xf32, #tpu.memory_space<vmem>>, vector<1024x32xf32>
    %c0_16 = arith.constant 0 : index
    %c0_17 = arith.constant 0 : index
    %24 = vector.load %arg2[%c0_16, %c0_17] : memref<32x64xf32, #tpu.memory_space<vmem>>, vector<32x64xf32>
    %cst_18 = arith.constant dense<0.000000e+00> : vector<1024x64xf32>
    %25 = tpu.matmul %23, %24, %cst_18 {dimension_numbers = #tpu.dot_dimension_numbers<[1], [0], [0], [1], [0, 0, 1, 1], [], []>} : vector<1024x32xf32>, vector<32x64xf32>, vector<1024x64xf32> -> vector<1024x64xf32>
    %c0_19 = arith.constant 0 : index
    %c0_20 = arith.constant 0 : index
    %26 = vector.load %arg3[%c0_19, %c0_20] : memref<1x64xf32, #tpu.memory_space<vmem>>, vector<1x64xf32>
    %27 = vector.broadcast %26 : vector<1x64xf32> to vector<1024x64xf32>
    %28 = arith.addf %25, %27 : vector<1024x64xf32>
    %cst_21 = arith.constant 0.000000e+00 : f32
    %29 = vector.broadcast %cst_21 : f32 to vector<1024x64xf32>
    %30 = arith.maximumf %28, %29 : vector<1024x64xf32>
    %31 = vector.extract_strided_slice %30 {offsets = [0, 0], sizes = [1024, 32], strides = [1, 1]} : vector<1024x64xf32> to vector<1024x32xf32>
    %32 = vector.extract_strided_slice %30 {offsets = [0, 32], sizes = [256, 16], strides = [1, 1]} : vector<1024x64xf32> to vector<256x16xf32>
    %33 = vector.extract_strided_slice %30 {offsets = [0, 48], sizes = [256, 16], strides = [1, 1]} : vector<1024x64xf32> to vector<256x16xf32>
    %c0_22 = arith.constant 0 : index
    %c0_23 = arith.constant 0 : index
    %34 = vector.load %arg8[%c0_22, %c0_23] : memref<16x3xf32, #tpu.memory_space<vmem>>, vector<16x3xf32>
    %cst_24 = arith.constant dense<0.000000e+00> : vector<256x3xf32>
    %35 = tpu.matmul %32, %34, %cst_24 {dimension_numbers = #tpu.dot_dimension_numbers<[1], [0], [0], [1], [0, 0, 1, 1], [], []>} : vector<256x16xf32>, vector<16x3xf32>, vector<256x3xf32> -> vector<256x3xf32>
    %c0_25 = arith.constant 0 : index
    %c0_26 = arith.constant 0 : index
    %36 = vector.load %arg9[%c0_25, %c0_26] : memref<1x3xf32, #tpu.memory_space<vmem>>, vector<1x3xf32>
    %37 = vector.broadcast %36 : vector<1x3xf32> to vector<256x3xf32>
    %38 = arith.addf %35, %37 : vector<256x3xf32>
    %39 = arith.negf %38 : vector<256x3xf32>
    %40 = math.exp %39 : vector<256x3xf32>
    %cst_27 = arith.constant 1.000000e+00 : f32
    %41 = vector.broadcast %cst_27 : f32 to vector<256x3xf32>
    %42 = arith.addf %41, %40 : vector<256x3xf32>
    %43 = arith.divf %41, %42 : vector<256x3xf32>
    %c0_28 = arith.constant 0 : index
    %c0_29 = arith.constant 0 : index
    %44 = vector.load %arg10[%c0_28, %c0_29] : memref<16x32xf32, #tpu.memory_space<vmem>>, vector<16x32xf32>
    %cst_30 = arith.constant dense<0.000000e+00> : vector<256x32xf32>
    %45 = tpu.matmul %33, %44, %cst_30 {dimension_numbers = #tpu.dot_dimension_numbers<[1], [0], [0], [1], [0, 0, 1, 1], [], []>} : vector<256x16xf32>, vector<16x32xf32>, vector<256x32xf32> -> vector<256x32xf32>
    %c0_31 = arith.constant 0 : index
    %c0_32 = arith.constant 0 : index
    %46 = vector.load %arg11[%c0_31, %c0_32] : memref<1x32xf32, #tpu.memory_space<vmem>>, vector<1x32xf32>
    %47 = vector.broadcast %46 : vector<1x32xf32> to vector<256x32xf32>
    %48 = arith.addf %45, %47 : vector<256x32xf32>
    %49 = vector.extract_strided_slice %43 {offsets = [0, 0], sizes = [256, 1], strides = [1, 1]} : vector<256x3xf32> to vector<256x1xf32>
    %50 = vector.broadcast %49 : vector<256x1xf32> to vector<256x32xf32>
    %51 = arith.mulf %1, %50 : vector<256x32xf32>
    %52 = vector.extract_strided_slice %43 {offsets = [0, 1], sizes = [256, 1], strides = [1, 1]} : vector<256x3xf32> to vector<256x1xf32>
    %53 = vector.broadcast %52 : vector<256x1xf32> to vector<256x32xf32>
    %54 = arith.mulf %3, %53 : vector<256x32xf32>
    %55 = arith.addf %51, %54 : vector<256x32xf32>
    %56 = vector.extract_strided_slice %43 {offsets = [0, 2], sizes = [256, 1], strides = [1, 1]} : vector<256x3xf32> to vector<256x1xf32>
    %57 = vector.broadcast %56 : vector<256x1xf32> to vector<256x32xf32>
    %58 = arith.mulf %5, %57 : vector<256x32xf32>
    %59 = arith.addf %55, %58 : vector<256x32xf32>
    %60 = arith.addf %59, %48 : vector<256x32xf32>
    %cst_33 = arith.constant 4.000000e+00 : f32
    %61 = vector.broadcast %cst_33 : f32 to vector<256x32xf32>
    %62 = arith.divf %60, %61 : vector<256x32xf32>
    %c0_34 = arith.constant 0 : index
    %c0_35 = arith.constant 0 : index
    %63 = vector.load %arg4[%c0_34, %c0_35] : memref<32x32xf32, #tpu.memory_space<vmem>>, vector<32x32xf32>
    %cst_36 = arith.constant dense<0.000000e+00> : vector<256x32xf32>
    %64 = tpu.matmul %62, %63, %cst_36 {dimension_numbers = #tpu.dot_dimension_numbers<[1], [0], [0], [1], [0, 0, 1, 1], [], []>} : vector<256x32xf32>, vector<32x32xf32>, vector<256x32xf32> -> vector<256x32xf32>
    %c0_37 = arith.constant 0 : index
    %c0_38 = arith.constant 0 : index
    %65 = vector.load %arg5[%c0_37, %c0_38] : memref<1x32xf32, #tpu.memory_space<vmem>>, vector<1x32xf32>
    %66 = vector.broadcast %65 : vector<1x32xf32> to vector<256x32xf32>
    %67 = arith.addf %64, %66 : vector<256x32xf32>
    %cst_39 = arith.constant 0.000000e+00 : f32
    %68 = vector.broadcast %cst_39 : f32 to vector<256x32xf32>
    %69 = arith.maximumf %67, %68 : vector<256x32xf32>
    %c0_40 = arith.constant 0 : index
    %c0_41 = arith.constant 0 : index
    %70 = vector.load %arg6[%c0_40, %c0_41] : memref<32x16xf32, #tpu.memory_space<vmem>>, vector<32x16xf32>
    %cst_42 = arith.constant dense<0.000000e+00> : vector<1024x16xf32>
    %71 = tpu.matmul %31, %70, %cst_42 {dimension_numbers = #tpu.dot_dimension_numbers<[1], [0], [0], [1], [0, 0, 1, 1], [], []>} : vector<1024x32xf32>, vector<32x16xf32>, vector<1024x16xf32> -> vector<1024x16xf32>
    %c0_43 = arith.constant 0 : index
    %c0_44 = arith.constant 0 : index
    %72 = vector.load %arg7[%c0_43, %c0_44] : memref<1x16xf32, #tpu.memory_space<vmem>>, vector<1x16xf32>
    %73 = vector.broadcast %72 : vector<1x16xf32> to vector<1024x16xf32>
    %74 = arith.addf %71, %73 : vector<1024x16xf32>
    %c0_45 = arith.constant 0 : index
    %c0_46 = arith.constant 0 : index
    %75 = vector.load %arg6[%c0_45, %c0_46] : memref<32x16xf32, #tpu.memory_space<vmem>>, vector<32x16xf32>
    %cst_47 = arith.constant dense<0.000000e+00> : vector<256x16xf32>
    %76 = tpu.matmul %69, %75, %cst_47 {dimension_numbers = #tpu.dot_dimension_numbers<[1], [0], [0], [1], [0, 0, 1, 1], [], []>} : vector<256x32xf32>, vector<32x16xf32>, vector<256x16xf32> -> vector<256x16xf32>
    %c0_48 = arith.constant 0 : index
    %c0_49 = arith.constant 0 : index
    %77 = vector.load %arg7[%c0_48, %c0_49] : memref<1x16xf32, #tpu.memory_space<vmem>>, vector<1x16xf32>
    %78 = vector.broadcast %77 : vector<1x16xf32> to vector<256x16xf32>
    %79 = arith.addf %76, %78 : vector<256x16xf32>
    %80 = vector.extract_strided_slice %74 {offsets = [0, 0], sizes = [256, 16], strides = [1, 1]} : vector<1024x16xf32> to vector<256x16xf32>
    %81 = vector.extract_strided_slice %74 {offsets = [256, 0], sizes = [256, 16], strides = [1, 1]} : vector<1024x16xf32> to vector<256x16xf32>
    %82 = arith.subf %80, %81 : vector<256x16xf32>
    %83 = math.absf %82 : vector<256x16xf32>
    %cst_50 = arith.constant dense<0.000000e+00> : vector<256xf32>
    %84 = vector.multi_reduction <add>, %83, %cst_50 [1] : vector<256x16xf32> to vector<256xf32>
    %85 = vector.shape_cast %84 : vector<256xf32> to vector<256x1xf32>
    %cst_51 = arith.constant 1.600000e+01 : f32
    %86 = vector.broadcast %cst_51 : f32 to vector<256x1xf32>
    %87 = arith.divf %85, %86 : vector<256x1xf32>
    %88 = vector.extract_strided_slice %74 {offsets = [512, 0], sizes = [256, 16], strides = [1, 1]} : vector<1024x16xf32> to vector<256x16xf32>
    %89 = arith.subf %80, %88 : vector<256x16xf32>
    %90 = math.absf %89 : vector<256x16xf32>
    %cst_52 = arith.constant dense<0.000000e+00> : vector<256xf32>
    %91 = vector.multi_reduction <add>, %90, %cst_52 [1] : vector<256x16xf32> to vector<256xf32>
    %92 = vector.shape_cast %91 : vector<256xf32> to vector<256x1xf32>
    %cst_53 = arith.constant 1.600000e+01 : f32
    %93 = vector.broadcast %cst_53 : f32 to vector<256x1xf32>
    %94 = arith.divf %92, %93 : vector<256x1xf32>
    %95 = vector.extract_strided_slice %74 {offsets = [768, 0], sizes = [256, 16], strides = [1, 1]} : vector<1024x16xf32> to vector<256x16xf32>
    %96 = arith.subf %80, %95 : vector<256x16xf32>
    %97 = math.absf %96 : vector<256x16xf32>
    %cst_54 = arith.constant dense<0.000000e+00> : vector<256xf32>
    %98 = vector.multi_reduction <add>, %97, %cst_54 [1] : vector<256x16xf32> to vector<256xf32>
    %99 = vector.shape_cast %98 : vector<256xf32> to vector<256x1xf32>
    %cst_55 = arith.constant 1.600000e+01 : f32
    %100 = vector.broadcast %cst_55 : f32 to vector<256x1xf32>
    %101 = arith.divf %99, %100 : vector<256x1xf32>
    %102 = tpu.concatenate %87, %94, %101 in 1 : vector<256x1xf32>, vector<256x1xf32>, vector<256x1xf32> -> vector<256x3xf32>
    %103 = tpu.transpose %79, [1, 0] : vector<256x16xf32> -> vector<16x256xf32>
    %c0_56 = arith.constant 0 : index
    %c0_57 = arith.constant 0 : index
    %104 = vector.load %arg12[%c0_56, %c0_57] : memref<22x256xf32, #tpu.memory_space<vmem>>, vector<16x256xf32>
    tpu.vector_store %arg12[%c0_56, %c0_57], %103 {strides = array<i32>} : memref<22x256xf32, #tpu.memory_space<vmem>>, vector<16x256xf32>,
    %105 = tpu.transpose %43, [1, 0] : vector<256x3xf32> -> vector<3x256xf32>
    %c16 = arith.constant 16 : index
    %c0_58 = arith.constant 0 : index
    %106 = vector.load %arg12[%c16, %c0_58] : memref<22x256xf32, #tpu.memory_space<vmem>>, vector<3x256xf32>
    tpu.vector_store %arg12[%c16, %c0_58], %105 {strides = array<i32>} : memref<22x256xf32, #tpu.memory_space<vmem>>, vector<3x256xf32>,
    %107 = tpu.transpose %102, [1, 0] : vector<256x3xf32> -> vector<3x256xf32>
    %c19 = arith.constant 19 : index
    %c0_59 = arith.constant 0 : index
    %108 = vector.load %arg12[%c19, %c0_59] : memref<22x256xf32, #tpu.memory_space<vmem>>, vector<3x256xf32>
    tpu.vector_store %arg12[%c19, %c0_59], %107 {strides = array<i32>} : memref<22x256xf32, #tpu.memory_space<vmem>>, vector<3x256xf32>,
    return
  }
  func.func @transform_0(%arg0: i32) -> (i32, i32, i32) {
    %c0_i32 = arith.constant 0 : i32
    %c0_i32_0 = arith.constant 0 : i32
    %c0_i32_1 = arith.constant 0 : i32
    return %c0_i32, %arg0, %c0_i32_0 : i32, i32, i32
  }
  func.func @transform_1(%arg0: i32) -> (i32, i32) {
    %c0_i32 = arith.constant 0 : i32
    %c0_i32_0 = arith.constant 0 : i32
    %c0_i32_1 = arith.constant 0 : i32
    return %c0_i32, %c0_i32_0 : i32, i32
  }
  func.func @transform_2(%arg0: i32) -> (i32, i32) {
    %c0_i32 = arith.constant 0 : i32
    %c0_i32_0 = arith.constant 0 : i32
    %c0_i32_1 = arith.constant 0 : i32
    return %c0_i32, %c0_i32_0 : i32, i32
  }
  func.func @transform_3(%arg0: i32) -> (i32, i32) {
    %c0_i32 = arith.constant 0 : i32
    %c0_i32_0 = arith.constant 0 : i32
    %c0_i32_1 = arith.constant 0 : i32
    return %c0_i32, %c0_i32_0 : i32, i32
  }
  func.func @transform_4(%arg0: i32) -> (i32, i32) {
    %c0_i32 = arith.constant 0 : i32
    %c0_i32_0 = arith.constant 0 : i32
    %c0_i32_1 = arith.constant 0 : i32
    return %c0_i32, %c0_i32_0 : i32, i32
  }
  func.func @transform_5(%arg0: i32) -> (i32, i32) {
    %c0_i32 = arith.constant 0 : i32
    %c0_i32_0 = arith.constant 0 : i32
    %c0_i32_1 = arith.constant 0 : i32
    return %c0_i32, %c0_i32_0 : i32, i32
  }
  func.func @transform_6(%arg0: i32) -> (i32, i32) {
    %c0_i32 = arith.constant 0 : i32
    %c0_i32_0 = arith.constant 0 : i32
    %c0_i32_1 = arith.constant 0 : i32
    return %c0_i32, %c0_i32_0 : i32, i32
  }
  func.func @transform_7(%arg0: i32) -> (i32, i32) {
    %c0_i32 = arith.constant 0 : i32
    %c0_i32_0 = arith.constant 0 : i32
    %c0_i32_1 = arith.constant 0 : i32
    return %c0_i32, %c0_i32_0 : i32, i32
  }
  func.func @transform_8(%arg0: i32) -> (i32, i32) {
    %c0_i32 = arith.constant 0 : i32
    %c0_i32_0 = arith.constant 0 : i32
    %c0_i32_1 = arith.constant 0 : i32
    return %c0_i32, %c0_i32_0 : i32, i32
  }
  func.func @transform_9(%arg0: i32) -> (i32, i32) {
    %c0_i32 = arith.constant 0 : i32
    %c0_i32_0 = arith.constant 0 : i32
    %c0_i32_1 = arith.constant 0 : i32
    return %c0_i32, %c0_i32_0 : i32, i32
  }
  func.func @transform_10(%arg0: i32) -> (i32, i32) {
    %c0_i32 = arith.constant 0 : i32
    %c0_i32_0 = arith.constant 0 : i32
    %c0_i32_1 = arith.constant 0 : i32
    return %c0_i32, %c0_i32_0 : i32, i32
  }
  func.func @transform_11(%arg0: i32) -> (i32, i32) {
    %c0_i32 = arith.constant 0 : i32
    %c0_i32_0 = arith.constant 0 : i32
    return %c0_i32, %arg0 : i32, i32
  }
}

</mosaic_0001>

<bundles_post_ra>
// kernel: tpu_custom_call.1
= control target key start
LH: loop header
LB: loop body
LE: loop exit
PB: predicated region body
PF: predicated region fallthrough
CT: control target
= control target key end

     0   :  { %vm234_vm0 = vcmask 261120   ;;  %s11968_s0 = inlined_call_operand.vmem [shape: f32[3,256,32], index: 0, kind: input, shape index: {}]   ;;  %s11969_s1 = inlined_call_operand.vmem [shape: f32[32,64], index: 1, kind: input, shape index: {}]   ;;  %s11970_s2 = inlined_call_operand.vmem [shape: f32[1,64], index: 2, kind: input, shape index: {}]   ;;  %s11971_s3 = inlined_call_operand.vmem [shape: f32[32,32], index: 3, kind: input, shape index: {}]   ;;  %s11972_s4 = inlined_call_operand.vmem [shape: f32[1,32], index: 4, kind: input, shape index: {}]   ;;  %s11973_s5 = inlined_call_operand.vmem [shape: f32[32,16], index: 5, kind: input, shape index: {}]   ;;  %s11974_s6 = inlined_call_operand.vmem [shape: f32[1,16], index: 6, kind: input, shape index: {}]   ;;  %s11975_s7 = inlined_call_operand.vmem [shape: f32[16,3], index: 7, kind: input, shape index: {}]   ;;  %s11976_s8 = inlined_call_operand.vmem [shape: f32[1,3], index: 8, kind: input, shape index: {}]   ;;  %s11977_s9 = inlined_call_operand.vmem [shape: f32[16,32], index: 9, kind: input, shape index: {}]   ;;  %s11978_s10 = inlined_call_operand.vmem [shape: f32[1,32], index: 10, kind: input, shape index: {}]   ;;  %s11979_s11 = inlined_call_operand.hbm [shape: f32[22,256], index: 11, kind: output, shape index: {}]  }
   0x1   :  { %v684_v0 = vld [vmem:[%s11969_s1] sm:$0xff]  ;;  %v685_v1 = vld [vmem:[%s11969_s1 + $0x8] sm:$0xff]  ;;  %v686_v2 = vld [vmem:[%s11969_s1 + $0x10] sm:$0xff] }
   0x2   :  { %v7625_v3 = vpack.c.bf16 %v685_v1, %v684_v0  ;;  %v687_v4 = vld [vmem:[%s11969_s1 + $0x18] sm:$0xff]  ;;  %v39_v5 = vld [vmem:[%s11968_s0] sm:$0xff]  ;;  %v40_v10 = vld [vmem:[%s11968_s0 + $0x8] sm:$0xff] }
   0x3   :  { %v8113_v6 = vld [vmem:[%s11968_s0 + $0x100] sm:$0xff]  ;;  %v7629_v7 = vpack.c.bf16 %v687_v4, %v686_v2  ;;  %v8125_v11 = vld [vmem:[%s11968_s0 + $0x108] sm:$0xff]  ;;  %v8134_v14 = vld [vmem:[%s11968_s0 + $0x10] sm:$0xff] }
   0x4   :  { %v6152_v8 = vld [vmem:[%s11968_s0 + $0x200] sm:$0xff]  ;;  %v137_v9 = vadd.f32 %v8113_v6, %v39_v5  ;;  %7626 = vmatprep.subr.bf16.mxu0 %v7625_v3  ;;  %v6153_v12 = vld [vmem:[%s11968_s0 + $0x208] sm:$0xff]  ;;  %v138_v13 = vadd.f32 %v8125_v11, %v40_v10  ;;  %v8139_v15 = vld [vmem:[%s11968_s0 + $0x110] sm:$0xff] }
   0x5   :  { %7628 = vmatpush3.bf16.msra.mxu0 %v7625_v3  ;;  %v6154_v17 = vld [vmem:[%s11968_s0 + $0x210] sm:$0xff]  ;;  %v139_v18 = vadd.f32 %v8139_v15, %v8134_v14  ;;  %v8151_v19 = vld [vmem:[%s11968_s0 + $0x18] sm:$0xff]  ;;  %v8168_v24 = vld [vmem:[%s11968_s0 + $0x20] sm:$0xff] }
   0x6   :  { %v8141_v16 = vadd.f32 %v6152_v8, %v137_v9  ;;  %v8156_v20 = vld [vmem:[%s11968_s0 + $0x118] sm:$0xff]  ;;  %7630 = vmatprep.subr.bf16.mxu0 %v7629_v7  ;;  %v8158_v21 = vadd.f32 %v6153_v12, %v138_v13  ;;  %v8173_v25 = vld [vmem:[%s11968_s0 + $0x120] sm:$0xff]  ;;  %v8186_v30 = vld [vmem:[%s11968_s0 + $0x28] sm:$0xff] }
   0x7   :  { %v6155_v22 = vld [vmem:[%s11968_s0 + $0x218] sm:$0xff]  ;;  %v140_v23 = vadd.f32 %v8156_v20, %v8151_v19  ;;  %v8176_v27 = vadd.f32 %v6154_v17, %v139_v18  ;;  %v6156_v28 = vld [vmem:[%s11968_s0 + $0x220] sm:$0xff]  ;;  %v141_v29 = vadd.f32 %v8173_v25, %v8168_v24  ;;  %v8191_v31 = vld [vmem:[%s11968_s0 + $0x128] sm:$0xff] }
   0x8   :  { %v202_v26 = vmul.f32 0.33333334, %v8141_v16  ;;  %v267_v32 = vsub.f32 %v8141_v16, %v39_v5  ;;  %v203_v33 = vmul.f32 0.33333334, %v8158_v21  ;;  %v6157_v35 = vld [vmem:[%s11968_s0 + $0x228] sm:$0xff]  ;;  %v142_v36 = vadd.f32 %v8191_v31, %v8186_v30  ;;  %v8205_v37 = vld [vmem:[%s11968_s0 + $0x30] sm:$0xff] }
   0x9   :  { %v8195_v34 = vadd.f32 %v6155_v22, %v140_v23  ;;  %v8210_v38 = vld [vmem:[%s11968_s0 + $0x130] sm:$0xff]  ;;  %v268_v39 = vsub.f32 %v8158_v21, %v40_v10  ;;  %7632 = vmatpush3.bf16.msra.mxu0 %v7629_v7  ;;  %v204_v40 = vmul.f32 0.33333334, %v8176_v27  ;;  %v8215_v41 = vadd.f32 %v6156_v28, %v141_v29  ;;  %v8225_v44 = vld [vmem:[%s11968_s0 + $0x38] sm:$0xff]  ;;  %v8244_v51 = vld [vmem:[%s11968_s0 + $0x40] sm:$0xff] }
   0xa   :  { %235 = vst.msk [vmem:[#allocation2] sm:$0xff] %vm234_vm0, %v202_v26  ;;  %v6158_v42 = vld [vmem:[%s11968_s0 + $0x230] sm:$0xff]  ;;  %v143_v43 = vadd.f32 %v8210_v38, %v8205_v37  ;;  %v8230_v45 = vld [vmem:[%s11968_s0 + $0x138] sm:$0xff]  ;;  %v300_v46 = vmul.f32 0.5, %v267_v32  ;;  %236 = vst.msk [vmem:[#allocation2 + $0x8] sm:$0xff] %vm234_vm0, %v203_v33  ;;  %v8234_v48 = vadd.f32 %v6157_v35, %v142_v36  ;;  %v269_v60 = vsub.f32 %v8176_v27, %v8134_v14 }
   0xb   :  { %v205_v47 = vmul.f32 0.33333334, %v8195_v34  ;;  %v6159_v49 = vld [vmem:[%s11968_s0 + $0x238] sm:$0xff]  ;;  %v144_v50 = vadd.f32 %v8230_v45, %v8225_v44  ;;  %v8249_v52 = vld [vmem:[%s11968_s0 + $0x140] sm:$0xff]  ;;  %v301_v53 = vmul.f32 0.5, %v268_v39  ;;  %237 = vst.msk [vmem:[#allocation2 + $0x10] sm:$0xff] %vm234_vm0, %v204_v40  ;;  %v270_v3 = vsub.f32 %v8195_v34, %v8151_v19 }
   0xc   :  { %v206_v54 = vmul.f32 0.33333334, %v8215_v41  ;;  %v8253_v55 = vadd.f32 %v6158_v42, %v143_v43  ;;  %v6160_v56 = vld [vmem:[%s11968_s0 + $0x240] sm:$0xff]  ;;  %v145_v57 = vadd.f32 %v8249_v52, %v8244_v51  ;;  %v8263_v58 = vld [vmem:[%s11968_s0 + $0x48] sm:$0xff]  ;;  %332 = vst.msk [vmem:[#allocation2 + $0x100] sm:$0xff] %vm234_vm0, %v300_v46  ;;  %v8285_v1 = vld [vmem:[%s11968_s0 + $0x50] sm:$0xff]  ;;  %v271_v36 = vsub.f32 %v8215_v41, %v8168_v24 }
   0xd   :  { %v8268_v59 = vld [vmem:[%s11968_s0 + $0x148] sm:$0xff]  ;;  %238 = vst.msk [vmem:[#allocation2 + $0x18] sm:$0xff] %vm234_vm0, %v205_v47  ;;  %v207_v61 = vmul.f32 0.33333334, %v8234_v48  ;;  %v8275_v62 = vadd.f32 %v6159_v49, %v144_v50  ;;  %v8290_v2 = vld [vmem:[%s11968_s0 + $0x150] sm:$0xff]  ;;  %333 = vst.msk [vmem:[#allocation2 + $0x108] sm:$0xff] %vm234_vm0, %v301_v53  ;;  %v272_v24 = vsub.f32 %v8234_v48, %v8186_v30 }
   0xe   :  { %v6161_v63 = vld [vmem:[%s11968_s0 + $0x248] sm:$0xff]  ;;  %v146_v0 = vadd.f32 %v8268_v59, %v8263_v58  ;;  %239 = vst.msk [vmem:[#allocation2 + $0x20] sm:$0xff] %vm234_vm0, %v206_v54  ;;  %v208_v4 = vmul.f32 0.33333334, %v8253_v55  ;;  %v8297_v5 = vadd.f32 %v6160_v56, %v145_v57  ;;  %v6162_v7 = vld [vmem:[%s11968_s0 + $0x250] sm:$0xff]  ;;  %v147_v8 = vadd.f32 %v8290_v2, %v8285_v1  ;;  %v8307_v9 = vld [vmem:[%s11968_s0 + $0x58] sm:$0xff] }
   0xf   :  { %v8312_v10 = vld [vmem:[%s11968_s0 + $0x158] sm:$0xff]  ;;  %v302_v12 = vmul.f32 0.5, %v269_v60  ;;  %240 = vst.msk [vmem:[#allocation2 + $0x28] sm:$0xff] %vm234_vm0, %v207_v61  ;;  %v209_v13 = vmul.f32 0.33333334, %v8275_v62  ;;  %v8326_v19 = vld [vmem:[%s11968_s0 + $0x60] sm:$0xff]  ;;  %v273_v30 = vsub.f32 %v8253_v55, %v8205_v37 }
  0x10   :  { %v8316_v14 = vadd.f32 %v6161_v63, %v146_v0  ;;  %v6163_v17 = vld [vmem:[%s11968_s0 + $0x258] sm:$0xff]  ;;  %v148_v18 = vadd.f32 %v8312_v10, %v8307_v9  ;;  %v8331_v22 = vld [vmem:[%s11968_s0 + $0x160] sm:$0xff]  ;;  %v303_v23 = vmul.f32 0.5, %v270_v3  ;;  %241 = vst.msk [vmem:[#allocation2 + $0x30] sm:$0xff] %vm234_vm0, %v208_v4  ;;  %v210_v26 = vmul.f32 0.33333334, %v8297_v5 }
  0x11   :  { %v8335_v28 = vadd.f32 %v6162_v7, %v147_v8  ;;  %v6164_v29 = vld [vmem:[%s11968_s0 + $0x260] sm:$0xff]  ;;  %v149_v32 = vadd.f32 %v8331_v22, %v8326_v19  ;;  %v8345_v33 = vld [vmem:[%s11968_s0 + $0x68] sm:$0xff]  ;;  %334 = vst.msk [vmem:[#allocation2 + $0x110] sm:$0xff] %vm234_vm0, %v302_v12  ;;  %242 = vst.msk [vmem:[#allocation2 + $0x38] sm:$0xff] %vm234_vm0, %v209_v13  ;;  %v304_v57 = vmul.f32 0.5, %v271_v36  ;;  %v305_v4 = vmul.f32 0.5, %v272_v24 }
  0x12   :  { %v8350_v35 = vld [vmem:[%s11968_s0 + $0x168] sm:$0xff]  ;;  %v556_v39 = vld [vmem:[#allocation2] sm:$0xff]  ;;  %v211_v40 = vmul.f32 0.33333334, %v8316_v14  ;;  %v8357_v42 = vadd.f32 %v6163_v17, %v148_v18  ;;  %v8367_v47 = vld [vmem:[%s11968_s0 + $0x70] sm:$0xff]  ;;  %335 = vst.msk [vmem:[#allocation2 + $0x118] sm:$0xff] %vm234_vm0, %v303_v23  ;;  %v274_v23 = vsub.f32 %v8275_v62, %v8225_v44  ;;  %v275_v44 = vsub.f32 %v8297_v5, %v8244_v51 }
  0x13   :  { %v6165_v43 = vld [vmem:[%s11968_s0 + $0x268] sm:$0xff]  ;;  %v150_v46 = vadd.f32 %v8350_v35, %v8345_v33  ;;  %7017 = vmatprep.mubr.msk.f32.mxu0 %vm234_vm0, %v556_v39  ;;  %243 = vst.msk [vmem:[#allocation2 + $0x40] sm:$0xff] %vm234_vm0, %v210_v26  ;;  %v212_v50 = vmul.f32 0.33333334, %v8335_v28  ;;  %v8375_v53 = vadd.f32 %v6164_v29, %v149_v32  ;;  %v8380_v54 = vld [vmem:[%s11968_s0 + $0x170] sm:$0xff]  ;;  %v8397_v3 = vld [vmem:[%s11968_s0 + $0x78] sm:$0xff] }
  0x14   :  { %v557_v49 = vld [vmem:[#allocation2 + $0x8] sm:$0xff]  ;;  %v6166_v56 = vld [vmem:[%s11968_s0 + $0x270] sm:$0xff]  ;;  %244 = vst.msk [vmem:[#allocation2 + $0x48] sm:$0xff] %vm234_vm0, %v211_v40  ;;  %v213_v61 = vmul.f32 0.33333334, %v8357_v42  ;;  %v151_v0 = vadd.f32 %v8380_v54, %v8367_v47  ;;  %v8402_v37 = vld [vmem:[%s11968_s0 + $0x178] sm:$0xff]  ;;  %v276_v40 = vsub.f32 %v8316_v14, %v8263_v58 }
  0x15   :  { %7018 = vmatmul.mubr.msk.f32.vlgmr.msra.gmra.mrb[0].mxu0 %vm234_vm0, %v557_v49  ;;  %v558_v60 = vld [vmem:[#allocation2 + $0x10] sm:$0xff]  ;;  %v8390_v63 = vadd.f32 %v6165_v43, %v150_v46  ;;  %v559_v7 = vld [vmem:[#allocation2 + $0x18] sm:$0xff]  ;;  %245 = vst.msk [vmem:[#allocation2 + $0x50] sm:$0xff] %vm234_vm0, %v212_v50  ;;  %v214_v8 = vmul.f32 0.33333334, %v8375_v53  ;;  %v152_v13 = vadd.f32 %v8402_v37, %v8397_v3  ;;  %v8417_v17 = vld [vmem:[%s11968_s0 + $0x80] sm:$0xff]  ;;  %v277_v49 = vsub.f32 %v8335_v28, %v8285_v1 }
  0x16   :  { %7020 = vmatprep.mubr.msk.f32.mxu0 %vm234_vm0, %v558_v60  ;;  %v8410_v12 = vld [vmem:[%s11968_s0 + $0x278] sm:$0xff]  ;;  %336 = vst.msk [vmem:[#allocation2 + $0x120] sm:$0xff] %vm234_vm0, %v304_v57  ;;  %v306_v18 = vmul.f32 0.5, %v273_v30  ;;  %v560_v26 = vld [vmem:[#allocation2 + $0x20] sm:$0xff]  ;;  %246 = vst.msk [vmem:[#allocation2 + $0x58] sm:$0xff] %vm234_vm0, %v213_v61  ;;  %v8424_v32 = vadd.f32 %v6166_v56, %v151_v0  ;;  %v307_v58 = vmul.f32 0.5, %v274_v23  ;;  %v278_v60 = vsub.f32 %v8357_v42, %v8307_v9 }
  0x17   :  { %12080 = vst [vmem:[#allocation6_spill] sm:$0xff] %v8410_v12  ;;  %v215_v29 = vmul.f32 0.33333334, %v8390_v63  ;;  %v8429_v36 = vld [vmem:[%s11968_s0 + $0x180] sm:$0xff]  ;;  %337 = vst.msk [vmem:[#allocation2 + $0x128] sm:$0xff] %vm234_vm0, %v305_v4  ;;  %v8443_v43 = vadd.f32 %v8410_v12, %v152_v13  ;;  %v8450_v24 = vld [vmem:[%s11968_s0 + $0x88] sm:$0xff]  ;;  %v279_v13 = vsub.f32 %v8375_v53, %v8326_v19 }
  0x18   :  { %v8434_v39 = vld [vmem:[%s11968_s0 + $0x280] sm:$0xff]  ;;  %247 = vst.msk [vmem:[#allocation2 + $0x60] sm:$0xff] %vm234_vm0, %v214_v8  ;;  %v153_v46 = vadd.f32 %v8429_v36, %v8417_v17  ;;  %v8455_v51 = vld [vmem:[%s11968_s0 + $0x188] sm:$0xff]  ;;  %338 = vst.msk [vmem:[#allocation2 + $0x130] sm:$0xff] %vm234_vm0, %v306_v18  ;;  %v216_v50 = vmul.f32 0.33333334, %v8424_v32 }
  0x19   :  { %12081 = vst [vmem:[#allocation7_spill] sm:$0xff] %v8434_v39  ;;  %7021 = vmatmul.mubr.msk.f32.gmra.mrb[2].mxu0 %vm234_vm0, %v559_v7  ;;  %248 = vst.msk [vmem:[#allocation2 + $0x68] sm:$0xff] %vm234_vm0, %v215_v29  ;;  %v8466_v56 = vld [vmem:[%s11968_s0 + $0x288] sm:$0xff]  ;;  %v154_v57 = vadd.f32 %v8455_v51, %v8450_v24  ;;  %v8473_v30 = vld [vmem:[%s11968_s0 + $0x90] sm:$0xff]  ;;  %v308_v1 = vmul.f32 0.5, %v275_v44  ;;  %v309_v9 = vmul.f32 0.5, %v276_v40 }
  0x1a   :  { %12082 = vst [vmem:[#allocation8_spill] sm:$0xff] %v8466_v56  ;;  %7023 = vmatprep.mubr.msk.f32.mxu0 %vm234_vm0, %v560_v26  ;;  %v561_v61 = vld [vmem:[#allocation2 + $0x28] sm:$0xff]  ;;  %v217_v0 = vmul.f32 0.33333334, %v8443_v43  ;;  %v8480_v4 = vadd.f32 %v8434_v39, %v153_v46  ;;  %v8485_v7 = vld [vmem:[%s11968_s0 + $0x190] sm:$0xff]  ;;  %339 = vst.msk [vmem:[#allocation2 + $0x138] sm:$0xff] %vm234_vm0, %v307_v58 }
  0x1b   :  { %v8490_v8 = vld [vmem:[%s11968_s0 + $0x290] sm:$0xff]  ;;  %249 = vst.msk [vmem:[#allocation2 + $0x70] sm:$0xff] %vm234_vm0, %v216_v50  ;;  %v8497_v23 = vadd.f32 %v8466_v56, %v154_v57  ;;  %v155_v26 = vadd.f32 %v8485_v7, %v8473_v30  ;;  %v8504_v29 = vld [vmem:[%s11968_s0 + $0x98] sm:$0xff]  ;;  %340 = vst.msk [vmem:[#allocation2 + $0x140] sm:$0xff] %vm234_vm0, %v308_v1  ;;  %v310_v19 = vmul.f32 0.5, %v277_v49  ;;  %v311_v40 = vmul.f32 0.5, %v278_v60 }
  0x1c   :  { %12083 = vst [vmem:[#allocation9_spill] sm:$0xff] %v8490_v8  ;;  %v562_v18 = vld [vmem:[#allocation2 + $0x30] sm:$0xff]  ;;  %v8509_v44 = vld [vmem:[%s11968_s0 + $0x198] sm:$0xff]  ;;  %250 = vst.msk [vmem:[#allocation2 + $0x78] sm:$0xff] %vm234_vm0, %v217_v0  ;;  %v218_v46 = vmul.f32 0.33333334, %v8480_v4  ;;  %v280_v1 = vsub.f32 %v8390_v63, %v8345_v33  ;;  %v281_v33 = vsub.f32 %v8424_v32, %v8367_v47 }
  0x1d   :  { %12084 = vst [vmem:[#allocation10_spill] sm:$0xff] %v8509_v44  ;;  %v8517_v58 = vld [vmem:[%s11968_s0 + $0x298] sm:$0xff]  ;;  %v156_v50 = vadd.f32 %v8509_v44, %v8504_v29  ;;  %v8524_v57 = vld [vmem:[%s11968_s0 + $0xa0] sm:$0xff]  ;;  %341 = vst.msk [vmem:[#allocation2 + $0x148] sm:$0xff] %vm234_vm0, %v309_v9  ;;  %v312_v49 = vmul.f32 0.5, %v279_v13  ;;  %7024 = vmatmul.mubr.msk.f32.gmra.mrb[4].mxu0 %vm234_vm0, %v561_v61  ;;  %v8532_v0 = vadd.f32 %v8490_v8, %v155_v26 }
  0x1e   :  { %12085 = vst [vmem:[#allocation11_spill] sm:$0xff] %v8517_v58  ;;  %v219_v60 = vmul.f32 0.33333334, %v8497_v23  ;;  %v8537_v56 = vld [vmem:[%s11968_s0 + $0x1a0] sm:$0xff]  ;;  %342 = vst.msk [vmem:[#allocation2 + $0x150] sm:$0xff] %vm234_vm0, %v310_v19  ;;  %v282_v61 = vsub.f32 %v8443_v43, %v8397_v3  ;;  %7026 = vmatprep.mubr.msk.f32.mxu0 %vm234_vm0, %v562_v18  ;;  %v563_v13 = vld [vmem:[#allocation2 + $0x38] sm:$0xff]  ;;  %v283_v18 = vsub.f32 %v8480_v4, %v8417_v17 }
  0x1f   :  { %12086 = vst [vmem:[#allocation12_spill] sm:$0xff] %v8532_v0  ;;  %12087 = vst [vmem:[#allocation13_spill] sm:$0xff] %v8537_v56  ;;  %v8542_v9 = vld [vmem:[%s11968_s0 + $0x2a0] sm:$0xff]  ;;  %v8553_v26 = vadd.f32 %v8517_v58, %v156_v50  ;;  %v157_v8 = vadd.f32 %v8537_v56, %v8524_v57  ;;  %v8560_v19 = vld [vmem:[%s11968_s0 + $0xa8] sm:$0xff]  ;;  %v313_v3 = vmul.f32 0.5, %v280_v1  ;;  %v314_v1 = vmul.f32 0.5, %v281_v33 }
  0x20   :  { %12088 = vst [vmem:[#allocation14_spill] sm:$0xff] %v8542_v9  ;;  %343 = vst.msk [vmem:[#allocation2 + $0x158] sm:$0xff] %vm234_vm0, %v311_v40  ;;  %v8565_v47 = vld [vmem:[%s11968_s0 + $0x1a8] sm:$0xff]  ;;  %v564_v40 = vld [vmem:[#allocation2 + $0x40] sm:$0xff]  ;;  %v284_v17 = vsub.f32 %v8497_v23, %v8450_v24  ;;  %v315_v33 = vmul.f32 0.5, %v282_v61  ;;  %v285_v24 = vsub.f32 %v8532_v0, %v8473_v30 }
  0x21   :  { %251 = vst.msk [vmem:[#allocation2 + $0x80] sm:$0xff] %vm234_vm0, %v218_v46  ;;  %12089 = vst [vmem:[#allocation15_spill] sm:$0xff] %v8553_v26  ;;  %v220_v46 = vmul.f32 0.33333334, %v8532_v0  ;;  %v8575_v50 = vld [vmem:[%s11968_s0 + $0x2a8] sm:$0xff]  ;;  %v158_v58 = vadd.f32 %v8565_v47, %v8560_v19  ;;  %v8588_v39 = vadd.f32 %v8542_v9, %v157_v8  ;;  %v8593_v12 = vld [vmem:[%s11968_s0 + $0x1b0] sm:$0xff]  ;;  %7027 = vmatmul.mubr.msk.f32.gmra.mrb[6].mxu0 %vm234_vm0, %v563_v13 }
  0x22   :  { %12090 = vst [vmem:[#allocation16_spill] sm:$0xff] %v8565_v47  ;;  %344 = vst.msk [vmem:[#allocation2 + $0x160] sm:$0xff] %vm234_vm0, %v312_v49  ;;  %v8582_v49 = vld [vmem:[%s11968_s0 + $0xb0] sm:$0xff]  ;;  %v8613_v56 = vld [vmem:[%s11968_s0 + $0xb8] sm:$0xff]  ;;  %v317_v13 = vmul.f32 0.5, %v284_v17  ;;  %7029 = vmatprep.mubr.msk.f32.mxu0 %vm234_vm0, %v564_v40  ;;  %v318_v40 = vmul.f32 0.5, %v285_v24 }
  0x23   :  { %252 = vst.msk [vmem:[#allocation2 + $0x88] sm:$0xff] %vm234_vm0, %v219_v60  ;;  %12091 = vst [vmem:[#allocation17_spill] sm:$0xff] %v8575_v50  ;;  %v221_v60 = vmul.f32 0.33333334, %v8553_v26  ;;  %v8598_v47 = vld [vmem:[%s11968_s0 + $0x2b0] sm:$0xff]  ;;  %v8606_v8 = vadd.f32 %v8575_v50, %v158_v58  ;;  %v159_v9 = vadd.f32 %v8593_v12, %v8582_v49  ;;  %v8618_v61 = vld [vmem:[%s11968_s0 + $0x1b8] sm:$0xff] }
  0x24   :  { %12092 = vst [vmem:[#allocation18_spill] sm:$0xff] %v8588_v39  ;;  %12093 = vst [vmem:[#allocation19_spill] sm:$0xff] %v8593_v12  ;;  %v8623_v30 = vld [vmem:[%s11968_s0 + $0x2b8] sm:$0xff]  ;;  %v316_v58 = vmul.f32 0.5, %v283_v18  ;;  %v160_v50 = vadd.f32 %v8618_v61, %v8613_v56  ;;  %v8634_v12 = vld [vmem:[%s11968_s0 + $0xc0] sm:$0xff] }
  0x25   :  { %12094 = vst [vmem:[#allocation20_spill] sm:$0xff] %v8598_v47  ;;  %345 = vst.msk [vmem:[#allocation2 + $0x168] sm:$0xff] %vm234_vm0, %v313_v3  ;;  %v565_v3 = vld [vmem:[#allocation2 + $0x48] sm:$0xff]  ;;  %v8639_v18 = vld [vmem:[%s11968_s0 + $0x1c0] sm:$0xff] }
  0x26   :  { %253 = vst.msk [vmem:[#allocation2 + $0x90] sm:$0xff] %vm234_vm0, %v220_v46  ;;  %12095 = vst [vmem:[#allocation21_spill] sm:$0xff] %v8606_v8  ;;  %v222_v46 = vmul.f32 0.33333334, %v8588_v39  ;;  %v566_v17 = vld [vmem:[#allocation2 + $0x50] sm:$0xff]  ;;  %v8651_v44 = vld [vmem:[%s11968_s0 + $0x2c0] sm:$0xff]  ;;  %v161_v0 = vadd.f32 %v8639_v18, %v8634_v12  ;;  %7030 = vmatmul.mubr.msk.f32.gmra.mrb[8].mxu0 %vm234_vm0, %v565_v3 }
  0x27   :  { %12096 = vst [vmem:[#allocation22_spill] sm:$0xff] %v8618_v61  ;;  %12097 = vst [vmem:[#allocation23_spill] sm:$0xff] %v8623_v30  ;;  %v8646_v61 = vadd.f32 %v8598_v47, %v159_v9  ;;  %v8666_v9 = vadd.f32 %v8623_v30, %v160_v50  ;;  %v8671_v24 = vld [vmem:[%s11968_s0 + $0x1c8] sm:$0xff]  ;;  %v288_v50 = vsub.f32 %v8606_v8, %v8560_v19  ;;  %v8699_v19 = vld [vmem:[%s11968_s0 + $0x1d0] sm:$0xff]  ;;  %7032 = vmatprep.mubr.msk.f32.mxu0 %vm234_vm0, %v566_v17 }
  0x28   :  { %346 = vst.msk [vmem:[#allocation2 + $0x170] sm:$0xff] %vm234_vm0, %v314_v1  ;;  %254 = vst.msk [vmem:[#allocation2 + $0x98] sm:$0xff] %vm234_vm0, %v221_v60  ;;  %v286_v1 = vsub.f32 %v8553_v26, %v8504_v29  ;;  %v223_v60 = vmul.f32 0.33333334, %v8606_v8  ;;  %v287_v29 = vsub.f32 %v8588_v39, %v8524_v57  ;;  %v8676_v47 = vld [vmem:[%s11968_s0 + $0x2c8] sm:$0xff]  ;;  %v8704_v3 = vld [vmem:[%s11968_s0 + $0x2d0] sm:$0xff] }
  0x29   :  { %12098 = vst [vmem:[#allocation24_spill] sm:$0xff] %v8639_v18  ;;  %347 = vst.msk [vmem:[#allocation2 + $0x178] sm:$0xff] %vm234_vm0, %v315_v33  ;;  %v8658_v33 = vld [vmem:[%s11968_s0 + $0xc8] sm:$0xff]  ;;  %v224_v30 = vmul.f32 0.33333334, %v8646_v61  ;;  %v8692_v18 = vadd.f32 %v8651_v44, %v161_v0  ;;  %v289_v17 = vsub.f32 %v8646_v61, %v8582_v49  ;;  %v8731_v39 = vld [vmem:[%s11968_s0 + $0x2d8] sm:$0xff] }
  0x2a   :  { %12099 = vst [vmem:[#allocation25_spill] sm:$0xff] %v8646_v61  ;;  %12100 = vst [vmem:[#allocation26_spill] sm:$0xff] %v8651_v44  ;;  %v319_v57 = vmul.f32 0.5, %v286_v1  ;;  %v320_v1 = vmul.f32 0.5, %v287_v29  ;;  %v225_v0 = vmul.f32 0.33333334, %v8666_v9 }
  0x2b   :  { %348 = vst.msk [vmem:[#allocation2 + $0x180] sm:$0xff] %vm234_vm0, %v316_v58  ;;  %349 = vst.msk [vmem:[#allocation2 + $0x188] sm:$0xff] %vm234_vm0, %v317_v13  ;;  %v8681_v58 = vld [vmem:[%s11968_s0 + $0xd0] sm:$0xff]  ;;  %v8713_v44 = vld [vmem:[%s11968_s0 + $0xd8] sm:$0xff]  ;;  %v321_v29 = vmul.f32 0.5, %v288_v50 }
  0x2c   :  { %255 = vst.msk [vmem:[#allocation2 + $0xa0] sm:$0xff] %vm234_vm0, %v222_v46  ;;  %12101 = vst [vmem:[#allocation27_spill] sm:$0xff] %v8666_v9  ;;  %v567_v46 = vld [vmem:[#allocation2 + $0x58] sm:$0xff]  ;;  %v163_v13 = vadd.f32 %v8699_v19, %v8681_v58  ;;  %v8743_v49 = vld [vmem:[%s11968_s0 + $0x1e0] sm:$0xff] }
  0x2d   :  { %12102 = vst [vmem:[#allocation28_spill] sm:$0xff] %v8671_v24  ;;  %12103 = vst [vmem:[#allocation29_spill] sm:$0xff] %v8676_v47  ;;  %7033 = vmatmul.mubr.msk.f32.gmra.mrb[10].mxu0 %vm234_vm0, %v567_v46 }
  0x2e   :  { %350 = vst.msk [vmem:[#allocation2 + $0x190] sm:$0xff] %vm234_vm0, %v318_v40  ;;  %256 = vst.msk [vmem:[#allocation2 + $0xa8] sm:$0xff] %vm234_vm0, %v223_v60  ;;  %v162_v40 = vadd.f32 %v8671_v24, %v8658_v33  ;;  %v568_v60 = vld [vmem:[#allocation2 + $0x60] sm:$0xff]  ;;  %v8718_v24 = vld [vmem:[%s11968_s0 + $0x1d8] sm:$0xff]  ;;  %v8750_v50 = vadd.f32 %v8704_v3, %v163_v13  ;;  %v291_v13 = vsub.f32 %v8692_v18, %v8634_v12 }
  0x2f   :  { %12104 = vst [vmem:[#allocation30_spill] sm:$0xff] %v8692_v18  ;;  %12105 = vst [vmem:[#allocation31_spill] sm:$0xff] %v8699_v19  ;;  %v226_v19 = vmul.f32 0.33333334, %v8692_v18  ;;  %v164_v26 = vadd.f32 %v8718_v24, %v8713_v44  ;;  %7035 = vmatprep.mubr.msk.f32.mxu0 %vm234_vm0, %v568_v60  ;;  %v570_v60 = vld [vmem:[#allocation2 + $0x70] sm:$0xff]  ;;  %v8815_v18 = vld [vmem:[%s11968_s0 + $0x1f8] sm:$0xff] }
  0x30   :  { %12106 = vst [vmem:[#allocation32_spill] sm:$0xff] %v8704_v3  ;;  %12107 = vst [vmem:[#allocation33_spill] sm:$0xff] %v8718_v24  ;;  %v8726_v8 = vadd.f32 %v8676_v47, %v162_v40  ;;  %v8755_v40 = vld [vmem:[%s11968_s0 + $0x2e0] sm:$0xff]  ;;  %v8776_v24 = vld [vmem:[%s11968_s0 + $0x1e8] sm:$0xff] }
  0x31   :  { %351 = vst.msk [vmem:[#allocation2 + $0x198] sm:$0xff] %vm234_vm0, %v319_v57  ;;  %257 = vst.msk [vmem:[#allocation2 + $0xb0] sm:$0xff] %vm234_vm0, %v224_v30  ;;  %v8738_v57 = vld [vmem:[%s11968_s0 + $0xe0] sm:$0xff]  ;;  %v290_v30 = vsub.f32 %v8666_v9, %v8613_v56  ;;  %v322_v56 = vmul.f32 0.5, %v289_v17  ;;  %v8828_v9 = vld [vmem:[%s11968_s0 + $0x2f8] sm:$0xff] }
  0x32   :  { %12108 = vst [vmem:[#allocation34_spill] sm:$0xff] %v8726_v8  ;;  %12109 = vst [vmem:[#allocation35_spill] sm:$0xff] %v8731_v39  ;;  %v165_v47 = vadd.f32 %v8743_v49, %v8738_v57  ;;  %v227_v3 = vmul.f32 0.33333334, %v8726_v8  ;;  %v292_v46 = vsub.f32 %v8726_v8, %v8658_v33  ;;  %v8803_v33 = vld [vmem:[%s11968_s0 + $0x2f0] sm:$0xff]  ;;  %v70_v8 = vld [vmem:[%s11968_s0 + $0xf8] sm:$0xff] }
  0x33   :  { %12110 = vst [vmem:[#allocation36_spill] sm:$0xff] %v8743_v49  ;;  %352 = vst.msk [vmem:[#allocation2 + $0x1a0] sm:$0xff] %vm234_vm0, %v320_v1  ;;  %v8762_v1 = vld [vmem:[%s11968_s0 + $0xe8] sm:$0xff]  ;;  %v8771_v49 = vadd.f32 %v8731_v39, %v164_v26  ;;  %v323_v12 = vmul.f32 0.5, %v290_v30  ;;  %v69_v39 = vld [vmem:[%s11968_s0 + $0xf0] sm:$0xff]  ;;  %v168_v61 = vadd.f32 %v8815_v18, %v70_v8 }
  0x34   :  { %258 = vst.msk [vmem:[#allocation2 + $0xb8] sm:$0xff] %vm234_vm0, %v225_v0  ;;  %12111 = vst [vmem:[#allocation37_spill] sm:$0xff] %v8755_v40  ;;  %v569_v0 = vld [vmem:[#allocation2 + $0x68] sm:$0xff]  ;;  %v8788_v26 = vadd.f32 %v8755_v40, %v165_v47  ;;  %v166_v17 = vadd.f32 %v8776_v24, %v8762_v1  ;;  %v8798_v30 = vld [vmem:[%s11968_s0 + $0x1f0] sm:$0xff]  ;;  %v324_v47 = vmul.f32 0.5, %v291_v13  ;;  %v293_v13 = vsub.f32 %v8750_v50, %v8681_v58 }
  0x35   :  { %353 = vst.msk [vmem:[#allocation2 + $0x1a8] sm:$0xff] %vm234_vm0, %v321_v29  ;;  %259 = vst.msk [vmem:[#allocation2 + $0xc0] sm:$0xff] %vm234_vm0, %v226_v19  ;;  %v8781_v29 = vld [vmem:[%s11968_s0 + $0x2e8] sm:$0xff]  ;;  %v228_v19 = vmul.f32 0.33333334, %v8750_v50  ;;  %v294_v58 = vsub.f32 %v8771_v49, %v8713_v44  ;;  %7036 = vmatmul.mubr.msk.f32.gmra.mrb[12].mxu0 %vm234_vm0, %v569_v0  ;;  %v12117_v44 = vsub.f32 %v8141_v16, %v8113_v6 }
  0x36   :  { %12112 = vst [vmem:[#allocation38_spill] sm:$0xff] %v8776_v24  ;;  %12113 = vst [vmem:[#allocation39_spill] sm:$0xff] %v8781_v29  ;;  %v229_v40 = vmul.f32 0.33333334, %v8771_v49  ;;  %v167_v24 = vadd.f32 %v8798_v30, %v69_v39  ;;  %7038 = vmatprep.mubr.msk.f32.mxu0 %vm234_vm0, %v570_v60  ;;  %v8855_v0 = vadd.f32 %v8828_v9, %v168_v61 }
  0x37   :  { %12114 = vst [vmem:[#allocation40_spill] sm:$0xff] %v8798_v30  ;;  %12115 = vst [vmem:[#allocation41_spill] sm:$0xff] %v8803_v33  ;;  %v8823_v30 = vadd.f32 %v8781_v29, %v166_v17  ;;  %v326_v17 = vmul.f32 0.5, %v293_v13  ;;  %v396_v29 = vmul.f32 0.5, %v12117_v44  ;;  %v572_v13 = vld [vmem:[#allocation2 + $0x80] sm:$0xff] }
  0x38   :  { %354 = vst.msk [vmem:[#allocation2 + $0x1b0] sm:$0xff] %vm234_vm0, %v322_v56  ;;  %260 = vst.msk [vmem:[#allocation2 + $0xc8] sm:$0xff] %vm234_vm0, %v227_v3  ;;  %v325_v56 = vmul.f32 0.5, %v292_v46  ;;  %v230_v3 = vmul.f32 0.33333334, %v8788_v26  ;;  %v8840_v46 = vadd.f32 %v8803_v33, %v167_v24 }
  0x39   :  { %12116 = vst [vmem:[#allocation42_spill] sm:$0xff] %v8815_v18  ;;  %355 = vst.msk [vmem:[#allocation2 + $0x1b8] sm:$0xff] %vm234_vm0, %v323_v12  ;;  %v1912_v12 = vld [vmem:[%s11975_s7] sm:$0xff]  ;;  %v231_v24 = vmul.f32 0.33333334, %v8823_v30  ;;  %v296_v6 = vsub.f32 %v8823_v30, %v8762_v1 }
  0x3a   :  { %261 = vst.msk [vmem:[#allocation2 + $0xd0] sm:$0xff] %vm234_vm0, %v228_v19  ;;  %356 = vst.msk [vmem:[#allocation2 + $0x1c0] sm:$0xff] %vm234_vm0, %v324_v47  ;;  %v1913_v19 = vld [vmem:[%s11975_s7 + $0x8] sm:$0xff]  ;;  %v295_v47 = vsub.f32 %v8788_v26, %v8738_v57  ;;  %v232_v18 = vmul.f32 0.33333334, %v8840_v46  ;;  %v297_v60 = vsub.f32 %v8840_v46, %v69_v39 }
  0x3b   :  { %262 = vst.msk [vmem:[#allocation2 + $0xd8] sm:$0xff] %vm234_vm0, %v229_v40  ;;  %357 = vst.msk [vmem:[#allocation2 + $0x1c8] sm:$0xff] %vm234_vm0, %v325_v56  ;;  %v571_v40 = vld [vmem:[#allocation2 + $0x78] sm:$0xff]  ;;  %v7633_v33 = vpack.c.bf16 %v1913_v19, %v1912_v12  ;;  %v327_v56 = vmul.f32 0.5, %v294_v58  ;;  %v233_v61 = vmul.f32 0.33333334, %v8855_v0  ;;  %v365_v12 = vsub.f32 %v8158_v21, %v8125_v11 }
  0x3c   :  { %263 = vst.msk [vmem:[#allocation2 + $0xe0] sm:$0xff] %vm234_vm0, %v230_v3  ;;  %358 = vst.msk [vmem:[#allocation2 + $0x1d0] sm:$0xff] %vm234_vm0, %v326_v17  ;;  %v328_v57 = vmul.f32 0.5, %v295_v47  ;;  %v298_v3 = vsub.f32 %v8855_v0, %v70_v8  ;;  %v366_v58 = vsub.f32 %v8176_v27, %v8139_v15  ;;  %7039 = vmatmul.mubr.msk.f32.gmra.mrb[14].mxu0 %vm234_vm0, %v571_v40  ;;  %v329_v39 = vmul.f32 0.5, %v296_v6  ;;  %v574_v17 = vld [vmem:[#allocation2 + $0x90] sm:$0xff]  ;;  %v575_v15 = vld [vmem:[#allocation2 + $0x98] sm:$0xff] }
  0x3d   :  { %428 = vst.msk [vmem:[#allocation2 + $0x200] sm:$0xff] %vm234_vm0, %v396_v29  ;;  %264 = vst.msk [vmem:[#allocation2 + $0xe8] sm:$0xff] %vm234_vm0, %v231_v24  ;;  %7634 = vmatprep.subr.bf16.mxu0 %v7633_v33  ;;  %v330_v1 = vmul.f32 0.5, %v297_v60  ;;  %7041 = vmatprep.mubr.msk.f32.mxu0 %vm234_vm0, %v572_v13  ;;  %v573_v29 = vld [vmem:[#allocation2 + $0x88] sm:$0xff]  ;;  %v397_v19 = vmul.f32 0.5, %v365_v12  ;;  %v578_v47 = vld [vmem:[#allocation2 + $0xb0] sm:$0xff] }
  0x3e   :  { %359 = vst.msk [vmem:[#allocation2 + $0x1d8] sm:$0xff] %vm234_vm0, %v327_v56  ;;  %265 = vst.msk [vmem:[#allocation2 + $0xf0] sm:$0xff] %vm234_vm0, %v232_v18  ;;  %7636 = vmatpush3.bf16.msra.mxu0 %v7633_v33  ;;  %v331_v8 = vmul.f32 0.5, %v298_v3  ;;  %v398_v11 = vmul.f32 0.5, %v366_v58  ;;  %v576_v18 = vld [vmem:[#allocation2 + $0xa0] sm:$0xff]  ;;  %v577_v33 = vld [vmem:[#allocation2 + $0xa8] sm:$0xff] }
  0x3f   :  { %360 = vst.msk [vmem:[#allocation2 + $0x1e0] sm:$0xff] %vm234_vm0, %v328_v57  ;;  %266 = vst.msk [vmem:[#allocation2 + $0xf8] sm:$0xff] %vm234_vm0, %v233_v61 }
  0x40   :  { %361 = vst.msk [vmem:[#allocation2 + $0x1e8] sm:$0xff] %vm234_vm0, %v329_v39  ;;  %362 = vst.msk [vmem:[#allocation2 + $0x1f0] sm:$0xff] %vm234_vm0, %v330_v1  ;;  %7042 = vmatmul.mubr.msk.f32.gmra.mrb[16].mxu0 %vm234_vm0, %v573_v29 }
  0x41   :  { %363 = vst.msk [vmem:[#allocation2 + $0x1f8] sm:$0xff] %vm234_vm0, %v331_v8  ;;  %429 = vst.msk [vmem:[#allocation2 + $0x208] sm:$0xff] %vm234_vm0, %v397_v19  ;;  %7044 = vmatprep.mubr.msk.f32.mxu0 %vm234_vm0, %v574_v17 }
  0x42   :  { %430 = vst.msk [vmem:[#allocation2 + $0x210] sm:$0xff] %vm234_vm0, %v398_v11 }
  0x44   :  { %7045 = vmatmul.mubr.msk.f32.gmra.mrb[18].mxu0 %vm234_vm0, %v575_v15 }
  0x45   :  { %7047 = vmatprep.mubr.msk.f32.mxu0 %vm234_vm0, %v576_v18 }
  0x46   :  { %16 = vsyncpa [#allocation4], 0  ;;  %v579_v44 = vld [vmem:[#allocation2 + $0xb8] sm:$0xff]  ;;  %v580_v40 = vld [vmem:[#allocation2 + $0xc0] sm:$0xff]  ;;  %v367_v19 = vsub.f32 %v8195_v34, %v8156_v20  ;;  %v368_v18 = vsub.f32 %v8215_v41, %v8173_v25  ;;  %v371_v25 = vsub.f32 %v8275_v62, %v8230_v45  ;;  %s8027_s12 = smov 96   ;;  %s8028_s13 = smov 80  }
  0x47   :  { %v581_v24 = vld [vmem:[#allocation2 + $0xc8] sm:$0xff]  ;;  %v582_v56 = vld [vmem:[#allocation2 + $0xd0] sm:$0xff]  ;;  %v583_v13 = vld [vmem:[#allocation2 + $0xd8] sm:$0xff]  ;;  %vm2017_vm1 = vcmask 130048   ;;  %vm5832_vm2 = vcmask 7168   ;;  %vm5865_vm3 = vcmask 15360  }
  0x48   :  { %7048 = vmatmul.mubr.msk.f32.gmra.mrb[20].mxu0 %vm234_vm0, %v577_v33  ;;  %v584_v57 = vld [vmem:[#allocation2 + $0xe0] sm:$0xff]  ;;  %v585_v6 = vld [vmem:[#allocation2 + $0xe8] sm:$0xff]  ;;  %v586_v60 = vld [vmem:[#allocation2 + $0xf0] sm:$0xff]  ;;  %v399_v17 = vmul.f32 0.5, %v367_v19  ;;  %v369_v33 = vsub.f32 %v8234_v48, %v8191_v31 }
  0x49   :  { %7050 = vmatprep.mubr.msk.f32.mxu0 %vm234_vm0, %v578_v47  ;;  %v587_v61 = vld [vmem:[#allocation2 + $0xf8] sm:$0xff]  ;;  %v588_v3 = vld [vmem:[#allocation2 + $0x100] sm:$0xff]  ;;  %v589_v12 = vld [vmem:[#allocation2 + $0x108] sm:$0xff]  ;;  %v400_v47 = vmul.f32 0.5, %v368_v18 }
  0x4a   :  { %v590_v58 = vld [vmem:[#allocation2 + $0x110] sm:$0xff]  ;;  %v591_v39 = vld [vmem:[#allocation2 + $0x118] sm:$0xff]  ;;  %v592_v1 = vld [vmem:[#allocation2 + $0x120] sm:$0xff]  ;;  %431 = vst.msk [vmem:[#allocation2 + $0x218] sm:$0xff] %vm234_vm0, %v399_v17  ;;  %v378_v17 = vsub.f32 %v8424_v32, %v8380_v54  ;;  %v381_v54 = vsub.f32 %v8497_v23, %v8455_v51 }
  0x4b   :  { %v593_v29 = vld [vmem:[#allocation2 + $0x128] sm:$0xff]  ;;  %v594_v8 = vld [vmem:[#allocation2 + $0x130] sm:$0xff]  ;;  %v595_v11 = vld [vmem:[#allocation2 + $0x138] sm:$0xff]  ;;  %432 = vst.msk [vmem:[#allocation2 + $0x220] sm:$0xff] %vm234_vm0, %v400_v47  ;;  %v380_v47 = vsub.f32 %v8480_v4, %v8429_v36 }
  0x4c   :  { %7051 = vmatmul.mubr.msk.f32.gmra.mrb[22].mxu0 %vm234_vm0, %v579_v44  ;;  %v596_v15 = vld [vmem:[#allocation2 + $0x140] sm:$0xff]  ;;  %v597_v20 = vld [vmem:[#allocation2 + $0x148] sm:$0xff]  ;;  %v401_v44 = vmul.f32 0.5, %v369_v33  ;;  %v12119_v36 = vld [vmem:[#allocation10_spill] sm:$0xff] }
  0x4d   :  { %7053 = vmatprep.mubr.msk.f32.mxu0 %vm234_vm0, %v580_v40  ;;  %v598_v40 = vld [vmem:[#allocation2 + $0x150] sm:$0xff]  ;;  %v608_v33 = vld [vmem:[#allocation2 + $0x1a0] sm:$0xff] }
  0x4e   :  { %433 = vst.msk [vmem:[#allocation2 + $0x228] sm:$0xff] %vm234_vm0, %v401_v44  ;;  %v413_v44 = vmul.f32 0.5, %v381_v54 }
  0x50   :  { %7054 = vmatmul.mubr.msk.f32.gmra.mrb[24].mxu0 %vm234_vm0, %v581_v24  ;;  %v370_v24 = vsub.f32 %v8253_v55, %v8210_v38  ;;  %v373_v38 = vsub.f32 %v8316_v14, %v8268_v59  ;;  %445 = vst.msk [vmem:[#allocation2 + $0x288] sm:$0xff] %vm234_vm0, %v413_v44 }
  0x51   :  { %7056 = vmatprep.mubr.msk.f32.mxu0 %vm234_vm0, %v582_v56  ;;  %v599_v56 = vld [vmem:[#allocation2 + $0x158] sm:$0xff] }
  0x52   :  { %v402_v31 = vmul.f32 0.5, %v370_v24  ;;  %v12118_v24 = vld [vmem:[#allocation12_spill] sm:$0xff] }
  0x54   :  { %7057 = vmatmul.mubr.msk.f32.gmra.mrb[26].mxu0 %vm234_vm0, %v583_v13  ;;  %v403_v13 = vmul.f32 0.5, %v371_v25  ;;  %434 = vst.msk [vmem:[#allocation2 + $0x230] sm:$0xff] %vm234_vm0, %v402_v31  ;;  %v382_v25 = vsub.f32 %v12118_v24, %v8485_v7  ;;  %v12120_v31 = vld [vmem:[#allocation15_spill] sm:$0xff]  ;;  %v12123_v7 = vld [vmem:[#allocation16_spill] sm:$0xff] }
  0x55   :  { %7059 = vmatprep.mubr.msk.f32.mxu0 %vm234_vm0, %v584_v57  ;;  %v600_v57 = vld [vmem:[#allocation2 + $0x160] sm:$0xff] }
  0x56   :  { %435 = vst.msk [vmem:[#allocation2 + $0x238] sm:$0xff] %vm234_vm0, %v403_v13  ;;  %v414_v51 = vmul.f32 0.5, %v382_v25  ;;  %v611_v13 = vld [vmem:[#allocation2 + $0x1b8] sm:$0xff] }
  0x57   :  { %v12133_v25 = vld [vmem:[#allocation31_spill] sm:$0xff] }
  0x58   :  { %7060 = vmatmul.mubr.msk.f32.gmra.mrb[28].mxu0 %vm234_vm0, %v585_v6  ;;  %v372_v6 = vsub.f32 %v8297_v5, %v8249_v52  ;;  %v375_v52 = vsub.f32 %v8357_v42, %v8312_v10  ;;  %446 = vst.msk [vmem:[#allocation2 + $0x290] sm:$0xff] %vm234_vm0, %v414_v51 }
  0x59   :  { %7062 = vmatprep.mubr.msk.f32.mxu0 %vm234_vm0, %v586_v60  ;;  %v601_v60 = vld [vmem:[#allocation2 + $0x168] sm:$0xff] }
  0x5a   :  { %v404_v45 = vmul.f32 0.5, %v372_v6  ;;  %v612_v6 = vld [vmem:[#allocation2 + $0x1c0] sm:$0xff] }
  0x5c   :  { %7063 = vmatmul.mubr.msk.f32.gmra.mrb[30].mxu0 %vm234_vm0, %v587_v61  ;;  %v405_v61 = vmul.f32 0.5, %v373_v38  ;;  %436 = vst.msk [vmem:[#allocation2 + $0x240] sm:$0xff] %vm234_vm0, %v404_v45  ;;  %v12121_v38 = vld [vmem:[#allocation13_spill] sm:$0xff]  ;;  %v12122_v45 = vld [vmem:[#allocation18_spill] sm:$0xff] }
  0x5d   :  { %7065 = vmatprep.mubr.msk.f32.mxu0 %vm234_vm0, %v588_v3  ;;  %v602_v3 = vld [vmem:[#allocation2 + $0x170] sm:$0xff] }
  0x5e   :  { %437 = vst.msk [vmem:[#allocation2 + $0x248] sm:$0xff] %vm234_vm0, %v405_v61  ;;  %v12124_v61 = vld [vmem:[#allocation21_spill] sm:$0xff] }
  0x60   :  { %7066 = vmatmul.mubr.msk.f32.gmra.mrb[32].mxu0 %vm234_vm0, %v589_v12  ;;  %v374_v12 = vsub.f32 %v8335_v28, %v8290_v2  ;;  %v377_v2 = vsub.f32 %v8390_v63, %v8350_v35  ;;  %v410_v35 = vmul.f32 0.5, %v378_v17 }
  0x61   :  { %7068 = vmatprep.mubr.msk.f32.mxu0 %vm234_vm0, %v590_v58  ;;  %v603_v58 = vld [vmem:[#allocation2 + $0x178] sm:$0xff] }
  0x62   :  { %v406_v59 = vmul.f32 0.5, %v374_v12  ;;  %v409_v19 = vmul.f32 0.5, %v377_v2  ;;  %442 = vst.msk [vmem:[#allocation2 + $0x270] sm:$0xff] %vm234_vm0, %v410_v35  ;;  %v12127_v2 = vld [vmem:[#allocation22_spill] sm:$0xff]  ;;  %v12129_v35 = vld [vmem:[#allocation24_spill] sm:$0xff] }
  0x64   :  { %7069 = vmatmul.mubr.msk.f32.gmra.mrb[34].mxu0 %vm234_vm0, %v591_v39  ;;  %v407_v39 = vmul.f32 0.5, %v375_v52  ;;  %438 = vst.msk [vmem:[#allocation2 + $0x250] sm:$0xff] %vm234_vm0, %v406_v59  ;;  %441 = vst.msk [vmem:[#allocation2 + $0x268] sm:$0xff] %vm234_vm0, %v409_v19  ;;  %v613_v52 = vld [vmem:[#allocation2 + $0x1c8] sm:$0xff] }
  0x65   :  { %7071 = vmatprep.mubr.msk.f32.mxu0 %vm234_vm0, %v592_v1  ;;  %v604_v1 = vld [vmem:[#allocation2 + $0x180] sm:$0xff] }
  0x66   :  { %439 = vst.msk [vmem:[#allocation2 + $0x258] sm:$0xff] %vm234_vm0, %v407_v39  ;;  %v12125_v39 = vld [vmem:[#allocation19_spill] sm:$0xff] }
  0x68   :  { %7072 = vmatmul.mubr.msk.f32.gmra.mrb[36].mxu0 %vm234_vm0, %v593_v29  ;;  %v376_v29 = vsub.f32 %v8375_v53, %v8331_v22  ;;  %v379_v22 = vsub.f32 %v8443_v43, %v8402_v37  ;;  %v412_v37 = vmul.f32 0.5, %v380_v47  ;;  %v12132_v47 = vld [vmem:[#allocation34_spill] sm:$0xff] }
  0x69   :  { %7074 = vmatprep.mubr.msk.f32.mxu0 %vm234_vm0, %v594_v8  ;;  %v605_v8 = vld [vmem:[#allocation2 + $0x188] sm:$0xff] }
  0x6a   :  { %v408_v10 = vmul.f32 0.5, %v376_v29  ;;  %v411_v18 = vmul.f32 0.5, %v379_v22  ;;  %444 = vst.msk [vmem:[#allocation2 + $0x280] sm:$0xff] %vm234_vm0, %v412_v37  ;;  %v616_v22 = vld [vmem:[#allocation2 + $0x1e0] sm:$0xff] }
  0x6c   :  { %7075 = vmatmul.mubr.msk.f32.gmra.mrb[38].mxu0 %vm234_vm0, %v595_v11  ;;  %v606_v11 = vld [vmem:[#allocation2 + $0x190] sm:$0xff]  ;;  %440 = vst.msk [vmem:[#allocation2 + $0x260] sm:$0xff] %vm234_vm0, %v408_v10  ;;  %443 = vst.msk [vmem:[#allocation2 + $0x278] sm:$0xff] %vm234_vm0, %v411_v18  ;;  %v12128_v10 = vld [vmem:[#allocation27_spill] sm:$0xff] }
  0x6d   :  { %7077 = vmatprep.mubr.msk.f32.mxu0 %vm234_vm0, %v596_v15  ;;  %v607_v15 = vld [vmem:[#allocation2 + $0x198] sm:$0xff] }
  0x70   :  { %7078 = vmatmul.mubr.msk.f32.gmra.mrb[40].mxu0 %vm234_vm0, %v597_v20  ;;  %v609_v20 = vld [vmem:[#allocation2 + $0x1a8] sm:$0xff] }
  0x71   :  { %7080 = vmatprep.mubr.msk.f32.mxu0 %vm234_vm0, %v598_v40  ;;  %v610_v40 = vld [vmem:[#allocation2 + $0x1b0] sm:$0xff] }
  0x74   :  { %7081 = vmatmul.mubr.msk.f32.gmra.mrb[42].mxu0 %vm234_vm0, %v599_v56  ;;  %v383_v56 = vsub.f32 %v12120_v31, %v12119_v36  ;;  %v390_v36 = vsub.f32 %v8750_v50, %v12133_v25  ;;  %v626_v25 = vld [vmem:[#allocation2 + $0x230] sm:$0xff] }
  0x75   :  { %7083 = vmatprep.mubr.msk.f32.mxu0 %vm234_vm0, %v600_v57 }
  0x76   :  { %v415_v57 = vmul.f32 0.5, %v383_v56  ;;  %v12134_v56 = vld [vmem:[#allocation33_spill] sm:$0xff] }
  0x77   :  { %v391_v51 = vsub.f32 %v8771_v49, %v12134_v56 }
  0x78   :  { %7084 = vmatmul.mubr.msk.f32.gmra.mrb[44].mxu0 %vm234_vm0, %v601_v60  ;;  %v384_v60 = vsub.f32 %v12122_v45, %v12121_v38  ;;  %447 = vst.msk [vmem:[#allocation2 + $0x298] sm:$0xff] %vm234_vm0, %v415_v57  ;;  %v619_v57 = vld [vmem:[#allocation2 + $0x1f8] sm:$0xff]  ;;  %v620_v38 = vld [vmem:[#allocation2 + $0x200] sm:$0xff] }
  0x79   :  { %7086 = vmatprep.mubr.msk.f32.mxu0 %vm234_vm0, %v602_v3  ;;  %v385_v3 = vsub.f32 %v12124_v61, %v12123_v7 }
  0x7a   :  { %v416_v12 = vmul.f32 0.5, %v384_v60  ;;  %v12135_v60 = vld [vmem:[#allocation36_spill] sm:$0xff] }
  0x7b   :  { %v417_v59 = vmul.f32 0.5, %v385_v3  ;;  %v392_v7 = vsub.f32 %v8788_v26, %v12135_v60  ;;  %v12136_v3 = vld [vmem:[#allocation38_spill] sm:$0xff] }
  0x7c   :  { %7087 = vmatmul.mubr.msk.f32.gmra.mrb[46].mxu0 %vm234_vm0, %v603_v58  ;;  %v614_v58 = vld [vmem:[#allocation2 + $0x1d0] sm:$0xff]  ;;  %448 = vst.msk [vmem:[#allocation2 + $0x2a0] sm:$0xff] %vm234_vm0, %v416_v12  ;;  %v393_v12 = vsub.f32 %v8823_v30, %v12136_v3  ;;  %v629_v3 = vld [vmem:[#allocation2 + $0x248] sm:$0xff] }
  0x7d   :  { %7089 = vmatprep.mubr.msk.f32.mxu0 %vm234_vm0, %v604_v1  ;;  %v12126_v1 = vld [vmem:[#allocation25_spill] sm:$0xff]  ;;  %449 = vst.msk [vmem:[#allocation2 + $0x2a8] sm:$0xff] %vm234_vm0, %v417_v59 }
  0x7e   :  { %v386_v29 = vsub.f32 %v12126_v1, %v12125_v39  ;;  %v621_v59 = vld [vmem:[#allocation2 + $0x208] sm:$0xff]  ;;  %v622_v39 = vld [vmem:[#allocation2 + $0x210] sm:$0xff] }
  0x80   :  { %7090 = vmatmul.mubr.msk.f32.gmra.mrb[48].mxu0 %vm234_vm0, %v605_v8  ;;  %v387_v8 = vsub.f32 %v12128_v10, %v12127_v2  ;;  %v418_v19 = vmul.f32 0.5, %v386_v29  ;;  %v12137_v29 = vld [vmem:[#allocation40_spill] sm:$0xff] }
  0x81   :  { %7092 = vmatprep.mubr.msk.f32.mxu0 %vm234_vm0, %v606_v11  ;;  %v615_v11 = vld [vmem:[#allocation2 + $0x1d8] sm:$0xff]  ;;  %v394_v2 = vsub.f32 %v8840_v46, %v12137_v29 }
  0x82   :  { %v419_v17 = vmul.f32 0.5, %v387_v8  ;;  %450 = vst.msk [vmem:[#allocation2 + $0x2b0] sm:$0xff] %vm234_vm0, %v418_v19  ;;  %v12138_v8 = vld [vmem:[#allocation42_spill] sm:$0xff]  ;;  %v631_v29 = vld [vmem:[#allocation2 + $0x258] sm:$0xff] }
  0x83   :  { %v395_v19 = vsub.f32 %v8855_v0, %v12138_v8  ;;  %v632_v8 = vld [vmem:[#allocation2 + $0x260] sm:$0xff] }
  0x84   :  { %7093 = vmatmul.mubr.msk.f32.gmra.mrb[50].mxu0 %vm234_vm0, %v607_v15  ;;  %v12130_v15 = vld [vmem:[#allocation30_spill] sm:$0xff]  ;;  %451 = vst.msk [vmem:[#allocation2 + $0x2b8] sm:$0xff] %vm234_vm0, %v419_v17  ;;  %v623_v17 = vld [vmem:[#allocation2 + $0x218] sm:$0xff] }
  0x85   :  { %7095 = vmatprep.mubr.msk.f32.mxu0 %vm234_vm0, %v608_v33  ;;  %v388_v18 = vsub.f32 %v12130_v15, %v12129_v35  ;;  %v12131_v33 = vld [vmem:[#allocation28_spill] sm:$0xff] }
  0x86   :  { %v389_v54 = vsub.f32 %v12132_v47, %v12131_v33  ;;  %v624_v35 = vld [vmem:[#allocation2 + $0x220] sm:$0xff] }
  0x87   :  { %v420_v37 = vmul.f32 0.5, %v388_v18  ;;  %v7890_v18 = vld [vmem:[%s11968_s0 + $0x200] sm:$0xff] }
  0x88   :  { %7096 = vmatmul.mubr.msk.f32.gmra.mrb[52].mxu0 %vm234_vm0, %v609_v20  ;;  %v617_v20 = vld [vmem:[#allocation2 + $0x1e8] sm:$0xff]  ;;  %v421_v44 = vmul.f32 0.5, %v389_v54  ;;  %v460_v33 = vsub.f32 %v8141_v16, %v7890_v18  ;;  %v7892_v16 = vld [vmem:[%s11968_s0 + $0x210] sm:$0xff] }
  0x89   :  { %7098 = vmatprep.mubr.msk.f32.mxu0 %vm234_vm0, %v610_v40  ;;  %v618_v40 = vld [vmem:[#allocation2 + $0x1f0] sm:$0xff]  ;;  %452 = vst.msk [vmem:[#allocation2 + $0x2c0] sm:$0xff] %vm234_vm0, %v420_v37  ;;  %v7891_v54 = vld [vmem:[%s11968_s0 + $0x208] sm:$0xff] }
  0x8a   :  { %453 = vst.msk [vmem:[#allocation2 + $0x2c8] sm:$0xff] %vm234_vm0, %v421_v44  ;;  %v461_v37 = vsub.f32 %v8158_v21, %v7891_v54  ;;  %v625_v44 = vld [vmem:[#allocation2 + $0x228] sm:$0xff]  ;;  %v7893_v21 = vld [vmem:[%s11968_s0 + $0x218] sm:$0xff]  ;;  %v634_v18 = vld [vmem:[#allocation2 + $0x270] sm:$0xff] }
  0x8b   :  { %v463_v56 = vsub.f32 %v8195_v34, %v7893_v21  ;;  %v7895_v34 = vld [vmem:[%s11968_s0 + $0x228] sm:$0xff] }
  0x8c   :  { %7099 = vmatmul.mubr.msk.f32.gmra.mrb[54].mxu0 %vm234_vm0, %v611_v13  ;;  %v422_v13 = vmul.f32 0.5, %v390_v36  ;;  %v462_v36 = vsub.f32 %v8176_v27, %v7892_v16  ;;  %v7894_v27 = vld [vmem:[%s11968_s0 + $0x220] sm:$0xff]  ;;  %v465_v60 = vsub.f32 %v8234_v48, %v7895_v34  ;;  %v7897_v48 = vld [vmem:[%s11968_s0 + $0x238] sm:$0xff]  ;;  %v637_v21 = vld [vmem:[#allocation2 + $0x288] sm:$0xff] }
  0x8d   :  { %7101 = vmatprep.mubr.msk.f32.mxu0 %vm234_vm0, %v612_v6  ;;  %v423_v6 = vmul.f32 0.5, %v391_v51  ;;  %v640_v34 = vld [vmem:[#allocation2 + $0x2a0] sm:$0xff] }
  0x8e   :  { %454 = vst.msk [vmem:[#allocation2 + $0x2d0] sm:$0xff] %vm234_vm0, %v422_v13  ;;  %v494_v51 = vmul.f32 0.5, %v462_v36  ;;  %v627_v13 = vld [vmem:[#allocation2 + $0x238] sm:$0xff] }
  0x8f   :  { %455 = vst.msk [vmem:[#allocation2 + $0x2d8] sm:$0xff] %vm234_vm0, %v423_v6  ;;  %v628_v6 = vld [vmem:[#allocation2 + $0x240] sm:$0xff] }
  0x90   :  { %7102 = vmatmul.mubr.msk.f32.gmra.mrb[56].mxu0 %vm234_vm0, %v613_v52  ;;  %v424_v52 = vmul.f32 0.5, %v392_v7  ;;  %526 = vst.msk [vmem:[#allocation2 + $0x310] sm:$0xff] %vm234_vm0, %v494_v51  ;;  %v638_v51 = vld [vmem:[#allocation2 + $0x290] sm:$0xff] }
  0x91   :  { %7104 = vmatprep.mubr.msk.f32.mxu0 %vm234_vm0, %v614_v58  ;;  %v425_v58 = vmul.f32 0.5, %v393_v12  ;;  %v497_v12 = vmul.f32 0.5, %v465_v60  ;;  %v12140_v60 = vld [vmem:[#allocation7_spill] sm:$0xff] }
  0x92   :  { %456 = vst.msk [vmem:[#allocation2 + $0x2e0] sm:$0xff] %vm234_vm0, %v424_v52  ;;  %v630_v52 = vld [vmem:[#allocation2 + $0x250] sm:$0xff] }
  0x93   :  { %457 = vst.msk [vmem:[#allocation2 + $0x2e8] sm:$0xff] %vm234_vm0, %v425_v58  ;;  %529 = vst.msk [vmem:[#allocation2 + $0x328] sm:$0xff] %vm234_vm0, %v497_v12  ;;  %v467_v58 = vsub.f32 %v8275_v62, %v7897_v48  ;;  %v7899_v62 = vld [vmem:[%s11968_s0 + $0x248] sm:$0xff] }
  0x94   :  { %7105 = vmatmul.mubr.msk.f32.gmra.mrb[58].mxu0 %vm234_vm0, %v615_v11  ;;  %v426_v11 = vmul.f32 0.5, %v394_v2  ;;  %v641_v12 = vld [vmem:[#allocation2 + $0x2a8] sm:$0xff] }
  0x95   :  { %7107 = vmatprep.mubr.msk.f32.mxu0 %vm234_vm0, %v616_v22  ;;  %v427_v22 = vmul.f32 0.5, %v395_v19  ;;  %v499_v2 = vmul.f32 0.5, %v467_v58 }
  0x96   :  { %458 = vst.msk [vmem:[#allocation2 + $0x2f0] sm:$0xff] %vm234_vm0, %v426_v11  ;;  %v469_v11 = vsub.f32 %v8316_v14, %v7899_v62  ;;  %v7901_v14 = vld [vmem:[%s11968_s0 + $0x258] sm:$0xff]  ;;  %v645_v62 = vld [vmem:[#allocation2 + $0x2c8] sm:$0xff] }
  0x97   :  { %459 = vst.msk [vmem:[#allocation2 + $0x2f8] sm:$0xff] %vm234_vm0, %v427_v22  ;;  %531 = vst.msk [vmem:[#allocation2 + $0x338] sm:$0xff] %vm234_vm0, %v499_v2  ;;  %v633_v22 = vld [vmem:[#allocation2 + $0x268] sm:$0xff]  ;;  %v471_v54 = vsub.f32 %v8357_v42, %v7901_v14  ;;  %v644_v2 = vld [vmem:[#allocation2 + $0x2c0] sm:$0xff] }
  0x98   :  { %7108 = vmatmul.mubr.msk.f32.gmra.mrb[60].mxu0 %vm234_vm0, %v617_v20  ;;  %v492_v20 = vmul.f32 0.5, %v460_v33  ;;  %v7903_v42 = vld [vmem:[%s11968_s0 + $0x268] sm:$0xff] }
  0x99   :  { %7110 = vmatprep.mubr.msk.f32.mxu0 %vm234_vm0, %v618_v40  ;;  %v493_v40 = vmul.f32 0.5, %v461_v37  ;;  %v473_v16 = vsub.f32 %v8390_v63, %v7903_v42  ;;  %v12149_v14 = vld [vmem:[#allocation29_spill] sm:$0xff] }
  0x9a   :  { %524 = vst.msk [vmem:[#allocation2 + $0x300] sm:$0xff] %vm234_vm0, %v492_v20  ;;  %v635_v20 = vld [vmem:[#allocation2 + $0x278] sm:$0xff] }
  0x9b   :  { %525 = vst.msk [vmem:[#allocation2 + $0x308] sm:$0xff] %vm234_vm0, %v493_v40  ;;  %v636_v40 = vld [vmem:[#allocation2 + $0x280] sm:$0xff] }
  0x9c   :  { %7111 = vmatmul.mubr.msk.f32.gmra.mrb[62].mxu0 %vm234_vm0, %v619_v57  ;;  %v495_v57 = vmul.f32 0.5, %v463_v56  ;;  %v505_v56 = vmul.f32 0.5, %v473_v16 }
  0x9d   :  { %7113 = vmatprep.mubr.msk.f32.mxu0 %vm234_vm0, %v620_v38  ;;  %v464_v38 = vsub.f32 %v8215_v41, %v7894_v27  ;;  %v7896_v41 = vld [vmem:[%s11968_s0 + $0x230] sm:$0xff]  ;;  %v639_v27 = vld [vmem:[#allocation2 + $0x298] sm:$0xff] }
  0x9e   :  { %527 = vst.msk [vmem:[#allocation2 + $0x318] sm:$0xff] %vm234_vm0, %v495_v57  ;;  %537 = vst.msk [vmem:[#allocation2 + $0x368] sm:$0xff] %vm234_vm0, %v505_v56  ;;  %v12139_v57 = vld [vmem:[#allocation6_spill] sm:$0xff] }
  0x9f   :  { %v496_v7 = vmul.f32 0.5, %v464_v38  ;;  %v475_v63 = vsub.f32 %v8443_v43, %v12139_v57  ;;  %v650_v42 = vld [vmem:[#allocation2 + $0x2f0] sm:$0xff] }
  0xa0   :  { %7114 = vmatmul.mubr.msk.f32.gmra.mrb[64].mxu0 %vm234_vm0, %v621_v59  ;;  %v466_v59 = vsub.f32 %v8253_v55, %v7896_v41  ;;  %v7898_v55 = vld [vmem:[%s11968_s0 + $0x240] sm:$0xff]  ;;  %v642_v41 = vld [vmem:[#allocation2 + $0x2b0] sm:$0xff] }
  0xa1   :  { %7116 = vmatprep.mubr.msk.f32.mxu0 %vm234_vm0, %v622_v39  ;;  %528 = vst.msk [vmem:[#allocation2 + $0x320] sm:$0xff] %vm234_vm0, %v496_v7  ;;  %v468_v19 = vsub.f32 %v8297_v5, %v7898_v55  ;;  %v7900_v5 = vld [vmem:[%s11968_s0 + $0x250] sm:$0xff]  ;;  %v507_v38 = vmul.f32 0.5, %v475_v63  ;;  %v476_v7 = vsub.f32 %v8480_v4, %v12140_v60  ;;  %v12143_v4 = vld [vmem:[#allocation11_spill] sm:$0xff]  ;;  %v12154_v63 = vld [vmem:[#allocation41_spill] sm:$0xff] }
  0xa2   :  { %v498_v39 = vmul.f32 0.5, %v466_v59  ;;  %v470_v33 = vsub.f32 %v8335_v28, %v7900_v5  ;;  %v7902_v28 = vld [vmem:[%s11968_s0 + $0x260] sm:$0xff]  ;;  %v12142_v59 = vld [vmem:[#allocation9_spill] sm:$0xff]  ;;  %v479_v58 = vsub.f32 %v12120_v31, %v12143_v4  ;;  %v12148_v5 = vld [vmem:[#allocation26_spill] sm:$0xff] }
  0xa3   :  { %539 = vst.msk [vmem:[#allocation2 + $0x378] sm:$0xff] %vm234_vm0, %v507_v38  ;;  %v508_v43 = vmul.f32 0.5, %v476_v7  ;;  %v478_v48 = vsub.f32 %v12118_v24, %v12142_v59  ;;  %v12145_v24 = vld [vmem:[#allocation17_spill] sm:$0xff]  ;;  %v491_v38 = vsub.f32 %v8855_v0, %v8828_v9  ;;  %v659_v9 = vld [vmem:[#allocation2 + $0x338] sm:$0xff] }
  0xa4   :  { %7117 = vmatmul.mubr.msk.f32.gmra.mrb[66].mxu0 %vm234_vm0, %v623_v17  ;;  %530 = vst.msk [vmem:[#allocation2 + $0x330] sm:$0xff] %vm234_vm0, %v498_v39  ;;  %v500_v17 = vmul.f32 0.5, %v468_v19  ;;  %v502_v37 = vmul.f32 0.5, %v470_v33  ;;  %v643_v39 = vld [vmem:[#allocation2 + $0x2b8] sm:$0xff]  ;;  %v481_v19 = vsub.f32 %v12124_v61, %v12145_v24  ;;  %v484_v33 = vsub.f32 %v12130_v15, %v12148_v5 }
  0xa5   :  { %7119 = vmatprep.mubr.msk.f32.mxu0 %vm234_vm0, %v624_v35  ;;  %v501_v35 = vmul.f32 0.5, %v469_v11  ;;  %540 = vst.msk [vmem:[#allocation2 + $0x380] sm:$0xff] %vm234_vm0, %v508_v43  ;;  %v523_v60 = vmul.f32 0.5, %v491_v38 }
  0xa6   :  { %532 = vst.msk [vmem:[#allocation2 + $0x340] sm:$0xff] %vm234_vm0, %v500_v17  ;;  %534 = vst.msk [vmem:[#allocation2 + $0x350] sm:$0xff] %vm234_vm0, %v502_v37  ;;  %v513_v11 = vmul.f32 0.5, %v481_v19  ;;  %v646_v17 = vld [vmem:[#allocation2 + $0x2d0] sm:$0xff]  ;;  %v647_v37 = vld [vmem:[#allocation2 + $0x2d8] sm:$0xff] }
  0xa7   :  { %533 = vst.msk [vmem:[#allocation2 + $0x348] sm:$0xff] %vm234_vm0, %v501_v35  ;;  %555 = vst.msk [vmem:[#allocation2 + $0x3f8] sm:$0xff] %vm234_vm0, %v523_v60 }
  0xa8   :  { %7120 = vmatmul.mubr.msk.f32.gmra.mrb[68].mxu0 %vm234_vm0, %v625_v44  ;;  %v503_v44 = vmul.f32 0.5, %v471_v54  ;;  %545 = vst.msk [vmem:[#allocation2 + $0x3a8] sm:$0xff] %vm234_vm0, %v513_v11  ;;  %v485_v54 = vsub.f32 %v12132_v47, %v12149_v14  ;;  %v12151_v47 = vld [vmem:[#allocation35_spill] sm:$0xff]  ;;  %v656_v7 = vld [vmem:[#allocation2 + $0x320] sm:$0xff] }
  0xa9   :  { %7122 = vmatprep.mubr.msk.f32.mxu0 %vm234_vm0, %v626_v25  ;;  %v472_v25 = vsub.f32 %v8375_v53, %v7902_v28  ;;  %v7904_v53 = vld [vmem:[%s11968_s0 + $0x270] sm:$0xff]  ;;  %v487_v28 = vsub.f32 %v8771_v49, %v12151_v47  ;;  %v651_v49 = vld [vmem:[#allocation2 + $0x2f8] sm:$0xff] }
  0xaa   :  { %535 = vst.msk [vmem:[#allocation2 + $0x358] sm:$0xff] %vm234_vm0, %v503_v44  ;;  %v648_v44 = vld [vmem:[#allocation2 + $0x2e0] sm:$0xff] }
  0xab   :  { %v504_v36 = vmul.f32 0.5, %v472_v25  ;;  %v649_v25 = vld [vmem:[#allocation2 + $0x2e8] sm:$0xff] }
  0xac   :  { %7123 = vmatmul.mubr.msk.f32.gmra.mrb[70].mxu0 %vm234_vm0, %v627_v13  ;;  %v474_v13 = vsub.f32 %v8424_v32, %v7904_v53  ;;  %v12141_v32 = vld [vmem:[#allocation8_spill] sm:$0xff] }
  0xad   :  { %7125 = vmatprep.mubr.msk.f32.mxu0 %vm234_vm0, %v628_v6  ;;  %536 = vst.msk [vmem:[#allocation2 + $0x360] sm:$0xff] %vm234_vm0, %v504_v36  ;;  %v519_v36 = vmul.f32 0.5, %v487_v28  ;;  %v652_v53 = vld [vmem:[#allocation2 + $0x300] sm:$0xff]  ;;  %v662_v43 = vld [vmem:[#allocation2 + $0x350] sm:$0xff] }
  0xae   :  { %v506_v6 = vmul.f32 0.5, %v474_v13  ;;  %v660_v0 = vld [vmem:[#allocation2 + $0x340] sm:$0xff] }
  0xaf   :  { %551 = vst.msk [vmem:[#allocation2 + $0x3d8] sm:$0xff] %vm234_vm0, %v519_v36 }
  0xb0   :  { %7126 = vmatmul.mubr.msk.f32.gmra.mrb[72].mxu0 %vm234_vm0, %v629_v3  ;;  %538 = vst.msk [vmem:[#allocation2 + $0x370] sm:$0xff] %vm234_vm0, %v506_v6  ;;  %v477_v3 = vsub.f32 %v8497_v23, %v12141_v32  ;;  %v510_v23 = vmul.f32 0.5, %v478_v48  ;;  %v490_v6 = vsub.f32 %v8840_v46, %v12154_v63  ;;  %v657_v46 = vld [vmem:[#allocation2 + $0x328] sm:$0xff]  ;;  %v658_v32 = vld [vmem:[#allocation2 + $0x330] sm:$0xff] }
  0xb1   :  { %7128 = vmatprep.mubr.msk.f32.mxu0 %vm234_vm0, %v630_v52 }
  0xb2   :  { %v509_v52 = vmul.f32 0.5, %v477_v3  ;;  %542 = vst.msk [vmem:[#allocation2 + $0x390] sm:$0xff] %vm234_vm0, %v510_v23  ;;  %v661_v3 = vld [vmem:[#allocation2 + $0x348] sm:$0xff] }
  0xb4   :  { %7129 = vmatmul.mubr.msk.f32.gmra.mrb[74].mxu0 %vm234_vm0, %v631_v29  ;;  %541 = vst.msk [vmem:[#allocation2 + $0x388] sm:$0xff] %vm234_vm0, %v509_v52  ;;  %v511_v29 = vmul.f32 0.5, %v479_v58  ;;  %v663_v52 = vld [vmem:[#allocation2 + $0x358] sm:$0xff]  ;;  %v665_v58 = vld [vmem:[#allocation2 + $0x368] sm:$0xff] }
  0xb5   :  { %7131 = vmatprep.mubr.msk.f32.mxu0 %vm234_vm0, %v632_v8  ;;  %v12144_v8 = vld [vmem:[#allocation14_spill] sm:$0xff] }
  0xb6   :  { %v480_v55 = vsub.f32 %v12122_v45, %v12144_v8  ;;  %543 = vst.msk [vmem:[#allocation2 + $0x398] sm:$0xff] %vm234_vm0, %v511_v29  ;;  %v12147_v45 = vld [vmem:[#allocation23_spill] sm:$0xff] }
  0xb7   :  { %v666_v29 = vld [vmem:[#allocation2 + $0x370] sm:$0xff] }
  0xb8   :  { %7132 = vmatmul.mubr.msk.f32.gmra.mrb[76].mxu0 %vm234_vm0, %v633_v22  ;;  %v512_v31 = vmul.f32 0.5, %v480_v55  ;;  %v12146_v22 = vld [vmem:[#allocation20_spill] sm:$0xff] }
  0xb9   :  { %7134 = vmatprep.mubr.msk.f32.mxu0 %vm234_vm0, %v634_v18  ;;  %v482_v35 = vsub.f32 %v12126_v1, %v12146_v22  ;;  %v483_v18 = vsub.f32 %v12128_v10, %v12147_v45  ;;  %v516_v1 = vmul.f32 0.5, %v484_v33  ;;  %v12150_v10 = vld [vmem:[#allocation32_spill] sm:$0xff]  ;;  %v670_v33 = vld [vmem:[#allocation2 + $0x390] sm:$0xff] }
  0xba   :  { %544 = vst.msk [vmem:[#allocation2 + $0x3a0] sm:$0xff] %vm234_vm0, %v512_v31  ;;  %v486_v15 = vsub.f32 %v8750_v50, %v12150_v10 }
  0xbb   :  { %v514_v61 = vmul.f32 0.5, %v482_v35  ;;  %548 = vst.msk [vmem:[#allocation2 + $0x3c0] sm:$0xff] %vm234_vm0, %v516_v1 }
  0xbc   :  { %7135 = vmatmul.mubr.msk.f32.gmra.mrb[78].mxu0 %vm234_vm0, %v635_v20  ;;  %v515_v20 = vmul.f32 0.5, %v483_v18  ;;  %v518_v16 = vmul.f32 0.5, %v486_v15 }
  0xbd   :  { %7137 = vmatprep.mubr.msk.f32.mxu0 %vm234_vm0, %v636_v40  ;;  %546 = vst.msk [vmem:[#allocation2 + $0x3b0] sm:$0xff] %vm234_vm0, %v514_v61  ;;  %v517_v40 = vmul.f32 0.5, %v485_v54  ;;  %v669_v61 = vld [vmem:[#allocation2 + $0x388] sm:$0xff]  ;;  %v671_v1 = vld [vmem:[#allocation2 + $0x398] sm:$0xff] }
  0xbe   :  { %547 = vst.msk [vmem:[#allocation2 + $0x3b8] sm:$0xff] %vm234_vm0, %v515_v20  ;;  %550 = vst.msk [vmem:[#allocation2 + $0x3d0] sm:$0xff] %vm234_vm0, %v518_v16  ;;  %v673_v16 = vld [vmem:[#allocation2 + $0x3a8] sm:$0xff] }
  0xbf   :  { %549 = vst.msk [vmem:[#allocation2 + $0x3c8] sm:$0xff] %vm234_vm0, %v517_v40 }
  0xc0   :  { %7138 = vmatmul.mubr.msk.f32.gmra.mrb[80].mxu0 %vm234_vm0, %v637_v21  ;;  %v12152_v21 = vld [vmem:[#allocation37_spill] sm:$0xff] }
  0xc1   :  { %7140 = vmatprep.mubr.msk.f32.mxu0 %vm234_vm0, %v638_v51  ;;  %v488_v56 = vsub.f32 %v8788_v26, %v12152_v21  ;;  %v12153_v51 = vld [vmem:[#allocation39_spill] sm:$0xff]  ;;  %v653_v26 = vld [vmem:[#allocation2 + $0x308] sm:$0xff]  ;;  %v672_v10 = vld [vmem:[#allocation2 + $0x3a0] sm:$0xff] }
  0xc2   :  { %v489_v50 = vsub.f32 %v8823_v30, %v12153_v51  ;;  %v522_v30 = vmul.f32 0.5, %v490_v6  ;;  %v676_v63 = vld [vmem:[#allocation2 + $0x3c0] sm:$0xff] }
  0xc3   :  { %v520_v13 = vmul.f32 0.5, %v488_v56 }
  0xc4   :  { %7141 = vmatmul.mubr.msk.f32.gmra.mrb[82].mxu0 %vm234_vm0, %v639_v27  ;;  %v521_v57 = vmul.f32 0.5, %v489_v50  ;;  %v654_v27 = vld [vmem:[#allocation2 + $0x310] sm:$0xff]  ;;  %554 = vst.msk [vmem:[#allocation2 + $0x3f0] sm:$0xff] %vm234_vm0, %v522_v30 }
  0xc5   :  { %7143 = vmatprep.mubr.msk.f32.mxu0 %vm234_vm0, %v640_v34  ;;  %552 = vst.msk [vmem:[#allocation2 + $0x3e0] sm:$0xff] %vm234_vm0, %v520_v13  ;;  %v655_v34 = vld [vmem:[#allocation2 + $0x318] sm:$0xff]  ;;  %v674_v21 = vld [vmem:[#allocation2 + $0x3b0] sm:$0xff] }
  0xc6   :  { %553 = vst.msk [vmem:[#allocation2 + $0x3e8] sm:$0xff] %vm234_vm0, %v521_v57  ;;  %v675_v13 = vld [vmem:[#allocation2 + $0x3b8] sm:$0xff] }
  0xc8   :  { %7144 = vmatmul.mubr.msk.f32.gmra.mrb[84].mxu0 %vm234_vm0, %v641_v12  ;;  %v9186_v12 = vld [vmem:[%s11970_s2] ss:$0 sm:$0xff] }
  0xc9   :  { %7146 = vmatprep.mubr.msk.f32.mxu0 %vm234_vm0, %v642_v41  ;;  %v664_v41 = vld [vmem:[#allocation2 + $0x360] sm:$0xff] }
  0xcc   :  { %7147 = vmatmul.mubr.msk.f32.gmra.mrb[86].mxu0 %vm234_vm0, %v643_v39 }
  0xcd   :  { %7149 = vmatprep.mubr.msk.f32.mxu0 %vm234_vm0, %v644_v2 }
  0xd0   :  { %7150 = vmatmul.mubr.msk.f32.gmra.mrb[88].mxu0 %vm234_vm0, %v645_v62  ;;  %v667_v62 = vld [vmem:[#allocation2 + $0x378] sm:$0xff] }
  0xd1   :  { %7152 = vmatprep.mubr.msk.f32.mxu0 %vm234_vm0, %v646_v17  ;;  %v668_v17 = vld [vmem:[#allocation2 + $0x380] sm:$0xff] }
  0xd4   :  { %7153 = vmatmul.mubr.msk.f32.gmra.mrb[90].mxu0 %vm234_vm0, %v647_v37 }
  0xd5   :  { %7155 = vmatprep.mubr.msk.f32.mxu0 %vm234_vm0, %v648_v44 }
  0xd8   :  { %7156 = vmatmul.mubr.msk.f32.gmra.mrb[92].mxu0 %vm234_vm0, %v649_v25 }
  0xd9   :  { %7158 = vmatprep.mubr.msk.f32.mxu0 %vm234_vm0, %v650_v42 }
  0xdc   :  { %7159 = vmatmul.mubr.msk.f32.gmra.mrb[94].mxu0 %vm234_vm0, %v651_v49 }
  0xdd   :  { %7161 = vmatprep.mubr.msk.f32.mxu0 %vm234_vm0, %v652_v53 }
  0xe0   :  { %7162 = vmatmul.mubr.msk.f32.gmra.mrb[96].mxu0 %vm234_vm0, %v653_v26 }
  0xe1   :  { %7164 = vmatprep.mubr.msk.f32.mxu0 %vm234_vm0, %v654_v27 }
  0xe4   :  { %7165 = vmatmul.mubr.msk.f32.gmra.mrb[98].mxu0 %vm234_vm0, %v655_v34  ;;  %v677_v34 = vld [vmem:[#allocation2 + $0x3c8] sm:$0xff] }
  0xe5   :  { %7167 = vmatprep.mubr.msk.f32.mxu0 %vm234_vm0, %v656_v7  ;;  %v678_v7 = vld [vmem:[#allocation2 + $0x3d0] sm:$0xff] }
  0xe8   :  { %7168 = vmatmul.mubr.msk.f32.gmra.mrb[100].mxu0 %vm234_vm0, %v657_v46  ;;  %v7019_v59 = vpop.f32.mrb[0].mxu0 }
  0xe9   :  { %7170 = vmatprep.mubr.msk.f32.mxu0 %vm234_vm0, %v658_v32  ;;  %v1151_v48 = vadd.f32 %v7019_v59, %v9186_v12  ;;  %v1145_v4 = vpop.f32.mrb[1].mxu0 }
  0xea   :  { %v1146_v39 = vadd.f32 %v9186_v12, %v1145_v4 }
  0xeb   :  { %v9192_v23 = vmax.f32 %v1151_v48, 0.0 }
  0xec   :  { %7171 = vmatmul.mubr.msk.f32.gmra.mrb[102].mxu0 %vm234_vm0, %v659_v9  ;;  %v7022_v2 = vpop.f32.mrb[2].mxu0  ;;  %v9201_v19 = vmax.f32 %v1146_v39, 0.0 }
  0xed   :  { %7173 = vmatprep.mubr.msk.f32.mxu0 %vm234_vm0, %v660_v0  ;;  %12155 = vst [vmem:[#allocation12_spill] sm:$0xff] %v9192_v23  ;;  %v1161_v8 = vadd.f32 %v7022_v2, %v9186_v12  ;;  %1955 = vrot.lane.b32.xlu0 %v9192_v23, %s8027_s12  ;;  %v1155_v55 = vpop.f32.mrb[3].mxu0 }
  0xee   :  { %v1156_v24 = vadd.f32 %v9186_v12, %v1155_v55  ;;  %12156 = vst [vmem:[#allocation10_spill] sm:$0xff] %v9201_v19 }
  0xef   :  { %v9203_v31 = vmax.f32 %v1161_v8, 0.0  ;;  %v682_v8 = vld [vmem:[#allocation2 + $0x3f0] sm:$0xff] }
  0xf0   :  { %7174 = vmatmul.mubr.msk.f32.gmra.mrb[104].mxu0 %vm234_vm0, %v661_v3  ;;  %v7025_v11 = vpop.f32.mrb[4].mxu0  ;;  %v9205_v22 = vmax.f32 %v1156_v24, 0.0 }
  0xf1   :  { %7176 = vmatprep.mubr.msk.f32.mxu0 %vm234_vm0, %v662_v43  ;;  %12157 = vst [vmem:[#allocation15_spill] sm:$0xff] %v9203_v31  ;;  %1959 = vrot.lane.b32.xlu1 %v9203_v31, %s8027_s12  ;;  %v1171_v35 = vadd.f32 %v7025_v11, %v9186_v12  ;;  %v1165_v45 = vpop.f32.mrb[5].mxu0  ;;  %v679_v43 = vld [vmem:[#allocation2 + $0x3d8] sm:$0xff] }
  0xf2   :  { %12158 = vst [vmem:[#allocation13_spill] sm:$0xff] %v9205_v22  ;;  %1953 = vrot.lane.b32.xlu0 %v9201_v19, %s8027_s12  ;;  %v1166_v18 = vadd.f32 %v9186_v12, %v1165_v45 }
  0xf3   :  { %v9215_v14 = vmax.f32 %v1171_v35, 0.0  ;;  %v683_v35 = vld [vmem:[#allocation2 + $0x3f8] sm:$0xff] }
  0xf4   :  { %7177 = vmatmul.mubr.msk.f32.gmra.mrb[106].mxu0 %vm234_vm0, %v663_v52  ;;  %v7028_v5 = vpop.f32.mrb[6].mxu0  ;;  %v9217_v54 = vmax.f32 %v1166_v18, 0.0 }
  0xf5   :  { %7179 = vmatprep.mubr.msk.f32.mxu0 %vm234_vm0, %v664_v41  ;;  %12159 = vst [vmem:[#allocation18_spill] sm:$0xff] %v9215_v14  ;;  %1957 = vrot.lane.b32.xlu1 %v9205_v22, %s8027_s12  ;;  %v1181_v37 = vadd.f32 %v7028_v5, %v9186_v12  ;;  %v1175_v20 = vpop.f32.mrb[7].mxu0  ;;  %v680_v41 = vld [vmem:[#allocation2 + $0x3e0] sm:$0xff] }
  0xf6   :  { %12160 = vst [vmem:[#allocation16_spill] sm:$0xff] %v9217_v54  ;;  %2508 = vrot.lane.b32.xlu0 %v9201_v19, %s8028_s13  ;;  %v1176_v44 = vadd.f32 %v9186_v12, %v1175_v20 }
  0xf7   :  { %v9227_v15 = vmax.f32 %v1181_v37, 0.0 }
  0xf8   :  { %7180 = vmatmul.mubr.msk.f32.gmra.mrb[108].mxu0 %vm234_vm0, %v665_v58  ;;  %v9229_v47 = vmax.f32 %v1176_v44, 0.0 }
  0xf9   :  { %7182 = vmatprep.mubr.msk.f32.mxu0 %vm234_vm0, %v666_v29  ;;  %v7031_v40 = vpop.f32.mrb[8].mxu0  ;;  %12161 = vst [vmem:[#allocation21_spill] sm:$0xff] %v9227_v15  ;;  %1963 = vrot.lane.b32.xlu1 %v9215_v14, %s8027_s12  ;;  %v681_v29 = vld [vmem:[#allocation2 + $0x3e8] sm:$0xff] }
  0xfa   :  { %12162 = vst [vmem:[#allocation19_spill] sm:$0xff] %v9229_v47  ;;  %1961 = vrot.lane.b32.xlu0 %v9217_v54, %s8027_s12  ;;  %v1191_v28 = vadd.f32 %v7031_v40, %v9186_v12  ;;  %v1185_v25 = vpop.f32.mrb[9].mxu0 }
  0xfb   :  { %v1186_v42 = vadd.f32 %v9186_v12, %v1185_v25 }
  0xfc   :  { %7183 = vmatmul.mubr.msk.f32.gmra.mrb[110].mxu0 %vm234_vm0, %v667_v62  ;;  %v9239_v56 = vmax.f32 %v1191_v28, 0.0 }
  0xfd   :  { %7185 = vmatprep.mubr.msk.f32.mxu0 %vm234_vm0, %v668_v17  ;;  %v9241_v51 = vmax.f32 %v1186_v42, 0.0  ;;  %1967 = vrot.lane.b32.xlu1 %v9227_v15, %s8027_s12 }
  0xfe   :  { %12163 = vst [vmem:[#allocation25_spill] sm:$0xff] %v9239_v56  ;;  %1965 = vrot.lane.b32.xlu0 %v9229_v47, %s8027_s12 }
  0xff   :  { %12164 = vst [vmem:[#allocation22_spill] sm:$0xff] %v9241_v51 }
 0x100   :  { %7186 = vmatmul.mubr.msk.f32.gmra.mrb[112].mxu0 %vm234_vm0, %v669_v61  ;;  %v7034_v36 = vpop.f32.mrb[10].mxu0 }
 0x101   :  { %7188 = vmatprep.mubr.msk.f32.mxu0 %vm234_vm0, %v670_v33  ;;  %v1201_v50 = vadd.f32 %v7034_v36, %v9186_v12  ;;  %v1195_v49 = vpop.f32.mrb[11].mxu0  ;;  %1971 = vrot.lane.b32.xlu1 %v9239_v56, %s8027_s12 }
 0x102   :  { %v1196_v53 = vadd.f32 %v9186_v12, %v1195_v49  ;;  %1969 = vrot.lane.b32.xlu0 %v9241_v51, %s8027_s12 }
 0x103   :  { %v9251_v6 = vmax.f32 %v1201_v50, 0.0 }
 0x104   :  { %7189 = vmatmul.mubr.msk.f32.gmra.mrb[114].mxu0 %vm234_vm0, %v671_v1  ;;  %v9253_v26 = vmax.f32 %v1196_v53, 0.0 }
 0x105   :  { %7191 = vmatprep.mubr.msk.f32.mxu0 %vm234_vm0, %v672_v10  ;;  %12165 = vst [vmem:[#allocation27_spill] sm:$0xff] %v9251_v6  ;;  %1975 = vrot.lane.b32.xlu1 %v9251_v6, %s8027_s12 }
 0x106   :  { %12166 = vst [vmem:[#allocation24_spill] sm:$0xff] %v9253_v26  ;;  %1973 = vrot.lane.b32.xlu0 %v9253_v26, %s8027_s12 }
 0x108   :  { %7192 = vmatmul.mubr.msk.f32.gmra.mrb[116].mxu0 %vm234_vm0, %v673_v16  ;;  %v7037_v57 = vpop.f32.mrb[12].mxu0 }
 0x109   :  { %7194 = vmatprep.mubr.msk.f32.mxu0 %vm234_vm0, %v674_v21  ;;  %v1211_v27 = vadd.f32 %v7037_v57, %v9186_v12  ;;  %v1205_v30 = vpop.f32.mrb[13].mxu0 }
 0x10a   :  { %v1206_v38 = vadd.f32 %v9186_v12, %v1205_v30  ;;  %v2500_v30 = vld [vmem:[%s11977_s9 + $0x8] sm:$0xff] }
 0x10b   :  { %v9263_v46 = vmax.f32 %v1211_v27, 0.0  ;;  %v2499_v27 = vld [vmem:[%s11977_s9] sm:$0xff] }
 0x10c   :  { %7195 = vmatmul.mubr.msk.f32.gmra.mrb[118].mxu0 %vm234_vm0, %v675_v13  ;;  %v9265_v32 = vmax.f32 %v1206_v38, 0.0 }
 0x10d   :  { %7197 = vmatprep.mubr.msk.f32.mxu0 %vm234_vm0, %v676_v63  ;;  %12167 = vst [vmem:[#allocation30_spill] sm:$0xff] %v9263_v46  ;;  %1979 = vrot.lane.b32.xlu1 %v9263_v46, %s8027_s12 }
 0x10e   :  { %12168 = vst [vmem:[#allocation28_spill] sm:$0xff] %v9265_v32  ;;  %1977 = vrot.lane.b32.xlu0 %v9265_v32, %s8027_s12 }
 0x10f   :  { %v7040_v60 = vpop.f32.mrb[14].mxu0 }
 0x110   :  { %v1221_v9 = vadd.f32 %v7040_v60, %v9186_v12  ;;  %v1215_v0 = vpop.f32.mrb[15].mxu0  ;;  %7198 = vmatmul.mubr.msk.f32.gmra.mrb[120].mxu0 %vm234_vm0, %v677_v34  ;;  %v7637_v34 = vpack.c.bf16 %v2500_v30, %v2499_v27 }
 0x111   :  { %v1216_v3 = vadd.f32 %v9186_v12, %v1215_v0  ;;  %7200 = vmatprep.mubr.msk.f32.mxu0 %vm234_vm0, %v678_v7 }
 0x112   :  { %v9275_v59 = vmax.f32 %v1221_v9, 0.0  ;;  %7638 = vmatprep.subr.bf16.mxu1 %v7637_v34 }
 0x113   :  { %v7043_v52 = vpop.f32.mrb[16].mxu0  ;;  %v9277_v48 = vmax.f32 %v1216_v3, 0.0  ;;  %7640 = vmatpush3.bf16.msra.mxu1 %v7637_v34 }
 0x114   :  { %12169 = vst [vmem:[#allocation34_spill] sm:$0xff] %v9275_v59  ;;  %v1231_v4 = vadd.f32 %v7043_v52, %v9186_v12  ;;  %v1225_v58 = vpop.f32.mrb[17].mxu0  ;;  %7201 = vmatmul.mubr.msk.f32.gmra.mrb[122].mxu0 %vm234_vm0, %v679_v43  ;;  %1983 = vrot.lane.b32.xlu1 %v9275_v59, %s8027_s12 }
 0x115   :  { %12170 = vst [vmem:[#allocation31_spill] sm:$0xff] %v9277_v48  ;;  %v1226_v39 = vadd.f32 %v9186_v12, %v1225_v58  ;;  %7203 = vmatprep.mubr.msk.f32.mxu0 %vm234_vm0, %v680_v41  ;;  %1981 = vrot.lane.b32.xlu0 %v9277_v48, %s8027_s12 }
 0x116   :  { %v9287_v55 = vmax.f32 %v1231_v4, 0.0 }
 0x117   :  { %v7046_v2 = vpop.f32.mrb[18].mxu0  ;;  %v9289_v24 = vmax.f32 %v1226_v39, 0.0 }
 0x118   :  { %12171 = vst [vmem:[#allocation33_spill] sm:$0xff] %v9287_v55  ;;  %v1241_v62 = vadd.f32 %v7046_v2, %v9186_v12  ;;  %v1235_v11 = vpop.f32.mrb[19].mxu0  ;;  %7204 = vmatmul.mubr.msk.f32.gmra.mrb[124].mxu0 %vm234_vm0, %v681_v29  ;;  %1987 = vrot.lane.b32.xlu1 %v9287_v55, %s8027_s12 }
 0x119   :  { %12172 = vst [vmem:[#allocation36_spill] sm:$0xff] %v9289_v24  ;;  %v1236_v17 = vadd.f32 %v9186_v12, %v1235_v11  ;;  %7206 = vmatprep.mubr.msk.f32.mxu0 %vm234_vm0, %v682_v8  ;;  %1985 = vrot.lane.b32.xlu0 %v9289_v24, %s8027_s12 }
 0x11a   :  { %v9299_v18 = vmax.f32 %v1241_v62, 0.0 }
 0x11b   :  { %v7049_v45 = vpop.f32.mrb[20].mxu0  ;;  %v9301_v61 = vmax.f32 %v1236_v17, 0.0 }
 0x11c   :  { %12173 = vst [vmem:[#allocation38_spill] sm:$0xff] %v9299_v18  ;;  %v1251_v5 = vadd.f32 %v7049_v45, %v9186_v12  ;;  %v1245_v33 = vpop.f32.mrb[21].mxu0  ;;  %7207 = vmatmul.mubr.msk.f32.gmra.mrb[126].mxu0 %vm234_vm0, %v683_v35  ;;  %1991 = vrot.lane.b32.xlu1 %v9299_v18, %s8027_s12 }
 0x11d   :  { %12174 = vst [vmem:[#allocation40_spill] sm:$0xff] %v9301_v61  ;;  %v1246_v37 = vadd.f32 %v9186_v12, %v1245_v33  ;;  %1989 = vrot.lane.b32.xlu0 %v9301_v61, %s8027_s12 }
 0x11e   :  { %v9310_v44 = vmax.f32 %v1251_v5, 0.0 }
 0x11f   :  { %v7052_v20 = vpop.f32.mrb[22].mxu0  ;;  %v9312_v1 = vmax.f32 %v1246_v37, 0.0 }
 0x120   :  { %12175 = vst [vmem:[#allocation42_spill] sm:$0xff] %v9310_v44  ;;  %v1261_v40 = vadd.f32 %v7052_v20, %v9186_v12  ;;  %v1255_v10 = vpop.f32.mrb[23].mxu0  ;;  %1995 = vrot.lane.b32.xlu1 %v9310_v44, %s8027_s12 }
 0x121   :  { %12176 = vst [vmem:[#allocation6_spill] sm:$0xff] %v9312_v1  ;;  %v1256_v28 = vadd.f32 %v9186_v12, %v1255_v10  ;;  %1993 = vrot.lane.b32.xlu0 %v9312_v1, %s8027_s12 }
 0x122   :  { %v9320_v42 = vmax.f32 %v1261_v40, 0.0 }
 0x123   :  { %v7055_v25 = vpop.f32.mrb[24].mxu0  ;;  %v9322_v16 = vmax.f32 %v1256_v28, 0.0 }
 0x124   :  { %12177 = vst [vmem:[#allocation7_spill] sm:$0xff] %v9320_v42  ;;  %v1271_v36 = vadd.f32 %v7055_v25, %v9186_v12  ;;  %v1265_v21 = vpop.f32.mrb[25].mxu0  ;;  %1999 = vrot.lane.b32.xlu1 %v9320_v42, %s8027_s12 }
 0x125   :  { %12178 = vst [vmem:[#allocation8_spill] sm:$0xff] %v9322_v16  ;;  %v1266_v50 = vadd.f32 %v9186_v12, %v1265_v21  ;;  %1997 = vrot.lane.b32.xlu0 %v9322_v16, %s8027_s12 }
 0x126   :  { %v9330_v53 = vmax.f32 %v1271_v36, 0.0 }
 0x127   :  { %v7058_v49 = vpop.f32.mrb[26].mxu0  ;;  %v9332_v13 = vmax.f32 %v1266_v50, 0.0 }
 0x128   :  { %12179 = vst [vmem:[#allocation9_spill] sm:$0xff] %v9330_v53  ;;  %v1281_v57 = vadd.f32 %v7058_v49, %v9186_v12  ;;  %v1275_v63 = vpop.f32.mrb[27].mxu0  ;;  %2003 = vrot.lane.b32.xlu1 %v9330_v53, %s8027_s12 }
 0x129   :  { %12180 = vst [vmem:[#allocation11_spill] sm:$0xff] %v9332_v13  ;;  %v1276_v38 = vadd.f32 %v9186_v12, %v1275_v63  ;;  %2001 = vrot.lane.b32.xlu0 %v9332_v13, %s8027_s12 }
 0x12a   :  { %v9346_v7 = vmax.f32 %v1281_v57, 0.0 }
 0x12b   :  { %v7061_v60 = vpop.f32.mrb[28].mxu0  ;;  %v9348_v9 = vmax.f32 %v1276_v38, 0.0 }
 0x12c   :  { %12181 = vst [vmem:[#allocation14_spill] sm:$0xff] %v9346_v7  ;;  %v1291_v0 = vadd.f32 %v7061_v60, %v9186_v12  ;;  %v1285_v3 = vpop.f32.mrb[29].mxu0  ;;  %2007 = vrot.lane.b32.xlu1 %v9346_v7, %s8027_s12 }
 0x12d   :  { %12182 = vst [vmem:[#allocation17_spill] sm:$0xff] %v9348_v9  ;;  %v1286_v43 = vadd.f32 %v9186_v12, %v1285_v3  ;;  %2005 = vrot.lane.b32.xlu0 %v9348_v9, %s8027_s12 }
 0x12e   :  { %v9356_v41 = vmax.f32 %v1291_v0, 0.0 }
 0x12f   :  { %v7064_v52 = vpop.f32.mrb[30].mxu0  ;;  %v9358_v4 = vmax.f32 %v1286_v43, 0.0 }
 0x130   :  { %12183 = vst [vmem:[#allocation20_spill] sm:$0xff] %v9356_v41  ;;  %v1301_v58 = vadd.f32 %v7064_v52, %v9186_v12  ;;  %v1295_v39 = vpop.f32.mrb[31].mxu0  ;;  %2011 = vrot.lane.b32.xlu1 %v9356_v41, %s8027_s12 }
 0x131   :  { %12184 = vst [vmem:[#allocation23_spill] sm:$0xff] %v9358_v4  ;;  %2009 = vrot.lane.b32.xlu0 %v9358_v4, %s8027_s12  ;;  %v1296_v28 = vadd.f32 %v9186_v12, %v1295_v39 }
 0x132   :  { %v9367_v2 = vmax.f32 %v1301_v58, 0.0 }
 0x133   :  { %v9365_v29 = vpop.f32.mrb[32].mxu0  ;;  %v9428_v21 = vmax.f32 %v1296_v28, 0.0 }
 0x134   :  { %12185 = vst [vmem:[#allocation26_spill] sm:$0xff] %v9365_v29  ;;  %12186 = vst [vmem:[#allocation29_spill] sm:$0xff] %v9367_v2  ;;  %v9373_v8 = vpop.f32.mrb[33].mxu0  ;;  %2015 = vrot.lane.b32.xlu1 %v9367_v2, %s8027_s12 }
 0x135   :  { %12187 = vst [vmem:[#allocation32_spill] sm:$0xff] %v9373_v8  ;;  %2512 = vrot.lane.b32.xlu0 %v9205_v22, %s8028_s13  ;;  %12201 = vst [vmem:[#allocation52_spill] sm:$0xff] %v9428_v21 }
 0x137   :  { %v9375_v62 = vpop.f32.mrb[34].mxu0 }
 0x138   :  { %12188 = vst [vmem:[#allocation35_spill] sm:$0xff] %v9375_v62  ;;  %v9381_v11 = vpop.f32.mrb[35].mxu0  ;;  %2510 = vrot.lane.b32.xlu1 %v9192_v23, %s8028_s13  ;;  %v3504_v62 = vld [vmem:[%s11971_s3 + $0x10] sm:$0xff] }
 0x139   :  { %12189 = vst [vmem:[#allocation37_spill] sm:$0xff] %v9381_v11  ;;  %2516 = vrot.lane.b32.xlu0 %v9217_v54, %s8028_s13 }
 0x13b   :  { %v9383_v17 = vpop.f32.mrb[36].mxu0 }
 0x13c   :  { %12190 = vst [vmem:[#allocation39_spill] sm:$0xff] %v9383_v17  ;;  %v9389_v35 = vpop.f32.mrb[37].mxu0  ;;  %2514 = vrot.lane.b32.xlu1 %v9203_v31, %s8028_s13  ;;  %v12284_v17 = vmov 2  }
 0x13d   :  { %12191 = vst [vmem:[#allocation41_spill] sm:$0xff] %v9389_v35  ;;  %2520 = vrot.lane.b32.xlu0 %v9229_v47, %s8028_s13 }
 0x13f   :  { %v9391_v45 = vpop.f32.mrb[38].mxu0 }
 0x140   :  { %12192 = vst [vmem:[#allocation43_spill] sm:$0xff] %v9391_v45  ;;  %v9397_v5 = vpop.f32.mrb[39].mxu0  ;;  %2518 = vrot.lane.b32.xlu1 %v9215_v14, %s8028_s13 }
 0x141   :  { %12193 = vst [vmem:[#allocation44_spill] sm:$0xff] %v9397_v5  ;;  %2524 = vrot.lane.b32.xlu0 %v9241_v51, %s8028_s13 }
 0x143   :  { %v9399_v33 = vpop.f32.mrb[40].mxu0 }
 0x144   :  { %12194 = vst [vmem:[#allocation45_spill] sm:$0xff] %v9399_v33  ;;  %v9405_v37 = vpop.f32.mrb[41].mxu0  ;;  %2522 = vrot.lane.b32.xlu1 %v9227_v15, %s8028_s13 }
 0x145   :  { %12195 = vst [vmem:[#allocation46_spill] sm:$0xff] %v9405_v37  ;;  %2528 = vrot.lane.b32.xlu0 %v9253_v26, %s8028_s13 }
 0x147   :  { %v9407_v20 = vpop.f32.mrb[42].mxu0 }
 0x148   :  { %12196 = vst [vmem:[#allocation47_spill] sm:$0xff] %v9407_v20  ;;  %v9413_v40 = vpop.f32.mrb[43].mxu0  ;;  %2526 = vrot.lane.b32.xlu1 %v9239_v56, %s8028_s13 }
 0x149   :  { %12197 = vst [vmem:[#allocation48_spill] sm:$0xff] %v9413_v40  ;;  %2532 = vrot.lane.b32.xlu0 %v9265_v32, %s8028_s13  ;;  %v12283_v40 = vmov 0  }
 0x14b   :  { %v9415_v10 = vpop.f32.mrb[44].mxu0 }
 0x14c   :  { %12198 = vst [vmem:[#allocation49_spill] sm:$0xff] %v9415_v10  ;;  %v9422_v25 = vpop.f32.mrb[45].mxu0  ;;  %2530 = vrot.lane.b32.xlu1 %v9251_v6, %s8028_s13 }
 0x14d   :  { %12199 = vst [vmem:[#allocation50_spill] sm:$0xff] %v9422_v25  ;;  %2536 = vrot.lane.b32.xlu0 %v9277_v48, %s8028_s13 }
 0x14f   :  { %v9424_v36 = vpop.f32.mrb[46].mxu0 }
 0x150   :  { %12200 = vst [vmem:[#allocation51_spill] sm:$0xff] %v9424_v36  ;;  %v9432_v50 = vpop.f32.mrb[47].mxu0  ;;  %2534 = vrot.lane.b32.xlu1 %v9263_v46, %s8028_s13 }
 0x151   :  { %12202 = vst [vmem:[#allocation53_spill] sm:$0xff] %v9432_v50  ;;  %2013 = vrot.lane.b32.xlu0 %v9428_v21, %s8027_s12 }
 0x153   :  { %v9434_v49 = vpop.f32.mrb[48].mxu0 }
 0x154   :  { %12203 = vst [vmem:[#allocation54_spill] sm:$0xff] %v9434_v49  ;;  %v9440_v12 = vpop.f32.mrb[49].mxu0  ;;  %2538 = vrot.lane.b32.xlu1 %v9275_v59, %s8028_s13 }
 0x155   :  { %12204 = vst [vmem:[#allocation55_spill] sm:$0xff] %v9440_v12  ;;  %2540 = vrot.lane.b32.xlu0 %v9289_v24, %s8028_s13 }
 0x157   :  { %v9442_v57 = vpop.f32.mrb[50].mxu0 }
 0x158   :  { %12205 = vst [vmem:[#allocation56_spill] sm:$0xff] %v9442_v57  ;;  %v9448_v63 = vpop.f32.mrb[51].mxu0  ;;  %2542 = vrot.lane.b32.xlu1 %v9287_v55, %s8028_s13 }
 0x159   :  { %12206 = vst [vmem:[#allocation57_spill] sm:$0xff] %v9448_v63  ;;  %2544 = vrot.lane.b32.xlu0 %v9301_v61, %s8028_s13 }
 0x15b   :  { %v9450_v27 = vpop.f32.mrb[52].mxu0 }
 0x15c   :  { %12207 = vst [vmem:[#allocation58_spill] sm:$0xff] %v9450_v27  ;;  %v9456_v30 = vpop.f32.mrb[53].mxu0  ;;  %2546 = vrot.lane.b32.xlu1 %v9299_v18, %s8028_s13 }
 0x15d   :  { %12208 = vst [vmem:[#allocation59_spill] sm:$0xff] %v9456_v30  ;;  %2548 = vrot.lane.b32.xlu0 %v9312_v1, %s8028_s13 }
 0x15f   :  { %v9458_v38 = vpop.f32.mrb[54].mxu0  ;;  %v1956_v52 = vpop.permute.xlu0 %1955 }
 0x160   :  { %12209 = vst [vmem:[#allocation60_spill] sm:$0xff] %v9458_v38  ;;  %v9464_v34 = vpop.f32.mrb[55].mxu0  ;;  %2550 = vrot.lane.b32.xlu1 %v9310_v44, %s8028_s13 }
 0x161   :  { %12210 = vst [vmem:[#allocation61_spill] sm:$0xff] %v9464_v34  ;;  %2552 = vrot.lane.b32.xlu0 %v9322_v16, %s8028_s13 }
 0x163   :  { %v9466_v60 = vpop.f32.mrb[56].mxu0  ;;  %v1960_v28 = vpop.permute.xlu1 %1959 }
 0x164   :  { %12211 = vst [vmem:[#allocation62_spill] sm:$0xff] %v9466_v60  ;;  %v9472_v0 = vpop.f32.mrb[57].mxu0  ;;  %2554 = vrot.lane.b32.xlu1 %v9320_v42, %s8028_s13 }
 0x165   :  { %12212 = vst [vmem:[#allocation63_spill] sm:$0xff] %v9472_v0  ;;  %2556 = vrot.lane.b32.xlu0 %v9332_v13, %s8028_s13 }
 0x167   :  { %v9474_v3 = vpop.f32.mrb[58].mxu0 }
 0x168   :  { %12213 = vst [vmem:[#allocation64_spill] sm:$0xff] %v9474_v3  ;;  %v9480_v43 = vpop.f32.mrb[59].mxu0  ;;  %2558 = vrot.lane.b32.xlu1 %v9330_v53, %s8028_s13  ;;  %v1954_v3 = vpop.permute.xlu0 %1953 }
 0x169   :  { %12214 = vst [vmem:[#allocation65_spill] sm:$0xff] %v9480_v43  ;;  %2560 = vrot.lane.b32.xlu0 %v9348_v9, %s8028_s13  ;;  %7213 = vmatprep.mubr.msk.f32.mxu0 %vm2017_vm1, %v1954_v3  ;;  %v1958_v43 = vpop.permute.xlu1 %1957 }
 0x16a   :  { %7214 = vmatmul.mubr.msk.f32.vlgmr.msra.gmra.mrb[128].mxu0 %vm2017_vm1, %v1956_v52 }
 0x16b   :  { %v9482_v58 = vpop.f32.mrb[60].mxu0  ;;  %7216 = vmatprep.mubr.msk.f32.mxu0 %vm2017_vm1, %v1958_v43 }
 0x16c   :  { %12215 = vst [vmem:[#allocation66_spill] sm:$0xff] %v9482_v58  ;;  %v9488_v39 = vpop.f32.mrb[61].mxu0  ;;  %2562 = vrot.lane.b32.xlu1 %v9346_v7, %s8028_s13  ;;  %v2509_v0 = vpop.permute.xlu0 %2508 }
 0x16d   :  { %12216 = vst [vmem:[#allocation67_spill] sm:$0xff] %v9488_v39  ;;  %2564 = vrot.lane.b32.xlu0 %v9358_v4, %s8028_s13  ;;  %7265 = vmatprep.mubr.msk.f32.mxu1 %vm2017_vm1, %v2509_v0  ;;  %v1964_v52 = vpop.permute.xlu1 %1963 }
 0x16e   :  { %7217 = vmatmul.mubr.msk.f32.gmra.mrb[130].mxu0 %vm2017_vm1, %v1960_v28 }
 0x16f   :  { %v9491_v60 = vpop.f32.mrb[62].mxu0 }
 0x170   :  { %12217 = vst [vmem:[#allocation68_spill] sm:$0xff] %v9491_v60  ;;  %v9496_v58 = vpop.f32.mrb[63].mxu0  ;;  %2566 = vrot.lane.b32.xlu1 %v9356_v41, %s8028_s13  ;;  %v1962_v60 = vpop.permute.xlu0 %1961 }
 0x171   :  { %12218 = vst [vmem:[#allocation69_spill] sm:$0xff] %v9496_v58  ;;  %2568 = vrot.lane.b32.xlu0 %v9428_v21, %s8028_s13  ;;  %7219 = vmatprep.mubr.msk.f32.mxu0 %vm2017_vm1, %v1962_v60  ;;  %v1968_v43 = vpop.permute.xlu1 %1967 }
 0x172   :  { %7220 = vmatmul.mubr.msk.f32.gmra.mrb[132].mxu0 %vm2017_vm1, %v1964_v52 }
 0x173   :  { %v9502_v39 = vpop.f32.mrb[64].mxu0 }
 0x174   :  { %12219 = vst [vmem:[#allocation70_spill] sm:$0xff] %v9502_v39  ;;  %v9507_v3 = vpop.f32.mrb[65].mxu0  ;;  %2570 = vrot.lane.b32.xlu1 %v9367_v2, %s8028_s13  ;;  %v1966_v28 = vpop.permute.xlu0 %1965 }
 0x175   :  { %12220 = vst [vmem:[#allocation71_spill] sm:$0xff] %v9507_v3  ;;  %7222 = vmatprep.mubr.msk.f32.mxu0 %vm2017_vm1, %v1966_v28  ;;  %v1972_v60 = vpop.permute.xlu1 %1971 }
 0x176   :  { %7223 = vmatmul.mubr.msk.f32.gmra.mrb[134].mxu0 %vm2017_vm1, %v1968_v43 }
 0x177   :  { %v9512_v58 = vpop.f32.mrb[66].mxu0 }
 0x178   :  { %12221 = vst [vmem:[#allocation72_spill] sm:$0xff] %v9512_v58  ;;  %v9517_v0 = vpop.f32.mrb[67].mxu0  ;;  %v1970_v38 = vpop.permute.xlu0 %1969 }
 0x179   :  { %12222 = vst [vmem:[#allocation73_spill] sm:$0xff] %v9517_v0  ;;  %7225 = vmatprep.mubr.msk.f32.mxu0 %vm2017_vm1, %v1970_v38  ;;  %v1976_v0 = vpop.permute.xlu1 %1975 }
 0x17a   :  { %7226 = vmatmul.mubr.msk.f32.gmra.mrb[136].mxu0 %vm2017_vm1, %v1972_v60 }
 0x17b   :  { %v9520_v39 = vpop.f32.mrb[68].mxu0 }
 0x17c   :  { %12223 = vst [vmem:[#allocation74_spill] sm:$0xff] %v9520_v39  ;;  %v9523_v3 = vpop.f32.mrb[69].mxu0  ;;  %v1974_v34 = vpop.permute.xlu0 %1973 }
 0x17d   :  { %12224 = vst [vmem:[#allocation75_spill] sm:$0xff] %v9523_v3  ;;  %7228 = vmatprep.mubr.msk.f32.mxu0 %vm2017_vm1, %v1974_v34 }
 0x17e   :  { %7229 = vmatmul.mubr.msk.f32.gmra.mrb[138].mxu0 %vm2017_vm1, %v1976_v0 }
 0x17f   :  { %v9526_v58 = vpop.f32.mrb[70].mxu0  ;;  %v1980_v39 = vpop.permute.xlu1 %1979 }
 0x180   :  { %12225 = vst [vmem:[#allocation76_spill] sm:$0xff] %v9526_v58  ;;  %v9529_v52 = vpop.f32.mrb[71].mxu0  ;;  %v1978_v3 = vpop.permute.xlu0 %1977 }
 0x181   :  { %12226 = vst [vmem:[#allocation77_spill] sm:$0xff] %v9529_v52  ;;  %7231 = vmatprep.mubr.msk.f32.mxu0 %vm2017_vm1, %v1978_v3 }
 0x182   :  { %7232 = vmatmul.mubr.msk.f32.gmra.mrb[140].mxu0 %vm2017_vm1, %v1980_v39 }
 0x183   :  { %v9532_v28 = vpop.f32.mrb[72].mxu0 }
 0x184   :  { %12227 = vst [vmem:[#allocation78_spill] sm:$0xff] %v9532_v28  ;;  %v9535_v43 = vpop.f32.mrb[73].mxu0 }
 0x185   :  { %12228 = vst [vmem:[#allocation79_spill] sm:$0xff] %v9535_v43 }
 0x186   :  { %v1984_v58 = vpop.permute.xlu1 %1983 }
 0x187   :  { %v9538_v38 = vpop.f32.mrb[74].mxu0  ;;  %v1982_v52 = vpop.permute.xlu0 %1981 }
 0x188   :  { %12229 = vst [vmem:[#allocation80_spill] sm:$0xff] %v9538_v38  ;;  %v9541_v60 = vpop.f32.mrb[75].mxu0  ;;  %7234 = vmatprep.mubr.msk.f32.mxu0 %vm2017_vm1, %v1982_v52 }
 0x189   :  { %12230 = vst [vmem:[#allocation81_spill] sm:$0xff] %v9541_v60  ;;  %7235 = vmatmul.mubr.msk.f32.gmra.mrb[142].mxu0 %vm2017_vm1, %v1984_v58 }
 0x18a   :  { %v1988_v28 = vpop.permute.xlu1 %1987 }
 0x18b   :  { %v9544_v34 = vpop.f32.mrb[76].mxu0  ;;  %v1986_v43 = vpop.permute.xlu0 %1985 }
 0x18c   :  { %12231 = vst [vmem:[#allocation82_spill] sm:$0xff] %v9544_v34  ;;  %v9547_v0 = vpop.f32.mrb[77].mxu0  ;;  %7237 = vmatprep.mubr.msk.f32.mxu0 %vm2017_vm1, %v1986_v43 }
 0x18d   :  { %12232 = vst [vmem:[#allocation83_spill] sm:$0xff] %v9547_v0  ;;  %7238 = vmatmul.mubr.msk.f32.gmra.mrb[144].mxu0 %vm2017_vm1, %v1988_v28 }
 0x18e   :  { %v1992_v38 = vpop.permute.xlu1 %1991 }
 0x18f   :  { %v9550_v3 = vpop.f32.mrb[78].mxu0  ;;  %v1990_v60 = vpop.permute.xlu0 %1989 }
 0x190   :  { %12233 = vst [vmem:[#allocation84_spill] sm:$0xff] %v9550_v3  ;;  %v9553_v39 = vpop.f32.mrb[79].mxu0  ;;  %7240 = vmatprep.mubr.msk.f32.mxu0 %vm2017_vm1, %v1990_v60 }
 0x191   :  { %12234 = vst [vmem:[#allocation85_spill] sm:$0xff] %v9553_v39  ;;  %7241 = vmatmul.mubr.msk.f32.gmra.mrb[146].mxu0 %vm2017_vm1, %v1992_v38 }
 0x192   :  { %v1996_v34 = vpop.permute.xlu1 %1995 }
 0x193   :  { %v9556_v52 = vpop.f32.mrb[80].mxu0  ;;  %v1994_v0 = vpop.permute.xlu0 %1993 }
 0x194   :  { %12235 = vst [vmem:[#allocation86_spill] sm:$0xff] %v9556_v52  ;;  %v9559_v58 = vpop.f32.mrb[81].mxu0  ;;  %7243 = vmatprep.mubr.msk.f32.mxu0 %vm2017_vm1, %v1994_v0 }
 0x195   :  { %12236 = vst [vmem:[#allocation87_spill] sm:$0xff] %v9559_v58  ;;  %7244 = vmatmul.mubr.msk.f32.gmra.mrb[148].mxu0 %vm2017_vm1, %v1996_v34 }
 0x196   :  { %v2000_v3 = vpop.permute.xlu1 %1999 }
 0x197   :  { %v9562_v43 = vpop.f32.mrb[82].mxu0  ;;  %v1998_v39 = vpop.permute.xlu0 %1997 }
 0x198   :  { %12237 = vst [vmem:[#allocation88_spill] sm:$0xff] %v9562_v43  ;;  %v9565_v28 = vpop.f32.mrb[83].mxu0  ;;  %7246 = vmatprep.mubr.msk.f32.mxu0 %vm2017_vm1, %v1998_v39 }
 0x199   :  { %12238 = vst [vmem:[#allocation89_spill] sm:$0xff] %v9565_v28  ;;  %7247 = vmatmul.mubr.msk.f32.gmra.mrb[150].mxu0 %vm2017_vm1, %v2000_v3 }
 0x19a   :  { %v2004_v52 = vpop.permute.xlu1 %2003 }
 0x19b   :  { %v9568_v60 = vpop.f32.mrb[84].mxu0  ;;  %v2002_v58 = vpop.permute.xlu0 %2001 }
 0x19c   :  { %12239 = vst [vmem:[#allocation90_spill] sm:$0xff] %v9568_v60  ;;  %v9571_v38 = vpop.f32.mrb[85].mxu0  ;;  %7249 = vmatprep.mubr.msk.f32.mxu0 %vm2017_vm1, %v2002_v58 }
 0x19d   :  { %12240 = vst [vmem:[#allocation91_spill] sm:$0xff] %v9571_v38  ;;  %7250 = vmatmul.mubr.msk.f32.gmra.mrb[152].mxu0 %vm2017_vm1, %v2004_v52 }
 0x19e   :  { %v2008_v43 = vpop.permute.xlu1 %2007 }
 0x19f   :  { %v9574_v0 = vpop.f32.mrb[86].mxu0  ;;  %v2006_v28 = vpop.permute.xlu0 %2005 }
 0x1a0   :  { %12241 = vst [vmem:[#allocation92_spill] sm:$0xff] %v9574_v0  ;;  %v9577_v34 = vpop.f32.mrb[87].mxu0  ;;  %7252 = vmatprep.mubr.msk.f32.mxu0 %vm2017_vm1, %v2006_v28 }
 0x1a1   :  { %12242 = vst [vmem:[#allocation93_spill] sm:$0xff] %v9577_v34  ;;  %7253 = vmatmul.mubr.msk.f32.gmra.mrb[154].mxu0 %vm2017_vm1, %v2008_v43 }
 0x1a2   :  { %v2012_v60 = vpop.permute.xlu1 %2011 }
 0x1a3   :  { %v9580_v39 = vpop.f32.mrb[88].mxu0  ;;  %v2010_v38 = vpop.permute.xlu0 %2009 }
 0x1a4   :  { %12243 = vst [vmem:[#allocation94_spill] sm:$0xff] %v9580_v39  ;;  %v9583_v3 = vpop.f32.mrb[89].mxu0  ;;  %7255 = vmatprep.mubr.msk.f32.mxu0 %vm2017_vm1, %v2010_v38 }
 0x1a5   :  { %12244 = vst [vmem:[#allocation95_spill] sm:$0xff] %v9583_v3  ;;  %7256 = vmatmul.mubr.msk.f32.gmra.mrb[156].mxu0 %vm2017_vm1, %v2012_v60 }
 0x1a6   :  { %v2016_v0 = vpop.permute.xlu1 %2015 }
 0x1a7   :  { %v9586_v58 = vpop.f32.mrb[90].mxu0  ;;  %v2513_v34 = vpop.permute.xlu0 %2512 }
 0x1a8   :  { %12245 = vst [vmem:[#allocation96_spill] sm:$0xff] %v9586_v58  ;;  %v9589_v52 = vpop.f32.mrb[91].mxu0 }
 0x1a9   :  { %12246 = vst [vmem:[#allocation97_spill] sm:$0xff] %v9589_v52 }
 0x1aa   :  { %v2511_v39 = vpop.permute.xlu1 %2510 }
 0x1ab   :  { %v9591_v27 = vpop.f32.mrb[92].mxu0  ;;  %v2517_v43 = vpop.permute.xlu0 %2516  ;;  %7266 = vmatmul.mubr.msk.f32.vlgmr.msra.gmra.mrb[0].mxu1 %vm2017_vm1, %v2511_v39 }
 0x1ac   :  { %12247 = vst [vmem:[#allocation98_spill] sm:$0xff] %v9591_v27  ;;  %v9593_v28 = vpop.f32.mrb[93].mxu0  ;;  %7268 = vmatprep.mubr.msk.f32.mxu1 %vm2017_vm1, %v2513_v34 }
 0x1ad   :  { %12248 = vst [vmem:[#allocation99_spill] sm:$0xff] %v9593_v28 }
 0x1ae   :  { %v2515_v58 = vpop.permute.xlu1 %2514 }
 0x1af   :  { %v9596_v3 = vpop.f32.mrb[94].mxu0  ;;  %v2521_v60 = vpop.permute.xlu0 %2520  ;;  %7269 = vmatmul.mubr.msk.f32.gmra.mrb[2].mxu1 %vm2017_vm1, %v2515_v58 }
 0x1b0   :  { %12249 = vst [vmem:[#allocation100_spill] sm:$0xff] %v9596_v3  ;;  %v9599_v38 = vpop.f32.mrb[95].mxu0  ;;  %7271 = vmatprep.mubr.msk.f32.mxu1 %vm2017_vm1, %v2517_v43 }
 0x1b1   :  { %12250 = vst [vmem:[#allocation101_spill] sm:$0xff] %v9599_v38 }
 0x1b2   :  { %v2519_v28 = vpop.permute.xlu1 %2518 }
 0x1b3   :  { %v9602_v52 = vpop.f32.mrb[96].mxu0  ;;  %v2525_v30 = vpop.permute.xlu0 %2524  ;;  %7272 = vmatmul.mubr.msk.f32.gmra.mrb[4].mxu1 %vm2017_vm1, %v2519_v28 }
 0x1b4   :  { %12251 = vst [vmem:[#allocation102_spill] sm:$0xff] %v9602_v52  ;;  %v9605_v27 = vpop.f32.mrb[97].mxu0  ;;  %7274 = vmatprep.mubr.msk.f32.mxu1 %vm2017_vm1, %v2521_v60 }
 0x1b5   :  { %12252 = vst [vmem:[#allocation103_spill] sm:$0xff] %v9605_v27 }
 0x1b6   :  { %v2523_v3 = vpop.permute.xlu1 %2522 }
 0x1b7   :  { %v9608_v39 = vpop.f32.mrb[98].mxu0  ;;  %v2529_v38 = vpop.permute.xlu0 %2528  ;;  %7275 = vmatmul.mubr.msk.f32.gmra.mrb[6].mxu1 %vm2017_vm1, %v2523_v3 }
 0x1b8   :  { %12253 = vst [vmem:[#allocation104_spill] sm:$0xff] %v9608_v39  ;;  %v9611_v34 = vpop.f32.mrb[99].mxu0  ;;  %7277 = vmatprep.mubr.msk.f32.mxu1 %vm2017_vm1, %v2525_v30 }
 0x1b9   :  { %12254 = vst [vmem:[#allocation105_spill] sm:$0xff] %v9611_v34 }
 0x1ba   :  { %v2527_v52 = vpop.permute.xlu1 %2526 }
 0x1bb   :  { %v9614_v58 = vpop.f32.mrb[100].mxu0  ;;  %v2533_v27 = vpop.permute.xlu0 %2532  ;;  %7278 = vmatmul.mubr.msk.f32.gmra.mrb[8].mxu1 %vm2017_vm1, %v2527_v52 }
 0x1bc   :  { %12255 = vst [vmem:[#allocation106_spill] sm:$0xff] %v9614_v58  ;;  %v9617_v43 = vpop.f32.mrb[101].mxu0  ;;  %7280 = vmatprep.mubr.msk.f32.mxu1 %vm2017_vm1, %v2529_v38 }
 0x1bd   :  { %12256 = vst [vmem:[#allocation107_spill] sm:$0xff] %v9617_v43 }
 0x1be   :  { %v2531_v39 = vpop.permute.xlu1 %2530 }
 0x1bf   :  { %v9620_v28 = vpop.f32.mrb[102].mxu0  ;;  %v2537_v34 = vpop.permute.xlu0 %2536  ;;  %7281 = vmatmul.mubr.msk.f32.gmra.mrb[10].mxu1 %vm2017_vm1, %v2531_v39 }
 0x1c0   :  { %12257 = vst [vmem:[#allocation108_spill] sm:$0xff] %v9620_v28  ;;  %v9623_v60 = vpop.f32.mrb[103].mxu0  ;;  %7283 = vmatprep.mubr.msk.f32.mxu1 %vm2017_vm1, %v2533_v27  ;;  %v12025_v28 = vmov 2  }
 0x1c1   :  { %12258 = vst [vmem:[#allocation109_spill] sm:$0xff] %v9623_v60  ;;  %7675 = vset.pattern.permute.xlu0 %v12025_v28 }
 0x1c2   :  { %v2535_v58 = vpop.permute.xlu1 %2534 }
 0x1c3   :  { %v9626_v3 = vpop.f32.mrb[104].mxu0  ;;  %v2014_v43 = vpop.permute.xlu0 %2013  ;;  %7284 = vmatmul.mubr.msk.f32.gmra.mrb[12].mxu1 %vm2017_vm1, %v2535_v58 }
 0x1c4   :  { %12259 = vst [vmem:[#allocation110_spill] sm:$0xff] %v9626_v3  ;;  %v9629_v30 = vpop.f32.mrb[105].mxu0  ;;  %7258 = vmatprep.mubr.msk.f32.mxu0 %vm2017_vm1, %v2014_v43  ;;  %7286 = vmatprep.mubr.msk.f32.mxu1 %vm2017_vm1, %v2537_v34 }
 0x1c5   :  { %12260 = vst [vmem:[#allocation111_spill] sm:$0xff] %v9629_v30  ;;  %7259 = vmatmul.mubr.msk.f32.gmra.mrb[158].mxu0 %vm2017_vm1, %v2016_v0 }
 0x1c6   :  { %v2539_v39 = vpop.permute.xlu1 %2538 }
 0x1c7   :  { %v9633_v52 = vpop.f32.mrb[106].mxu0  ;;  %v2541_v3 = vpop.permute.xlu0 %2540  ;;  %7287 = vmatmul.mubr.msk.f32.gmra.mrb[14].mxu1 %vm2017_vm1, %v2539_v39 }
 0x1c8   :  { %12261 = vst [vmem:[#allocation112_spill] sm:$0xff] %v9633_v52  ;;  %v9637_v38 = vpop.f32.mrb[107].mxu0  ;;  %7289 = vmatprep.mubr.msk.f32.mxu1 %vm2017_vm1, %v2541_v3 }
 0x1c9   :  { %12262 = vst [vmem:[#allocation113_spill] sm:$0xff] %v9637_v38 }
 0x1ca   :  { %v2543_v58 = vpop.permute.xlu1 %2542 }
 0x1cb   :  { %v9640_v27 = vpop.f32.mrb[108].mxu0  ;;  %v2545_v43 = vpop.permute.xlu0 %2544  ;;  %7290 = vmatmul.mubr.msk.f32.gmra.mrb[16].mxu1 %vm2017_vm1, %v2543_v58 }
 0x1cc   :  { %12263 = vst [vmem:[#allocation114_spill] sm:$0xff] %v9640_v27  ;;  %v9643_v30 = vpop.f32.mrb[109].mxu0  ;;  %7292 = vmatprep.mubr.msk.f32.mxu1 %vm2017_vm1, %v2545_v43 }
 0x1cd   :  { %12264 = vst [vmem:[#allocation115_spill] sm:$0xff] %v9643_v30 }
 0x1ce   :  { %v2547_v52 = vpop.permute.xlu1 %2546 }
 0x1cf   :  { %v9647_v34 = vpop.f32.mrb[110].mxu0  ;;  %v2549_v38 = vpop.permute.xlu0 %2548  ;;  %7293 = vmatmul.mubr.msk.f32.gmra.mrb[18].mxu1 %vm2017_vm1, %v2547_v52 }
 0x1d0   :  { %12265 = vst [vmem:[#allocation116_spill] sm:$0xff] %v9647_v34  ;;  %v9649_v0 = vpop.f32.mrb[111].mxu0  ;;  %7295 = vmatprep.mubr.msk.f32.mxu1 %vm2017_vm1, %v2549_v38 }
 0x1d1   :  { %12266 = vst [vmem:[#allocation117_spill] sm:$0xff] %v9649_v0 }
 0x1d2   :  { %v2551_v27 = vpop.permute.xlu1 %2550 }
 0x1d3   :  { %v9653_v39 = vpop.f32.mrb[112].mxu0  ;;  %v2553_v30 = vpop.permute.xlu0 %2552  ;;  %7296 = vmatmul.mubr.msk.f32.gmra.mrb[20].mxu1 %vm2017_vm1, %v2551_v27 }
 0x1d4   :  { %12267 = vst [vmem:[#allocation118_spill] sm:$0xff] %v9653_v39  ;;  %v9655_v3 = vpop.f32.mrb[113].mxu0  ;;  %7298 = vmatprep.mubr.msk.f32.mxu1 %vm2017_vm1, %v2553_v30  ;;  %v12027_v30 = vmov 0  }
 0x1d5   :  { %12268 = vst [vmem:[#allocation119_spill] sm:$0xff] %v9655_v3  ;;  %7673 = vset.pattern.permute.xlu1 %v12027_v30 }
 0x1d6   :  { %v2555_v34 = vpop.permute.xlu1 %2554 }
 0x1d7   :  { %v9659_v58 = vpop.f32.mrb[114].mxu0  ;;  %v2557_v0 = vpop.permute.xlu0 %2556  ;;  %7299 = vmatmul.mubr.msk.f32.gmra.mrb[22].mxu1 %vm2017_vm1, %v2555_v34 }
 0x1d8   :  { %12269 = vst [vmem:[#allocation120_spill] sm:$0xff] %v9659_v58  ;;  %v9661_v43 = vpop.f32.mrb[115].mxu0  ;;  %7301 = vmatprep.mubr.msk.f32.mxu1 %vm2017_vm1, %v2557_v0 }
 0x1d9   :  { %12270 = vst [vmem:[#allocation121_spill] sm:$0xff] %v9661_v43 }
 0x1da   :  { %v2559_v39 = vpop.permute.xlu1 %2558 }
 0x1db   :  { %v9665_v52 = vpop.f32.mrb[116].mxu0  ;;  %v2561_v3 = vpop.permute.xlu0 %2560  ;;  %7302 = vmatmul.mubr.msk.f32.gmra.mrb[24].mxu1 %vm2017_vm1, %v2559_v39 }
 0x1dc   :  { %12271 = vst [vmem:[#allocation122_spill] sm:$0xff] %v9665_v52  ;;  %v9667_v38 = vpop.f32.mrb[117].mxu0  ;;  %7304 = vmatprep.mubr.msk.f32.mxu1 %vm2017_vm1, %v2561_v3 }
 0x1dd   :  { %12272 = vst [vmem:[#allocation123_spill] sm:$0xff] %v9667_v38 }
 0x1de   :  { %v2563_v0 = vpop.permute.xlu1 %2562 }
 0x1df   :  { %v9673_v27 = vpop.f32.mrb[118].mxu0  ;;  %7305 = vmatmul.mubr.msk.f32.gmra.mrb[26].mxu1 %vm2017_vm1, %v2563_v0  ;;  %v2565_v52 = vpop.permute.xlu0 %2564 }
 0x1e0   :  { %12273 = vst [vmem:[#allocation124_spill] sm:$0xff] %v9673_v27  ;;  %v9675_v34 = vpop.f32.mrb[119].mxu0  ;;  %7307 = vmatprep.mubr.msk.f32.mxu1 %vm2017_vm1, %v2565_v52 }
 0x1e1   :  { %12274 = vst [vmem:[#allocation125_spill] sm:$0xff] %v9675_v34 }
 0x1e2   :  { %v2567_v58 = vpop.permute.xlu1 %2566 }
 0x1e3   :  { %v9679_v38 = vpop.f32.mrb[120].mxu0  ;;  %7308 = vmatmul.mubr.msk.f32.gmra.mrb[28].mxu1 %vm2017_vm1, %v2567_v58  ;;  %v2569_v39 = vpop.permute.xlu0 %2568  ;;  %v9701_v58 = vld [vmem:[%s11976_s8] ss:$0 sm:$0xff] }
 0x1e4   :  { %12275 = vst [vmem:[#allocation126_spill] sm:$0xff] %v9679_v38  ;;  %v9681_v28 = vpop.f32.mrb[121].mxu0  ;;  %7310 = vmatprep.mubr.msk.f32.mxu1 %vm2017_vm1, %v2569_v39 }
 0x1e5   :  { %12276 = vst [vmem:[#allocation127_spill] sm:$0xff] %v9681_v28 }
 0x1e6   :  { %v2571_v27 = vpop.permute.xlu1 %2570 }
 0x1e7   :  { %v9685_v3 = vpop.f32.mrb[122].mxu0  ;;  %7311 = vmatmul.mubr.msk.f32.gmra.mrb[30].mxu1 %vm2017_vm1, %v2571_v27 }
 0x1e8   :  { %12277 = vst [vmem:[#allocation128_spill] sm:$0xff] %v9685_v3  ;;  %v9687_v30 = vpop.f32.mrb[123].mxu0 }
 0x1e9   :  { %12278 = vst [vmem:[#allocation129_spill] sm:$0xff] %v9687_v30 }
 0x1eb   :  { %v9690_v0 = vpop.f32.mrb[124].mxu0 }
 0x1ec   :  { %12279 = vst [vmem:[#allocation130_spill] sm:$0xff] %v9690_v0  ;;  %v9692_v52 = vpop.f32.mrb[125].mxu0 }
 0x1ed   :  { %12280 = vst [vmem:[#allocation131_spill] sm:$0xff] %v9692_v52 }
 0x1ef   :  { %v9694_v38 = vpop.f32.mrb[126].mxu0 }
 0x1f0   :  { %12281 = vst [vmem:[#allocation132_spill] sm:$0xff] %v9694_v38  ;;  %v9696_v28 = vpop.f32.mrb[127].mxu0 }
 0x1f1   :  { %12282 = vst [vmem:[#allocation133_spill] sm:$0xff] %v9696_v28 }
 0x23d   :  { %v7215_v39 = vpop.f32.mrb[128].mxu0 }
 0x23e   :  { %v2154_v3 = vadd.f32 %v7215_v39, %v9701_v58  ;;  %v2148_v30 = vpop.f32.mrb[129].mxu0 }
 0x23f   :  { %v2149_v34 = vadd.f32 %v9701_v58, %v2148_v30 }
 0x240   :  { %v6347_v27 = vmul.f32 -1.442695, %v2154_v3 }
 0x241   :  { %v6346_v43 = vmul.f32 -1.442695, %v2149_v34  ;;  %v7218_v0 = vpop.f32.mrb[130].mxu0 }
 0x242   :  { %7762 = vpow2.f32 %v6347_v27  ;;  %v2158_v52 = vpop.f32.mrb[131].mxu0  ;;  %v2164_v38 = vadd.f32 %v7218_v0, %v9701_v58 }
 0x243   :  { %7764 = vpow2.f32 %v6346_v43  ;;  %v2159_v49 = vadd.f32 %v9701_v58, %v2158_v52 }
 0x244   :  { %v6349_v57 = vmul.f32 -1.442695, %v2164_v38 }
 0x245   :  { %v7221_v28 = vpop.f32.mrb[132].mxu0  ;;  %v6348_v3 = vmul.f32 -1.442695, %v2159_v49 }
 0x246   :  { %v2168_v60 = vpop.f32.mrb[133].mxu0  ;;  %7766 = vpow2.f32 %v6349_v57  ;;  %v2174_v30 = vadd.f32 %v7221_v28, %v9701_v58 }
 0x247   :  { %v2169_v49 = vadd.f32 %v9701_v58, %v2168_v60  ;;  %v12029_v60 = vmov 1  }
 0x248   :  { %v6351_v0 = vmul.f32 -1.442695, %v2174_v30 }
 0x249   :  { %v7224_v63 = vpop.f32.mrb[134].mxu0 }
 0x24a   :  { %v2178_v12 = vpop.f32.mrb[135].mxu0 }
 0x24c   :  { %v7763_v36 = vpop.eup %7762 }
 0x24d   :  { %v7765_v39 = vpop.eup %7764  ;;  %v2404_v50 = vadd.f32 1.0, %v7763_v36  ;;  %v7227_v34 = vpop.f32.mrb[136].mxu0 }
 0x24e   :  { %v9708_v27 = vpop.f32.mrb[137].mxu0  ;;  %v2403_v43 = vadd.f32 1.0, %v7765_v39 }
 0x24f   :  { %7768 = vrcp.f32 %v2404_v50 }
 0x250   :  { %7770 = vpow2.f32 %v6348_v3  ;;  %v7767_v57 = vpop.eup %7766  ;;  %v2184_v3 = vadd.f32 %v7224_v63, %v9701_v58 }
 0x251   :  { %v9710_v10 = vpop.f32.mrb[138].mxu0  ;;  %7772 = vrcp.f32 %v2403_v43  ;;  %v2406_v50 = vadd.f32 1.0, %v7767_v57  ;;  %v6350_v43 = vmul.f32 -1.442695, %v2169_v49  ;;  %v2179_v49 = vadd.f32 %v9701_v58, %v2178_v12 }
 0x252   :  { %v9712_v38 = vpop.f32.mrb[139].mxu0  ;;  %7774 = vpow2.f32 %v6351_v0  ;;  %v6353_v63 = vmul.f32 -1.442695, %v2184_v3 }
 0x253   :  { %7776 = vrcp.f32 %v2406_v50  ;;  %v6352_v12 = vmul.f32 -1.442695, %v2179_v49  ;;  %v3505_v49 = vld [vmem:[%s11971_s3 + $0x18] sm:$0xff] }
 0x254   :  { %7778 = vpow2.f32 %v6350_v43  ;;  %v2194_v43 = vadd.f32 %v7227_v34, %v9701_v58 }
 0x255   :  { %v9714_v52 = vpop.f32.mrb[140].mxu0 }
 0x256   :  { %v9716_v36 = vpop.f32.mrb[141].mxu0 }
 0x259   :  { %v9718_v28 = vpop.eup %7768 }
 0x25a   :  { %3250 = vperm.xlu0 %7675, %v9718_v28   ;;  %2868 = vperm.xlu1 %7673, %v9718_v28   ;;  %v7771_v30 = vpop.eup %7770 }
 0x25b   :  { %v9730_v20 = vpop.eup %7772  ;;  %v2405_v37 = vadd.f32 1.0, %v7771_v30  ;;  %v3502_v30 = vld [vmem:[%s11971_s3] sm:$0xff] }
 0x25c   :  { %v9721_v25 = vpop.f32.mrb[142].mxu0  ;;  %v7775_v33 = vpop.eup %7774 }
 0x25d   :  { %v9725_v39 = vpop.f32.mrb[143].mxu0  ;;  %v2408_v50 = vadd.f32 1.0, %v7775_v33  ;;  %7780 = vrcp.f32 %v2405_v37  ;;  %v3503_v33 = vld [vmem:[%s11971_s3 + $0x8] sm:$0xff]  ;;  %v9758_v35 = vpop.eup %7776  ;;  %v2224_v55 = vadd.f32 %v9721_v25, %v9701_v58 }
 0x25e   :  { %7676 = vset.pattern.permute.xlu0 %v12283_v40  ;;  %7674 = vset.pattern.permute.xlu1 %v12029_v60  ;;  %7782 = vpow2.f32 %v6353_v63  ;;  %v7641_v37 = vpack.c.bf16 %v3503_v33, %v3502_v30  ;;  %v12285_v63 = vmov 1   ;;  %v6355_v30 = vmul.f32 -1.442695, %v2194_v43  ;;  %v7779_v2 = vpop.eup %7778 }
 0x25f   :  { %3058 = vperm.xlu1 %7674, %v9718_v28   ;;  %2863 = vperm.xlu0 %7676, %v9730_v20   ;;  %7784 = vrcp.f32 %v2408_v50  ;;  %v7645_v50 = vpack.c.bf16 %v3505_v49, %v3504_v62  ;;  %v2407_v41 = vadd.f32 1.0, %v7779_v2  ;;  %v6361_v25 = vmul.f32 -1.442695, %v2224_v55 }
 0x260   :  { %v9728_v0 = vpop.f32.mrb[144].mxu0  ;;  %7642 = vmatprep.subr.bf16.mxu1 %v7641_v37  ;;  %7786 = vpow2.f32 %v6352_v12 }
 0x261   :  { %v9734_v57 = vpop.f32.mrb[145].mxu0  ;;  %7644 = vmatpush3.bf16.msra.mxu1 %v7641_v37  ;;  %7788 = vpow2.f32 %v6355_v30  ;;  %v2189_v37 = vadd.f32 %v9701_v58, %v9708_v27  ;;  %v2204_v27 = vadd.f32 %v9710_v10, %v9701_v58  ;;  %v2199_v10 = vadd.f32 %v9701_v58, %v9712_v38 }
 0x262   :  { %7646 = vmatprep.subr.bf16.mxu1 %v7645_v50  ;;  %7790 = vrcp.f32 %v2407_v41  ;;  %v2234_v6 = vadd.f32 %v9728_v0, %v9701_v58  ;;  %v2229_v54 = vadd.f32 %v9701_v58, %v9734_v57 }
 0x263   :  { %7678 = vset.pattern.permute.xlu1 %v12284_v17  ;;  %7677 = vset.pattern.permute.xlu0 %v12029_v60 }
 0x264   :  { %v9739_v45 = vpop.f32.mrb[146].mxu0  ;;  %3246 = vperm.xlu1 %7678, %v9730_v20   ;;  %3054 = vperm.xlu0 %7677, %v9730_v20  }
 0x265   :  { %v9741_v5 = vpop.f32.mrb[147].mxu0  ;;  %7648 = vmatpush3.bf16.msra.mxu1 %v7645_v50  ;;  %v6354_v50 = vmul.f32 -1.442695, %v2189_v37  ;;  %v6357_v37 = vmul.f32 -1.442695, %v2204_v27  ;;  %v2244_v57 = vadd.f32 %v9739_v45, %v9701_v58 }
 0x267   :  { %v9774_v11 = vpop.eup %7780 }
 0x268   :  { %v9753_v3 = vpop.f32.mrb[148].mxu0  ;;  %7680 = vset.pattern.permute.xlu1 %v12285_v63  ;;  %7679 = vset.pattern.permute.xlu0 %v12283_v40  ;;  %v7783_v21 = vpop.eup %7782 }
 0x269   :  { %v9756_v60 = vpop.f32.mrb[149].mxu0  ;;  %3066 = vperm.xlu1 %7680, %v9758_v35   ;;  %2878 = vperm.xlu0 %7679, %v9758_v35   ;;  %v9784_v12 = vpop.eup %7784  ;;  %v2410_v43 = vadd.f32 1.0, %v7783_v21  ;;  %v2254_v45 = vadd.f32 %v9753_v3, %v9701_v58 }
 0x26a   :  { %v7787_v8 = vpop.eup %7786 }
 0x26b   :  { %7792 = vrcp.f32 %v2410_v43  ;;  %v2409_v30 = vadd.f32 1.0, %v7787_v8  ;;  %v7789_v4 = vpop.eup %7788 }
 0x26c   :  { %v9770_v34 = vpop.f32.mrb[150].mxu0  ;;  %7794 = vpow2.f32 %v6354_v50  ;;  %v2412_v43 = vadd.f32 1.0, %v7789_v4  ;;  %v9808_v7 = vpop.eup %7790  ;;  %v6356_v50 = vmul.f32 -1.442695, %v2199_v10  ;;  %v2214_v4 = vadd.f32 %v9714_v52, %v9701_v58 }
 0x26d   :  { %v9772_v33 = vpop.f32.mrb[151].mxu0  ;;  %7681 = vset.pattern.permute.xlu1 %v12284_v17  ;;  %7684 = vset.pattern.permute.xlu0 %v12284_v17  ;;  %7796 = vrcp.f32 %v2409_v30 }
 0x26e   :  { %3258 = vperm.xlu1 %7681, %v9758_v35   ;;  %3254 = vperm.xlu0 %7684, %v9774_v11   ;;  %7798 = vpow2.f32 %v6357_v37  ;;  %v6359_v37 = vmul.f32 -1.442695, %v2214_v4 }
 0x26f   :  { %7800 = vrcp.f32 %v2412_v43 }
 0x270   :  { %v9778_v29 = vpop.f32.mrb[152].mxu0  ;;  %7802 = vpow2.f32 %v6356_v50 }
 0x271   :  { %v9782_v62 = vpop.f32.mrb[153].mxu0  ;;  %7804 = vpow2.f32 %v6359_v37  ;;  %v9853_v37 = vld [vmem:[%s11978_s10] ss:$0 sm:$0xff] }
 0x272   :  { %7682 = vset.pattern.permute.xlu1 %v12283_v40  ;;  %7685 = vset.pattern.permute.xlu0 %v12283_v40 }
 0x273   :  { %2873 = vperm.xlu1 %7682, %v9774_v11   ;;  %2888 = vperm.xlu0 %7685, %v9784_v12  }
 0x274   :  { %v9788_v49 = vpop.f32.mrb[154].mxu0 }
 0x275   :  { %v9792_v2 = vpop.f32.mrb[155].mxu0  ;;  %v9817_v27 = vpop.eup %7792 }
 0x276   :  { %v7795_v53 = vpop.eup %7794 }
 0x277   :  { %7683 = vset.pattern.permute.xlu1 %v12285_v63  ;;  %7686 = vset.pattern.permute.xlu0 %v12284_v17  ;;  %v9829_v10 = vpop.eup %7796  ;;  %v2411_v52 = vadd.f32 1.0, %v7795_v53  ;;  %v2209_v53 = vadd.f32 %v9701_v58, %v9716_v36 }
 0x278   :  { %v9798_v21 = vpop.f32.mrb[156].mxu0  ;;  %3062 = vperm.xlu1 %7683, %v9774_v11   ;;  %3266 = vperm.xlu0 %7686, %v9784_v12   ;;  %v7799_v42 = vpop.eup %7798 }
 0x279   :  { %v9800_v41 = vpop.f32.mrb[157].mxu0  ;;  %v9841_v50 = vpop.eup %7800  ;;  %7806 = vrcp.f32 %v2411_v52  ;;  %v2414_v44 = vadd.f32 1.0, %v7799_v42  ;;  %v6358_v42 = vmul.f32 -1.442695, %v2209_v53 }
 0x27a   :  { %v7803_v1 = vpop.eup %7802 }
 0x27b   :  { %7808 = vrcp.f32 %v2414_v44  ;;  %v2413_v24 = vadd.f32 1.0, %v7803_v1  ;;  %v7805_v48 = vpop.eup %7804 }
 0x27c   :  { %3074 = vperm.xlu1 %7683, %v9784_v12   ;;  %7688 = vset.pattern.permute.xlu0 %v12285_v63  ;;  %7810 = vpow2.f32 %v6358_v42  ;;  %v2416_v46 = vadd.f32 1.0, %v7805_v48 }
 0x27d   :  { %3070 = vperm.xlu0 %7688, %v9808_v7   ;;  %7812 = vrcp.f32 %v2413_v24 }
 0x27e   :  { %v9810_v8 = vpop.f32.mrb[0].mxu1  ;;  %7814 = vpow2.f32 %v6361_v25 }
 0x27f   :  { %v9814_v9 = vpop.f32.mrb[1].mxu1  ;;  %7816 = vrcp.f32 %v2416_v46  ;;  %v6363_v46 = vmul.f32 -1.442695, %v2234_v6 }
 0x280   :  { %7687 = vset.pattern.permute.xlu1 %v12283_v40 }
 0x281   :  { %7690 = vset.pattern.permute.xlu0 %v12283_v40  ;;  %2883 = vperm.xlu1 %7687, %v9808_v7  }
 0x282   :  { %v9822_v38 = vpop.f32.mrb[2].mxu1  ;;  %2898 = vperm.xlu0 %7690, %v9817_v27  }
 0x283   :  { %v9826_v30 = vpop.f32.mrb[3].mxu1  ;;  %v9874_v1 = vpop.eup %7806 }
 0x285   :  { %7689 = vset.pattern.permute.xlu1 %v12284_v17 }
 0x286   :  { %v9831_v43 = vpop.f32.mrb[4].mxu1  ;;  %3262 = vperm.xlu1 %7689, %v9808_v7   ;;  %7695 = vset.pattern.permute.xlu0 %v12284_v17 }
 0x287   :  { %v9834_v13 = vpop.f32.mrb[5].mxu1  ;;  %3270 = vperm.xlu0 %7695, %v9829_v10  }
 0x28a   :  { %v9839_v16 = vpop.f32.mrb[6].mxu1  ;;  %7691 = vset.pattern.permute.xlu1 %v12285_v63 }
 0x28b   :  { %v9843_v4 = vpop.f32.mrb[7].mxu1  ;;  %3082 = vperm.xlu1 %7691, %v9817_v27   ;;  %7696 = vset.pattern.permute.xlu0 %v12283_v40 }
 0x28c   :  { %2908 = vperm.xlu0 %7696, %v9841_v50  }
 0x28e   :  { %v7279_v52 = vpop.f32.mrb[8].mxu1 }
 0x28f   :  { %v9857_v18 = vadd.f32 %v7279_v52, %v9853_v37  ;;  %v2742_v36 = vpop.f32.mrb[9].mxu1  ;;  %7692 = vset.pattern.permute.xlu1 %v12284_v17 }
 0x290   :  { %v9860_v61 = vadd.f32 %v9853_v37, %v2742_v36  ;;  %3274 = vperm.xlu1 %7692, %v9817_v27   ;;  %7697 = vset.pattern.permute.xlu0 %v12284_v17  ;;  %v2219_v36 = vadd.f32 %v9701_v58, %v9725_v39  ;;  %v9892_v39 = vpop.eup %7808 }
 0x291   :  { %3282 = vperm.xlu0 %7697, %v9841_v50  }
 0x292   :  { %v7282_v59 = vpop.f32.mrb[10].mxu1  ;;  %v6360_v24 = vmul.f32 -1.442695, %v2219_v36  ;;  %v7811_v36 = vpop.eup %7810 }
 0x293   :  { %v9868_v52 = vadd.f32 %v7282_v59, %v9853_v37  ;;  %v2752_v44 = vpop.f32.mrb[11].mxu1  ;;  %v2415_v15 = vadd.f32 1.0, %v7811_v36 }
 0x294   :  { %v9872_v53 = vadd.f32 %v9853_v37, %v2752_v44  ;;  %7693 = vset.pattern.permute.xlu1 %v12283_v40  ;;  %7818 = vpow2.f32 %v6360_v24 }
 0x295   :  { %2893 = vperm.xlu1 %7693, %v9829_v10   ;;  %7699 = vset.pattern.permute.xlu0 %v12285_v63  ;;  %7820 = vpow2.f32 %v6363_v46 }
 0x296   :  { %v7285_v32 = vpop.f32.mrb[12].mxu1  ;;  %3086 = vperm.xlu0 %7699, %v9874_v1   ;;  %7822 = vrcp.f32 %v2415_v15 }
 0x297   :  { %v9882_v59 = vadd.f32 %v7285_v32, %v9853_v37  ;;  %v2762_v42 = vpop.f32.mrb[13].mxu1 }
 0x298   :  { %v9884_v44 = vpop.f32.mrb[158].mxu0  ;;  %v9888_v55 = vadd.f32 %v9853_v37, %v2762_v42  ;;  %v9906_v42 = vpop.eup %7812 }
 0x299   :  { %v9890_v48 = vpop.f32.mrb[159].mxu0  ;;  %7694 = vset.pattern.permute.xlu1 %v12285_v63 }
 0x29a   :  { %v7288_v32 = vpop.f32.mrb[14].mxu1  ;;  %3078 = vperm.xlu1 %7694, %v9829_v10   ;;  %7701 = vset.pattern.permute.xlu0 %v12283_v40 }
 0x29b   :  { %v9898_v26 = vadd.f32 %v7288_v32, %v9853_v37  ;;  %v2772_v56 = vpop.f32.mrb[15].mxu1  ;;  %2918 = vperm.xlu0 %7701, %v9892_v39  }
 0x29c   :  { %v9903_v25 = vadd.f32 %v9853_v37, %v2772_v56  ;;  %v7815_v56 = vpop.eup %7814 }
 0x29e   :  { %v7291_v0 = vpop.f32.mrb[16].mxu1  ;;  %3090 = vperm.xlu1 %7694, %v9841_v50  }
 0x29f   :  { %v9909_v51 = vadd.f32 %v7291_v0, %v9853_v37  ;;  %v2782_v32 = vpop.f32.mrb[17].mxu1  ;;  %7706 = vset.pattern.permute.xlu0 %v12284_v17  ;;  %v9920_v0 = vpop.eup %7816 }
 0x2a0   :  { %v9913_v47 = vadd.f32 %v9853_v37, %v2782_v32  ;;  %3286 = vperm.xlu0 %7706, %v9906_v42   ;;  %v2418_v32 = vadd.f32 1.0, %v7815_v56 }
 0x2a2   :  { %v7294_v6 = vpop.f32.mrb[18].mxu1  ;;  %7698 = vset.pattern.permute.xlu1 %v12283_v40  ;;  %7824 = vrcp.f32 %v2418_v32 }
 0x2a3   :  { %v9918_v24 = vadd.f32 %v7294_v6, %v9853_v37  ;;  %v2792_v14 = vpop.f32.mrb[19].mxu1  ;;  %2903 = vperm.xlu1 %7698, %v9874_v1   ;;  %v7819_v6 = vpop.eup %7818 }
 0x2a4   :  { %v9924_v36 = vadd.f32 %v9853_v37, %v2792_v14  ;;  %7707 = vset.pattern.permute.xlu0 %v12283_v40  ;;  %v6362_v14 = vmul.f32 -1.442695, %v2229_v54  ;;  %v2417_v56 = vadd.f32 1.0, %v7819_v6  ;;  %v6365_v6 = vmul.f32 -1.442695, %v2244_v57 }
 0x2a5   :  { %2928 = vperm.xlu0 %7707, %v9920_v0  }
 0x2a6   :  { %12286 = vst [vmem:[#allocation134_spill] sm:$0xff] %v9924_v36  ;;  %v7297_v46 = vpop.f32.mrb[20].mxu1  ;;  %7826 = vpow2.f32 %v6362_v14  ;;  %v6367_v14 = vmul.f32 -1.442695, %v2254_v45 }
 0x2a7   :  { %v9932_v31 = vadd.f32 %v7297_v46, %v9853_v37  ;;  %v2802_v15 = vpop.f32.mrb[21].mxu1  ;;  %7700 = vset.pattern.permute.xlu1 %v12284_v17  ;;  %7828 = vrcp.f32 %v2417_v56 }
 0x2a8   :  { %v9935_v22 = vadd.f32 %v9853_v37, %v2802_v15  ;;  %3278 = vperm.xlu1 %7700, %v9874_v1   ;;  %7830 = vpow2.f32 %v6365_v6 }
 0x2a9   :  { %12287 = vst [vmem:[#allocation135_spill] sm:$0xff] %v9932_v31  ;;  %7708 = vset.pattern.permute.xlu0 %v12284_v17  ;;  %v7821_v31 = vpop.eup %7820 }
 0x2aa   :  { %12288 = vst [vmem:[#allocation136_spill] sm:$0xff] %v9935_v22  ;;  %v7300_v23 = vpop.f32.mrb[22].mxu1  ;;  %3298 = vperm.xlu0 %7708, %v9920_v0   ;;  %v9949_v54 = vpop.eup %7822 }
 0x2ab   :  { %v9943_v46 = vadd.f32 %v7300_v23, %v9853_v37  ;;  %v2812_v19 = vpop.f32.mrb[23].mxu1  ;;  %v2420_v23 = vadd.f32 1.0, %v7821_v31  ;;  %v2249_v31 = vadd.f32 %v9701_v58, %v9756_v60 }
 0x2ac   :  { %v9947_v32 = vadd.f32 %v9853_v37, %v2812_v19  ;;  %7702 = vset.pattern.permute.xlu1 %v12285_v63  ;;  %v9963_v57 = vpop.eup %7824 }
 0x2ad   :  { %12289 = vst [vmem:[#allocation137_spill] sm:$0xff] %v9943_v46  ;;  %3098 = vperm.xlu1 %7702, %v9892_v39   ;;  %7832 = vrcp.f32 %v2420_v23  ;;  %v6366_v23 = vmul.f32 -1.442695, %v2249_v31 }
 0x2ae   :  { %12290 = vst [vmem:[#allocation138_spill] sm:$0xff] %v9947_v32  ;;  %v7303_v15 = vpop.f32.mrb[24].mxu1  ;;  %7710 = vset.pattern.permute.xlu0 %v12285_v63  ;;  %7834 = vpow2.f32 %v6367_v14 }
 0x2af   :  { %v9956_v46 = vadd.f32 %v7303_v15, %v9853_v37  ;;  %v2822_v22 = vpop.f32.mrb[25].mxu1  ;;  %3102 = vperm.xlu0 %7710, %v9949_v54   ;;  %7836 = vpow2.f32 %v6366_v23 }
 0x2b0   :  { %v9960_v19 = vadd.f32 %v9853_v37, %v2822_v22  ;;  %v7827_v45 = vpop.eup %7826 }
 0x2b1   :  { %12291 = vst [vmem:[#allocation139_spill] sm:$0xff] %v9956_v46  ;;  %7703 = vset.pattern.permute.xlu1 %v12284_v17  ;;  %v2419_v31 = vadd.f32 1.0, %v7827_v45 }
 0x2b2   :  { %12292 = vst [vmem:[#allocation140_spill] sm:$0xff] %v9960_v19  ;;  %v7306_v56 = vpop.f32.mrb[26].mxu1  ;;  %3290 = vperm.xlu1 %7703, %v9892_v39  }
 0x2b3   :  { %v9969_v3 = vadd.f32 %v7306_v56, %v9853_v37  ;;  %v2832_v15 = vpop.f32.mrb[27].mxu1  ;;  %7712 = vset.pattern.permute.xlu0 %v12283_v40  ;;  %v9980_v56 = vpop.eup %7828  ;;  %7838 = vrcp.f32 %v2419_v31 }
 0x2b4   :  { %v9973_v22 = vadd.f32 %v9853_v37, %v2832_v15  ;;  %2938 = vperm.xlu0 %7712, %v9963_v57  }
 0x2b5   :  { %12293 = vst [vmem:[#allocation141_spill] sm:$0xff] %v9969_v3  ;;  %v2264_v3 = vadd.f32 %v9770_v34, %v9701_v58 }
 0x2b6   :  { %12294 = vst [vmem:[#allocation142_spill] sm:$0xff] %v9973_v22  ;;  %v7309_v6 = vpop.f32.mrb[28].mxu1  ;;  %7704 = vset.pattern.permute.xlu1 %v12283_v40  ;;  %v7831_v22 = vpop.eup %7830 }
 0x2b7   :  { %v9978_v60 = vadd.f32 %v7309_v6, %v9853_v37  ;;  %v2842_v19 = vpop.f32.mrb[29].mxu1  ;;  %2913 = vperm.xlu1 %7704, %v9906_v42   ;;  %v6369_v34 = vmul.f32 -1.442695, %v2264_v3  ;;  %v2422_v45 = vadd.f32 1.0, %v7831_v22 }
 0x2b8   :  { %v9986_v15 = vadd.f32 %v9853_v37, %v2842_v19  ;;  %7717 = vset.pattern.permute.xlu0 %v12284_v17  ;;  %v9997_v19 = vpop.eup %7832 }
 0x2b9   :  { %12295 = vst [vmem:[#allocation143_spill] sm:$0xff] %v9978_v60  ;;  %3302 = vperm.xlu0 %7717, %v9980_v56   ;;  %12299 = vst [vmem:[#allocation147_spill] sm:$0xff] %v9997_v19  ;;  %v7835_v23 = vpop.eup %7834  ;;  %7840 = vpow2.f32 %v6369_v34 }
 0x2ba   :  { %12296 = vst [vmem:[#allocation144_spill] sm:$0xff] %v9986_v15  ;;  %v7312_v14 = vpop.f32.mrb[30].mxu1  ;;  %v2259_v15 = vadd.f32 %v9701_v58, %v9772_v33  ;;  %7842 = vrcp.f32 %v2422_v45  ;;  %v2424_v33 = vadd.f32 1.0, %v7835_v23  ;;  %v2284_v23 = vadd.f32 %v9788_v49, %v9701_v58 }
 0x2bb   :  { %v9992_v6 = vadd.f32 %v7312_v14, %v9853_v37  ;;  %v2852_v60 = vpop.f32.mrb[31].mxu1  ;;  %7705 = vset.pattern.permute.xlu1 %v12285_v63  ;;  %v7837_v14 = vpop.eup %7836 }
 0x2bc   :  { %v9995_v46 = vadd.f32 %v9853_v37, %v2852_v60  ;;  %3094 = vperm.xlu1 %7705, %v9906_v42   ;;  %v6368_v3 = vmul.f32 -1.442695, %v2259_v15  ;;  %v2274_v60 = vadd.f32 %v9778_v29, %v9701_v58  ;;  %v2269_v15 = vadd.f32 %v9701_v58, %v9782_v62 }
 0x2bd   :  { %12297 = vst [vmem:[#allocation145_spill] sm:$0xff] %v9992_v6  ;;  %7718 = vset.pattern.permute.xlu0 %v12283_v40  ;;  %v2423_v29 = vadd.f32 1.0, %v7837_v14  ;;  %v10014_v31 = vpop.eup %7838  ;;  %v2299_v6 = vadd.f32 %v9701_v58, %v9890_v48  ;;  %v7906_v48 = vld [vmem:[%s11968_s0 + $0x108] sm:$0xff] }
 0x2be   :  { %12298 = vst [vmem:[#allocation146_spill] sm:$0xff] %v9995_v46  ;;  %2948 = vperm.xlu0 %7718, %v9997_v19   ;;  %7844 = vpow2.f32 %v6368_v3  ;;  %v6371_v22 = vmul.f32 -1.442695, %v2274_v60  ;;  %v6370_v45 = vmul.f32 -1.442695, %v2269_v15 }
 0x2bf   :  { %7846 = vrcp.f32 %v2424_v33  ;;  %v6373_v33 = vmul.f32 -1.442695, %v2284_v23  ;;  %v6376_v32 = vmul.f32 -1.442695, %v2299_v6  ;;  %v7908_v6 = vld [vmem:[%s11968_s0] sm:$0xff] }
 0x2c0   :  { %3106 = vperm.xlu1 %7705, %v9920_v0   ;;  %7848 = vpow2.f32 %v6371_v22  ;;  %v2279_v22 = vadd.f32 %v9701_v58, %v9792_v2 }
 0x2c1   :  { %7850 = vrcp.f32 %v2423_v29 }
 0x2c2   :  { %7719 = vset.pattern.permute.xlu0 %v12284_v17  ;;  %7852 = vpow2.f32 %v6370_v45  ;;  %v6372_v29 = vmul.f32 -1.442695, %v2279_v22  ;;  %v2294_v45 = vadd.f32 %v9798_v21, %v9701_v58  ;;  %v2289_v21 = vadd.f32 %v9701_v58, %v9800_v41 }
 0x2c3   :  { %3314 = vperm.xlu0 %7719, %v9997_v19   ;;  %v7841_v34 = vpop.eup %7840 }
 0x2c4   :  { %7709 = vset.pattern.permute.xlu1 %v12283_v40  ;;  %v10022_v62 = vpop.eup %7842  ;;  %v2426_v3 = vadd.f32 1.0, %v7841_v34 }
 0x2c5   :  { %2923 = vperm.xlu1 %7709, %v9949_v54   ;;  %12300 = vst [vmem:[#allocation148_spill] sm:$0xff] %v10022_v62 }
 0x2c6   :  { %7854 = vrcp.f32 %v2426_v3  ;;  %v2239_v3 = vadd.f32 %v9701_v58, %v9741_v5 }
 0x2c7   :  { %7721 = vset.pattern.permute.xlu0 %v12285_v63  ;;  %7856 = vpow2.f32 %v6373_v33 }
 0x2c8   :  { %3118 = vperm.xlu0 %7721, %v10014_v31   ;;  %v7845_v60 = vpop.eup %7844  ;;  %v6364_v5 = vmul.f32 -1.442695, %v2239_v3  ;;  %v7905_v3 = vld [vmem:[%s11968_s0 + $0x8] sm:$0xff] }
 0x2c9   :  { %7711 = vset.pattern.permute.xlu1 %v12284_v17  ;;  %v10026_v14 = vpop.eup %7846  ;;  %v2425_v49 = vadd.f32 1.0, %v7845_v60  ;;  %v6375_v60 = vmul.f32 -1.442695, %v2294_v45  ;;  %v6374_v45 = vmul.f32 -1.442695, %v2289_v21 }
 0x2ca   :  { %3294 = vperm.xlu1 %7711, %v9949_v54   ;;  %v7849_v15 = vpop.eup %7848 }
 0x2cb   :  { %v10033_v34 = vpop.eup %7850  ;;  %7858 = vrcp.f32 %v2425_v49  ;;  %v2428_v2 = vadd.f32 1.0, %v7849_v15 }
 0x2cc   :  { %3130 = vperm.xlu0 %7721, %v10022_v62   ;;  %v7853_v23 = vpop.eup %7852  ;;  %7860 = vpow2.f32 %v6372_v29 }
 0x2cd   :  { %7862 = vrcp.f32 %v2428_v2  ;;  %v2427_v15 = vadd.f32 1.0, %v7853_v23 }
 0x2ce   :  { %7713 = vset.pattern.permute.xlu1 %v12285_v63  ;;  %7864 = vpow2.f32 %v6375_v60 }
 0x2cf   :  { %3114 = vperm.xlu1 %7713, %v9963_v57   ;;  %7866 = vrcp.f32 %v2427_v15 }
 0x2d0   :  { %3138 = vperm.xlu0 %7721, %v10026_v14   ;;  %v10043_v33 = vpop.eup %7854  ;;  %7868 = vpow2.f32 %v6364_v5  ;;  %v2304_v5 = vadd.f32 %v9884_v44, %v9701_v58  ;;  %v7909_v44 = vld [vmem:[%s11968_s0 + $0x100] sm:$0xff] }
 0x2d1   :  { %v7857_v29 = vpop.eup %7856  ;;  %7870 = vpow2.f32 %v6374_v45 }
 0x2d2   :  { %v2430_v46 = vadd.f32 1.0, %v7857_v29 }
 0x2d3   :  { %7714 = vset.pattern.permute.xlu1 %v12284_v17 }
 0x2d4   :  { %3306 = vperm.xlu1 %7714, %v9963_v57   ;;  %7730 = vset.pattern.permute.xlu0 %v12283_v40  ;;  %7872 = vrcp.f32 %v2430_v46 }
 0x2d5   :  { %2963 = vperm.xlu0 %7730, %v10033_v34   ;;  %v10053_v2 = vpop.eup %7858  ;;  %7874 = vpow2.f32 %v6376_v32 }
 0x2d6   :  { %v7861_v15 = vpop.eup %7860 }
 0x2d7   :  { %v10067_v29 = vpop.eup %7862  ;;  %v2429_v45 = vadd.f32 1.0, %v7861_v15  ;;  %v7910_v15 = vld [vmem:[%s11968_s0 + $0x200] sm:$0xff] }
 0x2d8   :  { %7715 = vset.pattern.permute.xlu1 %v12283_v40 }
 0x2d9   :  { %v2869_v22 = vpop.permute.xlu1 %2868  ;;  %2933 = vperm.xlu1 %7715, %v9980_v56   ;;  %7734 = vset.pattern.permute.xlu0 %v12285_v63  ;;  %v3251_v49 = vpop.permute.xlu0 %3250  ;;  %7876 = vrcp.f32 %v2429_v45 }
 0x2da   :  { %3146 = vperm.xlu0 %7734, %v10043_v33   ;;  %v3022_v60 = vmul.f32 %v7905_v3, %v2869_v22  ;;  %v7907_v22 = vld [vmem:[%s11968_s0 + $0x208] sm:$0xff] }
 0x2db   :  { %v3374_v3 = vmul.f32 %v7907_v22, %v3251_v49  ;;  %v7865_v49 = vpop.eup %7864 }
 0x2dd   :  { %7716 = vset.pattern.permute.xlu1 %v12285_v63 }
 0x2de   :  { %v3059_v41 = vpop.permute.xlu1 %3058  ;;  %3110 = vperm.xlu1 %7716, %v9980_v56   ;;  %7736 = vset.pattern.permute.xlu0 %v12283_v40  ;;  %v2864_v23 = vpop.permute.xlu0 %2863 }
 0x2df   :  { %v3182_v21 = vmul.f32 %v7906_v48, %v3059_v41  ;;  %2973 = vperm.xlu0 %7736, %v10053_v2   ;;  %v3021_v58 = vmul.f32 %v7908_v6, %v2864_v23  ;;  %v2708_v23 = vadd.f32 %v9810_v8, %v9853_v37 }
 0x2e1   :  { %v3214_v36 = vadd.f32 %v3182_v21, %v3022_v60  ;;  %v6377_v21 = vmul.f32 -1.442695, %v2304_v5 }
 0x2e2   :  { %3122 = vperm.xlu1 %7716, %v9997_v19  }
 0x2e3   :  { %v3247_v41 = vpop.permute.xlu1 %3246  ;;  %7740 = vset.pattern.permute.xlu0 %v12285_v63  ;;  %v3055_v48 = vpop.permute.xlu0 %3054  ;;  %v3406_v60 = vadd.f32 %v3374_v3, %v3214_v36  ;;  %v2703_v36 = vadd.f32 %v9853_v37, %v9814_v9  ;;  %7878 = vpow2.f32 %v6377_v21 }
 0x2e4   :  { %v3181_v46 = vmul.f32 %v7909_v44, %v3055_v48  ;;  %3154 = vperm.xlu0 %7740, %v10067_v29   ;;  %v3373_v22 = vmul.f32 %v7910_v15, %v3247_v41  ;;  %v10087_v48 = vpop.eup %7866  ;;  %v2432_v41 = vadd.f32 1.0, %v7865_v49 }
 0x2e5   :  { %v7869_v3 = vpop.eup %7868  ;;  %v3438_v6 = vadd.f32 %v3406_v60, %v2708_v23 }
 0x2e6   :  { %v3213_v19 = vadd.f32 %v3181_v46, %v3021_v58  ;;  %7720 = vset.pattern.permute.xlu1 %v12283_v40  ;;  %v7871_v8 = vpop.eup %7870  ;;  %v2421_v46 = vadd.f32 1.0, %v7869_v3  ;;  %7880 = vrcp.f32 %v2432_v41  ;;  %v7912_v41 = vld [vmem:[%s11968_s0 + $0x18] sm:$0xff] }
 0x2e7   :  { %2943 = vperm.xlu1 %7720, %v10014_v31   ;;  %v10095_v45 = vpop.eup %7872  ;;  %v2431_v60 = vadd.f32 1.0, %v7871_v8  ;;  %v7913_v8 = vld [vmem:[%s11968_s0 + $0x218] sm:$0xff] }
 0x2e8   :  { %v3405_v32 = vadd.f32 %v3373_v22, %v3213_v19  ;;  %v3067_v5 = vpop.permute.xlu1 %3066  ;;  %7742 = vset.pattern.permute.xlu0 %v12283_v40  ;;  %v2879_v44 = vpop.permute.xlu0 %2878  ;;  %v3471_v19 = vmul.f32 0.25, %v3438_v6  ;;  %7882 = vrcp.f32 %v2421_v46 }
 0x2e9   :  { %2983 = vperm.xlu0 %7742, %v10087_v48   ;;  %v7875_v49 = vpop.eup %7874  ;;  %7884 = vrcp.f32 %v2431_v60  ;;  %v3024_v6 = vmul.f32 %v7912_v41, %v2879_v44  ;;  %v7914_v44 = vld [vmem:[%s11968_s0 + $0x10] sm:$0xff] }
 0x2ea   :  { %v3437_v58 = vadd.f32 %v3405_v32, %v2703_v36  ;;  %v10103_v22 = vpop.eup %7876  ;;  %v2433_v23 = vadd.f32 1.0, %v7875_v49  ;;  %v7911_v32 = vld [vmem:[%s11968_s0 + $0x118] sm:$0xff] }
 0x2eb   :  { %7722 = vset.pattern.permute.xlu1 %v12284_v17  ;;  %v3184_v3 = vmul.f32 %v7911_v32, %v3067_v5 }
 0x2ec   :  { %3310 = vperm.xlu1 %7722, %v10014_v31   ;;  %v3470_v9 = vmul.f32 0.25, %v3437_v58  ;;  %7886 = vrcp.f32 %v2433_v23 }
 0x2ed   :  { %v3259_v15 = vpop.permute.xlu1 %3258  ;;  %7746 = vset.pattern.permute.xlu0 %v12285_v63  ;;  %v3255_v21 = vpop.permute.xlu0 %3254  ;;  %v3216_v60 = vadd.f32 %v3184_v3, %v3024_v6  ;;  %v7916_v3 = vld [vmem:[%s11968_s0 + $0x210] sm:$0xff] }
 0x2ee   :  { %3162 = vperm.xlu0 %7746, %v10095_v45   ;;  %7321 = vmatprep.mubr.msk.f32.mxu1 %vm234_vm0, %v3470_v9  ;;  %v7879_v58 = vpop.eup %7878  ;;  %v3376_v46 = vmul.f32 %v7913_v8, %v3259_v15  ;;  %v7915_v15 = vld [vmem:[%s11968_s0 + $0x110] sm:$0xff]  ;;  %v3375_v6 = vmul.f32 %v7916_v3, %v3255_v21 }
 0x2ef   :  { %7322 = vmatmul.mubr.msk.f32.vlgmr.msra.gmra.mrb[32].mxu1 %vm234_vm0, %v3471_v19  ;;  %v2434_v19 = vadd.f32 1.0, %v7879_v58 }
 0x2f0   :  { %7723 = vset.pattern.permute.xlu1 %v12283_v40  ;;  %v10118_v5 = vpop.eup %7880  ;;  %v3408_v23 = vadd.f32 %v3376_v46, %v3216_v60  ;;  %v2713_v46 = vadd.f32 %v9853_v37, %v9826_v30 }
 0x2f1   :  { %2958 = vperm.xlu1 %7723, %v10022_v62   ;;  %7888 = vrcp.f32 %v2434_v19  ;;  %v7918_v19 = vld [vmem:[%s11968_s0 + $0x28] sm:$0xff] }
 0x2f2   :  { %v2874_v36 = vpop.permute.xlu1 %2873  ;;  %7748 = vset.pattern.permute.xlu0 %v12283_v40  ;;  %v2889_v9 = vpop.permute.xlu0 %2888 }
 0x2f3   :  { %2993 = vperm.xlu0 %7748, %v10103_v22   ;;  %v3023_v32 = vmul.f32 %v7914_v44, %v2874_v36  ;;  %v10128_v8 = vpop.eup %7882  ;;  %v2718_v36 = vadd.f32 %v9822_v38, %v9853_v37 }
 0x2f5   :  { %7724 = vset.pattern.permute.xlu1 %v12284_v17  ;;  %v3440_v21 = vadd.f32 %v3408_v23, %v2718_v36 }
 0x2f6   :  { %3322 = vperm.xlu1 %7724, %v10022_v62  }
 0x2f7   :  { %v3063_v49 = vpop.permute.xlu1 %3062  ;;  %7752 = vset.pattern.permute.xlu0 %v12285_v63  ;;  %v3267_v44 = vpop.permute.xlu0 %3266 }
 0x2f8   :  { %v3183_v41 = vmul.f32 %v7915_v15, %v3063_v49  ;;  %3170 = vperm.xlu0 %7752, %v10118_v5   ;;  %v10137_v49 = vpop.eup %7884 }
 0x2f9   :  { %v10150_v30 = vpop.eup %7886 }
 0x2fa   :  { %v3215_v58 = vadd.f32 %v3183_v41, %v3023_v32  ;;  %7725 = vset.pattern.permute.xlu1 %v12283_v40  ;;  %v7917_v32 = vld [vmem:[%s11968_s0 + $0x128] sm:$0xff]  ;;  %v3026_v41 = vmul.f32 %v7918_v19, %v2889_v9 }
 0x2fb   :  { %v3075_v62 = vpop.permute.xlu1 %3074  ;;  %2953 = vperm.xlu1 %7725, %v10128_v8   ;;  %v7920_v9 = vld [vmem:[%s11968_s0 + $0x228] sm:$0xff] }
 0x2fc   :  { %v3407_v60 = vadd.f32 %v3375_v6, %v3215_v58  ;;  %7754 = vset.pattern.permute.xlu0 %v12283_v40  ;;  %v3186_v15 = vmul.f32 %v7917_v32, %v3075_v62  ;;  %v3473_v6 = vmul.f32 0.25, %v3440_v21  ;;  %v3071_v36 = vpop.permute.xlu0 %3070  ;;  %v7919_v62 = vld [vmem:[%s11968_s0 + $0x20] sm:$0xff] }
 0x2fd   :  { %3003 = vperm.xlu0 %7754, %v10137_v49   ;;  %v7921_v21 = vld [vmem:[%s11968_s0 + $0x120] sm:$0xff] }
 0x2fe   :  { %v3439_v38 = vadd.f32 %v3407_v60, %v2713_v46  ;;  %v3218_v58 = vadd.f32 %v3186_v15, %v3026_v41  ;;  %v3378_v60 = vmul.f32 %v7920_v9, %v3267_v44  ;;  %v3185_v32 = vmul.f32 %v7921_v21, %v3071_v36  ;;  %v10166_v15 = vpop.eup %7888  ;;  %v7922_v44 = vld [vmem:[%s11968_s0 + $0x220] sm:$0xff] }
 0x2ff   :  { %7726 = vset.pattern.permute.xlu1 %v12285_v63 }
 0x300   :  { %v2884_v3 = vpop.permute.xlu1 %2883  ;;  %3126 = vperm.xlu1 %7726, %v10128_v8   ;;  %v3472_v23 = vmul.f32 0.25, %v3439_v38  ;;  %v3410_v38 = vadd.f32 %v3378_v60, %v3218_v58 }
 0x301   :  { %3013 = vperm.xlu0 %7754, %v10150_v30   ;;  %v3025_v46 = vmul.f32 %v7919_v62, %v2884_v3  ;;  %v2899_v60 = vpop.permute.xlu0 %2898 }
 0x302   :  { %7324 = vmatprep.mubr.msk.f32.mxu1 %vm234_vm0, %v3472_v23  ;;  %v2728_v23 = vadd.f32 %v9831_v43, %v9853_v37 }
 0x303   :  { %7325 = vmatmul.mubr.msk.f32.gmra.mrb[34].mxu1 %vm234_vm0, %v3473_v6  ;;  %v3217_v41 = vadd.f32 %v3185_v32, %v3025_v46  ;;  %v2723_v6 = vadd.f32 %v9853_v37, %v9834_v13 }
 0x304   :  { %7727 = vset.pattern.permute.xlu1 %v12284_v17  ;;  %v3442_v36 = vadd.f32 %v3410_v38, %v2728_v23  ;;  %v7923_v38 = vld [vmem:[%s11968_s0 + $0x138] sm:$0xff] }
 0x305   :  { %v3263_v19 = vpop.permute.xlu1 %3262  ;;  %3318 = vperm.xlu1 %7727, %v10128_v8   ;;  %7758 = vset.pattern.permute.xlu0 %v12285_v63 }
 0x306   :  { %v3377_v3 = vmul.f32 %v7922_v44, %v3263_v19  ;;  %3178 = vperm.xlu0 %7758, %v10166_v15   ;;  %v3475_v21 = vmul.f32 0.25, %v3442_v36  ;;  %v3271_v13 = vpop.permute.xlu0 %3270 }
 0x308   :  { %v3409_v58 = vadd.f32 %v3377_v3, %v3217_v41  ;;  %v7924_v41 = vld [vmem:[%s11968_s0 + $0x38] sm:$0xff] }
 0x309   :  { %7728 = vset.pattern.permute.xlu1 %v12283_v40  ;;  %v3028_v44 = vmul.f32 %v7924_v41, %v2899_v60  ;;  %v7925_v3 = vld [vmem:[%s11968_s0 + $0x238] sm:$0xff]  ;;  %v2738_v41 = vadd.f32 %v9839_v16, %v9853_v37  ;;  %v7930_v16 = vld [vmem:[%s11968_s0 + $0x48] sm:$0xff] }
 0x30a   :  { %v3441_v62 = vadd.f32 %v3409_v58, %v2723_v6  ;;  %v3083_v9 = vpop.permute.xlu1 %3082  ;;  %2968 = vperm.xlu1 %7728, %v10026_v14  }
 0x30b   :  { %v3188_v19 = vmul.f32 %v7923_v38, %v3083_v9  ;;  %v2909_v6 = vpop.permute.xlu0 %2908 }
 0x30c   :  { %v3474_v46 = vmul.f32 0.25, %v3441_v62  ;;  %v7926_v62 = vld [vmem:[%s11968_s0 + $0x30] sm:$0xff] }
 0x30d   :  { %v3220_v58 = vadd.f32 %v3188_v19, %v3028_v44 }
 0x30e   :  { %7729 = vset.pattern.permute.xlu1 %v12284_v17  ;;  %7327 = vmatprep.mubr.msk.f32.mxu1 %vm234_vm0, %v3474_v46  ;;  %v7927_v46 = vld [vmem:[%s11968_s0 + $0x130] sm:$0xff] }
 0x30f   :  { %v3275_v32 = vpop.permute.xlu1 %3274  ;;  %3330 = vperm.xlu1 %7729, %v10026_v14   ;;  %7328 = vmatmul.mubr.msk.f32.gmra.mrb[36].mxu1 %vm234_vm0, %v3475_v21 }
 0x310   :  { %v3380_v23 = vmul.f32 %v7925_v3, %v3275_v32  ;;  %v7928_v32 = vld [vmem:[%s11968_s0 + $0x230] sm:$0xff]  ;;  %v3283_v44 = vpop.permute.xlu0 %3282 }
 0x311   :  { %v3379_v38 = vmul.f32 %v7928_v32, %v3271_v13 }
 0x312   :  { %v3412_v21 = vadd.f32 %v3380_v23, %v3220_v58  ;;  %v7929_v58 = vld [vmem:[%s11968_s0 + $0x148] sm:$0xff] }
 0x313   :  { %7731 = vset.pattern.permute.xlu1 %v12285_v63 }
 0x314   :  { %v2894_v43 = vpop.permute.xlu1 %2893  ;;  %3134 = vperm.xlu1 %7731, %v10033_v34   ;;  %v3444_v23 = vadd.f32 %v3412_v21, %v2738_v41  ;;  %v7931_v21 = vld [vmem:[%s11968_s0 + $0x40] sm:$0xff] }
 0x315   :  { %v3027_v9 = vmul.f32 %v7926_v62, %v2894_v43  ;;  %v2733_v43 = vadd.f32 %v9853_v37, %v9843_v4  ;;  %v3087_v37 = vpop.permute.xlu0 %3086  ;;  %v7933_v41 = vld [vmem:[%s11968_s0 + $0x140] sm:$0xff] }
 0x316   :  { %v3477_v4 = vmul.f32 0.25, %v3444_v23 }
 0x318   :  { %7732 = vset.pattern.permute.xlu1 %v12284_v17 }
 0x319   :  { %v3079_v36 = vpop.permute.xlu1 %3078  ;;  %3326 = vperm.xlu1 %7732, %v10033_v34  }
 0x31a   :  { %v3187_v60 = vmul.f32 %v7927_v46, %v3079_v36 }
 0x31c   :  { %v3219_v19 = vadd.f32 %v3187_v60, %v3027_v9  ;;  %v3030_v9 = vmul.f32 %v7930_v16, %v2909_v6  ;;  %v7932_v6 = vld [vmem:[%s11968_s0 + $0x248] sm:$0xff] }
 0x31d   :  { %v3091_v3 = vpop.permute.xlu1 %3090  ;;  %7733 = vset.pattern.permute.xlu1 %v12283_v40 }
 0x31e   :  { %v3411_v62 = vadd.f32 %v3379_v38, %v3219_v19  ;;  %2978 = vperm.xlu1 %7733, %v10043_v33   ;;  %v3190_v13 = vmul.f32 %v7929_v58, %v3091_v3  ;;  %v3382_v19 = vmul.f32 %v7932_v6, %v3283_v44  ;;  %v3189_v3 = vmul.f32 %v7933_v41, %v3087_v37  ;;  %v7939_v41 = vld [vmem:[%s11968_s0 + $0x150] sm:$0xff] }
 0x320   :  { %v3443_v36 = vadd.f32 %v3411_v62, %v2733_v43  ;;  %v3222_v32 = vadd.f32 %v3190_v13, %v3030_v9 }
 0x322   :  { %v2904_v46 = vpop.permute.xlu1 %2903  ;;  %7735 = vset.pattern.permute.xlu1 %v12284_v17  ;;  %v3476_v60 = vmul.f32 0.25, %v3443_v36  ;;  %v3414_v43 = vadd.f32 %v3382_v19, %v3222_v32  ;;  %v7938_v19 = vld [vmem:[%s11968_s0 + $0x50] sm:$0xff] }
 0x323   :  { %3338 = vperm.xlu1 %7735, %v10043_v33   ;;  %v3029_v38 = vmul.f32 %v7931_v21, %v2904_v46  ;;  %v2919_v46 = vpop.permute.xlu0 %2918 }
 0x324   :  { %5966 = vxpose.xlu0.b32.start [1/16] (narrow) %v9730_v20, 8  ;;  %7330 = vmatprep.mubr.msk.f32.mxu1 %vm234_vm0, %v3476_v60  ;;  %v7934_v20 = vld [vmem:[%s11968_s0 + $0x240] sm:$0xff]  ;;  %v3446_v13 = vadd.f32 %v3414_v43, %v9857_v18 }
 0x325   :  { %7331 = vmatmul.mubr.msk.f32.gmra.mrb[38].mxu1 %vm234_vm0, %v3477_v4  ;;  %v3221_v23 = vadd.f32 %v3189_v3, %v3029_v38  ;;  %v7936_v4 = vld [vmem:[%s11968_s0 + $0x58] sm:$0xff] }
 0x326   :  { %v3479_v60 = vmul.f32 0.25, %v3446_v13  ;;  %v3032_v37 = vmul.f32 %v7936_v4, %v2919_v46  ;;  %v7941_v46 = vld [vmem:[%s11968_s0 + $0x168] sm:$0xff] }
 0x327   :  { %v3279_v62 = vpop.permute.xlu1 %3278  ;;  %7737 = vset.pattern.permute.xlu1 %v12285_v63  ;;  %v3287_v18 = vpop.permute.xlu0 %3286 }
 0x328   :  { %v3381_v58 = vmul.f32 %v7934_v20, %v3279_v62  ;;  %3142 = vperm.xlu1 %7737, %v10053_v2   ;;  %5967 = vxpose.xlu0.b32.cont [2/16] (narrow) %v9718_v28, 8  ;;  %v7940_v62 = vld [vmem:[%s11968_s0 + $0x250] sm:$0xff] }
 0x32a   :  { %v3413_v44 = vadd.f32 %v3381_v58, %v3221_v23  ;;  %v3383_v23 = vmul.f32 %v7940_v62, %v3287_v18  ;;  %v3866_v58 = vld [vmem:[%s11973_s5] sm:$0xff]  ;;  %v3868_v18 = vld [vmem:[%s11973_s5 + $0x10] sm:$0xff] }
 0x32b   :  { %v2929_v21 = vpop.permute.xlu0 %2928 }
 0x32c   :  { %v3445_v36 = vadd.f32 %v3413_v44, %v9860_v61  ;;  %v3099_v16 = vpop.permute.xlu1 %3098  ;;  %7738 = vset.pattern.permute.xlu1 %v12284_v17  ;;  %5968 = vxpose.xlu0.b32.cont [3/16] (narrow) %v9774_v11, 8  ;;  %v7935_v11 = vld [vmem:[%s11968_s0 + $0x158] sm:$0xff]  ;;  %v3867_v44 = vld [vmem:[%s11973_s5 + $0x8] sm:$0xff] }
 0x32d   :  { %3334 = vperm.xlu1 %7738, %v10053_v2  }
 0x32e   :  { %v3478_v9 = vmul.f32 0.25, %v3445_v36  ;;  %v7649_v36 = vpack.c.bf16 %v3867_v44, %v3866_v58 }
 0x330   :  { %5969 = vxpose.xlu0.b32.cont [4/16] (narrow) %v9758_v35, 8  ;;  %7333 = vmatprep.mubr.msk.f32.mxu1 %vm234_vm0, %v3478_v9  ;;  %v3192_v35 = vmul.f32 %v7935_v11, %v3099_v16 }
 0x331   :  { %v3291_v28 = vpop.permute.xlu1 %3290  ;;  %7739 = vset.pattern.permute.xlu1 %v12283_v40  ;;  %7334 = vmatmul.mubr.msk.f32.gmra.mrb[40].mxu1 %vm234_vm0, %v3479_v60 }
 0x332   :  { %2988 = vperm.xlu1 %7739, %v10067_v29   ;;  %v3224_v38 = vadd.f32 %v3192_v35, %v3032_v37  ;;  %7658 = vmatprep.subr.bf16.mxu0 %v7649_v36 }
 0x333   :  { %7660 = vmatpush3.bf16.msra.mxu0 %v7649_v36  ;;  %7650 = vmatprep.subr.bf16.mxu1 %v7649_v36 }
 0x334   :  { %5970 = vxpose.xlu0.b32.cont [5/16] (narrow) %v9808_v7, 8  ;;  %v7937_v7 = vld [vmem:[%s11968_s0 + $0x258] sm:$0xff]  ;;  %7652 = vmatpush3.bf16.msra.mxu1 %v7649_v36 }
 0x335   :  { %v3384_v32 = vmul.f32 %v7937_v7, %v3291_v28  ;;  %v7943_v7 = vld [vmem:[%s11968_s0 + $0x60] sm:$0xff] }
 0x336   :  { %v2914_v61 = vpop.permute.xlu1 %2913  ;;  %7741 = vset.pattern.permute.xlu1 %v12284_v17 }
 0x337   :  { %3346 = vperm.xlu1 %7741, %v10067_v29   ;;  %v3416_v43 = vadd.f32 %v3384_v32, %v3224_v38 }
 0x338   :  { %5971 = vxpose.xlu0.b32.cont [6/16] (narrow) %v9784_v12, 8  ;;  %v3031_v12 = vmul.f32 %v7938_v19, %v2914_v61 }
 0x339   :  { %v3448_v9 = vadd.f32 %v3416_v43, %v9868_v52  ;;  %v7942_v52 = vld [vmem:[%s11968_s0 + $0x68] sm:$0xff]  ;;  %v7946_v43 = vld [vmem:[%s11968_s0 + $0x260] sm:$0xff] }
 0x33a   :  { %v3034_v61 = vmul.f32 %v7942_v52, %v2929_v21  ;;  %v7944_v21 = vld [vmem:[%s11968_s0 + $0x268] sm:$0xff]  ;;  %v7951_v52 = vld [vmem:[%s11968_s0 + $0x170] sm:$0xff] }
 0x33b   :  { %v3095_v6 = vpop.permute.xlu1 %3094  ;;  %7743 = vset.pattern.permute.xlu1 %v12285_v63  ;;  %v3481_v4 = vmul.f32 0.25, %v3448_v9 }
 0x33c   :  { %v3191_v3 = vmul.f32 %v7939_v41, %v3095_v6  ;;  %3150 = vperm.xlu1 %7743, %v10087_v48   ;;  %5972 = vxpose.xlu0.b32.cont [7/16] (narrow) %v9829_v10, 8  ;;  %v3299_v10 = vpop.permute.xlu0 %3298  ;;  %v7945_v6 = vld [vmem:[%s11968_s0 + $0x160] sm:$0xff] }
 0x33e   :  { %v3223_v20 = vadd.f32 %v3191_v3, %v3031_v12 }
 0x33f   :  { %v3107_v13 = vpop.permute.xlu1 %3106 }
 0x340   :  { %v3415_v16 = vadd.f32 %v3383_v23, %v3223_v20  ;;  %7744 = vset.pattern.permute.xlu1 %v12284_v17  ;;  %5973 = vxpose.xlu0.b32.cont [8/16] (narrow) %v9817_v27, 8  ;;  %v3194_v60 = vmul.f32 %v7941_v46, %v3107_v13  ;;  %v3869_v27 = vld [vmem:[%s11973_s5 + $0x18] sm:$0xff]  ;;  %v3103_v38 = vpop.permute.xlu0 %3102 }
 0x341   :  { %3342 = vperm.xlu1 %7744, %v10087_v48   ;;  %v7653_v11 = vpack.c.bf16 %v3869_v27, %v3868_v18  ;;  %v3193_v19 = vmul.f32 %v7945_v6, %v3103_v38  ;;  %v7949_v46 = vld [vmem:[%s11968_s0 + $0x278] sm:$0xff]  ;;  %v7950_v18 = vld [vmem:[%s11968_s0 + $0x70] sm:$0xff] }
 0x342   :  { %v3447_v28 = vadd.f32 %v3415_v16, %v9872_v53  ;;  %v3226_v37 = vadd.f32 %v3194_v60, %v3034_v61 }
 0x343   :  { %7662 = vmatprep.subr.bf16.mxu0 %v7653_v11  ;;  %7654 = vmatprep.subr.bf16.mxu1 %v7653_v11 }
 0x344   :  { %v2924_v35 = vpop.permute.xlu1 %2923  ;;  %5974 = vxpose.xlu0.b32.cont [9/16] (narrow) %v9874_v1, 8  ;;  %v3480_v53 = vmul.f32 0.25, %v3447_v28  ;;  %v3386_v1 = vmul.f32 %v7944_v21, %v3299_v10  ;;  %7664 = vmatpush3.bf16.msra.mxu0 %v7653_v11  ;;  %v2939_v44 = vpop.permute.xlu0 %2938  ;;  %v7948_v10 = vld [vmem:[%s11968_s0 + $0x78] sm:$0xff]  ;;  %v7953_v21 = vld [vmem:[%s11968_s0 + $0x188] sm:$0xff] }
 0x345   :  { %7745 = vset.pattern.permute.xlu1 %v12283_v40  ;;  %v3033_v32 = vmul.f32 %v7943_v7, %v2924_v35  ;;  %7656 = vmatpush3.bf16.msra.mxu1 %v7653_v11 }
 0x346   :  { %2998 = vperm.xlu1 %7745, %v10095_v45   ;;  %7336 = vmatprep.mubr.msk.f32.mxu1 %vm234_vm0, %v3480_v53  ;;  %v3418_v12 = vadd.f32 %v3386_v1, %v3226_v37 }
 0x347   :  { %7337 = vmatmul.mubr.msk.f32.gmra.mrb[42].mxu1 %vm234_vm0, %v3481_v4  ;;  %v3225_v3 = vadd.f32 %v3193_v19, %v3033_v32 }
 0x348   :  { %5975 = vxpose.xlu0.b32.cont [10/16] (narrow) %v9841_v50, 8  ;;  %v3450_v20 = vadd.f32 %v3418_v12, %v9882_v59  ;;  %v3303_v59 = vpop.permute.xlu0 %3302 }
 0x349   :  { %v3295_v41 = vpop.permute.xlu1 %3294 }
 0x34a   :  { %v3385_v62 = vmul.f32 %v7946_v43, %v3295_v41  ;;  %7747 = vset.pattern.permute.xlu1 %v12284_v17  ;;  %v3483_v36 = vmul.f32 0.25, %v3450_v20  ;;  %v7955_v43 = vld [vmem:[%s11968_s0 + $0x80] sm:$0xff] }
 0x34b   :  { %3354 = vperm.xlu1 %7747, %v10095_v45   ;;  %v7957_v20 = vld [vmem:[%s11968_s0 + $0x180] sm:$0xff] }
 0x34c   :  { %v3417_v23 = vadd.f32 %v3385_v62, %v3225_v3  ;;  %5976 = vxpose.xlu0.b32.cont [11/16] (narrow) %v9906_v42, 8  ;;  %v2949_v9 = vpop.permute.xlu0 %2948 }
 0x34e   :  { %v3449_v50 = vadd.f32 %v3417_v23, %v9888_v55  ;;  %v3115_v58 = vpop.permute.xlu1 %3114 }
 0x34f   :  { %7749 = vset.pattern.permute.xlu1 %v12285_v63 }
 0x350   :  { %v3482_v13 = vmul.f32 0.25, %v3449_v50  ;;  %3158 = vperm.xlu1 %7749, %v10103_v22   ;;  %5977 = vxpose.xlu0.b32.cont [12/16] (narrow) %v9892_v39, 8  ;;  %v7947_v39 = vld [vmem:[%s11968_s0 + $0x178] sm:$0xff]  ;;  %v3315_v4 = vpop.permute.xlu0 %3314 }
 0x351   :  { %v3196_v42 = vmul.f32 %v7947_v39, %v3115_v58 }
 0x352   :  { %7339 = vmatprep.mubr.msk.f32.mxu1 %vm234_vm0, %v3482_v13 }
 0x353   :  { %v3307_v16 = vpop.permute.xlu1 %3306  ;;  %7340 = vmatmul.mubr.msk.f32.gmra.mrb[44].mxu1 %vm234_vm0, %v3483_v36  ;;  %v7958_v36 = vld [vmem:[%s11968_s0 + $0x280] sm:$0xff] }
 0x354   :  { %7750 = vset.pattern.permute.xlu1 %v12284_v17  ;;  %5978 = vxpose.xlu0.b32.cont [13/16] (narrow) %v9949_v54, 8  ;;  %v3036_v54 = vmul.f32 %v7948_v10, %v2939_v44  ;;  %v3119_v41 = vpop.permute.xlu0 %3118 }
 0x355   :  { %3350 = vperm.xlu1 %7750, %v10103_v22   ;;  %v3197_v50 = vmul.f32 %v7957_v20, %v3119_v41 }
 0x356   :  { %v3228_v60 = vadd.f32 %v3196_v42, %v3036_v54 }
 0x358   :  { %v2934_v55 = vpop.permute.xlu1 %2933  ;;  %5979 = vxpose.xlu0.b32.cont [14/16] (narrow) %v9920_v0, 8  ;;  %v3388_v0 = vmul.f32 %v7949_v46, %v3307_v16 }
 0x359   :  { %7751 = vset.pattern.permute.xlu1 %v12283_v40  ;;  %v3035_v27 = vmul.f32 %v7950_v18, %v2934_v55 }
 0x35a   :  { %3008 = vperm.xlu1 %7751, %v10118_v5   ;;  %v3420_v11 = vadd.f32 %v3388_v0, %v3228_v60  ;;  %v7960_v0 = vld [vmem:[%s11968_s0 + $0x198] sm:$0xff] }
 0x35c   :  { %5980 = vxpose.xlu0.b32.cont [15/16] (narrow) %v9980_v56, 8  ;;  %v7952_v56 = vld [vmem:[%s11968_s0 + $0x270] sm:$0xff]  ;;  %v3452_v32 = vadd.f32 %v3420_v11, %v9898_v26 }
 0x35d   :  { %v3111_v28 = vpop.permute.xlu1 %3110  ;;  %v3387_v35 = vmul.f32 %v7952_v56, %v3303_v59  ;;  %v7963_v11 = vld [vmem:[%s11968_s0 + $0x90] sm:$0xff] }
 0x35e   :  { %v3195_v61 = vmul.f32 %v7951_v52, %v3111_v28  ;;  %7753 = vset.pattern.permute.xlu1 %v12284_v17  ;;  %v3485_v26 = vmul.f32 0.25, %v3452_v32  ;;  %v7961_v28 = vld [vmem:[%s11968_s0 + $0x298] sm:$0xff] }
 0x35f   :  { %3362 = vperm.xlu1 %7753, %v10118_v5  }
 0x360   :  { %v3227_v53 = vadd.f32 %v3195_v61, %v3035_v27  ;;  %5981 = vxpose.xlu0.b32.end [16/16] (narrow) %v9963_v57, 8  ;;  %v7954_v57 = vld [vmem:[%s11968_s0 + $0x88] sm:$0xff]  ;;  %v7962_v27 = vld [vmem:[%s11968_s0 + $0x190] sm:$0xff] }
 0x361   :  { %v3123_v37 = vpop.permute.xlu1 %3122  ;;  %v3038_v6 = vmul.f32 %v7954_v57, %v2949_v9 }
 0x362   :  { %v3419_v7 = vadd.f32 %v3387_v35, %v3227_v53  ;;  %v3198_v1 = vmul.f32 %v7953_v21, %v3123_v37  ;;  %v7964_v37 = vld [vmem:[%s11968_s0 + $0x290] sm:$0xff] }
 0x363   :  { %7755 = vset.pattern.permute.xlu1 %v12285_v63 }
 0x364   :  { %v3451_v38 = vadd.f32 %v3419_v7, %v9903_v25  ;;  %3166 = vperm.xlu1 %7755, %v10137_v49   ;;  %v3230_v3 = vadd.f32 %v3198_v1, %v3038_v6  ;;  %v7956_v25 = vld [vmem:[%s11968_s0 + $0x288] sm:$0xff]  ;;  %v12301_v1 = vld [vmem:[#allocation134_spill] sm:$0xff] }
 0x365   :  { %v3390_v23 = vmul.f32 %v7956_v25, %v3315_v4 }
 0x366   :  { %v2944_v19 = vpop.permute.xlu1 %2943  ;;  %v3484_v12 = vmul.f32 0.25, %v3451_v38 }
 0x367   :  { %v3037_v62 = vmul.f32 %v7955_v43, %v2944_v19  ;;  %v3422_v58 = vadd.f32 %v3390_v23, %v3230_v3  ;;  %v7967_v23 = vld [vmem:[%s11968_s0 + $0x2a8] sm:$0xff] }
 0x368   :  { %7756 = vset.pattern.permute.xlu1 %v12284_v17  ;;  %7342 = vmatprep.mubr.msk.f32.mxu1 %vm234_vm0, %v3484_v12 }
 0x369   :  { %3358 = vperm.xlu1 %7756, %v10137_v49   ;;  %7343 = vmatmul.mubr.msk.f32.gmra.mrb[46].mxu1 %vm234_vm0, %v3485_v26  ;;  %v3229_v13 = vadd.f32 %v3197_v50, %v3037_v62  ;;  %v3454_v55 = vadd.f32 %v3422_v58, %v9909_v51  ;;  %v7959_v51 = vld [vmem:[%s11968_s0 + $0x98] sm:$0xff]  ;;  %v7965_v26 = vld [vmem:[%s11968_s0 + $0xa8] sm:$0xff]  ;;  %v7968_v50 = vld [vmem:[%s11968_s0 + $0x1a0] sm:$0xff] }
 0x36b   :  { %v3311_v44 = vpop.permute.xlu1 %3310  ;;  %v3487_v54 = vmul.f32 0.25, %v3454_v55 }
 0x36c   :  { %v3389_v16 = vmul.f32 %v7958_v36, %v3311_v44 }
 0x36d   :  { %7757 = vset.pattern.permute.xlu1 %v12283_v40 }
 0x36e   :  { %v3421_v59 = vadd.f32 %v3389_v16, %v3229_v13  ;;  %3018 = vperm.xlu1 %7757, %v10166_v15   ;;  %v7969_v13 = vld [vmem:[%s11968_s0 + $0xa0] sm:$0xff] }
 0x370   :  { %v3453_v39 = vadd.f32 %v3421_v59, %v9913_v47  ;;  %v2959_v42 = vpop.permute.xlu1 %2958  ;;  %v3131_v47 = vpop.permute.xlu0 %3130 }
 0x371   :  { %v3200_v60 = vmul.f32 %v7960_v0, %v3131_v47 }
 0x372   :  { %v3486_v10 = vmul.f32 0.25, %v3453_v39  ;;  %7759 = vset.pattern.permute.xlu1 %v12285_v63  ;;  %v3040_v63 = vmul.f32 %v7959_v51, %v2959_v42  ;;  %v7970_v39 = vld [vmem:[%s11968_s0 + $0x2a0] sm:$0xff] }
 0x373   :  { %3174 = vperm.xlu1 %7759, %v10150_v30  }
 0x374   :  { %7345 = vmatprep.mubr.msk.f32.mxu1 %vm234_vm0, %v3486_v10  ;;  %v3232_v61 = vadd.f32 %v3200_v60, %v3040_v63  ;;  %v3139_v12 = vpop.permute.xlu0 %3138 }
 0x375   :  { %v3323_v9 = vpop.permute.xlu1 %3322  ;;  %7346 = vmatmul.mubr.msk.f32.gmra.mrb[48].mxu1 %vm234_vm0, %v3487_v54  ;;  %v12302_v54 = vld [vmem:[#allocation135_spill] sm:$0xff] }
 0x376   :  { %v3392_v18 = vmul.f32 %v7961_v28, %v3323_v9  ;;  %v7971_v28 = vld [vmem:[%s11968_s0 + $0xb8] sm:$0xff] }
 0x377   :  { %7760 = vset.pattern.permute.xlu1 %v12284_v17 }
 0x378   :  { %3366 = vperm.xlu1 %7760, %v10150_v30   ;;  %v3424_v35 = vadd.f32 %v3392_v18, %v3232_v61  ;;  %v2964_v25 = vpop.permute.xlu0 %2963 }
 0x379   :  { %v3041_v36 = vmul.f32 %v7969_v13, %v2964_v25 }
 0x37a   :  { %v2954_v40 = vpop.permute.xlu1 %2953  ;;  %v3456_v21 = vadd.f32 %v3424_v35, %v9918_v24  ;;  %v7966_v24 = vld [vmem:[%s11968_s0 + $0x1a8] sm:$0xff] }
 0x37b   :  { %v3039_v56 = vmul.f32 %v7963_v11, %v2954_v40  ;;  %v3202_v62 = vmul.f32 %v7966_v24, %v3139_v12  ;;  %v12303_v40 = vld [vmem:[#allocation136_spill] sm:$0xff]  ;;  %v12305_v12 = vld [vmem:[#allocation137_spill] sm:$0xff] }
 0x37c   :  { %3370 = vperm.xlu1 %7760, %v10166_v15   ;;  %v3489_v19 = vmul.f32 0.25, %v3456_v21  ;;  %v3147_v0 = vpop.permute.xlu0 %3146  ;;  %v12307_v24 = vld [vmem:[#allocation148_spill] sm:$0xff] }
 0x37f   :  { %v3127_v46 = vpop.permute.xlu1 %3126 }
 0x380   :  { %v3199_v52 = vmul.f32 %v7962_v27, %v3127_v46  ;;  %v2974_v11 = vpop.permute.xlu0 %2973 }
 0x382   :  { %v3231_v4 = vadd.f32 %v3199_v52, %v3039_v56  ;;  %v7972_v52 = vld [vmem:[%s11968_s0 + $0x1b8] sm:$0xff] }
 0x383   :  { %v3204_v61 = vmul.f32 %v7972_v52, %v3147_v0  ;;  %v7973_v56 = vld [vmem:[%s11968_s0 + $0x2b8] sm:$0xff] }
 0x384   :  { %v3319_v53 = vpop.permute.xlu1 %3318  ;;  %v12308_v0 = vld [vmem:[#allocation139_spill] sm:$0xff] }
 0x385   :  { %v3391_v7 = vmul.f32 %v7964_v37, %v3319_v53 }
 0x387   :  { %v3423_v32 = vadd.f32 %v3391_v7, %v3231_v4  ;;  %v12304_v4 = vld [vmem:[#allocation147_spill] sm:$0xff]  ;;  %v7975_v7 = vld [vmem:[%s11968_s0 + $0xb0] sm:$0xff] }
 0x389   :  { %v3455_v38 = vadd.f32 %v3423_v32, %v12301_v1  ;;  %v2969_v57 = vpop.permute.xlu1 %2968  ;;  %v3043_v32 = vmul.f32 %v7975_v7, %v2974_v11 }
 0x38a   :  { %v3042_v3 = vmul.f32 %v7965_v26, %v2969_v57  ;;  %v7976_v57 = vld [vmem:[%s11968_s0 + $0x2b0] sm:$0xff] }
 0x38b   :  { %v3488_v6 = vmul.f32 0.25, %v3455_v38  ;;  %v12306_v26 = vld [vmem:[#allocation138_spill] sm:$0xff] }
 0x38c   :  { %v3234_v44 = vadd.f32 %v3202_v62, %v3042_v3 }
 0x38d   :  { %7348 = vmatprep.mubr.msk.f32.mxu1 %vm234_vm0, %v3488_v6 }
 0x38e   :  { %v3331_v41 = vpop.permute.xlu1 %3330  ;;  %7349 = vmatmul.mubr.msk.f32.gmra.mrb[50].mxu1 %vm234_vm0, %v3489_v19 }
 0x38f   :  { %v3394_v20 = vmul.f32 %v7967_v23, %v3331_v41  ;;  %v3155_v23 = vpop.permute.xlu0 %3154 }
 0x391   :  { %v3426_v16 = vadd.f32 %v3394_v20, %v3234_v44  ;;  %v7978_v44 = vld [vmem:[%s11968_s0 + $0x1c8] sm:$0xff] }
 0x392   :  { %v3206_v13 = vmul.f32 %v7978_v44, %v3155_v23 }
 0x393   :  { %v3135_v43 = vpop.permute.xlu1 %3134  ;;  %v3458_v9 = vadd.f32 %v3426_v16, %v12302_v54 }
 0x394   :  { %v3201_v58 = vmul.f32 %v7968_v50, %v3135_v43 }
 0x395   :  { %v3491_v46 = vmul.f32 0.25, %v3458_v9 }
 0x396   :  { %v3233_v55 = vadd.f32 %v3201_v58, %v3041_v36  ;;  %v7979_v36 = vld [vmem:[%s11968_s0 + $0x2c8] sm:$0xff] }
 0x398   :  { %v3327_v59 = vpop.permute.xlu1 %3326 }
 0x399   :  { %v3393_v42 = vmul.f32 %v7970_v39, %v3327_v59  ;;  %v7981_v39 = vld [vmem:[%s11968_s0 + $0xc0] sm:$0xff] }
 0x39b   :  { %v3425_v10 = vadd.f32 %v3393_v42, %v3233_v55 }
 0x39d   :  { %v3457_v47 = vadd.f32 %v3425_v10, %v12303_v40  ;;  %v2979_v51 = vpop.permute.xlu1 %2978  ;;  %v7982_v40 = vld [vmem:[%s11968_s0 + $0x2c0] sm:$0xff] }
 0x39e   :  { %v3044_v18 = vmul.f32 %v7971_v28, %v2979_v51 }
 0x39f   :  { %v3490_v63 = vmul.f32 0.25, %v3457_v47 }
 0x3a0   :  { %v3236_v37 = vadd.f32 %v3204_v61, %v3044_v18 }
 0x3a1   :  { %7351 = vmatprep.mubr.msk.f32.mxu1 %vm234_vm0, %v3490_v63 }
 0x3a2   :  { %v3339_v60 = vpop.permute.xlu1 %3338  ;;  %7352 = vmatmul.mubr.msk.f32.gmra.mrb[52].mxu1 %vm234_vm0, %v3491_v46 }
 0x3a3   :  { %v3396_v35 = vmul.f32 %v7973_v56, %v3339_v60 }
 0x3a5   :  { %5998 = vxpose.xlu1.b32.start [1/16] (narrow) %v10014_v31, 8  ;;  %v7974_v31 = vld [vmem:[%s11968_s0 + $0x1b0] sm:$0xff]  ;;  %v3428_v21 = vadd.f32 %v3396_v35, %v3236_v37 }
 0x3a7   :  { %v3143_v27 = vpop.permute.xlu1 %3142  ;;  %v3460_v41 = vadd.f32 %v3428_v21, %v12305_v12  ;;  %v7985_v21 = vld [vmem:[%s11968_s0 + $0x2d8] sm:$0xff] }
 0x3a8   :  { %v3203_v53 = vmul.f32 %v7974_v31, %v3143_v27  ;;  %v12309_v27 = vld [vmem:[#allocation140_spill] sm:$0xff] }
 0x3a9   :  { %5999 = vxpose.xlu1.b32.cont [2/16] (narrow) %v12304_v4, 8  ;;  %v3493_v25 = vmul.f32 0.25, %v3460_v41 }
 0x3aa   :  { %v3235_v38 = vadd.f32 %v3203_v53, %v3043_v32 }
 0x3ac   :  { %v3335_v1 = vpop.permute.xlu1 %3334 }
 0x3ad   :  { %v3395_v6 = vmul.f32 %v7976_v57, %v3335_v1  ;;  %6000 = vxpose.xlu1.b32.cont [3/16] (narrow) %v10128_v8, 8  ;;  %v7977_v8 = vld [vmem:[%s11968_s0 + $0xc8] sm:$0xff] }
 0x3af   :  { %v3427_v19 = vadd.f32 %v3395_v6, %v3235_v38  ;;  %v7987_v6 = vld [vmem:[%s11968_s0 + $0xd0] sm:$0xff] }
 0x3b1   :  { %v3459_v3 = vadd.f32 %v3427_v19, %v12306_v26  ;;  %v2989_v43 = vpop.permute.xlu1 %2988  ;;  %6001 = vxpose.xlu1.b32.cont [4/16] (narrow) %v12307_v24, 8 }
 0x3b2   :  { %v3046_v50 = vmul.f32 %v7977_v8, %v2989_v43 }
 0x3b3   :  { %v3492_v62 = vmul.f32 0.25, %v3459_v3  ;;  %v7988_v3 = vld [vmem:[%s11968_s0 + $0x2d0] sm:$0xff] }
 0x3b4   :  { %v3238_v55 = vadd.f32 %v3206_v13, %v3046_v50  ;;  %v12311_v50 = vld [vmem:[#allocation142_spill] sm:$0xff] }
 0x3b5   :  { %6002 = vxpose.xlu1.b32.cont [5/16] (narrow) %v10033_v34, 8  ;;  %7354 = vmatprep.mubr.msk.f32.mxu1 %vm234_vm0, %v3492_v62  ;;  %v2984_v34 = vpop.permute.xlu0 %2983 }
 0x3b6   :  { %v3347_v20 = vpop.permute.xlu1 %3346  ;;  %7355 = vmatmul.mubr.msk.f32.gmra.mrb[54].mxu1 %vm234_vm0, %v3493_v25  ;;  %v3045_v42 = vmul.f32 %v7981_v39, %v2984_v34 }
 0x3b7   :  { %v3398_v16 = vmul.f32 %v7979_v36, %v3347_v20 }
 0x3b9   :  { %6003 = vxpose.xlu1.b32.cont [6/16] (narrow) %v10026_v14, 8  ;;  %v7980_v14 = vld [vmem:[%s11968_s0 + $0x1c0] sm:$0xff]  ;;  %v3430_v10 = vadd.f32 %v3398_v16, %v3238_v55  ;;  %v3163_v31 = vpop.permute.xlu0 %3162 }
 0x3bb   :  { %v3151_v58 = vpop.permute.xlu1 %3150  ;;  %v3462_v60 = vadd.f32 %v3430_v10, %v12308_v0  ;;  %v7990_v10 = vld [vmem:[%s11968_s0 + $0x1e8] sm:$0xff] }
 0x3bc   :  { %v3205_v59 = vmul.f32 %v7980_v14, %v3151_v58 }
 0x3bd   :  { %6004 = vxpose.xlu1.b32.cont [7/16] (narrow) %v10053_v2, 8  ;;  %v10484_v2 = vld [vmem:[%s11972_s4] ss:$0 sm:$0xff]  ;;  %v3495_v56 = vmul.f32 0.25, %v3462_v60  ;;  %v2994_v32 = vpop.permute.xlu0 %2993 }
 0x3be   :  { %v3237_v9 = vadd.f32 %v3205_v59, %v3045_v42  ;;  %v3047_v19 = vmul.f32 %v7987_v6, %v2994_v32  ;;  %v7993_v60 = vld [vmem:[%s11968_s0 + $0xe0] sm:$0xff] }
 0x3c0   :  { %v3343_v54 = vpop.permute.xlu1 %3342 }
 0x3c1   :  { %v3397_v47 = vmul.f32 %v7982_v40, %v3343_v54  ;;  %6005 = vxpose.xlu1.b32.cont [8/16] (narrow) %v10043_v33, 8 }
 0x3c2   :  { %v7323_v51 = vpop.f32.mrb[32].mxu1 }
 0x3c3   :  { %v3429_v63 = vadd.f32 %v3397_v47, %v3237_v9  ;;  %v3675_v46 = vpop.f32.mrb[33].mxu1  ;;  %v3681_v28 = vadd.f32 %v7323_v51, %v10484_v2  ;;  %v7992_v51 = vld [vmem:[%s11968_s0 + $0x1e0] sm:$0xff] }
 0x3c4   :  { %v3676_v18 = vadd.f32 %v10484_v2, %v3675_v46 }
 0x3c5   :  { %v3461_v52 = vadd.f32 %v3429_v63, %v12309_v27  ;;  %v2999_v61 = vpop.permute.xlu1 %2998  ;;  %6006 = vxpose.xlu1.b32.cont [9/16] (narrow) %v10087_v48, 8  ;;  %v3835_v35 = vmax.f32 %v3681_v28, 0.0  ;;  %v7983_v48 = vld [vmem:[%s11968_s0 + $0xd8] sm:$0xff] }
 0x3c6   :  { %v3834_v33 = vmax.f32 %v3676_v18, 0.0  ;;  %v3048_v4 = vmul.f32 %v7983_v48, %v2999_v61 }
 0x3c7   :  { %v3494_v11 = vmul.f32 0.25, %v3461_v52 }
 0x3c8   :  { %7577 = vmatprep.mubr.msk.f32.mxu0 %vm234_vm0, %v3834_v33  ;;  %v7994_v33 = vld [vmem:[%s11968_s0 + $0x2e0] sm:$0xff] }
 0x3c9   :  { %6007 = vxpose.xlu1.b32.cont [10/16] (narrow) %v10067_v29, 8  ;;  %7357 = vmatprep.mubr.msk.f32.mxu1 %vm234_vm0, %v3494_v11  ;;  %v7984_v29 = vld [vmem:[%s11968_s0 + $0x1d8] sm:$0xff] }
 0x3ca   :  { %7578 = vmatmul.mubr.msk.f32.vlgmr.msra.gmra.mrb[160].mxu0 %vm234_vm0, %v3835_v35  ;;  %v3355_v53 = vpop.permute.xlu1 %3354  ;;  %7358 = vmatmul.mubr.msk.f32.gmra.mrb[56].mxu1 %vm234_vm0, %v3495_v56  ;;  %v3208_v7 = vmul.f32 %v7984_v29, %v3163_v31  ;;  %v12312_v35 = vld [vmem:[#allocation143_spill] sm:$0xff] }
 0x3cb   :  { %v3400_v1 = vmul.f32 %v7985_v21, %v3355_v53  ;;  %v12313_v53 = vld [vmem:[#allocation144_spill] sm:$0xff]  ;;  %v7995_v21 = vld [vmem:[%s11968_s0 + $0x1f0] sm:$0xff] }
 0x3cc   :  { %v3240_v57 = vadd.f32 %v3208_v7, %v3048_v4 }
 0x3cd   :  { %6008 = vxpose.xlu1.b32.cont [11/16] (narrow) %v10103_v22, 8  ;;  %v7986_v22 = vld [vmem:[%s11968_s0 + $0x1d0] sm:$0xff] }
 0x3ce   :  { %v3432_v12 = vadd.f32 %v3400_v1, %v3240_v57 }
 0x3cf   :  { %v3159_v37 = vpop.permute.xlu1 %3158 }
 0x3d0   :  { %v3207_v38 = vmul.f32 %v7986_v22, %v3159_v37  ;;  %v7996_v22 = vld [vmem:[%s11968_s0 + $0xf0] sm:$0xff] }
 0x3d1   :  { %6009 = vxpose.xlu1.b32.cont [12/16] (narrow) %v10095_v45, 8  ;;  %v12310_v45 = vld [vmem:[#allocation141_spill] sm:$0xff] }
 0x3d2   :  { %v3239_v26 = vadd.f32 %v3207_v38, %v3047_v19  ;;  %v3464_v23 = vadd.f32 %v3432_v12, %v12310_v45  ;;  %v7997_v19 = vld [vmem:[%s11968_s0 + $0xf8] sm:$0xff] }
 0x3d4   :  { %v3351_v41 = vpop.permute.xlu1 %3350  ;;  %v3497_v36 = vmul.f32 0.25, %v3464_v23 }
 0x3d5   :  { %v3399_v43 = vmul.f32 %v7988_v3, %v3351_v41  ;;  %6010 = vxpose.xlu1.b32.cont [13/16] (narrow) %v10137_v49, 8  ;;  %v3171_v49 = vpop.permute.xlu0 %3170 }
 0x3d6   :  { %v7326_v24 = vpop.f32.mrb[34].mxu1  ;;  %v3210_v54 = vmul.f32 %v7990_v10, %v3171_v49  ;;  %v12316_v10 = vld [vmem:[#allocation10_spill] sm:$0xff] }
 0x3d7   :  { %v3431_v62 = vadd.f32 %v3399_v43, %v3239_v26  ;;  %v3685_v25 = vpop.f32.mrb[35].mxu1  ;;  %v3691_v20 = vadd.f32 %v7326_v24, %v10484_v2  ;;  %v7998_v26 = vld [vmem:[%s11968_s0 + $0x2f0] sm:$0xff] }
 0x3d8   :  { %v3686_v8 = vadd.f32 %v10484_v2, %v3685_v25  ;;  %v7999_v25 = vld [vmem:[%s11968_s0 + $0x1f8] sm:$0xff] }
 0x3d9   :  { %v3463_v58 = vadd.f32 %v3431_v62, %v12311_v50  ;;  %v3009_v44 = vpop.permute.xlu1 %3008  ;;  %6011 = vxpose.xlu1.b32.cont [14/16] (narrow) %v10118_v5, 8  ;;  %v3837_v16 = vmax.f32 %v3691_v20, 0.0  ;;  %v7989_v5 = vld [vmem:[%s11968_s0 + $0xe8] sm:$0xff]  ;;  %v3004_v9 = vpop.permute.xlu0 %3003 }
 0x3da   :  { %v3836_v13 = vmax.f32 %v3686_v8, 0.0  ;;  %v3050_v59 = vmul.f32 %v7989_v5, %v3009_v44  ;;  %v3049_v28 = vmul.f32 %v7993_v60, %v3004_v9  ;;  %v12315_v5 = vld [vmem:[#allocation145_spill] sm:$0xff] }
 0x3db   :  { %v3496_v34 = vmul.f32 0.25, %v3463_v58  ;;  %v12314_v58 = vld [vmem:[#allocation146_spill] sm:$0xff]  ;;  %v12323_v60 = vld [vmem:[#allocation21_spill] sm:$0xff] }
 0x3dc   :  { %7580 = vmatprep.mubr.msk.f32.mxu0 %vm234_vm0, %v3836_v13  ;;  %v3242_v46 = vadd.f32 %v3210_v54, %v3050_v59 }
 0x3dd   :  { %6012 = vxpose.xlu1.b32.cont [15/16] (narrow) %v10150_v30, 8  ;;  %7360 = vmatprep.mubr.msk.f32.mxu1 %vm234_vm0, %v3496_v34  ;;  %v3014_v7 = vpop.permute.xlu0 %3013  ;;  %v8000_v34 = vld [vmem:[%s11968_s0 + $0x2f8] sm:$0xff] }
 0x3de   :  { %7581 = vmatmul.mubr.msk.f32.gmra.mrb[162].mxu0 %vm234_vm0, %v3837_v16  ;;  %v3363_v14 = vpop.permute.xlu1 %3362  ;;  %7361 = vmatmul.mubr.msk.f32.gmra.mrb[58].mxu1 %vm234_vm0, %v3497_v36  ;;  %v3051_v38 = vmul.f32 %v7996_v22, %v3014_v7  ;;  %v12333_v22 = vld [vmem:[#allocation33_spill] sm:$0xff] }
 0x3e1   :  { %6013 = vxpose.xlu1.b32.end [16/16] (narrow) %v10166_v15, 8  ;;  %v7991_v15 = vld [vmem:[%s11968_s0 + $0x2e8] sm:$0xff]  ;;  %v3179_v57 = vpop.permute.xlu0 %3178 }
 0x3e2   :  { %v7329_v55 = vpop.f32.mrb[36].mxu1  ;;  %v3402_v40 = vmul.f32 %v7991_v15, %v3363_v14  ;;  %v3212_v45 = vmul.f32 %v7999_v25, %v3179_v57  ;;  %v12317_v15 = vld [vmem:[#allocation12_spill] sm:$0xff] }
 0x3e3   :  { %v3701_v39 = vadd.f32 %v7329_v55, %v10484_v2  ;;  %v3167_v42 = vpop.permute.xlu1 %3166  ;;  %v3695_v30 = vpop.f32.mrb[37].mxu1 }
 0x3e4   :  { %v3696_v47 = vadd.f32 %v10484_v2, %v3695_v30  ;;  %v3209_v63 = vmul.f32 %v7992_v51, %v3167_v42  ;;  %v3434_v27 = vadd.f32 %v3402_v40, %v3242_v46  ;;  %v12319_v51 = vld [vmem:[#allocation15_spill] sm:$0xff]  ;;  %v12321_v46 = vld [vmem:[#allocation18_spill] sm:$0xff] }
 0x3e5   :  { %v3839_v18 = vmax.f32 %v3701_v39, 0.0 }
 0x3e6   :  { %v3838_v0 = vmax.f32 %v3696_v47, 0.0  ;;  %v3241_v61 = vadd.f32 %v3209_v63, %v3049_v28  ;;  %v3466_v31 = vadd.f32 %v3434_v27, %v12312_v35  ;;  %v12318_v47 = vld [vmem:[#allocation13_spill] sm:$0xff]  ;;  %v12320_v63 = vld [vmem:[#allocation16_spill] sm:$0xff]  ;;  %v12324_v28 = vld [vmem:[#allocation22_spill] sm:$0xff] }
 0x3e7   :  { %v12326_v27 = vld [vmem:[#allocation24_spill] sm:$0xff] }
 0x3e8   :  { %v3359_v52 = vpop.permute.xlu1 %3358  ;;  %7583 = vmatprep.mubr.msk.f32.mxu0 %vm234_vm0, %v3838_v0  ;;  %v3499_v29 = vmul.f32 0.25, %v3466_v31  ;;  %v12322_v0 = vld [vmem:[#allocation19_spill] sm:$0xff]  ;;  %v12328_v35 = vld [vmem:[#allocation28_spill] sm:$0xff] }
 0x3e9   :  { %v3401_v11 = vmul.f32 %v7994_v33, %v3359_v52  ;;  %7584 = vmatmul.mubr.msk.f32.gmra.mrb[164].mxu0 %vm234_vm0, %v3839_v18  ;;  %v12325_v18 = vld [vmem:[#allocation25_spill] sm:$0xff] }
 0x3eb   :  { %v3433_v56 = vadd.f32 %v3401_v11, %v3241_v61 }
 0x3ed   :  { %v3465_v48 = vadd.f32 %v3433_v56, %v12313_v53  ;;  %v3019_v4 = vpop.permute.xlu1 %3018  ;;  %v12327_v56 = vld [vmem:[#allocation27_spill] sm:$0xff] }
 0x3ee   :  { %v3052_v12 = vmul.f32 %v7997_v19, %v3019_v4  ;;  %v12330_v4 = vld [vmem:[#allocation31_spill] sm:$0xff]  ;;  %v12335_v19 = vld [vmem:[#allocation38_spill] sm:$0xff] }
 0x3ef   :  { %v3498_v37 = vmul.f32 0.25, %v3465_v48  ;;  %v12329_v48 = vld [vmem:[#allocation30_spill] sm:$0xff] }
 0x3f0   :  { %v3244_v50 = vadd.f32 %v3212_v45, %v3052_v12  ;;  %v12336_v12 = vld [vmem:[#allocation6_spill] sm:$0xff] }
 0x3f1   :  { %7363 = vmatprep.mubr.msk.f32.mxu1 %vm234_vm0, %v3498_v37  ;;  %v12331_v37 = vld [vmem:[#allocation34_spill] sm:$0xff] }
 0x3f2   :  { %v3175_v32 = vpop.permute.xlu1 %3174  ;;  %7364 = vmatmul.mubr.msk.f32.gmra.mrb[60].mxu1 %vm234_vm0, %v3499_v29  ;;  %v12332_v29 = vld [vmem:[#allocation36_spill] sm:$0xff]  ;;  %v12343_v45 = vld [vmem:[#allocation14_spill] sm:$0xff] }
 0x3f3   :  { %v3211_v1 = vmul.f32 %v7995_v21, %v3175_v32 }
 0x3f5   :  { %v3243_v41 = vadd.f32 %v3211_v1, %v3051_v38  ;;  %v12334_v38 = vld [vmem:[#allocation40_spill] sm:$0xff] }
 0x3f7   :  { %v3367_v6 = vpop.permute.xlu1 %3366 }
 0x3f8   :  { %v3403_v3 = vmul.f32 %v7998_v26, %v3367_v6  ;;  %v7332_v43 = vpop.f32.mrb[38].mxu1  ;;  %v12338_v26 = vld [vmem:[#allocation8_spill] sm:$0xff] }
 0x3f9   :  { %v3711_v24 = vadd.f32 %v7332_v43, %v10484_v2  ;;  %v3705_v62 = vpop.f32.mrb[39].mxu1  ;;  %v12340_v43 = vld [vmem:[#allocation11_spill] sm:$0xff] }
 0x3fa   :  { %v3435_v23 = vadd.f32 %v3403_v3, %v3243_v41  ;;  %v3706_v20 = vadd.f32 %v10484_v2, %v3705_v62  ;;  %v12337_v41 = vld [vmem:[#allocation42_spill] sm:$0xff]  ;;  %v12339_v3 = vld [vmem:[#allocation7_spill] sm:$0xff]  ;;  %v12342_v62 = vld [vmem:[#allocation17_spill] sm:$0xff] }
 0x3fb   :  { %v3371_v8 = vpop.permute.xlu1 %3370  ;;  %v3841_v16 = vmax.f32 %v3711_v24, 0.0  ;;  %v12341_v24 = vld [vmem:[#allocation9_spill] sm:$0xff] }
 0x3fc   :  { %v3467_v44 = vadd.f32 %v3435_v23, %v12314_v58  ;;  %v3840_v13 = vmax.f32 %v3706_v20, 0.0  ;;  %v3404_v36 = vmul.f32 %v8000_v34, %v3371_v8  ;;  %v12344_v8 = vld [vmem:[#allocation23_spill] sm:$0xff]  ;;  %v10655_v58 = vld [vmem:[%s11970_s2] ss:$0 sm:$0xff] }
 0x3fe   :  { %v3500_v49 = vmul.f32 0.25, %v3467_v44  ;;  %v3436_v14 = vadd.f32 %v3404_v36, %v3244_v50  ;;  %7586 = vmatprep.mubr.msk.f32.mxu0 %vm234_vm0, %v3840_v13  ;;  %v12345_v44 = vld [vmem:[#allocation32_spill] sm:$0xff] }
 0x3ff   :  { %7587 = vmatmul.mubr.msk.f32.gmra.mrb[166].mxu0 %vm234_vm0, %v3841_v16  ;;  %v1306_v13 = vadd.f32 %v10655_v58, %v12345_v44  ;;  %v12346_v36 = vld [vmem:[#allocation20_spill] sm:$0xff] }
 0x400   :  { %v3468_v59 = vadd.f32 %v3436_v14, %v12315_v5  ;;  %7366 = vmatprep.mubr.msk.f32.mxu1 %vm234_vm0, %v3500_v49  ;;  %v12347_v49 = vld [vmem:[#allocation52_spill] sm:$0xff]  ;;  %v12348_v14 = vld [vmem:[#allocation26_spill] sm:$0xff] }
 0x401   :  { %v1311_v5 = vadd.f32 %v10655_v58, %v12348_v14  ;;  %v12366_v14 = vld [vmem:[#allocation57_spill] sm:$0xff] }
 0x402   :  { %v3501_v55 = vmul.f32 0.25, %v3468_v59  ;;  %v1816_v59 = vmax.f32 %v1306_v13, 0.0  ;;  %v12365_v13 = vld [vmem:[#allocation54_spill] sm:$0xff] }
 0x404   :  { %v7335_v39 = vpop.f32.mrb[40].mxu1  ;;  %7367 = vmatmul.mubr.msk.f32.gmra.mrb[62].mxu1 %vm234_vm0, %v3501_v55  ;;  %v12349_v55 = vld [vmem:[#allocation37_spill] sm:$0xff] }
 0x405   :  { %v3721_v42 = vadd.f32 %v7335_v39, %v10484_v2  ;;  %v3715_v30 = vpop.f32.mrb[41].mxu1  ;;  %7377 = vmatprep.mubr.msk.f32.mxu1 %vm234_vm0, %v12316_v10  ;;  %v1316_v39 = vadd.f32 %v10655_v58, %v12349_v55  ;;  %v12351_v10 = vld [vmem:[#allocation35_spill] sm:$0xff] }
 0x406   :  { %v3716_v54 = vadd.f32 %v10484_v2, %v3715_v30  ;;  %v1817_v30 = vmax.f32 %v1311_v5, 0.0  ;;  %v1396_v5 = vadd.f32 %v10655_v58, %v12366_v14 }
 0x407   :  { %v3843_v40 = vmax.f32 %v3721_v42, 0.0  ;;  %v12350_v42 = vld [vmem:[#allocation29_spill] sm:$0xff] }
 0x408   :  { %v3842_v9 = vmax.f32 %v3716_v54, 0.0  ;;  %7378 = vmatmul.mubr.msk.f32.vlgmr.msra.gmra.mrb[64].mxu1 %vm234_vm0, %v12317_v15  ;;  %v1321_v54 = vadd.f32 %v10655_v58, %v12351_v10  ;;  %v12352_v15 = vld [vmem:[#allocation41_spill] sm:$0xff] }
 0x409   :  { %7380 = vmatprep.mubr.msk.f32.mxu1 %vm234_vm0, %v12318_v47 }
 0x40a   :  { %7589 = vmatprep.mubr.msk.f32.mxu0 %vm234_vm0, %v3842_v9  ;;  %v1818_v9 = vmax.f32 %v1316_v39, 0.0 }
 0x40b   :  { %7590 = vmatmul.mubr.msk.f32.gmra.mrb[168].mxu0 %vm234_vm0, %v3843_v40  ;;  %v1326_v40 = vadd.f32 %v10655_v58, %v12352_v15 }
 0x40c   :  { %7381 = vmatmul.mubr.msk.f32.gmra.mrb[66].mxu1 %vm234_vm0, %v12319_v51 }
 0x40d   :  { %7383 = vmatprep.mubr.msk.f32.mxu1 %vm234_vm0, %v12320_v63 }
 0x410   :  { %7384 = vmatmul.mubr.msk.f32.gmra.mrb[68].mxu1 %vm234_vm0, %v12321_v46  ;;  %v1819_v46 = vmax.f32 %v1321_v54, 0.0  ;;  %v1834_v54 = vmax.f32 %v1396_v5, 0.0 }
 0x411   :  { %7386 = vmatprep.mubr.msk.f32.mxu1 %vm234_vm0, %v12322_v0  ;;  %v12353_v0 = vld [vmem:[#allocation39_spill] sm:$0xff] }
 0x414   :  { %7387 = vmatmul.mubr.msk.f32.gmra.mrb[70].mxu1 %vm234_vm0, %v12323_v60  ;;  %v1331_v60 = vadd.f32 %v10655_v58, %v12353_v0 }
 0x415   :  { %7389 = vmatprep.mubr.msk.f32.mxu1 %vm234_vm0, %v12324_v28 }
 0x418   :  { %7390 = vmatmul.mubr.msk.f32.gmra.mrb[72].mxu1 %vm234_vm0, %v12325_v18  ;;  %v1820_v18 = vmax.f32 %v1326_v40, 0.0 }
 0x419   :  { %7392 = vmatprep.mubr.msk.f32.mxu1 %vm234_vm0, %v12326_v27  ;;  %v12354_v27 = vld [vmem:[#allocation44_spill] sm:$0xff] }
 0x41a   :  { %v7338_v52 = vpop.f32.mrb[42].mxu1 }
 0x41b   :  { %v3731_v61 = vadd.f32 %v7338_v52, %v10484_v2  ;;  %v3725_v33 = vpop.f32.mrb[43].mxu1  ;;  %v1336_v52 = vadd.f32 %v10655_v58, %v12354_v27 }
 0x41c   :  { %v3726_v11 = vadd.f32 %v10484_v2, %v3725_v33  ;;  %7393 = vmatmul.mubr.msk.f32.gmra.mrb[74].mxu1 %vm234_vm0, %v12327_v56  ;;  %v12355_v56 = vld [vmem:[#allocation43_spill] sm:$0xff] }
 0x41d   :  { %7395 = vmatprep.mubr.msk.f32.mxu1 %vm234_vm0, %v12328_v35  ;;  %v3845_v53 = vmax.f32 %v3731_v61, 0.0  ;;  %v1341_v35 = vadd.f32 %v10655_v58, %v12355_v56 }
 0x41e   :  { %v3844_v31 = vmax.f32 %v3726_v11, 0.0  ;;  %v1821_v11 = vmax.f32 %v1331_v60, 0.0 }
 0x420   :  { %7396 = vmatmul.mubr.msk.f32.gmra.mrb[76].mxu1 %vm234_vm0, %v12329_v48  ;;  %7592 = vmatprep.mubr.msk.f32.mxu0 %vm234_vm0, %v3844_v31  ;;  %v1822_v31 = vmax.f32 %v1336_v52, 0.0  ;;  %v12372_v52 = vld [vmem:[#allocation63_spill] sm:$0xff] }
 0x421   :  { %7398 = vmatprep.mubr.msk.f32.mxu1 %vm234_vm0, %v12330_v4  ;;  %7593 = vmatmul.mubr.msk.f32.gmra.mrb[170].mxu0 %vm234_vm0, %v3845_v53  ;;  %v12356_v53 = vld [vmem:[#allocation46_spill] sm:$0xff]  ;;  %v1823_v4 = vmax.f32 %v1341_v35, 0.0 }
 0x422   :  { %v1346_v48 = vadd.f32 %v10655_v58, %v12356_v53 }
 0x424   :  { %7399 = vmatmul.mubr.msk.f32.gmra.mrb[78].mxu1 %vm234_vm0, %v12331_v37  ;;  %v12357_v37 = vld [vmem:[#allocation45_spill] sm:$0xff] }
 0x425   :  { %7401 = vmatprep.mubr.msk.f32.mxu1 %vm234_vm0, %v12332_v29  ;;  %v1351_v29 = vadd.f32 %v10655_v58, %v12357_v37  ;;  %v12375_v37 = vld [vmem:[#allocation64_spill] sm:$0xff] }
 0x426   :  { %v7341_v7 = vpop.f32.mrb[44].mxu1 }
 0x427   :  { %v3741_v32 = vadd.f32 %v7341_v7, %v10484_v2  ;;  %v3735_v21 = vpop.f32.mrb[45].mxu1  ;;  %v1824_v7 = vmax.f32 %v1346_v48, 0.0 }
 0x428   :  { %v3736_v1 = vadd.f32 %v10484_v2, %v3735_v21  ;;  %7402 = vmatmul.mubr.msk.f32.gmra.mrb[80].mxu1 %vm234_vm0, %v12333_v22  ;;  %v12359_v22 = vld [vmem:[#allocation47_spill] sm:$0xff] }
 0x429   :  { %7404 = vmatprep.mubr.msk.f32.mxu1 %vm234_vm0, %v12334_v38  ;;  %v3847_v6 = vmax.f32 %v3741_v32, 0.0  ;;  %v12358_v32 = vld [vmem:[#allocation48_spill] sm:$0xff]  ;;  %v1361_v38 = vadd.f32 %v10655_v58, %v12359_v22 }
 0x42a   :  { %v3846_v57 = vmax.f32 %v3736_v1, 0.0  ;;  %v1356_v21 = vadd.f32 %v10655_v58, %v12358_v32  ;;  %v1825_v1 = vmax.f32 %v1351_v29, 0.0  ;;  %v1441_v29 = vadd.f32 %v10655_v58, %v12375_v37 }
 0x42c   :  { %7405 = vmatmul.mubr.msk.f32.gmra.mrb[82].mxu1 %vm234_vm0, %v12335_v19  ;;  %7595 = vmatprep.mubr.msk.f32.mxu0 %vm234_vm0, %v3846_v57  ;;  %v1826_v57 = vmax.f32 %v1356_v21, 0.0 }
 0x42d   :  { %7407 = vmatprep.mubr.msk.f32.mxu1 %vm234_vm0, %v12336_v12  ;;  %7596 = vmatmul.mubr.msk.f32.gmra.mrb[172].mxu0 %vm234_vm0, %v3847_v6  ;;  %v12360_v6 = vld [vmem:[#allocation50_spill] sm:$0xff]  ;;  %v1827_v12 = vmax.f32 %v1361_v38, 0.0 }
 0x42e   :  { %v1366_v19 = vadd.f32 %v10655_v58, %v12360_v6  ;;  %v1843_v6 = vmax.f32 %v1441_v29, 0.0  ;;  %v12392_v29 = vld [vmem:[#allocation83_spill] sm:$0xff] }
 0x430   :  { %7408 = vmatmul.mubr.msk.f32.gmra.mrb[84].mxu1 %vm234_vm0, %v12337_v41  ;;  %v12361_v41 = vld [vmem:[#allocation49_spill] sm:$0xff] }
 0x431   :  { %7410 = vmatprep.mubr.msk.f32.mxu1 %vm234_vm0, %v12338_v26  ;;  %v1371_v26 = vadd.f32 %v10655_v58, %v12361_v41 }
 0x434   :  { %7411 = vmatmul.mubr.msk.f32.gmra.mrb[86].mxu1 %vm234_vm0, %v12339_v3  ;;  %v1828_v3 = vmax.f32 %v1366_v19, 0.0  ;;  %v12377_v19 = vld [vmem:[#allocation66_spill] sm:$0xff] }
 0x435   :  { %7413 = vmatprep.mubr.msk.f32.mxu1 %vm234_vm0, %v12340_v43  ;;  %v12362_v43 = vld [vmem:[#allocation53_spill] sm:$0xff] }
 0x438   :  { %7414 = vmatmul.mubr.msk.f32.gmra.mrb[88].mxu1 %vm234_vm0, %v12341_v24  ;;  %v1376_v24 = vadd.f32 %v10655_v58, %v12362_v43 }
 0x439   :  { %7416 = vmatprep.mubr.msk.f32.mxu1 %vm234_vm0, %v12342_v62  ;;  %v1829_v62 = vmax.f32 %v1371_v26, 0.0 }
 0x43c   :  { %v7344_v25 = vpop.f32.mrb[46].mxu1  ;;  %7417 = vmatmul.mubr.msk.f32.gmra.mrb[90].mxu1 %vm234_vm0, %v12343_v45 }
 0x43d   :  { %v3751_v23 = vadd.f32 %v7344_v25, %v10484_v2  ;;  %v3745_v20 = vpop.f32.mrb[47].mxu1  ;;  %7419 = vmatprep.mubr.msk.f32.mxu1 %vm234_vm0, %v12344_v8  ;;  %v12363_v25 = vld [vmem:[#allocation51_spill] sm:$0xff] }
 0x43e   :  { %v3746_v50 = vadd.f32 %v10484_v2, %v3745_v20  ;;  %v1381_v45 = vadd.f32 %v10655_v58, %v12363_v25  ;;  %v12364_v20 = vld [vmem:[#allocation55_spill] sm:$0xff] }
 0x43f   :  { %v3849_v16 = vmax.f32 %v3751_v23, 0.0  ;;  %v1830_v23 = vmax.f32 %v1376_v24, 0.0  ;;  %v1386_v8 = vadd.f32 %v10655_v58, %v12364_v20 }
 0x440   :  { %v3848_v34 = vmax.f32 %v3746_v50, 0.0  ;;  %7420 = vmatmul.mubr.msk.f32.gmra.mrb[92].mxu1 %vm234_vm0, %v12346_v36  ;;  %v1831_v44 = vmax.f32 %v1381_v45, 0.0 }
 0x441   :  { %7422 = vmatprep.mubr.msk.f32.mxu1 %vm234_vm0, %v12347_v49  ;;  %v1832_v49 = vmax.f32 %v1386_v8, 0.0 }
 0x442   :  { %7598 = vmatprep.mubr.msk.f32.mxu0 %vm234_vm0, %v3848_v34  ;;  %v1391_v34 = vadd.f32 %v10655_v58, %v12365_v13 }
 0x443   :  { %7599 = vmatmul.mubr.msk.f32.gmra.mrb[174].mxu0 %vm234_vm0, %v3849_v16 }
 0x444   :  { %7423 = vmatmul.mubr.msk.f32.gmra.mrb[94].mxu1 %vm234_vm0, %v12350_v42  ;;  %v1833_v39 = vmax.f32 %v1391_v34, 0.0  ;;  %v12367_v42 = vld [vmem:[#allocation56_spill] sm:$0xff]  ;;  %v12382_v34 = vld [vmem:[#allocation73_spill] sm:$0xff] }
 0x445   :  { %7425 = vmatprep.mubr.msk.f32.mxu1 %vm234_vm0, %v1816_v59 }
 0x448   :  { %v7347_v47 = vpop.f32.mrb[48].mxu1  ;;  %7426 = vmatmul.mubr.msk.f32.gmra.mrb[96].mxu1 %vm234_vm0, %v1817_v30  ;;  %v1401_v30 = vadd.f32 %v10655_v58, %v12367_v42 }
 0x449   :  { %v3761_v51 = vadd.f32 %v7347_v47, %v10484_v2  ;;  %v3755_v63 = vpop.f32.mrb[49].mxu1  ;;  %7428 = vmatprep.mubr.msk.f32.mxu1 %vm234_vm0, %v1818_v9  ;;  %v12368_v9 = vld [vmem:[#allocation59_spill] sm:$0xff]  ;;  %v12369_v47 = vld [vmem:[#allocation58_spill] sm:$0xff] }
 0x44a   :  { %v3756_v28 = vadd.f32 %v10484_v2, %v3755_v63  ;;  %v1406_v15 = vadd.f32 %v10655_v58, %v12368_v9  ;;  %v1835_v40 = vmax.f32 %v1401_v30, 0.0  ;;  %v12385_v30 = vld [vmem:[#allocation74_spill] sm:$0xff] }
 0x44b   :  { %v3851_v33 = vmax.f32 %v3761_v51, 0.0  ;;  %v1411_v51 = vadd.f32 %v10655_v58, %v12369_v47 }
 0x44c   :  { %v3850_v61 = vmax.f32 %v3756_v28, 0.0  ;;  %7429 = vmatmul.mubr.msk.f32.gmra.mrb[98].mxu1 %vm234_vm0, %v1819_v46  ;;  %v1836_v63 = vmax.f32 %v1406_v15, 0.0  ;;  %v12370_v46 = vld [vmem:[#allocation61_spill] sm:$0xff]  ;;  %v12371_v28 = vld [vmem:[#allocation60_spill] sm:$0xff] }
 0x44d   :  { %7431 = vmatprep.mubr.msk.f32.mxu1 %vm234_vm0, %v1820_v18  ;;  %v1416_v0 = vadd.f32 %v10655_v58, %v12370_v46  ;;  %v1837_v60 = vmax.f32 %v1411_v51, 0.0  ;;  %v1421_v18 = vadd.f32 %v10655_v58, %v12371_v28 }
 0x44e   :  { %7601 = vmatprep.mubr.msk.f32.mxu0 %vm234_vm0, %v3850_v61  ;;  %v1426_v61 = vadd.f32 %v10655_v58, %v12372_v52 }
 0x44f   :  { %7602 = vmatmul.mubr.msk.f32.gmra.mrb[176].mxu0 %vm234_vm0, %v3851_v33  ;;  %v1838_v27 = vmax.f32 %v1416_v0, 0.0  ;;  %v1839_v33 = vmax.f32 %v1421_v18, 0.0  ;;  %v12387_v0 = vld [vmem:[#allocation76_spill] sm:$0xff] }
 0x450   :  { %7432 = vmatmul.mubr.msk.f32.gmra.mrb[100].mxu1 %vm234_vm0, %v1821_v11  ;;  %v12373_v11 = vld [vmem:[#allocation62_spill] sm:$0xff]  ;;  %v1840_v35 = vmax.f32 %v1426_v61, 0.0 }
 0x451   :  { %7434 = vmatprep.mubr.msk.f32.mxu1 %vm234_vm0, %v1822_v31  ;;  %v1431_v56 = vadd.f32 %v10655_v58, %v12373_v11  ;;  %v12374_v31 = vld [vmem:[#allocation65_spill] sm:$0xff] }
 0x452   :  { %v1436_v53 = vadd.f32 %v10655_v58, %v12374_v31 }
 0x454   :  { %7435 = vmatmul.mubr.msk.f32.gmra.mrb[102].mxu1 %vm234_vm0, %v1823_v4  ;;  %v1841_v4 = vmax.f32 %v1431_v56, 0.0  ;;  %v1842_v21 = vmax.f32 %v1436_v53, 0.0 }
 0x455   :  { %7437 = vmatprep.mubr.msk.f32.mxu1 %vm234_vm0, %v1824_v7 }
 0x458   :  { %7438 = vmatmul.mubr.msk.f32.gmra.mrb[104].mxu1 %vm234_vm0, %v1825_v1  ;;  %v12376_v1 = vld [vmem:[#allocation67_spill] sm:$0xff] }
 0x459   :  { %7440 = vmatprep.mubr.msk.f32.mxu1 %vm234_vm0, %v1826_v57  ;;  %v1446_v22 = vadd.f32 %v10655_v58, %v12376_v1 }
 0x45b   :  { %v1844_v26 = vmax.f32 %v1446_v22, 0.0 }
 0x45c   :  { %7441 = vmatmul.mubr.msk.f32.gmra.mrb[106].mxu1 %vm234_vm0, %v1827_v12  ;;  %v1451_v12 = vadd.f32 %v10655_v58, %v12377_v19 }
 0x45d   :  { %7443 = vmatprep.mubr.msk.f32.mxu1 %vm234_vm0, %v1828_v3  ;;  %v12378_v3 = vld [vmem:[#allocation69_spill] sm:$0xff] }
 0x45e   :  { %v1456_v43 = vadd.f32 %v10655_v58, %v12378_v3  ;;  %v1845_v24 = vmax.f32 %v1451_v12, 0.0 }
 0x460   :  { %7444 = vmatmul.mubr.msk.f32.gmra.mrb[108].mxu1 %vm234_vm0, %v1829_v62  ;;  %v12379_v62 = vld [vmem:[#allocation68_spill] sm:$0xff]  ;;  %v1846_v45 = vmax.f32 %v1456_v43, 0.0 }
 0x461   :  { %v7350_v50 = vpop.f32.mrb[50].mxu1  ;;  %7446 = vmatprep.mubr.msk.f32.mxu1 %vm234_vm0, %v1830_v23  ;;  %v1461_v25 = vadd.f32 %v10655_v58, %v12379_v62  ;;  %v12380_v23 = vld [vmem:[#allocation71_spill] sm:$0xff] }
 0x462   :  { %v3771_v36 = vadd.f32 %v7350_v50, %v10484_v2  ;;  %v3765_v16 = vpop.f32.mrb[51].mxu1  ;;  %v1466_v20 = vadd.f32 %v10655_v58, %v12380_v23  ;;  %v12381_v50 = vld [vmem:[#allocation70_spill] sm:$0xff] }
 0x463   :  { %v3766_v59 = vadd.f32 %v10484_v2, %v3765_v16  ;;  %v1847_v8 = vmax.f32 %v1461_v25, 0.0  ;;  %v12396_v25 = vld [vmem:[#allocation87_spill] sm:$0xff] }
 0x464   :  { %7447 = vmatmul.mubr.msk.f32.gmra.mrb[110].mxu1 %vm234_vm0, %v1831_v44  ;;  %v3853_v10 = vmax.f32 %v3771_v36, 0.0  ;;  %v1471_v44 = vadd.f32 %v10655_v58, %v12381_v50  ;;  %v1848_v13 = vmax.f32 %v1466_v20, 0.0  ;;  %v1476_v36 = vadd.f32 %v10655_v58, %v12382_v34  ;;  %v12397_v50 = vld [vmem:[#allocation86_spill] sm:$0xff] }
 0x465   :  { %v3852_v55 = vmax.f32 %v3766_v59, 0.0  ;;  %7449 = vmatprep.mubr.msk.f32.mxu1 %vm234_vm0, %v1832_v49  ;;  %v12383_v49 = vld [vmem:[#allocation72_spill] sm:$0xff]  ;;  %v12384_v59 = vld [vmem:[#allocation75_spill] sm:$0xff] }
 0x466   :  { %v1849_v16 = vmax.f32 %v1471_v44, 0.0  ;;  %v1481_v14 = vadd.f32 %v10655_v58, %v12383_v49  ;;  %v1850_v5 = vmax.f32 %v1476_v36, 0.0  ;;  %v1551_v44 = vadd.f32 %v10655_v58, %v12397_v50  ;;  %v12398_v36 = vld [vmem:[#allocation89_spill] sm:$0xff]  ;;  %v12413_v50 = vld [vmem:[#allocation102_spill] sm:$0xff] }
 0x467   :  { %7604 = vmatprep.mubr.msk.f32.mxu0 %vm234_vm0, %v3852_v55  ;;  %v1486_v55 = vadd.f32 %v10655_v58, %v12384_v59 }
 0x468   :  { %7450 = vmatmul.mubr.msk.f32.gmra.mrb[112].mxu1 %vm234_vm0, %v1833_v39  ;;  %7605 = vmatmul.mubr.msk.f32.gmra.mrb[178].mxu0 %vm234_vm0, %v3853_v10  ;;  %v1851_v42 = vmax.f32 %v1481_v14, 0.0  ;;  %v1491_v10 = vadd.f32 %v10655_v58, %v12385_v30  ;;  %v1865_v49 = vmax.f32 %v1551_v44, 0.0  ;;  %v12399_v14 = vld [vmem:[#allocation88_spill] sm:$0xff]  ;;  %v12401_v30 = vld [vmem:[#allocation90_spill] sm:$0xff]  ;;  %v1631_v44 = vadd.f32 %v10655_v58, %v12413_v50 }
 0x469   :  { %7452 = vmatprep.mubr.msk.f32.mxu1 %vm234_vm0, %v1834_v54  ;;  %v1852_v15 = vmax.f32 %v1486_v55, 0.0  ;;  %v12400_v55 = vld [vmem:[#allocation91_spill] sm:$0xff] }
 0x46a   :  { %v1853_v46 = vmax.f32 %v1491_v10, 0.0  ;;  %v1571_v10 = vadd.f32 %v10655_v58, %v12401_v30 }
 0x46c   :  { %7453 = vmatmul.mubr.msk.f32.gmra.mrb[114].mxu1 %vm234_vm0, %v1835_v40  ;;  %v12386_v40 = vld [vmem:[#allocation77_spill] sm:$0xff] }
 0x46d   :  { %7455 = vmatprep.mubr.msk.f32.mxu1 %vm234_vm0, %v1836_v63  ;;  %v1496_v47 = vadd.f32 %v10655_v58, %v12386_v40  ;;  %v1869_v40 = vmax.f32 %v1571_v10, 0.0 }
 0x46f   :  { %v1854_v18 = vmax.f32 %v1496_v47, 0.0  ;;  %v12403_v47 = vld [vmem:[#allocation92_spill] sm:$0xff] }
 0x470   :  { %7456 = vmatmul.mubr.msk.f32.gmra.mrb[116].mxu1 %vm234_vm0, %v1837_v60  ;;  %v1501_v60 = vadd.f32 %v10655_v58, %v12387_v0 }
 0x471   :  { %7458 = vmatprep.mubr.msk.f32.mxu1 %vm234_vm0, %v1838_v27  ;;  %v12388_v27 = vld [vmem:[#allocation79_spill] sm:$0xff] }
 0x472   :  { %v1506_v52 = vadd.f32 %v10655_v58, %v12388_v27  ;;  %v1855_v61 = vmax.f32 %v1501_v60, 0.0  ;;  %v12405_v27 = vld [vmem:[#allocation94_spill] sm:$0xff] }
 0x474   :  { %7459 = vmatmul.mubr.msk.f32.gmra.mrb[118].mxu1 %vm234_vm0, %v1839_v33  ;;  %v12389_v33 = vld [vmem:[#allocation78_spill] sm:$0xff]  ;;  %v1856_v56 = vmax.f32 %v1506_v52, 0.0  ;;  %v1591_v52 = vadd.f32 %v10655_v58, %v12405_v27 }
 0x475   :  { %v7353_v48 = vpop.f32.mrb[52].mxu1  ;;  %7461 = vmatprep.mubr.msk.f32.mxu1 %vm234_vm0, %v1840_v35  ;;  %v1511_v11 = vadd.f32 %v10655_v58, %v12389_v33  ;;  %v12390_v35 = vld [vmem:[#allocation81_spill] sm:$0xff] }
 0x476   :  { %v3781_v7 = vadd.f32 %v7353_v48, %v10484_v2  ;;  %v3775_v32 = vpop.f32.mrb[53].mxu1  ;;  %v1516_v31 = vadd.f32 %v10655_v58, %v12390_v35  ;;  %v12391_v48 = vld [vmem:[#allocation80_spill] sm:$0xff]  ;;  %v12406_v35 = vld [vmem:[#allocation97_spill] sm:$0xff] }
 0x477   :  { %v3776_v38 = vadd.f32 %v10484_v2, %v3775_v32  ;;  %v1857_v53 = vmax.f32 %v1511_v11, 0.0 }
 0x478   :  { %7462 = vmatmul.mubr.msk.f32.gmra.mrb[120].mxu1 %vm234_vm0, %v1841_v4  ;;  %v3855_v41 = vmax.f32 %v3781_v7, 0.0  ;;  %v1521_v4 = vadd.f32 %v10655_v58, %v12391_v48  ;;  %v1858_v37 = vmax.f32 %v1516_v31, 0.0  ;;  %v1526_v7 = vadd.f32 %v10655_v58, %v12392_v29 }
 0x479   :  { %v3854_v57 = vmax.f32 %v3776_v38, 0.0  ;;  %7464 = vmatprep.mubr.msk.f32.mxu1 %vm234_vm0, %v1842_v21  ;;  %v12393_v21 = vld [vmem:[#allocation82_spill] sm:$0xff]  ;;  %v12394_v38 = vld [vmem:[#allocation85_spill] sm:$0xff]  ;;  %v1596_v31 = vadd.f32 %v10655_v58, %v12406_v35 }
 0x47a   :  { %v1859_v32 = vmax.f32 %v1521_v4, 0.0  ;;  %v1531_v1 = vadd.f32 %v10655_v58, %v12393_v21  ;;  %v1860_v22 = vmax.f32 %v1526_v7, 0.0  ;;  %v1873_v4 = vmax.f32 %v1591_v52, 0.0  ;;  %v12408_v21 = vld [vmem:[#allocation99_spill] sm:$0xff] }
 0x47b   :  { %7607 = vmatprep.mubr.msk.f32.mxu0 %vm234_vm0, %v3854_v57  ;;  %v1536_v57 = vadd.f32 %v10655_v58, %v12394_v38  ;;  %v12409_v38 = vld [vmem:[#allocation98_spill] sm:$0xff]  ;;  %v12420_v52 = vld [vmem:[#allocation111_spill] sm:$0xff] }
 0x47c   :  { %7465 = vmatmul.mubr.msk.f32.gmra.mrb[122].mxu1 %vm234_vm0, %v1843_v6  ;;  %7608 = vmatmul.mubr.msk.f32.gmra.mrb[180].mxu0 %vm234_vm0, %v3855_v41  ;;  %v1861_v12 = vmax.f32 %v1531_v1, 0.0  ;;  %v12395_v41 = vld [vmem:[#allocation84_spill] sm:$0xff]  ;;  %v1606_v1 = vadd.f32 %v10655_v58, %v12408_v21 }
 0x47d   :  { %7467 = vmatprep.mubr.msk.f32.mxu1 %vm234_vm0, %v1844_v26  ;;  %v1541_v26 = vadd.f32 %v10655_v58, %v12395_v41  ;;  %v1862_v62 = vmax.f32 %v1536_v57, 0.0  ;;  %v1611_v57 = vadd.f32 %v10655_v58, %v12409_v38 }
 0x480   :  { %7468 = vmatmul.mubr.msk.f32.gmra.mrb[124].mxu1 %vm234_vm0, %v1845_v24 }
 0x481   :  { %7470 = vmatprep.mubr.msk.f32.mxu1 %vm234_vm0, %v1846_v45  ;;  %v1546_v45 = vadd.f32 %v10655_v58, %v12396_v25 }
 0x483   :  { %v1864_v34 = vmax.f32 %v1546_v45, 0.0 }
 0x484   :  { %7471 = vmatmul.mubr.msk.f32.gmra.mrb[126].mxu1 %vm234_vm0, %v1847_v8  ;;  %v1863_v8 = vmax.f32 %v1541_v26, 0.0 }
 0x485   :  { %7473 = vmatprep.mubr.msk.f32.mxu1 %vm234_vm0, %v1848_v13 }
 0x488   :  { %7474 = vmatmul.mubr.msk.f32.gmra.mrb[128].mxu1 %vm234_vm0, %v1849_v16  ;;  %v1556_v16 = vadd.f32 %v10655_v58, %v12398_v36 }
 0x489   :  { %v7356_v39 = vpop.f32.mrb[54].mxu1  ;;  %7476 = vmatprep.mubr.msk.f32.mxu1 %vm234_vm0, %v1850_v5  ;;  %v1561_v5 = vadd.f32 %v10655_v58, %v12399_v14  ;;  %v12415_v14 = vld [vmem:[#allocation104_spill] sm:$0xff] }
 0x48a   :  { %v3791_v54 = vadd.f32 %v7356_v39, %v10484_v2  ;;  %v3785_v9 = vpop.f32.mrb[55].mxu1  ;;  %v1866_v59 = vmax.f32 %v1556_v16, 0.0  ;;  %v1566_v39 = vadd.f32 %v10655_v58, %v12400_v55 }
 0x48b   :  { %v3786_v51 = vadd.f32 %v10484_v2, %v3785_v9  ;;  %v12402_v9 = vld [vmem:[#allocation93_spill] sm:$0xff] }
 0x48c   :  { %7477 = vmatmul.mubr.msk.f32.gmra.mrb[130].mxu1 %vm234_vm0, %v1851_v42  ;;  %v3857_v28 = vmax.f32 %v3791_v54, 0.0  ;;  %v1867_v42 = vmax.f32 %v1561_v5, 0.0  ;;  %v1868_v54 = vmax.f32 %v1566_v39, 0.0  ;;  %v1641_v5 = vadd.f32 %v10655_v58, %v12415_v14 }
 0x48d   :  { %v3856_v63 = vmax.f32 %v3786_v51, 0.0  ;;  %7479 = vmatprep.mubr.msk.f32.mxu1 %vm234_vm0, %v1852_v15  ;;  %v1576_v15 = vadd.f32 %v10655_v58, %v12402_v9  ;;  %v1581_v51 = vadd.f32 %v10655_v58, %v12403_v47 }
 0x48e   :  { %v1883_v9 = vmax.f32 %v1641_v5, 0.0 }
 0x48f   :  { %7610 = vmatprep.mubr.msk.f32.mxu0 %vm234_vm0, %v3856_v63  ;;  %v1870_v63 = vmax.f32 %v1576_v15, 0.0  ;;  %v12417_v15 = vld [vmem:[#allocation106_spill] sm:$0xff] }
 0x490   :  { %7480 = vmatmul.mubr.msk.f32.gmra.mrb[132].mxu1 %vm234_vm0, %v1853_v46  ;;  %7611 = vmatmul.mubr.msk.f32.gmra.mrb[182].mxu0 %vm234_vm0, %v3857_v28  ;;  %v12404_v46 = vld [vmem:[#allocation95_spill] sm:$0xff] }
 0x491   :  { %7482 = vmatprep.mubr.msk.f32.mxu1 %vm234_vm0, %v1854_v18  ;;  %v1586_v0 = vadd.f32 %v10655_v58, %v12404_v46  ;;  %v1871_v18 = vmax.f32 %v1581_v51, 0.0 }
 0x494   :  { %7483 = vmatmul.mubr.msk.f32.gmra.mrb[134].mxu1 %vm234_vm0, %v1855_v61 }
 0x495   :  { %7485 = vmatprep.mubr.msk.f32.mxu1 %vm234_vm0, %v1856_v56  ;;  %v1872_v56 = vmax.f32 %v1586_v0, 0.0 }
 0x498   :  { %7486 = vmatmul.mubr.msk.f32.gmra.mrb[136].mxu1 %vm234_vm0, %v1857_v53 }
 0x499   :  { %7488 = vmatprep.mubr.msk.f32.mxu1 %vm234_vm0, %v1858_v37  ;;  %v12407_v37 = vld [vmem:[#allocation96_spill] sm:$0xff] }
 0x49a   :  { %v1601_v29 = vadd.f32 %v10655_v58, %v12407_v37 }
 0x49c   :  { %7489 = vmatmul.mubr.msk.f32.gmra.mrb[138].mxu1 %vm234_vm0, %v1859_v32  ;;  %v1874_v32 = vmax.f32 %v1596_v31, 0.0 }
 0x49d   :  { %v10819_v6 = vpop.f32.mrb[160].mxu0  ;;  %v7359_v19 = vpop.f32.mrb[56].mxu1  ;;  %7491 = vmatprep.mubr.msk.f32.mxu1 %vm234_vm0, %v1860_v22  ;;  %v1875_v22 = vmax.f32 %v1601_v29, 0.0 }
 0x49e   :  { %v3801_v3 = vadd.f32 %v7359_v19, %v10484_v2  ;;  %v10825_v43 = vpop.f32.mrb[161].mxu0  ;;  %v3795_v24 = vpop.f32.mrb[57].mxu1  ;;  %v1876_v19 = vmax.f32 %v1606_v1, 0.0  ;;  %v12424_v1 = vld [vmem:[#allocation115_spill] sm:$0xff] }
 0x49f   :  { %v3796_v23 = vadd.f32 %v10484_v2, %v3795_v24  ;;  %v1877_v24 = vmax.f32 %v1611_v57, 0.0 }
 0x4a0   :  { %7492 = vmatmul.mubr.msk.f32.gmra.mrb[140].mxu1 %vm234_vm0, %v1861_v12  ;;  %v3859_v13 = vmax.f32 %v3801_v3, 0.0  ;;  %v12410_v12 = vld [vmem:[#allocation101_spill] sm:$0xff] }
 0x4a1   :  { %v3858_v20 = vmax.f32 %v3796_v23, 0.0  ;;  %7494 = vmatprep.mubr.msk.f32.mxu1 %vm234_vm0, %v1862_v62  ;;  %v1616_v41 = vadd.f32 %v10655_v58, %v12410_v12  ;;  %v12411_v62 = vld [vmem:[#allocation100_spill] sm:$0xff]  ;;  %v12412_v23 = vld [vmem:[#allocation103_spill] sm:$0xff] }
 0x4a2   :  { %v1621_v25 = vadd.f32 %v10655_v58, %v12411_v62 }
 0x4a3   :  { %7613 = vmatprep.mubr.msk.f32.mxu0 %vm234_vm0, %v3858_v20  ;;  %v1878_v45 = vmax.f32 %v1616_v41, 0.0  ;;  %v1626_v20 = vadd.f32 %v10655_v58, %v12412_v23 }
 0x4a4   :  { %7495 = vmatmul.mubr.msk.f32.gmra.mrb[142].mxu1 %vm234_vm0, %v1863_v8  ;;  %7614 = vmatmul.mubr.msk.f32.gmra.mrb[184].mxu0 %vm234_vm0, %v3859_v13  ;;  %v1879_v8 = vmax.f32 %v1621_v25, 0.0 }
 0x4a5   :  { %7497 = vmatprep.mubr.msk.f32.mxu1 %vm234_vm0, %v1864_v34  ;;  %v1880_v13 = vmax.f32 %v1626_v20, 0.0  ;;  %v12414_v34 = vld [vmem:[#allocation105_spill] sm:$0xff] }
 0x4a6   :  { %v1636_v36 = vadd.f32 %v10655_v58, %v12414_v34 }
 0x4a8   :  { %7498 = vmatmul.mubr.msk.f32.gmra.mrb[144].mxu1 %vm234_vm0, %v1865_v49  ;;  %v1881_v49 = vmax.f32 %v1631_v44, 0.0  ;;  %v1882_v39 = vmax.f32 %v1636_v36, 0.0 }
 0x4a9   :  { %7500 = vmatprep.mubr.msk.f32.mxu1 %vm234_vm0, %v1866_v59 }
 0x4ac   :  { %7501 = vmatmul.mubr.msk.f32.gmra.mrb[146].mxu1 %vm234_vm0, %v1867_v42  ;;  %v12416_v42 = vld [vmem:[#allocation107_spill] sm:$0xff] }
 0x4ad   :  { %7503 = vmatprep.mubr.msk.f32.mxu1 %vm234_vm0, %v1868_v54  ;;  %v1646_v30 = vadd.f32 %v10655_v58, %v12416_v42  ;;  %v12429_v42 = vld [vmem:[#allocation118_spill] sm:$0xff] }
 0x4af   :  { %v1884_v51 = vmax.f32 %v1646_v30, 0.0  ;;  %v1711_v30 = vadd.f32 %v10655_v58, %v12429_v42 }
 0x4b0   :  { %7504 = vmatmul.mubr.msk.f32.gmra.mrb[148].mxu1 %vm234_vm0, %v1869_v40  ;;  %v1651_v40 = vadd.f32 %v10655_v58, %v12417_v15 }
 0x4b1   :  { %v10857_v60 = vpop.f32.mrb[162].mxu0  ;;  %v7362_v28 = vpop.f32.mrb[58].mxu1  ;;  %7506 = vmatprep.mubr.msk.f32.mxu1 %vm234_vm0, %v1870_v63  ;;  %v12418_v63 = vld [vmem:[#allocation109_spill] sm:$0xff] }
 0x4b2   :  { %v3811_v61 = vadd.f32 %v7362_v28, %v10484_v2  ;;  %v10863_v33 = vpop.f32.mrb[163].mxu0  ;;  %v3805_v11 = vpop.f32.mrb[59].mxu1  ;;  %v1656_v46 = vadd.f32 %v10655_v58, %v12418_v63  ;;  %v1885_v0 = vmax.f32 %v1651_v40, 0.0  ;;  %v12419_v28 = vld [vmem:[#allocation108_spill] sm:$0xff] }
 0x4b3   :  { %v3806_v53 = vadd.f32 %v10484_v2, %v3805_v11 }
 0x4b4   :  { %7507 = vmatmul.mubr.msk.f32.gmra.mrb[150].mxu1 %vm234_vm0, %v1871_v18  ;;  %v3861_v7 = vmax.f32 %v3811_v61, 0.0  ;;  %v1661_v18 = vadd.f32 %v10655_v58, %v12419_v28  ;;  %v1886_v27 = vmax.f32 %v1656_v46, 0.0  ;;  %v1666_v61 = vadd.f32 %v10655_v58, %v12420_v52 }
 0x4b5   :  { %v3860_v48 = vmax.f32 %v3806_v53, 0.0  ;;  %7509 = vmatprep.mubr.msk.f32.mxu1 %vm234_vm0, %v1872_v56  ;;  %v12421_v56 = vld [vmem:[#allocation110_spill] sm:$0xff] }
 0x4b6   :  { %v1887_v11 = vmax.f32 %v1661_v18, 0.0  ;;  %v1671_v35 = vadd.f32 %v10655_v58, %v12421_v56  ;;  %v1888_v53 = vmax.f32 %v1666_v61, 0.0  ;;  %v12433_v61 = vld [vmem:[#allocation122_spill] sm:$0xff] }
 0x4b7   :  { %7616 = vmatprep.mubr.msk.f32.mxu0 %vm234_vm0, %v3860_v48  ;;  %v12422_v48 = vld [vmem:[#allocation113_spill] sm:$0xff] }
 0x4b8   :  { %7510 = vmatmul.mubr.msk.f32.gmra.mrb[152].mxu1 %vm234_vm0, %v1873_v4  ;;  %7617 = vmatmul.mubr.msk.f32.gmra.mrb[186].mxu0 %vm234_vm0, %v3861_v7  ;;  %v1676_v4 = vadd.f32 %v10655_v58, %v12422_v48  ;;  %v1889_v29 = vmax.f32 %v1671_v35, 0.0  ;;  %v12423_v7 = vld [vmem:[#allocation112_spill] sm:$0xff]  ;;  %v12434_v35 = vld [vmem:[#allocation125_spill] sm:$0xff] }
 0x4b9   :  { %7512 = vmatprep.mubr.msk.f32.mxu1 %vm234_vm0, %v1874_v32  ;;  %v1681_v32 = vadd.f32 %v10655_v58, %v12423_v7  ;;  %v12435_v7 = vld [vmem:[#allocation124_spill] sm:$0xff] }
 0x4ba   :  { %v1890_v21 = vmax.f32 %v1676_v4, 0.0 }
 0x4bb   :  { %v1891_v41 = vmax.f32 %v1681_v32, 0.0  ;;  %v1741_v32 = vadd.f32 %v10655_v58, %v12435_v7 }
 0x4bc   :  { %7513 = vmatmul.mubr.msk.f32.gmra.mrb[154].mxu1 %vm234_vm0, %v1875_v22  ;;  %v10883_v26 = vpop.f32.mrb[164].mxu0  ;;  %v1686_v22 = vadd.f32 %v10655_v58, %v12424_v1  ;;  %v12436_v1 = vld [vmem:[#allocation127_spill] sm:$0xff] }
 0x4bd   :  { %7515 = vmatprep.mubr.msk.f32.mxu1 %vm234_vm0, %v1876_v19  ;;  %v10886_v3 = vpop.f32.mrb[165].mxu0 }
 0x4be   :  { %v1892_v25 = vmax.f32 %v1686_v22, 0.0  ;;  %v1746_v22 = vadd.f32 %v10655_v58, %v12436_v1 }
 0x4c0   :  { %7516 = vmatmul.mubr.msk.f32.gmra.mrb[156].mxu1 %vm234_vm0, %v1877_v24  ;;  %v12425_v24 = vld [vmem:[#allocation114_spill] sm:$0xff] }
 0x4c1   :  { %7518 = vmatprep.mubr.msk.f32.mxu1 %vm234_vm0, %v1878_v45  ;;  %v1691_v62 = vadd.f32 %v10655_v58, %v12425_v24  ;;  %v12426_v45 = vld [vmem:[#allocation117_spill] sm:$0xff]  ;;  %v1904_v24 = vmax.f32 %v1746_v22, 0.0 }
 0x4c2   :  { %v1696_v23 = vadd.f32 %v10655_v58, %v12426_v45 }
 0x4c4   :  { %7519 = vmatmul.mubr.msk.f32.gmra.mrb[158].mxu1 %vm234_vm0, %v1879_v8 }
 0x4c5   :  { %v7365_v16 = vpop.f32.mrb[60].mxu1  ;;  %7521 = vmatprep.mubr.msk.f32.mxu1 %vm234_vm0, %v1880_v13  ;;  %v12427_v13 = vld [vmem:[#allocation116_spill] sm:$0xff] }
 0x4c6   :  { %v3821_v59 = vadd.f32 %v7365_v16, %v10484_v2  ;;  %v3815_v55 = vpop.f32.mrb[61].mxu1  ;;  %v1701_v34 = vadd.f32 %v10655_v58, %v12427_v13  ;;  %v1894_v16 = vmax.f32 %v1696_v23, 0.0  ;;  %v12441_v13 = vld [vmem:[#allocation128_spill] sm:$0xff] }
 0x4c7   :  { %v3816_v10 = vadd.f32 %v10484_v2, %v3815_v55 }
 0x4c8   :  { %7522 = vmatmul.mubr.msk.f32.gmra.mrb[160].mxu1 %vm234_vm0, %v1881_v49  ;;  %v3863_v47 = vmax.f32 %v3821_v59, 0.0  ;;  %v12428_v49 = vld [vmem:[#allocation119_spill] sm:$0xff] }
 0x4c9   :  { %v3862_v54 = vmax.f32 %v3816_v10, 0.0  ;;  %7524 = vmatprep.mubr.msk.f32.mxu1 %vm234_vm0, %v1882_v39  ;;  %v1706_v14 = vadd.f32 %v10655_v58, %v12428_v49  ;;  %v1895_v39 = vmax.f32 %v1701_v34, 0.0  ;;  %v1761_v34 = vadd.f32 %v10655_v58, %v12441_v13  ;;  %v12442_v49 = vld [vmem:[#allocation131_spill] sm:$0xff] }
 0x4cb   :  { %7619 = vmatprep.mubr.msk.f32.mxu0 %vm234_vm0, %v3862_v54  ;;  %v1896_v10 = vmax.f32 %v1706_v14, 0.0  ;;  %v12430_v54 = vld [vmem:[#allocation121_spill] sm:$0xff]  ;;  %v1766_v14 = vadd.f32 %v10655_v58, %v12442_v49 }
 0x4cc   :  { %7525 = vmatmul.mubr.msk.f32.gmra.mrb[162].mxu1 %vm234_vm0, %v1883_v9  ;;  %7620 = vmatmul.mubr.msk.f32.gmra.mrb[188].mxu0 %vm234_vm0, %v3863_v47  ;;  %v1716_v9 = vadd.f32 %v10655_v58, %v12430_v54  ;;  %v1897_v47 = vmax.f32 %v1711_v30, 0.0  ;;  %v1907_v30 = vmax.f32 %v1761_v34, 0.0  ;;  %v11084_v34 = vld [vmem:[%s11974_s6] ss:$0 sm:$0xff] }
 0x4cd   :  { %7527 = vmatprep.mubr.msk.f32.mxu1 %vm234_vm0, %v1884_v51  ;;  %v12431_v51 = vld [vmem:[#allocation120_spill] sm:$0xff] }
 0x4ce   :  { %v1721_v63 = vadd.f32 %v10655_v58, %v12431_v51  ;;  %v1898_v46 = vmax.f32 %v1716_v9, 0.0  ;;  %v1908_v9 = vmax.f32 %v1766_v14, 0.0 }
 0x4d0   :  { %7528 = vmatmul.mubr.msk.f32.gmra.mrb[164].mxu1 %vm234_vm0, %v1885_v0  ;;  %v12432_v0 = vld [vmem:[#allocation123_spill] sm:$0xff]  ;;  %v1899_v52 = vmax.f32 %v1721_v63, 0.0 }
 0x4d1   :  { %7530 = vmatprep.mubr.msk.f32.mxu1 %vm234_vm0, %v1886_v27  ;;  %v1726_v28 = vadd.f32 %v10655_v58, %v12432_v0 }
 0x4d2   :  { %v10924_v31 = vpop.f32.mrb[166].mxu0 }
 0x4d3   :  { %v10928_v37 = vpop.f32.mrb[167].mxu0  ;;  %v1900_v56 = vmax.f32 %v1726_v28, 0.0  ;;  %v12445_v28 = vld [vmem:[#allocation132_spill] sm:$0xff] }
 0x4d4   :  { %7531 = vmatmul.mubr.msk.f32.gmra.mrb[166].mxu1 %vm234_vm0, %v1887_v11  ;;  %v1731_v11 = vadd.f32 %v10655_v58, %v12433_v61 }
 0x4d5   :  { %7533 = vmatprep.mubr.msk.f32.mxu1 %vm234_vm0, %v1888_v53  ;;  %v1736_v53 = vadd.f32 %v10655_v58, %v12434_v35 }
 0x4d7   :  { %v7368_v38 = vpop.f32.mrb[62].mxu1 }
 0x4d8   :  { %v3831_v57 = vadd.f32 %v7368_v38, %v10484_v2  ;;  %v3825_v19 = vpop.f32.mrb[63].mxu1  ;;  %7534 = vmatmul.mubr.msk.f32.gmra.mrb[168].mxu1 %vm234_vm0, %v1889_v29  ;;  %v1901_v29 = vmax.f32 %v1731_v11, 0.0 }
 0x4d9   :  { %v3826_v12 = vadd.f32 %v10484_v2, %v3825_v19  ;;  %7536 = vmatprep.mubr.msk.f32.mxu1 %vm234_vm0, %v1890_v21  ;;  %v1893_v2 = vmax.f32 %v1691_v62, 0.0  ;;  %v1902_v21 = vmax.f32 %v1736_v53, 0.0  ;;  %v1903_v19 = vmax.f32 %v1741_v32, 0.0  ;;  %v12438_v62 = vld [vmem:[#allocation129_spill] sm:$0xff] }
 0x4da   :  { %v3865_v50 = vmax.f32 %v3831_v57, 0.0 }
 0x4db   :  { %v3864_v20 = vmax.f32 %v3826_v12, 0.0  ;;  %v10944_v8 = vpop.f32.mrb[64].mxu1  ;;  %v12437_v12 = vld [vmem:[#allocation126_spill] sm:$0xff] }
 0x4dc   :  { %v10946_v44 = vpop.f32.mrb[65].mxu1  ;;  %7537 = vmatmul.mubr.msk.f32.gmra.mrb[170].mxu1 %vm234_vm0, %v1891_v41  ;;  %v1751_v41 = vadd.f32 %v10655_v58, %v12437_v12  ;;  %v11088_v49 = vadd.f32 %v10944_v8, %v11084_v34 }
 0x4dd   :  { %7539 = vmatprep.mubr.msk.f32.mxu1 %vm234_vm0, %v1892_v25  ;;  %7622 = vmatprep.mubr.msk.f32.mxu0 %vm234_vm0, %v3864_v20  ;;  %v1756_v25 = vadd.f32 %v10655_v58, %v12438_v62 }
 0x4de   :  { %v10953_v36 = vpop.f32.mrb[168].mxu0  ;;  %7623 = vmatmul.mubr.msk.f32.gmra.mrb[190].mxu0 %vm234_vm0, %v3865_v50 }
 0x4df   :  { %v10958_v5 = vpop.f32.mrb[66].mxu1  ;;  %v10960_v59 = vpop.f32.mrb[169].mxu0 }
 0x4e0   :  { %v10962_v55 = vpop.f32.mrb[67].mxu1  ;;  %7540 = vmatmul.mubr.msk.f32.gmra.mrb[172].mxu1 %vm234_vm0, %v1893_v2  ;;  %v1905_v2 = vmax.f32 %v1751_v41, 0.0 }
 0x4e1   :  { %7542 = vmatprep.mubr.msk.f32.mxu1 %vm234_vm0, %v1894_v16  ;;  %v1906_v16 = vmax.f32 %v1756_v25, 0.0 }
 0x4e3   :  { %v10970_v15 = vpop.f32.mrb[68].mxu1 }
 0x4e4   :  { %v10972_v40 = vpop.f32.mrb[69].mxu1  ;;  %7543 = vmatmul.mubr.msk.f32.gmra.mrb[174].mxu1 %vm234_vm0, %v1895_v39 }
 0x4e5   :  { %7545 = vmatprep.mubr.msk.f32.mxu1 %vm234_vm0, %v1896_v10  ;;  %v12443_v10 = vld [vmem:[#allocation130_spill] sm:$0xff] }
 0x4e6   :  { %v1771_v54 = vadd.f32 %v10655_v58, %v12443_v10  ;;  %v11093_v10 = vadd.f32 %v11084_v34, %v10946_v44 }
 0x4e7   :  { %v10980_v18 = vpop.f32.mrb[70].mxu1 }
 0x4e8   :  { %v10982_v27 = vpop.f32.mrb[71].mxu1  ;;  %7546 = vmatmul.mubr.msk.f32.gmra.mrb[176].mxu1 %vm234_vm0, %v1897_v47  ;;  %v12444_v47 = vld [vmem:[#allocation133_spill] sm:$0xff]  ;;  %v1909_v0 = vmax.f32 %v1771_v54, 0.0 }
 0x4e9   :  { %7548 = vmatprep.mubr.msk.f32.mxu1 %vm234_vm0, %v1898_v46  ;;  %v1776_v51 = vadd.f32 %v10655_v58, %v12444_v47 }
 0x4eb   :  { %v10990_v48 = vpop.f32.mrb[72].mxu1  ;;  %v1910_v61 = vmax.f32 %v1776_v51, 0.0 }
 0x4ec   :  { %v10992_v4 = vpop.f32.mrb[73].mxu1  ;;  %7549 = vmatmul.mubr.msk.f32.gmra.mrb[178].mxu1 %vm234_vm0, %v1899_v52  ;;  %v1781_v52 = vadd.f32 %v10655_v58, %v12445_v28 }
 0x4ed   :  { %7551 = vmatprep.mubr.msk.f32.mxu1 %vm234_vm0, %v1900_v56 }
 0x4ef   :  { %v11000_v38 = vpop.f32.mrb[74].mxu1 }
 0x4f0   :  { %v11002_v57 = vpop.f32.mrb[75].mxu1  ;;  %7552 = vmatmul.mubr.msk.f32.gmra.mrb[180].mxu1 %vm234_vm0, %v1901_v29  ;;  %v1911_v29 = vmax.f32 %v1781_v52, 0.0 }
 0x4f1   :  { %7554 = vmatprep.mubr.msk.f32.mxu1 %vm234_vm0, %v1902_v21 }
 0x4f3   :  { %v11010_v45 = vpop.f32.mrb[76].mxu1 }
 0x4f4   :  { %v11012_v23 = vpop.f32.mrb[77].mxu1  ;;  %7555 = vmatmul.mubr.msk.f32.gmra.mrb[182].mxu1 %vm234_vm0, %v1903_v19  ;;  %v11015_v20 = vpop.f32.mrb[170].mxu0 }
 0x4f5   :  { %12439 = vst [vmem:[#allocation134_spill] sm:$0xff] %v11015_v20  ;;  %7557 = vmatprep.mubr.msk.f32.mxu1 %vm234_vm0, %v1904_v24  ;;  %v11018_v50 = vpop.f32.mrb[171].mxu0 }
 0x4f6   :  { %12440 = vst [vmem:[#allocation135_spill] sm:$0xff] %v11018_v50 }
 0x4f7   :  { %v11024_v39 = vpop.f32.mrb[78].mxu1 }
 0x4f8   :  { %v11026_v42 = vpop.f32.mrb[79].mxu1  ;;  %7558 = vmatmul.mubr.msk.f32.gmra.mrb[184].mxu1 %vm234_vm0, %v1905_v2 }
 0x4f9   :  { %7560 = vmatprep.mubr.msk.f32.mxu1 %vm234_vm0, %v1906_v16 }
 0x4fb   :  { %v11034_v63 = vpop.f32.mrb[80].mxu1 }
 0x4fc   :  { %v11036_v46 = vpop.f32.mrb[81].mxu1  ;;  %7561 = vmatmul.mubr.msk.f32.gmra.mrb[186].mxu1 %vm234_vm0, %v1907_v30 }
 0x4fd   :  { %7563 = vmatprep.mubr.msk.f32.mxu1 %vm234_vm0, %v1908_v9 }
 0x4ff   :  { %v11042_v11 = vpop.f32.mrb[82].mxu1 }
 0x500   :  { %v11044_v56 = vpop.f32.mrb[83].mxu1  ;;  %7564 = vmatmul.mubr.msk.f32.gmra.mrb[188].mxu1 %vm234_vm0, %v1909_v0  ;;  %v11047_v35 = vpop.f32.mrb[172].mxu0  ;;  %v11100_v0 = vadd.f32 %v10958_v5, %v11084_v34 }
 0x501   :  { %12446 = vst [vmem:[#allocation136_spill] sm:$0xff] %v11047_v35  ;;  %7566 = vmatprep.mubr.msk.f32.mxu1 %vm234_vm0, %v1910_v61  ;;  %v11050_v53 = vpop.f32.mrb[173].mxu0  ;;  %v11105_v61 = vadd.f32 %v11084_v34, %v10962_v55 }
 0x502   :  { %12447 = vst [vmem:[#allocation147_spill] sm:$0xff] %v11050_v53 }
 0x503   :  { %v11052_v7 = vpop.f32.mrb[84].mxu1 }
 0x504   :  { %v11054_v32 = vpop.f32.mrb[85].mxu1  ;;  %7567 = vmatmul.mubr.msk.f32.gmra.mrb[190].mxu1 %vm234_vm0, %v1911_v29 }
 0x507   :  { %v11057_v58 = vpop.f32.mrb[86].mxu1 }
 0x508   :  { %v11059_v21 = vpop.f32.mrb[87].mxu1 }
 0x50b   :  { %v11061_v1 = vpop.f32.mrb[88].mxu1 }
 0x50c   :  { %v11063_v22 = vpop.f32.mrb[89].mxu1 }
 0x50f   :  { %v11065_v19 = vpop.f32.mrb[90].mxu1 }
 0x510   :  { %v11067_v12 = vpop.f32.mrb[91].mxu1 }
 0x513   :  { %v11069_v41 = vpop.f32.mrb[92].mxu1 }
 0x514   :  { %v11071_v24 = vpop.f32.mrb[93].mxu1 }
 0x516   :  { %v11073_v62 = vpop.f32.mrb[174].mxu0 }
 0x517   :  { %12448 = vst [vmem:[#allocation137_spill] sm:$0xff] %v11073_v62  ;;  %v11075_v25 = vpop.f32.mrb[94].mxu1  ;;  %v11077_v2 = vpop.f32.mrb[175].mxu0 }
 0x518   :  { %12449 = vst [vmem:[#allocation138_spill] sm:$0xff] %v11077_v2  ;;  %v11079_v13 = vpop.f32.mrb[95].mxu1 }
 0x51b   :  { %v7427_v16 = vpop.f32.mrb[96].mxu1 }
 0x51c   :  { %v4461_v14 = vadd.f32 %v7427_v16, %v11084_v34  ;;  %v4455_v30 = vpop.f32.mrb[97].mxu1 }
 0x51d   :  { %v4456_v54 = vadd.f32 %v11084_v34, %v4455_v30 }
 0x51e   :  { %v5256_v9 = vsub.f32 %v11088_v49, %v4461_v14 }
 0x51f   :  { %v5255_v47 = vsub.f32 %v11093_v10, %v4456_v54  ;;  %v7430_v51 = vpop.f32.mrb[98].mxu1 }
 0x520   :  { %v5288_v8 = vand.u32 2147483647, %v5256_v9  ;;  %v4471_v28 = vadd.f32 %v7430_v51, %v11084_v34  ;;  %v4465_v52 = vpop.f32.mrb[99].mxu1 }
 0x521   :  { %v5287_v44 = vand.u32 2147483647, %v5255_v47  ;;  %v4466_v29 = vadd.f32 %v11084_v34, %v4465_v52 }
 0x522   :  { %v5258_v16 = vsub.f32 %v11100_v0, %v4471_v28  ;;  %v11109_v14 = vpop.f32.mrb[176].mxu0  ;;  %v5322_v30 = vsel %vm2017_vm1, %v5288_v8, 0.0  ;;  %v11119_v28 = vadd.f32 %v10970_v15, %v11084_v34  ;;  %v11123_v8 = vadd.f32 %v11084_v34, %v10972_v40 }
 0x523   :  { %v5257_v5 = vsub.f32 %v11105_v61, %v4466_v29  ;;  %v11113_v54 = vpop.f32.mrb[177].mxu0  ;;  %5323 = vadd.xlane.f32.xlu1 %v5322_v30  ;;  %v7433_v9 = vpop.f32.mrb[100].mxu1  ;;  %v5319_v51 = vsel %vm2017_vm1, %v5287_v44, 0.0  ;;  %v11132_v15 = vadd.f32 %v10980_v18, %v11084_v34  ;;  %v11136_v40 = vadd.f32 %v11084_v34, %v10982_v27 }
 0x524   :  { %v5290_v17 = vand.u32 2147483647, %v5258_v16  ;;  %v4481_v55 = vadd.f32 %v7433_v9, %v11084_v34  ;;  %v4475_v47 = vpop.f32.mrb[101].mxu1  ;;  %5320 = vadd.xlane.f32.xlu0 %v5319_v51  ;;  %v11145_v18 = vadd.f32 %v10990_v48, %v11084_v34 }
 0x525   :  { %v4476_v52 = vadd.f32 %v11084_v34, %v4475_v47  ;;  %v5289_v29 = vand.u32 2147483647, %v5257_v5 }
 0x526   :  { %v5328_v30 = vsel %vm2017_vm1, %v5290_v17, 0.0  ;;  %v5260_v44 = vsub.f32 %v11119_v28, %v4481_v55 }
 0x527   :  { %v5259_v16 = vsub.f32 %v11123_v8, %v4476_v52  ;;  %v7436_v9 = vpop.f32.mrb[102].mxu1  ;;  %v5325_v55 = vsel %vm2017_vm1, %v5289_v29, 0.0 }
 0x528   :  { %v4491_v51 = vadd.f32 %v7436_v9, %v11084_v34  ;;  %v4485_v62 = vpop.f32.mrb[103].mxu1  ;;  %5329 = vadd.xlane.f32.xlu0 %v5328_v30  ;;  %v5292_v47 = vand.u32 2147483647, %v5260_v44 }
 0x529   :  { %v5291_v5 = vand.u32 2147483647, %v5259_v16  ;;  %v4486_v17 = vadd.f32 %v11084_v34, %v4485_v62  ;;  %v11150_v62 = vadd.f32 %v11084_v34, %v10992_v4  ;;  %v6014_v16 = vpop.trf.xlu1 }
 0x52a   :  { %v5262_v52 = vsub.f32 %v11132_v15, %v4491_v51  ;;  %6031 = vst [vmem:[#allocation3 + $0x28] sm:$0x7] %v6014_v16 }
 0x52b   :  { %v5261_v9 = vsub.f32 %v11136_v40, %v4486_v17  ;;  %v7439_v2 = vpop.f32.mrb[104].mxu1  ;;  %v5331_v30 = vsel %vm2017_vm1, %v5291_v5, 0.0  ;;  %v5982_v5 = vpop.trf.xlu0 }
 0x52c   :  { %v4501_v27 = vadd.f32 %v7439_v2, %v11084_v34  ;;  %v4495_v35 = vpop.f32.mrb[105].mxu1  ;;  %5332 = vadd.xlane.f32.xlu1 %v5331_v30  ;;  %5326 = vadd.xlane.f32.xlu0 %v5325_v55  ;;  %v5294_v17 = vand.u32 2147483647, %v5262_v52  ;;  %v5334_v55 = vsel %vm2017_vm1, %v5292_v47, 0.0  ;;  %6030 = vst [vmem:[#allocation3 + $0x20] sm:$0x7] %v5982_v5  ;;  %v11164_v52 = vadd.f32 %v11084_v34, %v11002_v57 }
 0x52d   :  { %v5293_v29 = vand.u32 2147483647, %v5261_v9  ;;  %v4496_v44 = vadd.f32 %v11084_v34, %v4495_v35  ;;  %v11160_v35 = vadd.f32 %v11000_v38, %v11084_v34  ;;  %v11174_v57 = vadd.f32 %v11010_v45, %v11084_v34 }
 0x52e   :  { %v5264_v51 = vsub.f32 %v11145_v18, %v4501_v27  ;;  %12450 = vst [vmem:[#allocation148_spill] sm:$0xff] %v11164_v52  ;;  %v5340_v5 = vsel %vm2017_vm1, %v5294_v17, 0.0  ;;  %v11187_v45 = vadd.f32 %v11024_v39, %v11084_v34 }
 0x52f   :  { %v5263_v48 = vsub.f32 %v11150_v62, %v4496_v44  ;;  %v7442_v53 = vpop.f32.mrb[106].mxu1  ;;  %v5337_v2 = vsel %vm2017_vm1, %v5293_v29, 0.0 }
 0x530   :  { %v4511_v4 = vadd.f32 %v7442_v53, %v11084_v34  ;;  %v4505_v30 = vpop.f32.mrb[107].mxu1  ;;  %5338 = vadd.xlane.f32.xlu1 %v5337_v2  ;;  %5335 = vadd.xlane.f32.xlu0 %v5334_v55  ;;  %v5296_v29 = vand.u32 2147483647, %v5264_v51  ;;  %v11178_v51 = vadd.f32 %v11084_v34, %v11012_v23 }
 0x531   :  { %v5295_v9 = vand.u32 2147483647, %v5263_v48  ;;  %v4506_v27 = vadd.f32 %v11084_v34, %v4505_v30 }
 0x532   :  { %v5266_v47 = vsub.f32 %v11160_v35, %v4511_v4  ;;  %12451 = vst [vmem:[#allocation139_spill] sm:$0xff] %v11178_v51  ;;  %v5346_v4 = vsel %vm2017_vm1, %v5296_v29, 0.0  ;;  %v11192_v29 = vadd.f32 %v11084_v34, %v11026_v42 }
 0x533   :  { %v5265_v44 = vsub.f32 %v11164_v52, %v4506_v27  ;;  %v7445_v53 = vpop.f32.mrb[108].mxu1  ;;  %v5343_v16 = vsel %vm2017_vm1, %v5295_v9, 0.0 }
 0x534   :  { %v4521_v38 = vadd.f32 %v7445_v53, %v11084_v34  ;;  %v4515_v2 = vpop.f32.mrb[109].mxu1  ;;  %5344 = vadd.xlane.f32.xlu1 %v5343_v16  ;;  %5341 = vadd.xlane.f32.xlu0 %v5340_v5  ;;  %v5298_v30 = vand.u32 2147483647, %v5266_v47  ;;  %12452 = vst [vmem:[#allocation140_spill] sm:$0xff] %v11192_v29 }
 0x535   :  { %v5297_v48 = vand.u32 2147483647, %v5265_v44  ;;  %v4516_v55 = vadd.f32 %v11084_v34, %v4515_v2 }
 0x536   :  { %v5268_v17 = vsub.f32 %v11174_v57, %v4521_v38 }
 0x537   :  { %v5267_v9 = vsub.f32 %v11178_v51, %v4516_v55  ;;  %v7448_v27 = vpop.f32.mrb[110].mxu1  ;;  %v5349_v53 = vsel %vm2017_vm1, %v5297_v48, 0.0 }
 0x538   :  { %v4531_v23 = vadd.f32 %v7448_v27, %v11084_v34  ;;  %v4525_v16 = vpop.f32.mrb[111].mxu1  ;;  %5350 = vadd.xlane.f32.xlu1 %v5349_v53  ;;  %5347 = vadd.xlane.f32.xlu0 %v5346_v4  ;;  %v5300_v38 = vand.u32 2147483647, %v5268_v17  ;;  %v5352_v27 = vsel %vm2017_vm1, %v5298_v30, 0.0  ;;  %v11210_v17 = vadd.f32 %v11084_v34, %v11036_v46 }
 0x539   :  { %v5299_v47 = vand.u32 2147483647, %v5267_v9  ;;  %v4526_v44 = vadd.f32 %v11084_v34, %v4525_v16  ;;  %v11206_v9 = vadd.f32 %v11034_v63, %v11084_v34  ;;  %v11220_v46 = vadd.f32 %v11042_v11, %v11084_v34 }
 0x53a   :  { %v5270_v5 = vsub.f32 %v11187_v45, %v4531_v23  ;;  %12454 = vst [vmem:[#allocation142_spill] sm:$0xff] %v11210_v17  ;;  %v11233_v11 = vadd.f32 %v11052_v7, %v11084_v34 }
 0x53b   :  { %v5269_v2 = vsub.f32 %v11192_v29, %v4526_v44  ;;  %v7451_v48 = vpop.f32.mrb[112].mxu1  ;;  %v11197_v39 = vpop.f32.mrb[178].mxu0  ;;  %v5355_v55 = vsel %vm2017_vm1, %v5299_v47, 0.0 }
 0x53c   :  { %12453 = vst [vmem:[#allocation141_spill] sm:$0xff] %v11197_v39  ;;  %v4541_v4 = vadd.f32 %v7451_v48, %v11084_v34  ;;  %v4535_v53 = vpop.f32.mrb[113].mxu1  ;;  %v11202_v42 = vpop.f32.mrb[179].mxu0  ;;  %5356 = vadd.xlane.f32.xlu1 %v5355_v55  ;;  %5353 = vadd.xlane.f32.xlu0 %v5352_v27  ;;  %v5302_v47 = vand.u32 2147483647, %v5270_v5  ;;  %v5358_v27 = vsel %vm2017_vm1, %v5300_v38, 0.0  ;;  %v11224_v5 = vadd.f32 %v11084_v34, %v11044_v56 }
 0x53d   :  { %v5301_v23 = vand.u32 2147483647, %v5269_v2  ;;  %v4536_v16 = vadd.f32 %v11084_v34, %v4535_v53 }
 0x53e   :  { %v5272_v30 = vsub.f32 %v11206_v9, %v4541_v4  ;;  %12455 = vst [vmem:[#allocation143_spill] sm:$0xff] %v11224_v5  ;;  %v5364_v53 = vsel %vm2017_vm1, %v5302_v47, 0.0 }
 0x53f   :  { %v5271_v44 = vsub.f32 %v11210_v17, %v4536_v16  ;;  %v7454_v48 = vpop.f32.mrb[114].mxu1  ;;  %v5361_v55 = vsel %vm2017_vm1, %v5301_v23, 0.0 }
 0x540   :  { %v4551_v63 = vadd.f32 %v7454_v48, %v11084_v34  ;;  %v4545_v20 = vpop.f32.mrb[115].mxu1  ;;  %5362 = vadd.xlane.f32.xlu1 %v5361_v55  ;;  %5359 = vadd.xlane.f32.xlu0 %v5358_v27  ;;  %v5304_v23 = vand.u32 2147483647, %v5272_v30 }
 0x541   :  { %v5303_v2 = vand.u32 2147483647, %v5271_v44  ;;  %v4546_v4 = vadd.f32 %v11084_v34, %v4545_v20  ;;  %v11238_v20 = vadd.f32 %v11084_v34, %v11054_v32  ;;  %v11248_v32 = vadd.f32 %v11057_v58, %v11084_v34 }
 0x542   :  { %v5274_v38 = vsub.f32 %v11220_v46, %v4551_v63 }
 0x543   :  { %v5273_v16 = vsub.f32 %v11224_v5, %v4546_v4  ;;  %v7457_v48 = vpop.f32.mrb[116].mxu1  ;;  %v5367_v55 = vsel %vm2017_vm1, %v5303_v2, 0.0  ;;  %12456 = vst [vmem:[#allocation144_spill] sm:$0xff] %v11238_v20 }
 0x544   :  { %v4561_v56 = vadd.f32 %v7457_v48, %v11084_v34  ;;  %v4555_v27 = vpop.f32.mrb[117].mxu1  ;;  %5368 = vadd.xlane.f32.xlu1 %v5367_v55  ;;  %5365 = vadd.xlane.f32.xlu0 %v5364_v53  ;;  %v5306_v63 = vand.u32 2147483647, %v5274_v38  ;;  %v5370_v48 = vsel %vm2017_vm1, %v5304_v23, 0.0 }
 0x545   :  { %v5305_v47 = vand.u32 2147483647, %v5273_v16  ;;  %v4556_v30 = vadd.f32 %v11084_v34, %v4555_v27  ;;  %v11252_v16 = vadd.f32 %v11084_v34, %v11059_v21  ;;  %v11262_v21 = vadd.f32 %v11061_v1, %v11084_v34 }
 0x546   :  { %v5276_v44 = vsub.f32 %v11233_v11, %v4561_v56 }
 0x547   :  { %v5275_v2 = vsub.f32 %v11238_v20, %v4556_v30  ;;  %v7460_v4 = vpop.f32.mrb[118].mxu1  ;;  %v5373_v7 = vsel %vm2017_vm1, %v5305_v47, 0.0  ;;  %12457 = vst [vmem:[#allocation146_spill] sm:$0xff] %v11252_v16 }
 0x548   :  { %v4571_v55 = vadd.f32 %v7460_v4, %v11084_v34  ;;  %v4565_v53 = vpop.f32.mrb[119].mxu1  ;;  %5374 = vadd.xlane.f32.xlu1 %v5373_v7  ;;  %5371 = vadd.xlane.f32.xlu0 %v5370_v48  ;;  %v5308_v27 = vand.u32 2147483647, %v5276_v44  ;;  %v5376_v7 = vsel %vm2017_vm1, %v5306_v63, 0.0  ;;  %v11266_v44 = vadd.f32 %v11084_v34, %v11063_v22 }
 0x549   :  { %v5307_v38 = vand.u32 2147483647, %v5275_v2  ;;  %v4566_v56 = vadd.f32 %v11084_v34, %v4565_v53 }
 0x54a   :  { %v5278_v47 = vsub.f32 %v11248_v32, %v4571_v55  ;;  %12458 = vst [vmem:[#allocation145_spill] sm:$0xff] %v11266_v44  ;;  %v5382_v53 = vsel %vm2017_vm1, %v5308_v27, 0.0  ;;  %v11284_v27 = vadd.f32 %v11084_v34, %v11067_v12  ;;  %v11294_v12 = vadd.f32 %v11069_v41, %v11084_v34 }
 0x54b   :  { %v5277_v23 = vsub.f32 %v11252_v16, %v4566_v56  ;;  %v7463_v30 = vpop.f32.mrb[120].mxu1  ;;  %v5379_v4 = vsel %vm2017_vm1, %v5307_v38, 0.0 }
 0x54c   :  { %v4581_v58 = vadd.f32 %v7463_v30, %v11084_v34  ;;  %v4575_v48 = vpop.f32.mrb[121].mxu1  ;;  %5380 = vadd.xlane.f32.xlu1 %v5379_v4  ;;  %5377 = vadd.xlane.f32.xlu0 %v5376_v7  ;;  %v5310_v38 = vand.u32 2147483647, %v5278_v47  ;;  %v11277_v7 = vadd.f32 %v11065_v19, %v11084_v34  ;;  %12462 = vst [vmem:[#allocation15_spill] sm:$0xff] %v11284_v27  ;;  %12463 = vst [vmem:[#allocation16_spill] sm:$0xff] %v11294_v12 }
 0x54d   :  { %v5309_v2 = vand.u32 2147483647, %v5277_v23  ;;  %v4576_v55 = vadd.f32 %v11084_v34, %v4575_v48 }
 0x54e   :  { %v5280_v63 = vsub.f32 %v11262_v21, %v4581_v58  ;;  %12460 = vst [vmem:[#allocation12_spill] sm:$0xff] %v11277_v7  ;;  %v5388_v39 = vsel %vm2017_vm1, %v5310_v38, 0.0 }
 0x54f   :  { %v5279_v56 = vsub.f32 %v11266_v44, %v4576_v55  ;;  %v7466_v30 = vpop.f32.mrb[122].mxu1  ;;  %v11272_v4 = vpop.f32.mrb[180].mxu0  ;;  %v5385_v1 = vsel %vm2017_vm1, %v5309_v2, 0.0 }
 0x550   :  { %12459 = vst [vmem:[#allocation10_spill] sm:$0xff] %v11272_v4  ;;  %v4591_v22 = vadd.f32 %v7466_v30, %v11084_v34  ;;  %v4585_v23 = vpop.f32.mrb[123].mxu1  ;;  %v11280_v48 = vpop.f32.mrb[181].mxu0  ;;  %5386 = vadd.xlane.f32.xlu1 %v5385_v1  ;;  %5383 = vadd.xlane.f32.xlu0 %v5382_v53  ;;  %v5312_v55 = vand.u32 2147483647, %v5280_v63 }
 0x551   :  { %12461 = vst [vmem:[#allocation13_spill] sm:$0xff] %v11280_v48  ;;  %v5311_v47 = vand.u32 2147483647, %v5279_v56  ;;  %v4586_v58 = vadd.f32 %v11084_v34, %v4585_v23  ;;  %v11298_v56 = vadd.f32 %v11084_v34, %v11071_v24  ;;  %v11308_v24 = vadd.f32 %v11075_v25, %v11084_v34 }
 0x552   :  { %v5282_v2 = vsub.f32 %v11277_v7, %v4591_v22 }
 0x553   :  { %v5281_v19 = vsub.f32 %v11284_v27, %v4586_v58  ;;  %v7469_v4 = vpop.f32.mrb[124].mxu1  ;;  %v5391_v30 = vsel %vm2017_vm1, %v5311_v47, 0.0  ;;  %12464 = vst [vmem:[#allocation18_spill] sm:$0xff] %v11298_v56  ;;  %12465 = vst [vmem:[#allocation19_spill] sm:$0xff] %v11308_v24 }
 0x554   :  { %v4601_v1 = vadd.f32 %v7469_v4, %v11084_v34  ;;  %v4595_v53 = vpop.f32.mrb[125].mxu1  ;;  %5392 = vadd.xlane.f32.xlu1 %v5391_v30  ;;  %5389 = vadd.xlane.f32.xlu0 %v5388_v39  ;;  %v5314_v23 = vand.u32 2147483647, %v5282_v2  ;;  %v5394_v39 = vsel %vm2017_vm1, %v5312_v55, 0.0  ;;  %v11312_v2 = vadd.f32 %v11084_v34, %v11079_v13 }
 0x555   :  { %v5313_v63 = vand.u32 2147483647, %v5281_v19  ;;  %v4596_v22 = vadd.f32 %v11084_v34, %v4595_v53 }
 0x556   :  { %v5284_v47 = vsub.f32 %v11294_v12, %v4601_v1  ;;  %12466 = vst [vmem:[#allocation21_spill] sm:$0xff] %v11312_v2  ;;  %v5400_v53 = vsel %vm2017_vm1, %v5314_v23, 0.0 }
 0x557   :  { %v5283_v38 = vsub.f32 %v11298_v56, %v4596_v22  ;;  %v7472_v4 = vpop.f32.mrb[126].mxu1  ;;  %v5397_v58 = vsel %vm2017_vm1, %v5313_v63, 0.0 }
 0x558   :  { %v4611_v41 = vadd.f32 %v7472_v4, %v11084_v34  ;;  %v4605_v30 = vpop.f32.mrb[127].mxu1  ;;  %5398 = vadd.xlane.f32.xlu1 %v5397_v58  ;;  %5395 = vadd.xlane.f32.xlu0 %v5394_v39  ;;  %v5316_v63 = vand.u32 2147483647, %v5284_v47 }
 0x559   :  { %v5315_v19 = vand.u32 2147483647, %v5283_v38  ;;  %v4606_v1 = vadd.f32 %v11084_v34, %v4605_v30 }
 0x55a   :  { %v5286_v55 = vsub.f32 %v11308_v24, %v4611_v41 }
 0x55b   :  { %v5285_v22 = vsub.f32 %v11312_v2, %v4606_v1  ;;  %v7475_v4 = vpop.f32.mrb[128].mxu1  ;;  %v5403_v58 = vsel %vm2017_vm1, %v5315_v19, 0.0  ;;  %v5406_v1 = vsel %vm2017_vm1, %v5316_v63, 0.0 }
 0x55c   :  { %v4621_v25 = vadd.f32 %v7475_v4, %v11084_v34  ;;  %v4615_v39 = vpop.f32.mrb[129].mxu1  ;;  %5404 = vadd.xlane.f32.xlu1 %v5403_v58  ;;  %5401 = vadd.xlane.f32.xlu0 %v5400_v53  ;;  %v5318_v48 = vand.u32 2147483647, %v5286_v55 }
 0x55d   :  { %v5317_v13 = vand.u32 2147483647, %v5285_v22  ;;  %v4616_v38 = vadd.f32 %v11084_v34, %v4615_v39 }
 0x55e   :  { %v5449_v30 = vsub.f32 %v11088_v49, %v4621_v25  ;;  %v5412_v63 = vsel %vm2017_vm1, %v5318_v48, 0.0 }
 0x55f   :  { %v5448_v23 = vsub.f32 %v11093_v10, %v4616_v38  ;;  %v7478_v47 = vpop.f32.mrb[130].mxu1  ;;  %v5409_v41 = vsel %vm2017_vm1, %v5317_v13, 0.0 }
 0x560   :  { %v4631_v19 = vadd.f32 %v7478_v47, %v11084_v34  ;;  %v4625_v50 = vpop.f32.mrb[131].mxu1  ;;  %5410 = vadd.xlane.f32.xlu1 %v5409_v41  ;;  %5407 = vadd.xlane.f32.xlu0 %v5406_v1  ;;  %v5481_v22 = vand.u32 2147483647, %v5449_v30 }
 0x561   :  { %v5480_v4 = vand.u32 2147483647, %v5448_v23  ;;  %v4626_v53 = vadd.f32 %v11084_v34, %v4625_v50 }
 0x562   :  { %v5451_v58 = vsub.f32 %v11100_v0, %v4631_v19  ;;  %v5515_v23 = vsel %vm2017_vm1, %v5481_v22, 0.0 }
 0x563   :  { %v5450_v55 = vsub.f32 %v11105_v61, %v4626_v53  ;;  %v7481_v25 = vpop.f32.mrb[132].mxu1  ;;  %v11329_v39 = vpop.f32.mrb[182].mxu0  ;;  %v5512_v13 = vsel %vm2017_vm1, %v5480_v4, 0.0 }
 0x564   :  { %12467 = vst [vmem:[#allocation22_spill] sm:$0xff] %v11329_v39  ;;  %v4641_v38 = vadd.f32 %v7481_v25, %v11084_v34  ;;  %v4635_v47 = vpop.f32.mrb[133].mxu1  ;;  %v11334_v41 = vpop.f32.mrb[183].mxu0  ;;  %5513 = vadd.xlane.f32.xlu1 %v5512_v13  ;;  %5413 = vadd.xlane.f32.xlu0 %v5412_v63  ;;  %v5483_v1 = vand.u32 2147483647, %v5451_v58 }
 0x565   :  { %12468 = vst [vmem:[#allocation25_spill] sm:$0xff] %v11334_v41  ;;  %v5482_v50 = vand.u32 2147483647, %v5450_v55  ;;  %v4636_v30 = vadd.f32 %v11084_v34, %v4635_v47 }
 0x566   :  { %v5453_v19 = vsub.f32 %v11119_v28, %v4641_v38 }
 0x567   :  { %v5452_v53 = vsub.f32 %v11123_v8, %v4636_v30  ;;  %v7484_v4 = vpop.f32.mrb[134].mxu1  ;;  %v5518_v48 = vsel %vm2017_vm1, %v5482_v50, 0.0  ;;  %v5521_v30 = vsel %vm2017_vm1, %v5483_v1, 0.0 }
 0x568   :  { %v4651_v25 = vadd.f32 %v7484_v4, %v11084_v34  ;;  %v4645_v39 = vpop.f32.mrb[135].mxu1  ;;  %5519 = vadd.xlane.f32.xlu1 %v5518_v48  ;;  %5516 = vadd.xlane.f32.xlu0 %v5515_v23  ;;  %v5485_v47 = vand.u32 2147483647, %v5453_v19 }
 0x569   :  { %v5484_v13 = vand.u32 2147483647, %v5452_v53  ;;  %v4646_v55 = vadd.f32 %v11084_v34, %v4645_v39 }
 0x56a   :  { %v5455_v63 = vsub.f32 %v11132_v15, %v4651_v25 }
 0x56b   :  { %v5454_v22 = vsub.f32 %v11136_v40, %v4646_v55  ;;  %v7487_v58 = vpop.f32.mrb[136].mxu1  ;;  %v5524_v38 = vsel %vm2017_vm1, %v5484_v13, 0.0  ;;  %v5527_v13 = vsel %vm2017_vm1, %v5485_v47, 0.0 }
 0x56c   :  { %v4661_v50 = vadd.f32 %v7487_v58, %v11084_v34  ;;  %v4655_v41 = vpop.f32.mrb[137].mxu1  ;;  %5525 = vadd.xlane.f32.xlu1 %v5524_v38  ;;  %5522 = vadd.xlane.f32.xlu0 %v5521_v30  ;;  %v5487_v53 = vand.u32 2147483647, %v5455_v63 }
 0x56d   :  { %v5486_v4 = vand.u32 2147483647, %v5454_v22  ;;  %v4656_v23 = vadd.f32 %v11084_v34, %v4655_v41 }
 0x56e   :  { %v5457_v39 = vsub.f32 %v11145_v18, %v4661_v50  ;;  %v5533_v41 = vsel %vm2017_vm1, %v5487_v53, 0.0 }
 0x56f   :  { %v5456_v19 = vsub.f32 %v11150_v62, %v4656_v23  ;;  %v7490_v48 = vpop.f32.mrb[138].mxu1  ;;  %v5530_v25 = vsel %vm2017_vm1, %v5486_v4, 0.0 }
 0x570   :  { %v4671_v1 = vadd.f32 %v7490_v48, %v11084_v34  ;;  %v4665_v55 = vpop.f32.mrb[139].mxu1  ;;  %5531 = vadd.xlane.f32.xlu1 %v5530_v25  ;;  %5528 = vadd.xlane.f32.xlu0 %v5527_v13  ;;  %v5489_v63 = vand.u32 2147483647, %v5457_v39 }
 0x571   :  { %v5488_v58 = vand.u32 2147483647, %v5456_v19  ;;  %v4666_v22 = vadd.f32 %v11084_v34, %v4665_v55 }
 0x572   :  { %v5459_v38 = vsub.f32 %v11160_v35, %v4671_v1 }
 0x573   :  { %v5458_v30 = vsub.f32 %v11164_v52, %v4666_v22  ;;  %v7493_v50 = vpop.f32.mrb[140].mxu1  ;;  %v5536_v4 = vsel %vm2017_vm1, %v5488_v58, 0.0  ;;  %v5539_v58 = vsel %vm2017_vm1, %v5489_v63, 0.0 }
 0x574   :  { %v4681_v47 = vadd.f32 %v7493_v50, %v11084_v34  ;;  %v4675_v23 = vpop.f32.mrb[141].mxu1  ;;  %5537 = vadd.xlane.f32.xlu1 %v5536_v4  ;;  %5534 = vadd.xlane.f32.xlu0 %v5533_v41  ;;  %v5491_v13 = vand.u32 2147483647, %v5459_v38 }
 0x575   :  { %v5490_v48 = vand.u32 2147483647, %v5458_v30  ;;  %v4676_v19 = vadd.f32 %v11084_v34, %v4675_v23 }
 0x576   :  { %v5461_v25 = vsub.f32 %v11174_v57, %v4681_v47  ;;  %v5545_v63 = vsel %vm2017_vm1, %v5491_v13, 0.0 }
 0x577   :  { %v5460_v53 = vsub.f32 %v11178_v51, %v4676_v19  ;;  %v7496_v39 = vpop.f32.mrb[142].mxu1  ;;  %v11363_v1 = vpop.f32.mrb[184].mxu0  ;;  %v5542_v55 = vsel %vm2017_vm1, %v5490_v48, 0.0 }
 0x578   :  { %v4691_v22 = vadd.f32 %v7496_v39, %v11084_v34  ;;  %v4685_v50 = vpop.f32.mrb[143].mxu1  ;;  %v11368_v4 = vpop.f32.mrb[185].mxu0  ;;  %5543 = vadd.xlane.f32.xlu1 %v5542_v55  ;;  %5540 = vadd.xlane.f32.xlu0 %v5539_v58  ;;  %v5493_v38 = vand.u32 2147483647, %v5461_v25 }
 0x579   :  { %v5492_v41 = vand.u32 2147483647, %v5460_v53  ;;  %v4686_v30 = vadd.f32 %v11084_v34, %v4685_v50 }
 0x57a   :  { %v5463_v47 = vsub.f32 %v11187_v45, %v4691_v22  ;;  %v5551_v58 = vsel %vm2017_vm1, %v5493_v38, 0.0 }
 0x57b   :  { %v5462_v23 = vsub.f32 %v11192_v29, %v4686_v30  ;;  %v7499_v19 = vpop.f32.mrb[144].mxu1  ;;  %v5548_v48 = vsel %vm2017_vm1, %v5492_v41, 0.0 }
 0x57c   :  { %v4701_v39 = vadd.f32 %v7499_v19, %v11084_v34  ;;  %v4695_v51 = vpop.f32.mrb[145].mxu1  ;;  %5549 = vadd.xlane.f32.xlu1 %v5548_v48  ;;  %5546 = vadd.xlane.f32.xlu0 %v5545_v63  ;;  %v5495_v25 = vand.u32 2147483647, %v5463_v47 }
 0x57d   :  { %v5494_v55 = vand.u32 2147483647, %v5462_v23  ;;  %v4696_v53 = vadd.f32 %v11084_v34, %v4695_v51 }
 0x57e   :  { %v5465_v22 = vsub.f32 %v11206_v9, %v4701_v39  ;;  %v5557_v39 = vsel %vm2017_vm1, %v5495_v25, 0.0 }
 0x57f   :  { %v5464_v50 = vsub.f32 %v11210_v17, %v4696_v53  ;;  %v7502_v30 = vpop.f32.mrb[146].mxu1  ;;  %v5554_v41 = vsel %vm2017_vm1, %v5494_v55, 0.0 }
 0x580   :  { %v4711_v13 = vadd.f32 %v7502_v30, %v11084_v34  ;;  %v4705_v29 = vpop.f32.mrb[147].mxu1  ;;  %5555 = vadd.xlane.f32.xlu1 %v5554_v41  ;;  %5552 = vadd.xlane.f32.xlu0 %v5551_v58  ;;  %v5497_v48 = vand.u32 2147483647, %v5465_v22 }
 0x581   :  { %v5496_v19 = vand.u32 2147483647, %v5464_v50  ;;  %v4706_v23 = vadd.f32 %v11084_v34, %v4705_v29 }
 0x582   :  { %v5467_v51 = vsub.f32 %v11220_v46, %v4711_v13 }
 0x583   :  { %v5466_v38 = vsub.f32 %v11224_v5, %v4706_v23  ;;  %v7505_v47 = vpop.f32.mrb[148].mxu1  ;;  %v5560_v63 = vsel %vm2017_vm1, %v5496_v19, 0.0  ;;  %v5563_v19 = vsel %vm2017_vm1, %v5497_v48, 0.0 }
 0x584   :  { %v4721_v55 = vadd.f32 %v7505_v47, %v11084_v34  ;;  %v4715_v53 = vpop.f32.mrb[149].mxu1  ;;  %5561 = vadd.xlane.f32.xlu1 %v5560_v63  ;;  %5558 = vadd.xlane.f32.xlu0 %v5557_v39  ;;  %v5499_v50 = vand.u32 2147483647, %v5467_v51 }
 0x585   :  { %v5498_v30 = vand.u32 2147483647, %v5466_v38  ;;  %v4716_v58 = vadd.f32 %v11084_v34, %v4715_v53 }
 0x586   :  { %v5469_v29 = vsub.f32 %v11233_v11, %v4721_v55  ;;  %v5569_v63 = vsel %vm2017_vm1, %v5499_v50, 0.0 }
 0x587   :  { %v5468_v22 = vsub.f32 %v11238_v20, %v4716_v58  ;;  %v7508_v41 = vpop.f32.mrb[150].mxu1  ;;  %v5566_v13 = vsel %vm2017_vm1, %v5498_v30, 0.0 }
 0x588   :  { %v4731_v25 = vadd.f32 %v7508_v41, %v11084_v34  ;;  %v4725_v23 = vpop.f32.mrb[151].mxu1  ;;  %5567 = vadd.xlane.f32.xlu1 %v5566_v13  ;;  %5564 = vadd.xlane.f32.xlu0 %v5563_v19  ;;  %v5501_v51 = vand.u32 2147483647, %v5469_v29 }
 0x589   :  { %v5500_v47 = vand.u32 2147483647, %v5468_v22  ;;  %v4726_v38 = vadd.f32 %v11084_v34, %v4725_v23 }
 0x58a   :  { %v5471_v39 = vsub.f32 %v11248_v32, %v4731_v25 }
 0x58b   :  { %v5470_v55 = vsub.f32 %v11252_v16, %v4726_v38  ;;  %v7511_v53 = vpop.f32.mrb[152].mxu1  ;;  %v11398_v58 = vpop.f32.mrb[186].mxu0  ;;  %v5572_v48 = vsel %vm2017_vm1, %v5500_v47, 0.0  ;;  %v5575_v47 = vsel %vm2017_vm1, %v5501_v51, 0.0 }
 0x58c   :  { %v4741_v30 = vadd.f32 %v7511_v53, %v11084_v34  ;;  %v4735_v41 = vpop.f32.mrb[153].mxu1  ;;  %v11402_v13 = vpop.f32.mrb[187].mxu0  ;;  %5573 = vadd.xlane.f32.xlu1 %v5572_v48  ;;  %5570 = vadd.xlane.f32.xlu0 %v5569_v63  ;;  %v5503_v19 = vand.u32 2147483647, %v5471_v39 }
 0x58d   :  { %v5502_v22 = vand.u32 2147483647, %v5470_v55  ;;  %v4736_v50 = vadd.f32 %v11084_v34, %v4735_v41 }
 0x58e   :  { %v5473_v29 = vsub.f32 %v11262_v21, %v4741_v30 }
 0x58f   :  { %v5472_v25 = vsub.f32 %v11266_v44, %v4736_v50  ;;  %v7514_v23 = vpop.f32.mrb[154].mxu1  ;;  %v5578_v38 = vsel %vm2017_vm1, %v5502_v22, 0.0  ;;  %v5581_v22 = vsel %vm2017_vm1, %v5503_v19, 0.0 }
 0x590   :  { %v4751_v53 = vadd.f32 %v7514_v23, %v11084_v34  ;;  %v4745_v16 = vpop.f32.mrb[155].mxu1  ;;  %5579 = vadd.xlane.f32.xlu1 %v5578_v38  ;;  %5576 = vadd.xlane.f32.xlu0 %v5575_v47  ;;  %v5505_v55 = vand.u32 2147483647, %v5473_v29 }
 0x591   :  { %v5504_v48 = vand.u32 2147483647, %v5472_v25  ;;  %v4746_v63 = vadd.f32 %v11084_v34, %v4745_v16 }
 0x592   :  { %v5475_v41 = vsub.f32 %v11277_v7, %v4751_v53  ;;  %v5587_v16 = vsel %vm2017_vm1, %v5505_v55, 0.0 }
 0x593   :  { %v5474_v39 = vsub.f32 %v11284_v27, %v4746_v63  ;;  %v7517_v30 = vpop.f32.mrb[156].mxu1  ;;  %v5584_v50 = vsel %vm2017_vm1, %v5504_v48, 0.0 }
 0x594   :  { %v4761_v51 = vadd.f32 %v7517_v30, %v11084_v34  ;;  %v4755_v44 = vpop.f32.mrb[157].mxu1  ;;  %5585 = vadd.xlane.f32.xlu1 %v5584_v50  ;;  %5582 = vadd.xlane.f32.xlu0 %v5581_v22  ;;  %v5507_v29 = vand.u32 2147483647, %v5475_v41 }
 0x595   :  { %v5506_v23 = vand.u32 2147483647, %v5474_v39  ;;  %v4756_v25 = vadd.f32 %v11084_v34, %v4755_v44 }
 0x596   :  { %v5477_v38 = vsub.f32 %v11294_v12, %v4761_v51  ;;  %v5593_v51 = vsel %vm2017_vm1, %v5507_v29, 0.0 }
 0x597   :  { %v5476_v47 = vsub.f32 %v11298_v56, %v4756_v25  ;;  %v7520_v53 = vpop.f32.mrb[158].mxu1  ;;  %v5590_v48 = vsel %vm2017_vm1, %v5506_v23, 0.0 }
 0x598   :  { %v4771_v19 = vadd.f32 %v7520_v53, %v11084_v34  ;;  %v4765_v63 = vpop.f32.mrb[159].mxu1  ;;  %5591 = vadd.xlane.f32.xlu1 %v5590_v48  ;;  %5588 = vadd.xlane.f32.xlu0 %v5587_v16  ;;  %v5509_v50 = vand.u32 2147483647, %v5477_v38 }
 0x599   :  { %v5508_v30 = vand.u32 2147483647, %v5476_v47  ;;  %v4766_v39 = vadd.f32 %v11084_v34, %v4765_v63 }
 0x59a   :  { %v5479_v44 = vsub.f32 %v11308_v24, %v4771_v19  ;;  %v5599_v29 = vsel %vm2017_vm1, %v5509_v50, 0.0 }
 0x59b   :  { %v5478_v55 = vsub.f32 %v11312_v2, %v4766_v39  ;;  %v7523_v41 = vpop.f32.mrb[160].mxu1  ;;  %v5596_v22 = vsel %vm2017_vm1, %v5508_v30, 0.0 }
 0x59c   :  { %v4781_v23 = vadd.f32 %v7523_v41, %v11084_v34  ;;  %v4775_v25 = vpop.f32.mrb[161].mxu1  ;;  %5597 = vadd.xlane.f32.xlu1 %v5596_v22  ;;  %5594 = vadd.xlane.f32.xlu0 %v5593_v51  ;;  %v5511_v47 = vand.u32 2147483647, %v5479_v44 }
 0x59d   :  { %v5510_v53 = vand.u32 2147483647, %v5478_v55  ;;  %v4776_v16 = vadd.f32 %v11084_v34, %v4775_v25 }
 0x59e   :  { %v5641_v48 = vsub.f32 %v11088_v49, %v4781_v23  ;;  %v5605_v49 = vsel %vm2017_vm1, %v5511_v47, 0.0 }
 0x59f   :  { %v5640_v38 = vsub.f32 %v11093_v10, %v4776_v16  ;;  %v7526_v19 = vpop.f32.mrb[162].mxu1  ;;  %v11431_v63 = vpop.f32.mrb[188].mxu0  ;;  %v5602_v30 = vsel %vm2017_vm1, %v5510_v53, 0.0 }
 0x5a0   :  { %v4791_v39 = vadd.f32 %v7526_v19, %v11084_v34  ;;  %v4785_v41 = vpop.f32.mrb[163].mxu1  ;;  %v11436_v22 = vpop.f32.mrb[189].mxu0  ;;  %5603 = vadd.xlane.f32.xlu1 %v5602_v30  ;;  %5600 = vadd.xlane.f32.xlu0 %v5599_v29  ;;  %v5673_v10 = vand.u32 2147483647, %v5641_v48 }
 0x5a1   :  { %v5672_v55 = vand.u32 2147483647, %v5640_v38  ;;  %v4786_v44 = vadd.f32 %v11084_v34, %v4785_v41 }
 0x5a2   :  { %v5643_v51 = vsub.f32 %v11100_v0, %v4791_v39 }
 0x5a3   :  { %v5642_v23 = vsub.f32 %v11105_v61, %v4786_v44  ;;  %v7529_v25 = vpop.f32.mrb[164].mxu1  ;;  %v5704_v50 = vsel %vm2017_vm1, %v5672_v55, 0.0  ;;  %v5707_v61 = vsel %vm2017_vm1, %v5673_v10, 0.0 }
 0x5a4   :  { %v4801_v53 = vadd.f32 %v7529_v25, %v11084_v34  ;;  %v4795_v16 = vpop.f32.mrb[165].mxu1  ;;  %5705 = vadd.xlane.f32.xlu1 %v5704_v50  ;;  %5606 = vadd.xlane.f32.xlu0 %v5605_v49  ;;  %v5675_v29 = vand.u32 2147483647, %v5643_v51 }
 0x5a5   :  { %v5674_v19 = vand.u32 2147483647, %v5642_v23  ;;  %v4796_v38 = vadd.f32 %v11084_v34, %v4795_v16 }
 0x5a6   :  { %v5645_v30 = vsub.f32 %v11119_v28, %v4801_v53  ;;  %v5713_v25 = vsel %vm2017_vm1, %v5675_v29, 0.0 }
 0x5a7   :  { %v5644_v47 = vsub.f32 %v11123_v8, %v4796_v38  ;;  %v7532_v48 = vpop.f32.mrb[166].mxu1  ;;  %v5710_v0 = vsel %vm2017_vm1, %v5674_v19, 0.0 }
 0x5a8   :  { %v4811_v39 = vadd.f32 %v7532_v48, %v11084_v34  ;;  %v4805_v41 = vpop.f32.mrb[167].mxu1  ;;  %5711 = vadd.xlane.f32.xlu1 %v5710_v0  ;;  %5708 = vadd.xlane.f32.xlu0 %v5707_v61  ;;  %v5677_v49 = vand.u32 2147483647, %v5645_v30 }
 0x5a9   :  { %v5676_v55 = vand.u32 2147483647, %v5644_v47  ;;  %v4806_v44 = vadd.f32 %v11084_v34, %v4805_v41 }
 0x5aa   :  { %v5647_v23 = vsub.f32 %v11132_v15, %v4811_v39  ;;  %v5719_v19 = vsel %vm2017_vm1, %v5677_v49, 0.0 }
 0x5ab   :  { %v5646_v28 = vsub.f32 %v11136_v40, %v4806_v44  ;;  %v7535_v51 = vpop.f32.mrb[168].mxu1  ;;  %v5716_v8 = vsel %vm2017_vm1, %v5676_v55, 0.0 }
 0x5ac   :  { %v4821_v10 = vadd.f32 %v7535_v51, %v11084_v34  ;;  %v4815_v50 = vpop.f32.mrb[169].mxu1  ;;  %5717 = vadd.xlane.f32.xlu1 %v5716_v8  ;;  %5714 = vadd.xlane.f32.xlu0 %v5713_v25  ;;  %v5679_v38 = vand.u32 2147483647, %v5647_v23 }
 0x5ad   :  { %v5678_v53 = vand.u32 2147483647, %v5646_v28  ;;  %v4816_v16 = vadd.f32 %v11084_v34, %v4815_v50 }
 0x5ae   :  { %v5649_v15 = vsub.f32 %v11145_v18, %v4821_v10  ;;  %v5725_v49 = vsel %vm2017_vm1, %v5679_v38, 0.0 }
 0x5af   :  { %v5648_v40 = vsub.f32 %v11150_v62, %v4816_v16  ;;  %v7538_v30 = vpop.f32.mrb[170].mxu1  ;;  %v5722_v47 = vsel %vm2017_vm1, %v5678_v53, 0.0 }
 0x5b0   :  { %v4831_v29 = vadd.f32 %v7538_v30, %v11084_v34  ;;  %v11462_v48 = vpop.f32.mrb[171].mxu1  ;;  %5723 = vadd.xlane.f32.xlu1 %v5722_v47  ;;  %5720 = vadd.xlane.f32.xlu0 %v5719_v19  ;;  %v5681_v55 = vand.u32 2147483647, %v5649_v15  ;;  %v11476_v51 = vpop.xlane.xlu1 %5323 }
 0x5b1   :  { %12469 = vst [vmem:[#allocation24_spill] sm:$0xff] %v11462_v48  ;;  %v5680_v0 = vand.u32 2147483647, %v5648_v40  ;;  %v11464_v61 = vpop.f32.mrb[190].mxu0  ;;  %v11466_v39 = vpop.xlane.xlu0 %5320 }
 0x5b2   :  { %12470 = vst [vmem:[#allocation27_spill] sm:$0xff] %v11464_v61  ;;  %v11468_v41 = vpop.f32.mrb[191].mxu0  ;;  %v5651_v18 = vsub.f32 %v11160_v35, %v4831_v29  ;;  %v5731_v35 = vsel %vm2017_vm1, %v5681_v55, 0.0 }
 0x5b3   :  { %v7541_v62 = vpop.f32.mrb[172].mxu1  ;;  %v5728_v44 = vsel %vm2017_vm1, %v5680_v0, 0.0 }
 0x5b4   :  { %v4841_v23 = vadd.f32 %v7541_v62, %v11084_v34  ;;  %v11474_v28 = vpop.f32.mrb[173].mxu1  ;;  %5729 = vadd.xlane.f32.xlu1 %v5728_v44  ;;  %5726 = vadd.xlane.f32.xlu0 %v5725_v49  ;;  %v5683_v25 = vand.u32 2147483647, %v5651_v18 }
 0x5b5   :  { %12471 = vst [vmem:[#allocation28_spill] sm:$0xff] %v11474_v28  ;;  %v11478_v8 = vpop.xlane.xlu0 %5329 }
 0x5b6   :  { %v5653_v10 = vsub.f32 %v11174_v57, %v4841_v23  ;;  %v5737_v47 = vsel %vm2017_vm1, %v5683_v25, 0.0  ;;  %v11494_v57 = vld [vmem:[%s11974_s6] ss:$0 sm:$0xff]  ;;  %s8032_s6 = smov [#allocation3]  }
 0x5b7   :  { %v7544_v50 = vpop.f32.mrb[174].mxu1  ;;  %s6109_s24 = sshll.u32 %s8032_s6, 4  ;;  %s6110_s24 = int_to_ptr.vmem [resolvable:$true] %s6109_s24 }
 0x5b8   :  { %v4851_v53 = vadd.f32 %v7544_v50, %v11084_v34  ;;  %v11483_v16 = vpop.f32.mrb[175].mxu1  ;;  %5732 = vadd.xlane.f32.xlu0 %v5731_v35  ;;  %v5685_v15 = vand.u32 2147483647, %v5653_v10  ;;  %s8003_s10 = scalar_lea.vmem %s6110_s24, 768  ;;  %p8008_p1 = scmp.lt.s32.totalorder %s6110_s24, %s6110_s24 }
 0x5b9   :  { %12472 = vst [vmem:[#allocation30_spill] sm:$0xff] %v11483_v16  ;;  %v11485_v19 = vpop.xlane.xlu1 %5332  ;;  %v11487_v38 = vpop.xlane.xlu0 %5326  ;;  %p8004_p0 = scmp.ne.s32.totalorder %s6110_s24, %s8003_s10  ;;  %p8009_p2 = scmp.lt.s32.totalorder %s8003_s10, %s8003_s10 }
 0x5ba   :  { %v5655_v40 = vsub.f32 %v11187_v45, %v4851_v53  ;;  %v5743_v44 = vsel %vm2017_vm1, %v5685_v15, 0.0 }
 0x5bb   :  { %v7547_v30 = vpop.f32.mrb[176].mxu1  ;;  %p8010_p3 = por %p8009_p2, %p8008_p1 }
 0x5bc   :  { %v4861_v34 = vadd.f32 %v11494_v57, %v7547_v30  ;;  %v11497_v29 = vpop.f32.mrb[177].mxu1  ;;  %5738 = vadd.xlane.f32.xlu0 %v5737_v47  ;;  %v5687_v18 = vand.u32 2147483647, %v5655_v40 }
 0x5bd   :  { %12473 = vst [vmem:[#allocation31_spill] sm:$0xff] %v11497_v29  ;;  %v11499_v0 = vpop.xlane.xlu1 %5338  ;;  %v11501_v55 = vpop.xlane.xlu0 %5335  ;;  %p8011_p4 = pnand %p8010_p3, %p8004_p0 }
 0x5be   :  { %v5657_v45 = vsub.f32 %v11206_v9, %v4861_v34  ;;  %v5749_v40 = vsel %vm2017_vm1, %v5687_v18, 0.0 }
 0x5bf   :  { %v7550_v62 = vpop.f32.mrb[178].mxu1 }
 0x5c0   :  { %v4871_v49 = vadd.f32 %v11494_v57, %v7550_v62  ;;  %v11506_v23 = vpop.f32.mrb[179].mxu1  ;;  %5744 = vadd.xlane.f32.xlu0 %v5743_v44  ;;  %v5689_v50 = vand.u32 2147483647, %v5657_v45 }
 0x5c1   :  { %12474 = vst [vmem:[#allocation34_spill] sm:$0xff] %v11506_v23  ;;  %v11508_v25 = vpop.xlane.xlu1 %5344  ;;  %v11510_v10 = vpop.xlane.xlu0 %5341 }
 0x5c2   :  { %v5659_v35 = vsub.f32 %v11220_v46, %v4871_v49  ;;  %v5755_v45 = vsel %vm2017_vm1, %v5689_v50, 0.0 }
 0x5c3   :  { %v7553_v53 = vpop.f32.mrb[180].mxu1 }
 0x5c4   :  { %v4881_v9 = vadd.f32 %v11494_v57, %v7553_v53  ;;  %v11515_v30 = vpop.f32.mrb[181].mxu1  ;;  %5750 = vadd.xlane.f32.xlu0 %v5749_v40  ;;  %v5691_v34 = vand.u32 2147483647, %v5659_v35 }
 0x5c5   :  { %12475 = vst [vmem:[#allocation36_spill] sm:$0xff] %v11515_v30  ;;  %v11517_v15 = vpop.xlane.xlu1 %5350  ;;  %v11519_v47 = vpop.xlane.xlu0 %5347 }
 0x5c6   :  { %v5661_v62 = vsub.f32 %v11233_v11, %v4881_v9  ;;  %v5761_v35 = vsel %vm2017_vm1, %v5691_v34, 0.0 }
 0x5c7   :  { %v7556_v44 = vpop.f32.mrb[182].mxu1 }
 0x5c8   :  { %v4891_v46 = vadd.f32 %v11494_v57, %v7556_v44  ;;  %v11524_v49 = vpop.f32.mrb[183].mxu1  ;;  %5756 = vadd.xlane.f32.xlu0 %v5755_v45  ;;  %v5693_v40 = vand.u32 2147483647, %v5661_v62 }
 0x5c9   :  { %12476 = vst [vmem:[#allocation33_spill] sm:$0xff] %v11524_v49  ;;  %v11526_v18 = vpop.xlane.xlu1 %5356  ;;  %v11528_v53 = vpop.xlane.xlu0 %5353  ;;  %v5107_v49 = vadd.f32 %v11494_v57, %v10863_v33  ;;  %v5122_v33 = vadd.f32 %v11494_v57, %v10883_v26  ;;  %v5421_v26 = vmul.f32 0.0625, %v11501_v55 }
 0x5ca   :  { %v5663_v24 = vsub.f32 %v11248_v32, %v4891_v46  ;;  %v5767_v62 = vsel %vm2017_vm1, %v5693_v40, 0.0 }
 0x5cb   :  { %v7559_v2 = vpop.f32.mrb[184].mxu1 }
 0x5cc   :  { %v4901_v11 = vadd.f32 %v11494_v57, %v7559_v2  ;;  %v11533_v9 = vpop.f32.mrb[185].mxu1  ;;  %5762 = vadd.xlane.f32.xlu0 %v5761_v35  ;;  %v5695_v45 = vand.u32 2147483647, %v5663_v24 }
 0x5cd   :  { %12477 = vst [vmem:[#allocation40_spill] sm:$0xff] %v11533_v9  ;;  %v11535_v50 = vpop.xlane.xlu1 %5362  ;;  %v11537_v44 = vpop.xlane.xlu0 %5359 }
 0x5ce   :  { %v5665_v12 = vsub.f32 %v11262_v21, %v4901_v11  ;;  %v5773_v7 = vsel %vm2017_vm1, %v5695_v45, 0.0 }
 0x5cf   :  { %v11540_v56 = vpop.f32.mrb[186].mxu1 }
 0x5d0   :  { %12478 = vst [vmem:[#allocation38_spill] sm:$0xff] %v11540_v56  ;;  %v11543_v32 = vpop.f32.mrb[187].mxu1  ;;  %5768 = vadd.xlane.f32.xlu0 %v5767_v62  ;;  %v5697_v46 = vand.u32 2147483647, %v5665_v12 }
 0x5d1   :  { %12479 = vst [vmem:[#allocation6_spill] sm:$0xff] %v11543_v32  ;;  %v11545_v34 = vpop.xlane.xlu1 %5368  ;;  %v11547_v2 = vpop.xlane.xlu0 %5365 }
 0x5d2   :  { %v5779_v11 = vsel %vm2017_vm1, %v5697_v46, 0.0 }
 0x5d3   :  { %v11549_v35 = vpop.f32.mrb[188].mxu1 }
 0x5d4   :  { %12480 = vst [vmem:[#allocation42_spill] sm:$0xff] %v11549_v35  ;;  %v11552_v27 = vpop.f32.mrb[189].mxu1  ;;  %5774 = vadd.xlane.f32.xlu0 %v5773_v7 }
 0x5d5   :  { %12481 = vst [vmem:[#allocation8_spill] sm:$0xff] %v11552_v27  ;;  %v11554_v21 = vpop.xlane.xlu1 %5374  ;;  %v11556_v24 = vpop.xlane.xlu0 %5371 }
 0x5d7   :  { %v11558_v40 = vpop.f32.mrb[190].mxu1 }
 0x5d8   :  { %12482 = vst [vmem:[#allocation7_spill] sm:$0xff] %v11558_v40  ;;  %v11561_v62 = vpop.f32.mrb[191].mxu1  ;;  %5780 = vadd.xlane.f32.xlu0 %v5779_v11  ;;  %v5097_v40 = vadd.f32 %v11494_v57, %v10825_v43  ;;  %v5102_v11 = vadd.f32 %v11494_v57, %v10819_v6  ;;  %v5112_v43 = vadd.f32 %v11494_v57, %v10857_v60  ;;  %v5420_v60 = vmul.f32 0.0625, %v11485_v19 }
 0x5d9   :  { %12483 = vst [vmem:[#allocation11_spill] sm:$0xff] %v11561_v62  ;;  %v11563_v56 = vpop.xlane.xlu1 %5380  ;;  %v11565_v12 = vpop.xlane.xlu0 %5377  ;;  %v5117_v6 = vadd.f32 %v11494_v57, %v10886_v3  ;;  %v5127_v3 = vadd.f32 %v11494_v57, %v10928_v37 }
 0x5dd   :  { %v11567_v35 = vpop.xlane.xlu1 %5386  ;;  %v11569_v45 = vpop.xlane.xlu0 %5383 }
 0x5e1   :  { %v11571_v7 = vpop.xlane.xlu1 %5392  ;;  %v11573_v27 = vpop.xlane.xlu0 %5389 }
 0x5e5   :  { %v11577_v32 = vpop.xlane.xlu1 %5398  ;;  %v11579_v46 = vpop.xlane.xlu0 %5395 }
 0x5e7   :  { %5898 = vxpose.xlu1.b32.start [1/16] (narrow) %v5097_v40, 16 }
 0x5e9   :  { %v11583_v62 = vpop.xlane.xlu1 %5404  ;;  %v11585_v9 = vpop.xlane.xlu0 %5401 }
 0x5eb   :  { %5899 = vxpose.xlu1.b32.cont [2/16] (narrow) %v5102_v11, 16 }
 0x5ed   :  { %v11589_v20 = vpop.xlane.xlu1 %5410  ;;  %v11591_v30 = vpop.xlane.xlu0 %5407 }
 0x5ef   :  { %5900 = vxpose.xlu1.b32.cont [3/16] (narrow) %v5107_v49, 16 }
 0x5f1   :  { %v11595_v40 = vpop.xlane.xlu1 %5513  ;;  %v11597_v5 = vpop.xlane.xlu0 %5413 }
 0x5f3   :  { %5901 = vxpose.xlu1.b32.cont [4/16] (narrow) %v5112_v43, 16 }
 0x5f5   :  { %v11601_v11 = vpop.xlane.xlu1 %5519  ;;  %v11603_v23 = vpop.xlane.xlu0 %5516 }
 0x5f7   :  { %5902 = vxpose.xlu1.b32.cont [5/16] (narrow) %v5117_v6, 16  ;;  %v5422_v6 = vmul.f32 0.0625, %v11499_v0  ;;  %v5423_v0 = vmul.f32 0.0625, %v11510_v10  ;;  %v5426_v10 = vmul.f32 0.0625, %v11517_v15 }
 0x5f9   :  { %v5526_v49 = vpop.xlane.xlu1 %5525  ;;  %v11607_v17 = vpop.xlane.xlu0 %5522 }
 0x5fa   :  { %v5612_v29 = vmul.f32 0.0625, %v5526_v49 }
 0x5fb   :  { %5903 = vxpose.xlu1.b32.cont [6/16] (narrow) %v5122_v33, 16 }
 0x5fc   :  { %v11611_v43 = vsel %vm5832_vm2, %v5420_v60, %v5612_v29  ;;  %v5132_v29 = vadd.f32 %v11494_v57, %v10924_v31  ;;  %v5424_v60 = vmul.f32 0.0625, %v11508_v25  ;;  %v5137_v31 = vadd.f32 %v11494_v57, %v10960_v59 }
 0x5fd   :  { %v5532_v16 = vpop.xlane.xlu1 %5531  ;;  %v5529_v28 = vpop.xlane.xlu0 %5528  ;;  %v5142_v59 = vadd.f32 %v11494_v57, %v10953_v36  ;;  %v12484_v36 = vld [vmem:[#allocation135_spill] sm:$0xff] }
 0x5fe   :  { %v5614_v52 = vmul.f32 0.0625, %v5532_v16  ;;  %v5613_v61 = vmul.f32 0.0625, %v5529_v28  ;;  %v5177_v28 = vadd.f32 %v11494_v57, %v11113_v54  ;;  %v5182_v54 = vadd.f32 %v11494_v57, %v11109_v14 }
 0x5ff   :  { %5904 = vxpose.xlu1.b32.cont [7/16] (narrow) %v5127_v3, 16  ;;  %v5425_v3 = vmul.f32 0.0625, %v11519_v47  ;;  %v5428_v47 = vmul.f32 0.0625, %v11526_v18  ;;  %v5187_v14 = vadd.f32 %v11494_v57, %v11202_v42  ;;  %v12485_v42 = vld [vmem:[#allocation141_spill] sm:$0xff] }
 0x600   :  { %v11618_v19 = vsel %vm5832_vm2, %v5422_v6, %v5614_v52  ;;  %v11621_v33 = vsel %vm5832_vm2, %v5421_v26, %v5613_v61 }
 0x601   :  { %v5538_v49 = vpop.xlane.xlu1 %5537  ;;  %v5535_v37 = vpop.xlane.xlu0 %5534 }
 0x602   :  { %v5616_v48 = vmul.f32 0.0625, %v5538_v49  ;;  %v5615_v55 = vmul.f32 0.0625, %v5535_v37  ;;  %v5427_v37 = vmul.f32 0.0625, %v11528_v53  ;;  %v5430_v53 = vmul.f32 0.0625, %v11535_v50 }
 0x603   :  { %5905 = vxpose.xlu1.b32.cont [8/16] (narrow) %v5132_v29, 16 }
 0x604   :  { %v11630_v52 = vsel %vm5832_vm2, %v5424_v60, %v5616_v48  ;;  %v11633_v61 = vsel %vm5832_vm2, %v5423_v0, %v5615_v55 }
 0x605   :  { %v5544_v16 = vpop.xlane.xlu1 %5543  ;;  %5930 = vxpose.xlu0.b32.start [1/16] (narrow) %v5177_v28, 16  ;;  %v5541_v25 = vpop.xlane.xlu0 %5540 }
 0x606   :  { %v5618_v6 = vmul.f32 0.0625, %v5544_v16  ;;  %v5617_v26 = vmul.f32 0.0625, %v5541_v25  ;;  %v5429_v25 = vmul.f32 0.0625, %v11537_v44  ;;  %v5432_v44 = vmul.f32 0.0625, %v11545_v34 }
 0x607   :  { %5906 = vxpose.xlu1.b32.cont [9/16] (narrow) %v5137_v31, 16  ;;  %v5147_v31 = vadd.f32 %v11494_v57, %v12484_v36 }
 0x608   :  { %v11642_v48 = vsel %vm5832_vm2, %v5426_v10, %v5618_v6  ;;  %v11645_v29 = vsel %vm5832_vm2, %v5425_v3, %v5617_v26  ;;  %v5192_v6 = vadd.f32 %v11494_v57, %v12485_v42  ;;  %v12489_v42 = vld [vmem:[#allocation10_spill] sm:$0xff] }
 0x609   :  { %v5550_v49 = vpop.xlane.xlu1 %5549  ;;  %5931 = vxpose.xlu0.b32.cont [2/16] (narrow) %v5182_v54, 16  ;;  %v5547_v15 = vpop.xlane.xlu0 %5546 }
 0x60a   :  { %v5620_v60 = vmul.f32 0.0625, %v5550_v49  ;;  %v5619_v0 = vmul.f32 0.0625, %v5547_v15 }
 0x60b   :  { %5907 = vxpose.xlu1.b32.cont [10/16] (narrow) %v5142_v59, 16  ;;  %v12486_v59 = vld [vmem:[#allocation134_spill] sm:$0xff] }
 0x60c   :  { %v11654_v55 = vsel %vm5832_vm2, %v5428_v47, %v5620_v60  ;;  %v11657_v28 = vsel %vm5832_vm2, %v5427_v37, %v5619_v0  ;;  %v5152_v49 = vadd.f32 %v11494_v57, %v12486_v59  ;;  %v5431_v47 = vmul.f32 0.0625, %v11547_v2  ;;  %v12487_v0 = vld [vmem:[#allocation13_spill] sm:$0xff] }
 0x60d   :  { %v5556_v16 = vpop.xlane.xlu1 %5555  ;;  %5932 = vxpose.xlu0.b32.cont [3/16] (narrow) %v5187_v14, 16  ;;  %v5553_v18 = vpop.xlane.xlu0 %5552  ;;  %v5197_v14 = vadd.f32 %v11494_v57, %v12487_v0  ;;  %v5434_v2 = vmul.f32 0.0625, %v11554_v21  ;;  %v12491_v0 = vld [vmem:[#allocation25_spill] sm:$0xff] }
 0x60e   :  { %v5622_v10 = vmul.f32 0.0625, %v5556_v16  ;;  %v5621_v3 = vmul.f32 0.0625, %v5553_v18  ;;  %v12488_v16 = vld [vmem:[#allocation147_spill] sm:$0xff] }
 0x60f   :  { %5908 = vxpose.xlu1.b32.cont [11/16] (narrow) %v5147_v31, 16  ;;  %v5157_v18 = vadd.f32 %v11494_v57, %v12488_v16 }
 0x610   :  { %v11666_v26 = vsel %vm5832_vm2, %v5430_v53, %v5622_v10  ;;  %v11669_v54 = vsel %vm5832_vm2, %v5429_v25, %v5621_v3  ;;  %v5433_v25 = vmul.f32 0.0625, %v11556_v24  ;;  %v5436_v24 = vmul.f32 0.0625, %v11563_v56 }
 0x611   :  { %v5562_v15 = vpop.xlane.xlu1 %5561  ;;  %5933 = vxpose.xlu0.b32.cont [4/16] (narrow) %v5192_v6, 16  ;;  %v5559_v50 = vpop.xlane.xlu0 %5558  ;;  %v5202_v6 = vadd.f32 %v11494_v57, %v12489_v42  ;;  %v12493_v42 = vld [vmem:[#allocation22_spill] sm:$0xff] }
 0x612   :  { %v5624_v37 = vmul.f32 0.0625, %v5562_v15  ;;  %v5623_v60 = vmul.f32 0.0625, %v5559_v50  ;;  %v12490_v15 = vld [vmem:[#allocation136_spill] sm:$0xff] }
 0x613   :  { %5909 = vxpose.xlu1.b32.cont [12/16] (narrow) %v5152_v49, 16  ;;  %v5162_v50 = vadd.f32 %v11494_v57, %v12490_v15 }
 0x614   :  { %v11678_v36 = vsel %vm5832_vm2, %v5432_v44, %v5624_v37  ;;  %v11681_v31 = vsel %vm5832_vm2, %v5431_v47, %v5623_v60  ;;  %v5435_v47 = vmul.f32 0.0625, %v11565_v12  ;;  %v5438_v12 = vmul.f32 0.0625, %v11567_v35 }
 0x615   :  { %v5568_v53 = vpop.xlane.xlu1 %5567  ;;  %5934 = vxpose.xlu0.b32.cont [5/16] (narrow) %v5197_v14, 16  ;;  %v5565_v34 = vpop.xlane.xlu0 %5564  ;;  %v5207_v14 = vadd.f32 %v11494_v57, %v12491_v0  ;;  %v5217_v0 = vadd.f32 %v11494_v57, %v11368_v4 }
 0x616   :  { %v5626_v10 = vmul.f32 0.0625, %v5568_v53  ;;  %v5625_v3 = vmul.f32 0.0625, %v5565_v34  ;;  %v12492_v53 = vld [vmem:[#allocation138_spill] sm:$0xff] }
 0x617   :  { %5910 = vxpose.xlu1.b32.cont [13/16] (narrow) %v5157_v18, 16  ;;  %v5167_v34 = vadd.f32 %v11494_v57, %v12492_v53 }
 0x618   :  { %v11690_v59 = vsel %vm5832_vm2, %v5434_v2, %v5626_v10  ;;  %v11693_v49 = vsel %vm5832_vm2, %v5433_v25, %v5625_v3  ;;  %v5437_v25 = vmul.f32 0.0625, %v11569_v45  ;;  %v5440_v45 = vmul.f32 0.0625, %v11571_v7 }
 0x619   :  { %v5574_v44 = vpop.xlane.xlu1 %5573  ;;  %5935 = vxpose.xlu0.b32.cont [6/16] (narrow) %v5202_v6, 16  ;;  %v5571_v21 = vpop.xlane.xlu0 %5570  ;;  %v5212_v6 = vadd.f32 %v11494_v57, %v12493_v42  ;;  %v5441_v7 = vmul.f32 0.0625, %v11579_v46 }
 0x61a   :  { %v5628_v37 = vmul.f32 0.0625, %v5574_v44  ;;  %v5627_v60 = vmul.f32 0.0625, %v5571_v21  ;;  %v12494_v44 = vld [vmem:[#allocation137_spill] sm:$0xff] }
 0x61b   :  { %5911 = vxpose.xlu1.b32.cont [14/16] (narrow) %v5162_v50, 16  ;;  %v5172_v21 = vadd.f32 %v11494_v57, %v12494_v44 }
 0x61c   :  { %v11702_v16 = vsel %vm5832_vm2, %v5436_v24, %v5628_v37  ;;  %v11705_v18 = vsel %vm5832_vm2, %v5435_v47, %v5627_v60  ;;  %v5439_v47 = vmul.f32 0.0625, %v11573_v27 }
 0x61d   :  { %v5580_v2 = vpop.xlane.xlu1 %5579  ;;  %5936 = vxpose.xlu0.b32.cont [7/16] (narrow) %v5207_v14, 16  ;;  %v5577_v56 = vpop.xlane.xlu0 %5576 }
 0x61e   :  { %v5630_v10 = vmul.f32 0.0625, %v5580_v2  ;;  %v5629_v3 = vmul.f32 0.0625, %v5577_v56  ;;  %v5442_v56 = vmul.f32 0.0625, %v11577_v32  ;;  %v5443_v32 = vmul.f32 0.0625, %v11585_v9 }
 0x61f   :  { %5912 = vxpose.xlu1.b32.cont [15/16] (narrow) %v5167_v34, 16 }
 0x620   :  { %v11714_v15 = vsel %vm5832_vm2, %v5438_v12, %v5630_v10  ;;  %v11717_v50 = vsel %vm5832_vm2, %v5437_v25, %v5629_v3  ;;  %v5222_v25 = vadd.f32 %v11494_v57, %v11363_v1 }
 0x621   :  { %v5586_v24 = vpop.xlane.xlu1 %5585  ;;  %5937 = vxpose.xlu0.b32.cont [8/16] (narrow) %v5212_v6, 16  ;;  %v5583_v35 = vpop.xlane.xlu0 %5582  ;;  %v5444_v6 = vmul.f32 0.0625, %v11583_v62  ;;  %v5445_v62 = vmul.f32 0.0625, %v11591_v30  ;;  %v5447_v30 = vmul.f32 0.0625, %v11597_v5  ;;  %v5418_v5 = vmul.f32 0.0625, %v11487_v38 }
 0x622   :  { %v5632_v37 = vmul.f32 0.0625, %v5586_v24  ;;  %v5631_v60 = vmul.f32 0.0625, %v5583_v35  ;;  %v5419_v38 = vmul.f32 0.0625, %v11478_v8 }
 0x623   :  { %5913 = vxpose.xlu1.b32.end [16/16] (narrow) %v5172_v21, 16  ;;  %v5227_v21 = vadd.f32 %v11494_v57, %v11402_v13  ;;  %v5608_v13 = vmul.f32 0.0625, %v11595_v40 }
 0x624   :  { %v11726_v14 = vsel %vm5832_vm2, %v5440_v45, %v5632_v37  ;;  %v11729_v53 = vsel %vm5832_vm2, %v5439_v47, %v5631_v60  ;;  %v5446_v47 = vmul.f32 0.0625, %v11589_v20  ;;  %v5232_v60 = vadd.f32 %v11494_v57, %v11398_v58 }
 0x625   :  { %v5592_v34 = vpop.xlane.xlu1 %5591  ;;  %5938 = vxpose.xlu0.b32.cont [9/16] (narrow) %v5217_v0, 16  ;;  %v5589_v2 = vpop.xlane.xlu0 %5588  ;;  %v5237_v58 = vadd.f32 %v11494_v57, %v11436_v22 }
 0x626   :  { %v5634_v27 = vmul.f32 0.0625, %v5592_v34  ;;  %v5633_v12 = vmul.f32 0.0625, %v5589_v2  ;;  %v5416_v2 = vmul.f32 0.0625, %v11466_v39 }
 0x628   :  { %v11736_v4 = vsel %vm5832_vm2, %v5442_v56, %v5634_v27  ;;  %v11739_v10 = vsel %vm5832_vm2, %v5441_v7, %v5633_v12  ;;  %v5833_v40 = vsel %vm5832_vm2, %v5416_v2, %v5608_v13  ;;  %v5610_v12 = vmul.f32 0.0625, %v11601_v11  ;;  %v12495_v13 = vld [vmem:[#allocation24_spill] sm:$0xff] }
 0x629   :  { %v5598_v3 = vpop.xlane.xlu1 %5597  ;;  %5939 = vxpose.xlu0.b32.cont [10/16] (narrow) %v5222_v25, 16  ;;  %v5595_v42 = vpop.xlane.xlu0 %5594  ;;  %v5609_v25 = vmul.f32 0.0625, %v11603_v23  ;;  %v5242_v11 = vadd.f32 %v11494_v57, %v11431_v63  ;;  %v5247_v63 = vadd.f32 %v11494_v57, %v11468_v41  ;;  %v4826_v8 = vadd.f32 %v11494_v57, %v12495_v13 }
 0x62a   :  { %v5636_v44 = vmul.f32 0.0625, %v5598_v3  ;;  %v5635_v46 = vmul.f32 0.0625, %v5595_v42  ;;  %v5417_v42 = vmul.f32 0.0625, %v11476_v51  ;;  %v5835_v23 = vsel %vm5832_vm2, %v5418_v5, %v5610_v12  ;;  %v12498_v12 = vld [vmem:[#allocation28_spill] sm:$0xff] }
 0x62c   :  { %v11746_v1 = vsel %vm5832_vm2, %v5444_v6, %v5636_v44  ;;  %v11749_v24 = vsel %vm5832_vm2, %v5443_v32, %v5635_v46  ;;  %v5834_v46 = vsel %vm5832_vm2, %v5417_v42, %v5609_v25  ;;  %v4836_v25 = vadd.f32 %v11494_v57, %v12498_v12 }
 0x62d   :  { %v5604_v35 = vpop.xlane.xlu1 %5603  ;;  %5940 = vxpose.xlu0.b32.cont [11/16] (narrow) %v5227_v21, 16  ;;  %v5601_v45 = vpop.xlane.xlu0 %5600  ;;  %v5611_v21 = vmul.f32 0.0625, %v11607_v17 }
 0x62e   :  { %v5638_v37 = vmul.f32 0.0625, %v5604_v35  ;;  %v5637_v9 = vmul.f32 0.0625, %v5601_v45 }
 0x630   :  { %v11757_v0 = vsel %vm5832_vm2, %v5446_v47, %v5638_v37  ;;  %v11760_v34 = vsel %vm5832_vm2, %v5445_v62, %v5637_v9  ;;  %v5836_v9 = vsel %vm5832_vm2, %v5419_v38, %v5611_v21 }
 0x631   :  { %v5706_v56 = vpop.xlane.xlu1 %5705  ;;  %5941 = vxpose.xlu0.b32.cont [12/16] (narrow) %v5232_v60, 16  ;;  %v5607_v20 = vpop.xlane.xlu0 %5606 }
 0x632   :  { %v5800_v7 = vmul.f32 0.0625, %v5706_v56  ;;  %v5639_v27 = vmul.f32 0.0625, %v5607_v20 }
 0x634   :  { %v11770_v3 = vsel %vm5865_vm3, %v5833_v40, %v5800_v7  ;;  %v11773_v39 = vsel %vm5832_vm2, %v5447_v30, %v5639_v27  ;;  %v12496_v7 = vld [vmem:[#allocation27_spill] sm:$0xff] }
 0x635   :  { %v5712_v6 = vpop.xlane.xlu1 %5711  ;;  %5942 = vxpose.xlu0.b32.cont [13/16] (narrow) %v5237_v58, 16  ;;  %v5709_v32 = vpop.xlane.xlu0 %5708  ;;  %v5252_v41 = vadd.f32 %v11494_v57, %v12496_v7  ;;  %v12497_v58 = vld [vmem:[#allocation148_spill] sm:$0xff] }
 0x636   :  { %v5802_v22 = vmul.f32 0.0625, %v5712_v6  ;;  %v5801_v44 = vmul.f32 0.0625, %v5709_v32  ;;  %v5650_v40 = vsub.f32 %v12497_v58, %v4826_v8 }
 0x638   :  { %v11783_v35 = vsel %vm5865_vm3, %v5835_v23, %v5802_v22  ;;  %v11786_v51 = vsel %vm5865_vm3, %v5834_v46, %v5801_v44  ;;  %v12499_v44 = vld [vmem:[#allocation139_spill] sm:$0xff]  ;;  %v12500_v23 = vld [vmem:[#allocation30_spill] sm:$0xff] }
 0x639   :  { %v5718_v45 = vpop.xlane.xlu1 %5717  ;;  %5943 = vxpose.xlu0.b32.cont [14/16] (narrow) %v5242_v11, 16  ;;  %v5715_v47 = vpop.xlane.xlu0 %5714  ;;  %v5652_v11 = vsub.f32 %v12499_v44, %v4836_v25  ;;  %v4846_v46 = vadd.f32 %v11494_v57, %v12500_v23  ;;  %v12505_v25 = vld [vmem:[#allocation143_spill] sm:$0xff]  ;;  %v12507_v23 = vld [vmem:[#allocation144_spill] sm:$0xff] }
 0x63a   :  { %v5804_v62 = vmul.f32 0.0625, %v5718_v45  ;;  %v5803_v37 = vmul.f32 0.0625, %v5715_v47 }
 0x63b   :  { %v5684_v47 = vand.u32 2147483647, %v5652_v11 }
 0x63c   :  { %v11794_v17 = vsel %vm5865_vm3, %v11611_v43, %v5804_v62  ;;  %v11797_v60 = vsel %vm5865_vm3, %v5836_v9, %v5803_v37  ;;  %v12501_v62 = vld [vmem:[#allocation140_spill] sm:$0xff]  ;;  %v12502_v37 = vld [vmem:[#allocation31_spill] sm:$0xff] }
 0x63d   :  { %v5724_v2 = vpop.xlane.xlu1 %5723  ;;  %5944 = vxpose.xlu0.b32.cont [15/16] (narrow) %v5247_v63, 16  ;;  %v5721_v56 = vpop.xlane.xlu0 %5720  ;;  %v4856_v63 = vadd.f32 %v11494_v57, %v12502_v37 }
 0x63e   :  { %v5806_v20 = vmul.f32 0.0625, %v5724_v2  ;;  %v5805_v30 = vmul.f32 0.0625, %v5721_v56  ;;  %v12503_v56 = vld [vmem:[#allocation142_spill] sm:$0xff] }
 0x640   :  { %v11805_v27 = vsel %vm5865_vm3, %v11618_v19, %v5806_v20  ;;  %v11809_v43 = vsel %vm5865_vm3, %v11621_v33, %v5805_v30  ;;  %v5682_v33 = vand.u32 2147483647, %v5650_v40  ;;  %v5656_v20 = vsub.f32 %v12503_v56, %v4856_v63  ;;  %v12509_v63 = vld [vmem:[#allocation146_spill] sm:$0xff] }
 0x641   :  { %v5730_v42 = vpop.xlane.xlu1 %5729  ;;  %5945 = vxpose.xlu0.b32.end [16/16] (narrow) %v5252_v41, 16  ;;  %v5727_v5 = vpop.xlane.xlu0 %5726  ;;  %v5740_v41 = vsel %vm2017_vm1, %v5684_v47, 0.0 }
 0x642   :  { %v5808_v6 = vmul.f32 0.0625, %v5730_v42  ;;  %v5807_v32 = vmul.f32 0.0625, %v5727_v5  ;;  %v5734_v9 = vsel %vm2017_vm1, %v5682_v33, 0.0  ;;  %v5688_v12 = vand.u32 2147483647, %v5656_v20 }
 0x644   :  { %v11816_v22 = vsel %vm5865_vm3, %v11630_v52, %v5808_v6  ;;  %v11820_v19 = vsel %vm5865_vm3, %v11633_v61, %v5807_v32  ;;  %v5654_v52 = vsub.f32 %v12501_v62, %v4846_v46  ;;  %v5752_v47 = vsel %vm2017_vm1, %v5688_v12, 0.0 }
 0x645   :  { %v5733_v21 = vpop.xlane.xlu0 %5732 }
 0x646   :  { %v5809_v38 = vmul.f32 0.0625, %v5733_v21  ;;  %v5686_v2 = vand.u32 2147483647, %v5654_v52 }
 0x648   :  { %v11827_v45 = vsel %vm5865_vm3, %v11645_v29, %v5809_v38  ;;  %v12504_v29 = vld [vmem:[#allocation34_spill] sm:$0xff]  ;;  %v5746_v32 = vsel %vm2017_vm1, %v5686_v2, 0.0 }
 0x649   :  { %v5739_v61 = vpop.xlane.xlu0 %5738  ;;  %v4866_v30 = vadd.f32 %v11494_v57, %v12504_v29 }
 0x64a   :  { %v5811_v13 = vmul.f32 0.0625, %v5739_v61  ;;  %5735 = vadd.xlane.f32.xlu1 %v5734_v9 }
 0x64b   :  { %v5658_v42 = vsub.f32 %v12505_v25, %v4866_v30  ;;  %v12511_v30 = vld [vmem:[#allocation145_spill] sm:$0xff] }
 0x64c   :  { %v11835_v8 = vsel %vm5865_vm3, %v11657_v28, %v5811_v13  ;;  %v12506_v28 = vld [vmem:[#allocation36_spill] sm:$0xff] }
 0x64d   :  { %v5745_v7 = vpop.xlane.xlu0 %5744  ;;  %v4876_v5 = vadd.f32 %v11494_v57, %v12506_v28  ;;  %v5690_v11 = vand.u32 2147483647, %v5658_v42  ;;  %v12513_v42 = vld [vmem:[#allocation38_spill] sm:$0xff] }
 0x64e   :  { %v5813_v58 = vmul.f32 0.0625, %v5745_v7  ;;  %5741 = vadd.xlane.f32.xlu1 %v5740_v41  ;;  %v4911_v28 = vadd.f32 %v11494_v57, %v12513_v42 }
 0x64f   :  { %v5660_v46 = vsub.f32 %v12507_v23, %v4876_v5  ;;  %v5758_v2 = vsel %vm2017_vm1, %v5690_v11, 0.0 }
 0x650   :  { %v11843_v40 = vsel %vm5865_vm3, %v11669_v54, %v5813_v58  ;;  %v12508_v54 = vld [vmem:[#allocation33_spill] sm:$0xff] }
 0x651   :  { %v5751_v6 = vpop.xlane.xlu0 %5750  ;;  %v4886_v21 = vadd.f32 %v11494_v57, %v12508_v54  ;;  %v5692_v37 = vand.u32 2147483647, %v5660_v46 }
 0x652   :  { %v5815_v33 = vmul.f32 0.0625, %v5751_v6  ;;  %5747 = vadd.xlane.f32.xlu1 %v5746_v32  ;;  %v12514_v6 = vld [vmem:[#allocation15_spill] sm:$0xff] }
 0x653   :  { %v5662_v61 = vsub.f32 %v12509_v63, %v4886_v21  ;;  %v5764_v12 = vsel %vm2017_vm1, %v5692_v37, 0.0  ;;  %v12516_v21 = vld [vmem:[#allocation12_spill] sm:$0xff]  ;;  %v12518_v63 = vld [vmem:[#allocation18_spill] sm:$0xff] }
 0x654   :  { %v11851_v44 = vsel %vm5865_vm3, %v11681_v31, %v5815_v33  ;;  %v12510_v31 = vld [vmem:[#allocation40_spill] sm:$0xff] }
 0x655   :  { %v5757_v38 = vpop.xlane.xlu0 %5756  ;;  %v4896_v9 = vadd.f32 %v11494_v57, %v12510_v31  ;;  %v5694_v29 = vand.u32 2147483647, %v5662_v61  ;;  %v12515_v33 = vld [vmem:[#allocation8_spill] sm:$0xff]  ;;  %v12519_v31 = vld [vmem:[#allocation11_spill] sm:$0xff] }
 0x656   :  { %v5817_v62 = vmul.f32 0.0625, %v5757_v38  ;;  %5753 = vadd.xlane.f32.xlu1 %v5752_v47  ;;  %v4916_v11 = vadd.f32 %v11494_v57, %v12515_v33  ;;  %v5667_v38 = vsub.f32 %v12516_v21, %v4911_v28  ;;  %v12517_v47 = vld [vmem:[#allocation42_spill] sm:$0xff]  ;;  %v12523_v33 = vld [vmem:[#allocation19_spill] sm:$0xff] }
 0x657   :  { %v5664_v7 = vsub.f32 %v12511_v30, %v4896_v9  ;;  %v5770_v46 = vsel %vm2017_vm1, %v5694_v29, 0.0  ;;  %v4926_v9 = vadd.f32 %v11494_v57, %v12519_v31 }
 0x658   :  { %v11859_v52 = vsel %vm5865_vm3, %v11693_v49, %v5817_v62  ;;  %v12512_v49 = vld [vmem:[#allocation6_spill] sm:$0xff]  ;;  %v4921_v62 = vadd.f32 %v11494_v57, %v12517_v47  ;;  %v5668_v61 = vsub.f32 %v12518_v63, %v4916_v11  ;;  %v5699_v30 = vand.u32 2147483647, %v5667_v38 }
 0x659   :  { %v5763_v13 = vpop.xlane.xlu0 %5762  ;;  %v4906_v41 = vadd.f32 %v11494_v57, %v12512_v49 }
 0x65a   :  { %v5819_v56 = vmul.f32 0.0625, %v5763_v13  ;;  %5759 = vadd.xlane.f32.xlu1 %v5758_v2 }
 0x65b   :  { %v5666_v32 = vsub.f32 %v12514_v6, %v4906_v41  ;;  %v5785_v6 = vsel %vm2017_vm1, %v5699_v30, 0.0 }
 0x65c   :  { %v11867_v20 = vsel %vm5865_vm3, %v11705_v18, %v5819_v56  ;;  %v5696_v18 = vand.u32 2147483647, %v5664_v7  ;;  %v12520_v7 = vld [vmem:[#allocation16_spill] sm:$0xff] }
 0x65d   :  { %v5769_v58 = vpop.xlane.xlu0 %5768  ;;  %v5698_v37 = vand.u32 2147483647, %v5666_v32  ;;  %v5669_v49 = vsub.f32 %v12520_v7, %v4921_v62  ;;  %v12524_v7 = vmov 2  }
 0x65e   :  { %v5821_v25 = vmul.f32 0.0625, %v5769_v58  ;;  %5765 = vadd.xlane.f32.xlu1 %v5764_v12  ;;  %v5776_v2 = vsel %vm2017_vm1, %v5696_v18, 0.0  ;;  %v12521_v58 = vld [vmem:[#allocation7_spill] sm:$0xff] }
 0x65f   :  { %v4931_v12 = vadd.f32 %v11494_v57, %v12521_v58  ;;  %v5782_v28 = vsel %vm2017_vm1, %v5698_v37, 0.0  ;;  %v5701_v32 = vand.u32 2147483647, %v5669_v49 }
 0x660   :  { %v11877_v5 = vsel %vm5865_vm3, %v11717_v50, %v5821_v25  ;;  %v12522_v25 = vld [vmem:[#allocation21_spill] sm:$0xff] }
 0x661   :  { %v5775_v23 = vpop.xlane.xlu0 %5774  ;;  %v5670_v42 = vsub.f32 %v12522_v25, %v4926_v9  ;;  %v5671_v11 = vsub.f32 %v12523_v33, %v4931_v12 }
 0x662   :  { %v5823_v54 = vmul.f32 0.0625, %v5775_v23  ;;  %5771 = vadd.xlane.f32.xlu1 %v5770_v46 }
 0x663   :  { %v5702_v23 = vand.u32 2147483647, %v5670_v42  ;;  %v5703_v46 = vand.u32 2147483647, %v5671_v11 }
 0x664   :  { %v11888_v50 = vsel %vm5865_vm3, %v11729_v53, %v5823_v54  ;;  %v5700_v53 = vand.u32 2147483647, %v5668_v61  ;;  %v5791_v54 = vsel %vm2017_vm1, %v5701_v32, 0.0 }
 0x665   :  { %v5781_v13 = vpop.xlane.xlu0 %5780  ;;  %v5794_v57 = vsel %vm2017_vm1, %v5702_v23, 0.0  ;;  %v5797_v21 = vsel %vm2017_vm1, %v5703_v46, 0.0 }
 0x666   :  { %v5825_v56 = vmul.f32 0.0625, %v5781_v13  ;;  %5777 = vadd.xlane.f32.xlu1 %v5776_v2 }
 0x667   :  { %v5914_v29 = vpop.trf.xlu1 }
 0x668   :  { %v11897_v41 = vsel %vm5865_vm3, %v11739_v10, %v5825_v56  ;;  %5962 = vst [vmem:[#allocation3] sm:$0xff] %v5914_v29  ;;  %v5788_v10 = vsel %vm2017_vm1, %v5700_v53, 0.0 }
 0x66a   :  { %5783 = vadd.xlane.f32.xlu1 %v5782_v28 }
 0x66b   :  { %v5915_v18 = vpop.trf.xlu1 }
 0x66c   :  { %5964 = vst [vmem:[#allocation3 + $0x10] sm:$0xff] %v5915_v18 }
 0x66e   :  { %5789 = vadd.xlane.f32.xlu1 %v5788_v10  ;;  %5786 = vadd.xlane.f32.xlu0 %v5785_v6 }
 0x672   :  { %5795 = vadd.xlane.f32.xlu1 %v5794_v57  ;;  %5792 = vadd.xlane.f32.xlu0 %v5791_v54 }
 0x676   :  { %5798 = vadd.xlane.f32.xlu0 %v5797_v21 }
 0x685   :  { %v5946_v38 = vpop.trf.xlu0 }
 0x686   :  { %5963 = vst [vmem:[#allocation3 + $0x8] sm:$0xff] %v5946_v38 }
 0x689   :  { %v5947_v47 = vpop.trf.xlu0 }
 0x68a   :  { %5965 = vst [vmem:[#allocation3 + $0x18] sm:$0xff] %v5947_v47 }
 0x6a3   :  { %6032 = vxpose.xlu0.b32.start [1/16] (narrow) %v11770_v3, 8 }
 0x6a7   :  { %6033 = vxpose.xlu0.b32.cont [2/16] (narrow) %v11786_v51, 8 }
 0x6ab   :  { %6034 = vxpose.xlu0.b32.cont [3/16] (narrow) %v11783_v35, 8 }
 0x6af   :  { %6035 = vxpose.xlu0.b32.cont [4/16] (narrow) %v11797_v60, 8 }
 0x6b3   :  { %6036 = vxpose.xlu0.b32.cont [5/16] (narrow) %v11794_v17, 8 }
 0x6b7   :  { %6037 = vxpose.xlu0.b32.cont [6/16] (narrow) %v11809_v43, 8 }
 0x6bb   :  { %6038 = vxpose.xlu0.b32.cont [7/16] (narrow) %v11805_v27, 8 }
 0x6bf   :  { %6039 = vxpose.xlu0.b32.cont [8/16] (narrow) %v11820_v19, 8 }
 0x6c3   :  { %6040 = vxpose.xlu0.b32.cont [9/16] (narrow) %v11816_v22, 8 }
 0x6c7   :  { %6041 = vxpose.xlu0.b32.cont [10/16] (narrow) %v11827_v45, 8 }
 0x6d7   :  { %v5736_v62 = vpop.xlane.xlu1 %5735 }
 0x6d8   :  { %v5810_v3 = vmul.f32 0.0625, %v5736_v62 }
 0x6da   :  { %v5876_v51 = vsel %vm5865_vm3, %v11642_v48, %v5810_v3 }
 0x6db   :  { %v5742_v35 = vpop.xlane.xlu1 %5741  ;;  %6042 = vxpose.xlu0.b32.cont [11/16] (narrow) %v5876_v51, 8 }
 0x6dc   :  { %v5812_v60 = vmul.f32 0.0625, %v5742_v35 }
 0x6de   :  { %v5878_v17 = vsel %vm5865_vm3, %v11654_v55, %v5812_v60 }
 0x6df   :  { %v5748_v37 = vpop.xlane.xlu1 %5747  ;;  %6043 = vxpose.xlu0.b32.cont [12/16] (narrow) %v11835_v8, 8 }
 0x6e0   :  { %v5814_v22 = vmul.f32 0.0625, %v5748_v37 }
 0x6e2   :  { %v5880_v48 = vsel %vm5865_vm3, %v11666_v26, %v5814_v22 }
 0x6e3   :  { %v5754_v27 = vpop.xlane.xlu1 %5753  ;;  %6044 = vxpose.xlu0.b32.cont [13/16] (narrow) %v5878_v17, 8 }
 0x6e4   :  { %v5816_v43 = vmul.f32 0.0625, %v5754_v27 }
 0x6e6   :  { %v5882_v19 = vsel %vm5865_vm3, %v11678_v36, %v5816_v43 }
 0x6e7   :  { %6064 = vxpose.xlu1.b32.start [1/16] (narrow) %v5882_v19, 8  ;;  %v5760_v45 = vpop.xlane.xlu1 %5759  ;;  %6045 = vxpose.xlu0.b32.cont [14/16] (narrow) %v11843_v40, 8 }
 0x6e8   :  { %v5818_v63 = vmul.f32 0.0625, %v5760_v45 }
 0x6ea   :  { %v5884_v55 = vsel %vm5865_vm3, %v11690_v59, %v5818_v63 }
 0x6eb   :  { %6046 = vxpose.xlu0.b32.cont [15/16] (narrow) %v5880_v48, 8  ;;  %6065 = vxpose.xlu1.b32.cont [2/16] (narrow) %v11859_v52, 8  ;;  %v5766_v8 = vpop.xlane.xlu1 %5765 }
 0x6ec   :  { %v5820_v61 = vmul.f32 0.0625, %v5766_v8 }
 0x6ee   :  { %v5886_v36 = vsel %vm5865_vm3, %v11702_v16, %v5820_v61 }
 0x6ef   :  { %6047 = vxpose.xlu0.b32.end [16/16] (narrow) %v11851_v44, 8  ;;  %6066 = vxpose.xlu1.b32.cont [3/16] (narrow) %v5884_v55, 8  ;;  %v5772_v40 = vpop.xlane.xlu1 %5771 }
 0x6f0   :  { %v5822_v26 = vmul.f32 0.0625, %v5772_v40 }
 0x6f2   :  { %v5888_v52 = vsel %vm5865_vm3, %v11714_v15, %v5822_v26 }
 0x6f3   :  { %6067 = vxpose.xlu1.b32.cont [4/16] (narrow) %v11867_v20, 8  ;;  %v5778_v31 = vpop.xlane.xlu1 %5777 }
 0x6f4   :  { %v5824_v59 = vmul.f32 0.0625, %v5778_v31 }
 0x6f6   :  { %v5890_v44 = vsel %vm5865_vm3, %v11726_v14, %v5824_v59 }
 0x6f7   :  { %6068 = vxpose.xlu1.b32.cont [5/16] (narrow) %v5886_v36, 8  ;;  %v5784_v20 = vpop.xlane.xlu1 %5783 }
 0x6f8   :  { %v5826_v9 = vmul.f32 0.0625, %v5784_v20 }
 0x6fb   :  { %6069 = vxpose.xlu1.b32.cont [6/16] (narrow) %v11877_v5, 8  ;;  %v5787_v16 = vpop.xlane.xlu0 %5786  ;;  %v5892_v5 = vsel %vm5865_vm3, %v11736_v4, %v5826_v9  ;;  %v5790_v2 = vpop.xlane.xlu1 %5789 }
 0x6fc   :  { %v5827_v13 = vmul.f32 0.0625, %v5787_v16  ;;  %v5828_v15 = vmul.f32 0.0625, %v5790_v2 }
 0x6fe   :  { %v5893_v56 = vsel %vm5865_vm3, %v11749_v24, %v5827_v13  ;;  %v5894_v14 = vsel %vm5865_vm3, %v11746_v1, %v5828_v15 }
 0x6ff   :  { %6070 = vxpose.xlu1.b32.cont [7/16] (narrow) %v5888_v52, 8  ;;  %v5796_v30 = vpop.xlane.xlu1 %5795 }
 0x700   :  { %v5830_v49 = vmul.f32 0.0625, %v5796_v30 }
 0x702   :  { %v5896_v53 = vsel %vm5865_vm3, %v11757_v0, %v5830_v49 }
 0x703   :  { %6071 = vxpose.xlu1.b32.cont [8/16] (narrow) %v11888_v50, 8  ;;  %v5793_v50 = vpop.xlane.xlu0 %5792 }
 0x704   :  { %v5829_v29 = vmul.f32 0.0625, %v5793_v50 }
 0x706   :  { %v5895_v4 = vsel %vm5865_vm3, %v11760_v34, %v5829_v29 }
 0x707   :  { %6072 = vxpose.xlu1.b32.cont [9/16] (narrow) %v5890_v44, 8 }
 0x70b   :  { %6073 = vxpose.xlu1.b32.cont [10/16] (narrow) %v11897_v41, 8  ;;  %v5799_v41 = vpop.xlane.xlu0 %5798 }
 0x70c   :  { %v5831_v24 = vmul.f32 0.0625, %v5799_v41 }
 0x70e   :  { %v5897_v58 = vsel %vm5865_vm3, %v11773_v39, %v5831_v24 }
 0x70f   :  { %6074 = vxpose.xlu1.b32.cont [11/16] (narrow) %v5892_v5, 8 }
 0x713   :  { %6075 = vxpose.xlu1.b32.cont [12/16] (narrow) %v5893_v56, 8 }
 0x717   :  { %6076 = vxpose.xlu1.b32.cont [13/16] (narrow) %v5894_v14, 8 }
 0x718   :  { %7761 = vset.pattern.permute.xlu0 %v12524_v7 }
 0x71b   :  { %6077 = vxpose.xlu1.b32.cont [14/16] (narrow) %v5895_v4, 8 }
 0x71f   :  { %6078 = vxpose.xlu1.b32.cont [15/16] (narrow) %v5896_v53, 8 }
 0x723   :  { %6079 = vxpose.xlu1.b32.end [16/16] (narrow) %v5897_v58, 8 }
 0x733   :  { %v6048_v1 = vpop.trf.xlu0 }
 0x734   :  { %v6098_v12 = vrot.slane %v6048_v1, 5 }
 0x736   :  { %6102 = vst [vmem:[#allocation3 + $0x20] sm:$0x38] %v6098_v12 }
 0x767   :  { %v6080_v25 = vpop.trf.xlu1 }
 0x768   :  { %v6099_v42 = vrot.slane %v6080_v25, 5 }
 0x76a   :  { %6103 = vst [vmem:[#allocation3 + $0x28] sm:$0x38] %v6099_v42 }
 0x76b   :  { %8014 = shalt.err (!%p8011_p4)
}
 0x76c   :  { %s8015_s27 = scalar_lea.hbm %s11979_s11, 768 }
 0x76d   :  { %p8016_p5 = scmp.ne.s32.totalorder %s11979_s11, %s8015_s27  ;;  %p8019_p6 = scmp.lt.u32.totalorder %s8015_s27, %s11979_s11 }
 0x76f   :  { %p8021_p7 = pnand %p8019_p6, %p8016_p5 }
 0x771   :  { %8024 = shalt.err (!%p8021_p7)
}
 0x772   :  { %s8033_s13 = smov 256   ;;  %s8034_s1 = smov 16  }
 0x773   :  { %6115 = dma.vmem_to_hbm [thread:$0]  %s6110_s24, 768, %s11979_s11, [#allocation4], %s8033_s13, %s8033_s13, %s8034_s1  }
 0x774   :  { %8025 = dma.done.wait [#allocation4], 768  }
 0x775   :  { %8026 = vsyncadd [#allocation4], 4294966528 }
 0x776   :  { %6119 = vsyncpa [#allocation4], 1 }

</bundles_post_ra>
